<compile_context>
chip_gen: v7x
topology: tpu7x:2x2x1
jax: 0.10.0
libtpu: 0.0.40
codegen_flags: <defaults>
</compile_context>

<pallas_src>
import functools

import numpy as np
import jax
import jax.numpy as jnp
from jax import lax
from jax.experimental import pallas as pl
from jax.experimental.pallas import tpu as pltpu

K = 3  # every (transposed) conv in the model is 3x3, stride 2, pad 1

# (c_in, c_out, is_transposed) for the six layers of Autoencoder_3.
_LAYERS = (
    (4, 64, False),
    (64, 128, False),
    (128, 256, False),
    (256, 128, True),
    (128, 64, True),
    (64, 3, True),
)


def _round8(n):
    return ((n + 7) // 8) * 8


def _build_gather_selector(h_in, w_in, h_out, w_out, stride=2, pad=1):
    """0/1 matrix (n_in, 9*n_out): act(C, n_in) @ S = im2col of all 9 taps.

    Columns are ordered (tap, out_pixel).  Each column has at most one nonzero,
    so the gather result is exact even after a bf16 round trip.
    """
    n_in, n_out = h_in * w_in, h_out * w_out
    s = np.zeros((n_in, K * K, n_out), np.float32)
    for ki in range(K):
        for kj in range(K):
            t = ki * K + kj
            for oy in range(h_out):
                iy = oy * stride - pad + ki
                if not 0 <= iy < h_in:
                    continue
                for ox in range(w_out):
                    ix = ox * stride - pad + kj
                    if 0 <= ix < w_in:
                        s[iy * w_in + ix, t, oy * w_out + ox] = 1.0
    s = s.reshape(n_in, K * K * n_out)
    assert s.sum(axis=0).max() <= 1.0, "gather selector must pick <=1 input per column"
    return s


def _build_scatter_selector(h_in, w_in, h_out, w_out, stride=2, pad=1):
    """0/1 matrix (9*n_in, n_out): Z(C, 9*n_in) @ S = ConvTranspose2d scatter-add.

    Rows ordered (tap, in_pixel); row (t=(ki,kj), p=(iy,ix)) hits output pixel
    (iy*2-1+ki, ix*2-1+kj) when it is in range (PyTorch s=2, p=1, op=1 mapping).
    """
    n_in, n_out = h_in * w_in, h_out * w_out
    s = np.zeros((K * K, n_in, n_out), np.float32)
    for ki in range(K):
        for kj in range(K):
            t = ki * K + kj
            for iy in range(h_in):
                oy = iy * stride - pad + ki
                if not 0 <= oy < h_out:
                    continue
                for ix in range(w_in):
                    ox = ix * stride - pad + kj
                    if 0 <= ox < w_out:
                        s[t, iy * w_in + ix, oy * w_out + ox] = 1.0
    return s.reshape(K * K * n_in, n_out)


def _autoencoder_kernel(*refs, layer_meta):
    """refs = (x, [S, W_fused, bias] * 6, out, enc_scratch, dec_scratch). One grid step = one image."""
    n_layers = len(layer_meta)
    x_ref = refs[0]
    out_ref = refs[1 + 3 * n_layers]
    enc_scr = refs[2 + 3 * n_layers]        # (9*c_in_p_max, n_out_max)  bf16
    dec_scr = refs[3 + 3 * n_layers]        # (c_out_p_max, 9*n_in_max)  bf16

    act = x_ref[0].astype(jnp.bfloat16)     # (c_in_pad, n_pix) channel-major
    for layer, (transposed, n_in, n_out, c_in_p, c_out_p, c_out) in enumerate(layer_meta):
        s_ref = refs[1 + 3 * layer]
        w_ref = refs[2 + 3 * layer]
        b_ref = refs[3 + 3 * layer]
        if not transposed:
            # --- Conv2d: gather first (low-res side), then one fused mix matmul ---
            g = jnp.dot(act, s_ref[...], preferred_element_type=jnp.float32)
            g = g.astype(jnp.bfloat16)      # exact: <=1 selected act per column
            # Move the tap axis onto the contraction axis via a tiny VMEM reorder.
            for t in range(K * K):
                enc_scr[t * c_in_p:(t + 1) * c_in_p, 0:n_out] = \
                    g[:, t * n_out:(t + 1) * n_out]
            y = jnp.dot(w_ref[...], enc_scr[0:K * K * c_in_p, 0:n_out],
                        preferred_element_type=jnp.float32)
        else:
            # --- ConvTranspose2d: channel mix at LOW resolution, then fused scatter ---
            z = jnp.dot(w_ref[...], act, preferred_element_type=jnp.float32)
            z = z.astype(jnp.bfloat16)
            for t in range(K * K):
                dec_scr[0:c_out_p, t * n_in:(t + 1) * n_in] = \
                    z[t * c_out_p:(t + 1) * c_out_p, :]
            y = jnp.dot(dec_scr[0:c_out_p, 0:K * K * n_in], s_ref[...],
                        preferred_element_type=jnp.float32)
        y = y + b_ref[...]                  # bias broadcast over pixels (f32)
        if layer == n_layers - 1:
            # drop the padded output channels; store stays lane-dense (3, H*W)
            out_ref[0] = jax.nn.sigmoid(y[0:c_out, :]).astype(out_ref.dtype)
        else:
            act = jnp.maximum(y, 0.0).astype(jnp.bfloat16)


def forward(x_nchw, kernel_params, layer_meta):
    """x_nchw: (B, 4, H, W) -> (B, 3, H, W)."""
    b, c0, h, w = x_nchw.shape
    n_pix = h * w
    c0_pad = layer_meta[0][3]
    c_last = layer_meta[-1][5]
    n_last = layer_meta[-1][2]

    x = x_nchw.reshape(b, c0, n_pix)                  # free view: channel-major pixels
    if c0_pad != c0:                                  # 4 -> 8 channels: 8-row aligned reorders
        x = jnp.pad(x, ((0, 0), (0, c0_pad - c0), (0, 0)))

    in_specs = [pl.BlockSpec((1, c0_pad, n_pix), lambda i: (i, 0, 0))]
    for p in kernel_params:                           # whole-array constant blocks ->
        in_specs.append(                              # stay VMEM-resident across grid steps
            pl.BlockSpec(p.shape, lambda i, _n=p.ndim: (0,) * _n))

    enc_rows = max(K * K * m[3] for m in layer_meta if not m[0])
    enc_cols = max(m[2] for m in layer_meta if not m[0])
    dec_rows = max(m[4] for m in layer_meta if m[0])
    dec_cols = max(K * K * m[1] for m in layer_meta if m[0])

    out = pl.pallas_call(
        functools.partial(_autoencoder_kernel, layer_meta=tuple(layer_meta)),
        grid=(b,),
        in_specs=in_specs,
        out_specs=pl.BlockSpec((1, c_last, n_last), lambda i: (i, 0, 0)),
        out_shape=jax.ShapeDtypeStruct((b, c_last, n_last), jnp.float32),
        scratch_shapes=[pltpu.VMEM((enc_rows, enc_cols), jnp.bfloat16),
                        pltpu.VMEM((dec_rows, dec_cols), jnp.bfloat16)],
        compiler_params=pltpu.CompilerParams(
            dimension_semantics=("parallel",)),       # one image per TensorCore on v7x
    )(x, *kernel_params)
    return out.reshape(b, c_last, h, w)


def init_params(key, h=16, w=16):
    """Returns (kernel_params, layer_meta, torch_params).

    kernel_params: flat tuple [S, W_fused, bias] * 6 pre-packed for the kernel
                   (S, W_fused bf16; bias (c_out_pad, 1) f32).
    layer_meta:    static per-layer ints (transposed, n_in, n_out, c_in_pad, c_out_pad, c_out).
    torch_params:  [(weight, bias, transposed)] * 6 in PyTorch layout for the XLA reference.
    """
    kernel_params, layer_meta, torch_params = [], [], []
    cur_h, cur_w = h, w
    for c_in, c_out, transposed in _LAYERS:
        key, kw, kb = jax.random.split(key, 3)
        bound = 1.0 / np.sqrt(c_in * K * K)
        if transposed:
            w_shape = (c_in, c_out, K, K)             # PyTorch ConvTranspose2d layout
            h_out, w_out = 2 * cur_h, 2 * cur_w       # (s=2, p=1, output_padding=1)
        else:
            w_shape = (c_out, c_in, K, K)             # PyTorch Conv2d layout
            h_out = (cur_h + 2 - K) // 2 + 1
            w_out = (cur_w + 2 - K) // 2 + 1
        w_t = jax.random.uniform(kw, w_shape, jnp.float32, -bound, bound)
        b_t = jax.random.uniform(kb, (c_out,), jnp.float32, -bound, bound)
        torch_params.append((w_t, b_t, transposed))

        n_in, n_out = cur_h * cur_w, h_out * w_out
        w_np = np.asarray(w_t)
        if not transposed:
            c_in_p, c_out_p = _round8(c_in), c_out
            s = _build_gather_selector(cur_h, cur_w, h_out, w_out)
            # W_fused[co, t*c_in_p + ci] = W[co, ci, ki, kj] (padded ci columns are zero)
            wf = np.zeros((c_out, K * K, c_in_p), np.float32)
            wf[:, :, :c_in] = w_np.transpose(0, 2, 3, 1).reshape(c_out, K * K, c_in)
            wf = wf.reshape(c_out, K * K * c_in_p)
            bf = np.asarray(b_t).reshape(c_out, 1)
        else:
            c_in_p, c_out_p = c_in, _round8(c_out)
            s = _build_scatter_selector(cur_h, cur_w, h_out, w_out)
            # W_fused[t*c_out_p + co, ci] = W[ci, co, ki, kj] (padded co rows are zero)
            wf = np.zeros((K * K, c_out_p, c_in), np.float32)
            wf[:, :c_out, :] = w_np.transpose(2, 3, 1, 0).reshape(K * K, c_out, c_in)
            wf = wf.reshape(K * K * c_out_p, c_in)
            bf = np.zeros((c_out_p, 1), np.float32)
            bf[:c_out, 0] = np.asarray(b_t)
        kernel_params += [jnp.asarray(s, jnp.bfloat16),
                          jnp.asarray(wf, jnp.bfloat16),
                          jnp.asarray(bf, jnp.float32)]
        layer_meta.append((transposed, n_in, n_out, c_in_p, c_out_p, c_out))
        cur_h, cur_w = h_out, w_out
    return tuple(kernel_params), tuple(layer_meta), torch_params


def reference_forward(x, torch_params):
    """Pure-XLA reference (lax convolutions) for the correctness check."""
    y = x
    n = len(torch_params)
    for i, (w_t, b_t, transposed) in enumerate(torch_params):
        if transposed:
            # ConvTranspose2d(s=2, p=1, op=1) == stride-1 conv over the 2x zero-
            # dilated input, padded (k-1-p, k-1-p+op), flipped kernel, in/out swapped.
            w_conv = jnp.transpose(w_t[:, :, ::-1, ::-1], (1, 0, 2, 3))
            y = lax.conv_general_dilated(
                y, w_conv, window_strides=(1, 1), padding=((1, 2), (1, 2)),
                lhs_dilation=(2, 2), dimension_numbers=("NCHW", "OIHW", "NCHW"))
        else:
            y = lax.conv_general_dilated(
                y, w_t, window_strides=(2, 2), padding=((1, 1), (1, 1)),
                dimension_numbers=("NCHW", "OIHW", "NCHW"))
        y = y + b_t.reshape(1, -1, 1, 1)
        y = jax.nn.sigmoid(y) if i == n - 1 else jnp.maximum(y, 0.0)
    return y


if __name__ == "__main__":
    key = jax.random.PRNGKey(0)
    k_param, k_x = jax.random.split(key)

    kernel_params, layer_meta, torch_params = init_params(k_param, h=16, w=16)
    x = jax.random.normal(k_x, (2, 4, 16, 16), jnp.float32)

    fwd = jax.jit(functools.partial(forward, layer_meta=layer_meta))
    out = jax.block_until_ready(fwd(x, kernel_params))

    assert out.shape == (2, 3, 16, 16), out.shape
    assert bool(jnp.all((out >= 0.0) & (out <= 1.0)))          # sigmoid range

    ref = jax.block_until_ready(reference_forward(x, torch_params))
    max_err = float(jnp.max(jnp.abs(out - ref)))
    assert max_err < 5e-2, f"kernel vs reference max |err| = {max_err}"
    print("KERNEL_OK")
</pallas_src>

<mosaic_0001>
module attributes {stable_mosaic.version = 11 : i64} {
  func.func @_autoencoder_kernel(%arg0: i32, %arg1: memref<1x8x256xf32, #tpu.memory_space<vmem>>, %arg2: memref<256x576xbf16, #tpu.memory_space<vmem>>, %arg3: memref<64x72xbf16, #tpu.memory_space<vmem>>, %arg4: memref<64x1xf32, #tpu.memory_space<vmem>>, %arg5: memref<64x144xbf16, #tpu.memory_space<vmem>>, %arg6: memref<128x576xbf16, #tpu.memory_space<vmem>>, %arg7: memref<128x1xf32, #tpu.memory_space<vmem>>, %arg8: memref<16x36xbf16, #tpu.memory_space<vmem>>, %arg9: memref<256x1152xbf16, #tpu.memory_space<vmem>>, %arg10: memref<256x1xf32, #tpu.memory_space<vmem>>, %arg11: memref<36x16xbf16, #tpu.memory_space<vmem>>, %arg12: memref<1152x256xbf16, #tpu.memory_space<vmem>>, %arg13: memref<128x1xf32, #tpu.memory_space<vmem>>, %arg14: memref<144x64xbf16, #tpu.memory_space<vmem>>, %arg15: memref<576x128xbf16, #tpu.memory_space<vmem>>, %arg16: memref<64x1xf32, #tpu.memory_space<vmem>>, %arg17: memref<576x256xbf16, #tpu.memory_space<vmem>>, %arg18: memref<72x64xbf16, #tpu.memory_space<vmem>>, %arg19: memref<8x1xf32, #tpu.memory_space<vmem>>, %arg20: memref<1x3x256xf32, #tpu.memory_space<vmem>>, %arg21: memref<1152x64xbf16, #tpu.memory_space<vmem>>, %arg22: memref<128x576xbf16, #tpu.memory_space<vmem>>) attributes {dimension_semantics = [#tpu.dimension_semantics<parallel>], iteration_bounds = array<i64: 2>, scalar_prefetch = 0 : i64, scratch_operands = 2 : i64, tpu.core_type = #tpu.core_type<tc>, window_params = [{transform_indices = @transform_0, window_bounds = array<i64: 1, 8, 256>}, {pipeline_mode = #tpu.pipeline_mode<synchronous>, transform_indices = @transform_1, window_bounds = array<i64: 256, 576>}, {pipeline_mode = #tpu.pipeline_mode<synchronous>, transform_indices = @transform_2, window_bounds = array<i64: 64, 72>}, {pipeline_mode = #tpu.pipeline_mode<synchronous>, transform_indices = @transform_3, window_bounds = array<i64: 64, 1>}, {pipeline_mode = #tpu.pipeline_mode<synchronous>, transform_indices = @transform_4, window_bounds = array<i64: 64, 144>}, {pipeline_mode = #tpu.pipeline_mode<synchronous>, transform_indices = @transform_5, window_bounds = array<i64: 128, 576>}, {pipeline_mode = #tpu.pipeline_mode<synchronous>, transform_indices = @transform_6, window_bounds = array<i64: 128, 1>}, {pipeline_mode = #tpu.pipeline_mode<synchronous>, transform_indices = @transform_7, window_bounds = array<i64: 16, 36>}, {pipeline_mode = #tpu.pipeline_mode<synchronous>, transform_indices = @transform_8, window_bounds = array<i64: 256, 1152>}, {pipeline_mode = #tpu.pipeline_mode<synchronous>, transform_indices = @transform_9, window_bounds = array<i64: 256, 1>}, {pipeline_mode = #tpu.pipeline_mode<synchronous>, transform_indices = @transform_10, window_bounds = array<i64: 36, 16>}, {pipeline_mode = #tpu.pipeline_mode<synchronous>, transform_indices = @transform_11, window_bounds = array<i64: 1152, 256>}, {pipeline_mode = #tpu.pipeline_mode<synchronous>, transform_indices = @transform_12, window_bounds = array<i64: 128, 1>}, {pipeline_mode = #tpu.pipeline_mode<synchronous>, transform_indices = @transform_13, window_bounds = array<i64: 144, 64>}, {pipeline_mode = #tpu.pipeline_mode<synchronous>, transform_indices = @transform_14, window_bounds = array<i64: 576, 128>}, {pipeline_mode = #tpu.pipeline_mode<synchronous>, transform_indices = @transform_15, window_bounds = array<i64: 64, 1>}, {pipeline_mode = #tpu.pipeline_mode<synchronous>, transform_indices = @transform_16, window_bounds = array<i64: 576, 256>}, {pipeline_mode = #tpu.pipeline_mode<synchronous>, transform_indices = @transform_17, window_bounds = array<i64: 72, 64>}, {pipeline_mode = #tpu.pipeline_mode<synchronous>, transform_indices = @transform_18, window_bounds = array<i64: 8, 1>}, {transform_indices = @transform_19, window_bounds = array<i64: 1, 3, 256>}]} {
    %c0 = arith.constant 0 : index
    %c0_0 = arith.constant 0 : index
    %c0_1 = arith.constant 0 : index
    %0 = vector.load %arg1[%c0, %c0_0, %c0_1] : memref<1x8x256xf32, #tpu.memory_space<vmem>>, vector<1x8x256xf32>
    %1 = vector.shape_cast %0 : vector<1x8x256xf32> to vector<8x256xf32>
    %2 = arith.truncf %1 : vector<8x256xf32> to vector<8x256xbf16>
    %c0_2 = arith.constant 0 : index
    %c0_3 = arith.constant 0 : index
    %3 = vector.load %arg2[%c0_2, %c0_3] : memref<256x576xbf16, #tpu.memory_space<vmem>>, vector<256x576xbf16>
    %cst = arith.constant dense<0.000000e+00> : vector<8x576xf32>
    %4 = tpu.matmul %2, %3, %cst {dimension_numbers = #tpu.dot_dimension_numbers<[1], [0], [0], [1], [0, 0, 1, 1], [], []>} : vector<8x256xbf16>, vector<256x576xbf16>, vector<8x576xf32> -> vector<8x576xf32>
    %5 = arith.truncf %4 : vector<8x576xf32> to vector<8x576xbf16>
    %6 = vector.extract_strided_slice %5 {offsets = [0, 0], sizes = [8, 64], strides = [1, 1]} : vector<8x576xbf16> to vector<8x64xbf16>
    %c0_4 = arith.constant 0 : index
    %c0_5 = arith.constant 0 : index
    %7 = vector.load %arg21[%c0_4, %c0_5] : memref<1152x64xbf16, #tpu.memory_space<vmem>>, vector<8x64xbf16>
    tpu.vector_store %arg21[%c0_4, %c0_5], %6 {strides = array<i32>} : memref<1152x64xbf16, #tpu.memory_space<vmem>>, vector<8x64xbf16>,
    %8 = vector.extract_strided_slice %5 {offsets = [0, 64], sizes = [8, 64], strides = [1, 1]} : vector<8x576xbf16> to vector<8x64xbf16>
    %c8 = arith.constant 8 : index
    %c0_6 = arith.constant 0 : index
    %9 = vector.load %arg21[%c8, %c0_6] : memref<1152x64xbf16, #tpu.memory_space<vmem>>, vector<8x64xbf16>
    tpu.vector_store %arg21[%c8, %c0_6], %8 {strides = array<i32>} : memref<1152x64xbf16, #tpu.memory_space<vmem>>, vector<8x64xbf16>,
    %10 = vector.extract_strided_slice %5 {offsets = [0, 128], sizes = [8, 64], strides = [1, 1]} : vector<8x576xbf16> to vector<8x64xbf16>
    %c16 = arith.constant 16 : index
    %c0_7 = arith.constant 0 : index
    %11 = vector.load %arg21[%c16, %c0_7] : memref<1152x64xbf16, #tpu.memory_space<vmem>>, vector<8x64xbf16>
    tpu.vector_store %arg21[%c16, %c0_7], %10 {strides = array<i32>} : memref<1152x64xbf16, #tpu.memory_space<vmem>>, vector<8x64xbf16>,
    %12 = vector.extract_strided_slice %5 {offsets = [0, 192], sizes = [8, 64], strides = [1, 1]} : vector<8x576xbf16> to vector<8x64xbf16>
    %c24 = arith.constant 24 : index
    %c0_8 = arith.constant 0 : index
    %13 = vector.load %arg21[%c24, %c0_8] : memref<1152x64xbf16, #tpu.memory_space<vmem>>, vector<8x64xbf16>
    tpu.vector_store %arg21[%c24, %c0_8], %12 {strides = array<i32>} : memref<1152x64xbf16, #tpu.memory_space<vmem>>, vector<8x64xbf16>,
    %14 = vector.extract_strided_slice %5 {offsets = [0, 256], sizes = [8, 64], strides = [1, 1]} : vector<8x576xbf16> to vector<8x64xbf16>
    %c32 = arith.constant 32 : index
    %c0_9 = arith.constant 0 : index
    %15 = vector.load %arg21[%c32, %c0_9] : memref<1152x64xbf16, #tpu.memory_space<vmem>>, vector<8x64xbf16>
    tpu.vector_store %arg21[%c32, %c0_9], %14 {strides = array<i32>} : memref<1152x64xbf16, #tpu.memory_space<vmem>>, vector<8x64xbf16>,
    %16 = vector.extract_strided_slice %5 {offsets = [0, 320], sizes = [8, 64], strides = [1, 1]} : vector<8x576xbf16> to vector<8x64xbf16>
    %c40 = arith.constant 40 : index
    %c0_10 = arith.constant 0 : index
    %17 = vector.load %arg21[%c40, %c0_10] : memref<1152x64xbf16, #tpu.memory_space<vmem>>, vector<8x64xbf16>
    tpu.vector_store %arg21[%c40, %c0_10], %16 {strides = array<i32>} : memref<1152x64xbf16, #tpu.memory_space<vmem>>, vector<8x64xbf16>,
    %18 = vector.extract_strided_slice %5 {offsets = [0, 384], sizes = [8, 64], strides = [1, 1]} : vector<8x576xbf16> to vector<8x64xbf16>
    %c48 = arith.constant 48 : index
    %c0_11 = arith.constant 0 : index
    %19 = vector.load %arg21[%c48, %c0_11] : memref<1152x64xbf16, #tpu.memory_space<vmem>>, vector<8x64xbf16>
    tpu.vector_store %arg21[%c48, %c0_11], %18 {strides = array<i32>} : memref<1152x64xbf16, #tpu.memory_space<vmem>>, vector<8x64xbf16>,
    %20 = vector.extract_strided_slice %5 {offsets = [0, 448], sizes = [8, 64], strides = [1, 1]} : vector<8x576xbf16> to vector<8x64xbf16>
    %c56 = arith.constant 56 : index
    %c0_12 = arith.constant 0 : index
    %21 = vector.load %arg21[%c56, %c0_12] : memref<1152x64xbf16, #tpu.memory_space<vmem>>, vector<8x64xbf16>
    tpu.vector_store %arg21[%c56, %c0_12], %20 {strides = array<i32>} : memref<1152x64xbf16, #tpu.memory_space<vmem>>, vector<8x64xbf16>,
    %22 = vector.extract_strided_slice %5 {offsets = [0, 512], sizes = [8, 64], strides = [1, 1]} : vector<8x576xbf16> to vector<8x64xbf16>
    %c64 = arith.constant 64 : index
    %c0_13 = arith.constant 0 : index
    %23 = vector.load %arg21[%c64, %c0_13] : memref<1152x64xbf16, #tpu.memory_space<vmem>>, vector<8x64xbf16>
    tpu.vector_store %arg21[%c64, %c0_13], %22 {strides = array<i32>} : memref<1152x64xbf16, #tpu.memory_space<vmem>>, vector<8x64xbf16>,
    %c0_14 = arith.constant 0 : index
    %c0_15 = arith.constant 0 : index
    %24 = vector.load %arg3[%c0_14, %c0_15] : memref<64x72xbf16, #tpu.memory_space<vmem>>, vector<64x72xbf16>
    %c0_16 = arith.constant 0 : index
    %c0_17 = arith.constant 0 : index
    %25 = vector.load %arg21[%c0_16, %c0_17] : memref<1152x64xbf16, #tpu.memory_space<vmem>>, vector<72x64xbf16>
    %cst_18 = arith.constant dense<0.000000e+00> : vector<64x64xf32>
    %26 = tpu.matmul %24, %25, %cst_18 {dimension_numbers = #tpu.dot_dimension_numbers<[1], [0], [0], [1], [0, 0, 1, 1], [], []>} : vector<64x72xbf16>, vector<72x64xbf16>, vector<64x64xf32> -> vector<64x64xf32>
    %c0_19 = arith.constant 0 : index
    %c0_20 = arith.constant 0 : index
    %27 = vector.load %arg4[%c0_19, %c0_20] : memref<64x1xf32, #tpu.memory_space<vmem>>, vector<64x1xf32>
    %28 = vector.broadcast %27 : vector<64x1xf32> to vector<64x64xf32>
    %29 = arith.addf %26, %28 : vector<64x64xf32>
    %cst_21 = arith.constant 0.000000e+00 : f32
    %30 = vector.broadcast %cst_21 : f32 to vector<64x64xf32>
    %31 = arith.maximumf %29, %30 : vector<64x64xf32>
    %32 = arith.truncf %31 : vector<64x64xf32> to vector<64x64xbf16>
    %c0_22 = arith.constant 0 : index
    %c0_23 = arith.constant 0 : index
    %33 = vector.load %arg5[%c0_22, %c0_23] : memref<64x144xbf16, #tpu.memory_space<vmem>>, vector<64x144xbf16>
    %cst_24 = arith.constant dense<0.000000e+00> : vector<64x144xf32>
    %34 = tpu.matmul %32, %33, %cst_24 {dimension_numbers = #tpu.dot_dimension_numbers<[1], [0], [0], [1], [0, 0, 1, 1], [], []>} : vector<64x64xbf16>, vector<64x144xbf16>, vector<64x144xf32> -> vector<64x144xf32>
    %35 = arith.truncf %34 : vector<64x144xf32> to vector<64x144xbf16>
    %36 = vector.extract_strided_slice %35 {offsets = [0, 0], sizes = [64, 16], strides = [1, 1]} : vector<64x144xbf16> to vector<64x16xbf16>
    %c0_25 = arith.constant 0 : index
    %c0_26 = arith.constant 0 : index
    %37 = vector.load %arg21[%c0_25, %c0_26] : memref<1152x64xbf16, #tpu.memory_space<vmem>>, vector<64x16xbf16>
    tpu.vector_store %arg21[%c0_25, %c0_26], %36 {strides = array<i32>} : memref<1152x64xbf16, #tpu.memory_space<vmem>>, vector<64x16xbf16>,
    %38 = vector.extract_strided_slice %35 {offsets = [0, 16], sizes = [64, 16], strides = [1, 1]} : vector<64x144xbf16> to vector<64x16xbf16>
    %c64_27 = arith.constant 64 : index
    %c0_28 = arith.constant 0 : index
    %39 = vector.load %arg21[%c64_27, %c0_28] : memref<1152x64xbf16, #tpu.memory_space<vmem>>, vector<64x16xbf16>
    tpu.vector_store %arg21[%c64_27, %c0_28], %38 {strides = array<i32>} : memref<1152x64xbf16, #tpu.memory_space<vmem>>, vector<64x16xbf16>,
    %40 = vector.extract_strided_slice %35 {offsets = [0, 32], sizes = [64, 16], strides = [1, 1]} : vector<64x144xbf16> to vector<64x16xbf16>
    %c128 = arith.constant 128 : index
    %c0_29 = arith.constant 0 : index
    %41 = vector.load %arg21[%c128, %c0_29] : memref<1152x64xbf16, #tpu.memory_space<vmem>>, vector<64x16xbf16>
    tpu.vector_store %arg21[%c128, %c0_29], %40 {strides = array<i32>} : memref<1152x64xbf16, #tpu.memory_space<vmem>>, vector<64x16xbf16>,
    %42 = vector.extract_strided_slice %35 {offsets = [0, 48], sizes = [64, 16], strides = [1, 1]} : vector<64x144xbf16> to vector<64x16xbf16>
    %c192 = arith.constant 192 : index
    %c0_30 = arith.constant 0 : index
    %43 = vector.load %arg21[%c192, %c0_30] : memref<1152x64xbf16, #tpu.memory_space<vmem>>, vector<64x16xbf16>
    tpu.vector_store %arg21[%c192, %c0_30], %42 {strides = array<i32>} : memref<1152x64xbf16, #tpu.memory_space<vmem>>, vector<64x16xbf16>,
    %44 = vector.extract_strided_slice %35 {offsets = [0, 64], sizes = [64, 16], strides = [1, 1]} : vector<64x144xbf16> to vector<64x16xbf16>
    %c256 = arith.constant 256 : index
    %c0_31 = arith.constant 0 : index
    %45 = vector.load %arg21[%c256, %c0_31] : memref<1152x64xbf16, #tpu.memory_space<vmem>>, vector<64x16xbf16>
    tpu.vector_store %arg21[%c256, %c0_31], %44 {strides = array<i32>} : memref<1152x64xbf16, #tpu.memory_space<vmem>>, vector<64x16xbf16>,
    %46 = vector.extract_strided_slice %35 {offsets = [0, 80], sizes = [64, 16], strides = [1, 1]} : vector<64x144xbf16> to vector<64x16xbf16>
    %c320 = arith.constant 320 : index
    %c0_32 = arith.constant 0 : index
    %47 = vector.load %arg21[%c320, %c0_32] : memref<1152x64xbf16, #tpu.memory_space<vmem>>, vector<64x16xbf16>
    tpu.vector_store %arg21[%c320, %c0_32], %46 {strides = array<i32>} : memref<1152x64xbf16, #tpu.memory_space<vmem>>, vector<64x16xbf16>,
    %48 = vector.extract_strided_slice %35 {offsets = [0, 96], sizes = [64, 16], strides = [1, 1]} : vector<64x144xbf16> to vector<64x16xbf16>
    %c384 = arith.constant 384 : index
    %c0_33 = arith.constant 0 : index
    %49 = vector.load %arg21[%c384, %c0_33] : memref<1152x64xbf16, #tpu.memory_space<vmem>>, vector<64x16xbf16>
    tpu.vector_store %arg21[%c384, %c0_33], %48 {strides = array<i32>} : memref<1152x64xbf16, #tpu.memory_space<vmem>>, vector<64x16xbf16>,
    %50 = vector.extract_strided_slice %35 {offsets = [0, 112], sizes = [64, 16], strides = [1, 1]} : vector<64x144xbf16> to vector<64x16xbf16>
    %c448 = arith.constant 448 : index
    %c0_34 = arith.constant 0 : index
    %51 = vector.load %arg21[%c448, %c0_34] : memref<1152x64xbf16, #tpu.memory_space<vmem>>, vector<64x16xbf16>
    tpu.vector_store %arg21[%c448, %c0_34], %50 {strides = array<i32>} : memref<1152x64xbf16, #tpu.memory_space<vmem>>, vector<64x16xbf16>,
    %52 = vector.extract_strided_slice %35 {offsets = [0, 128], sizes = [64, 16], strides = [1, 1]} : vector<64x144xbf16> to vector<64x16xbf16>
    %c512 = arith.constant 512 : index
    %c0_35 = arith.constant 0 : index
    %53 = vector.load %arg21[%c512, %c0_35] : memref<1152x64xbf16, #tpu.memory_space<vmem>>, vector<64x16xbf16>
    tpu.vector_store %arg21[%c512, %c0_35], %52 {strides = array<i32>} : memref<1152x64xbf16, #tpu.memory_space<vmem>>, vector<64x16xbf16>,
    %c0_36 = arith.constant 0 : index
    %c0_37 = arith.constant 0 : index
    %54 = vector.load %arg6[%c0_36, %c0_37] : memref<128x576xbf16, #tpu.memory_space<vmem>>, vector<128x576xbf16>
    %c0_38 = arith.constant 0 : index
    %c0_39 = arith.constant 0 : index
    %55 = vector.load %arg21[%c0_38, %c0_39] : memref<1152x64xbf16, #tpu.memory_space<vmem>>, vector<576x16xbf16>
    %cst_40 = arith.constant dense<0.000000e+00> : vector<128x16xf32>
    %56 = tpu.matmul %54, %55, %cst_40 {dimension_numbers = #tpu.dot_dimension_numbers<[1], [0], [0], [1], [0, 0, 1, 1], [], []>} : vector<128x576xbf16>, vector<576x16xbf16>, vector<128x16xf32> -> vector<128x16xf32>
    %c0_41 = arith.constant 0 : index
    %c0_42 = arith.constant 0 : index
    %57 = vector.load %arg7[%c0_41, %c0_42] : memref<128x1xf32, #tpu.memory_space<vmem>>, vector<128x1xf32>
    %58 = vector.broadcast %57 : vector<128x1xf32> to vector<128x16xf32>
    %59 = arith.addf %56, %58 : vector<128x16xf32>
    %cst_43 = arith.constant 0.000000e+00 : f32
    %60 = vector.broadcast %cst_43 : f32 to vector<128x16xf32>
    %61 = arith.maximumf %59, %60 : vector<128x16xf32>
    %62 = arith.truncf %61 : vector<128x16xf32> to vector<128x16xbf16>
    %c0_44 = arith.constant 0 : index
    %c0_45 = arith.constant 0 : index
    %63 = vector.load %arg8[%c0_44, %c0_45] : memref<16x36xbf16, #tpu.memory_space<vmem>>, vector<16x36xbf16>
    %cst_46 = arith.constant dense<0.000000e+00> : vector<128x36xf32>
    %64 = tpu.matmul %62, %63, %cst_46 {dimension_numbers = #tpu.dot_dimension_numbers<[1], [0], [0], [1], [0, 0, 1, 1], [], []>} : vector<128x16xbf16>, vector<16x36xbf16>, vector<128x36xf32> -> vector<128x36xf32>
    %65 = arith.truncf %64 : vector<128x36xf32> to vector<128x36xbf16>
    %66 = vector.extract_strided_slice %65 {offsets = [0, 0], sizes = [128, 4], strides = [1, 1]} : vector<128x36xbf16> to vector<128x4xbf16>
    %c0_47 = arith.constant 0 : index
    %c0_48 = arith.constant 0 : index
    %67 = vector.load %arg21[%c0_47, %c0_48] : memref<1152x64xbf16, #tpu.memory_space<vmem>>, vector<128x4xbf16>
    tpu.vector_store %arg21[%c0_47, %c0_48], %66 {strides = array<i32>} : memref<1152x64xbf16, #tpu.memory_space<vmem>>, vector<128x4xbf16>,
    %68 = vector.extract_strided_slice %65 {offsets = [0, 4], sizes = [128, 4], strides = [1, 1]} : vector<128x36xbf16> to vector<128x4xbf16>
    %c128_49 = arith.constant 128 : index
    %c0_50 = arith.constant 0 : index
    %69 = vector.load %arg21[%c128_49, %c0_50] : memref<1152x64xbf16, #tpu.memory_space<vmem>>, vector<128x4xbf16>
    tpu.vector_store %arg21[%c128_49, %c0_50], %68 {strides = array<i32>} : memref<1152x64xbf16, #tpu.memory_space<vmem>>, vector<128x4xbf16>,
    %70 = vector.extract_strided_slice %65 {offsets = [0, 8], sizes = [128, 4], strides = [1, 1]} : vector<128x36xbf16> to vector<128x4xbf16>
    %c256_51 = arith.constant 256 : index
    %c0_52 = arith.constant 0 : index
    %71 = vector.load %arg21[%c256_51, %c0_52] : memref<1152x64xbf16, #tpu.memory_space<vmem>>, vector<128x4xbf16>
    tpu.vector_store %arg21[%c256_51, %c0_52], %70 {strides = array<i32>} : memref<1152x64xbf16, #tpu.memory_space<vmem>>, vector<128x4xbf16>,
    %72 = vector.extract_strided_slice %65 {offsets = [0, 12], sizes = [128, 4], strides = [1, 1]} : vector<128x36xbf16> to vector<128x4xbf16>
    %c384_53 = arith.constant 384 : index
    %c0_54 = arith.constant 0 : index
    %73 = vector.load %arg21[%c384_53, %c0_54] : memref<1152x64xbf16, #tpu.memory_space<vmem>>, vector<128x4xbf16>
    tpu.vector_store %arg21[%c384_53, %c0_54], %72 {strides = array<i32>} : memref<1152x64xbf16, #tpu.memory_space<vmem>>, vector<128x4xbf16>,
    %74 = vector.extract_strided_slice %65 {offsets = [0, 16], sizes = [128, 4], strides = [1, 1]} : vector<128x36xbf16> to vector<128x4xbf16>
    %c512_55 = arith.constant 512 : index
    %c0_56 = arith.constant 0 : index
    %75 = vector.load %arg21[%c512_55, %c0_56] : memref<1152x64xbf16, #tpu.memory_space<vmem>>, vector<128x4xbf16>
    tpu.vector_store %arg21[%c512_55, %c0_56], %74 {strides = array<i32>} : memref<1152x64xbf16, #tpu.memory_space<vmem>>, vector<128x4xbf16>,
    %76 = vector.extract_strided_slice %65 {offsets = [0, 20], sizes = [128, 4], strides = [1, 1]} : vector<128x36xbf16> to vector<128x4xbf16>
    %c640 = arith.constant 640 : index
    %c0_57 = arith.constant 0 : index
    %77 = vector.load %arg21[%c640, %c0_57] : memref<1152x64xbf16, #tpu.memory_space<vmem>>, vector<128x4xbf16>
    tpu.vector_store %arg21[%c640, %c0_57], %76 {strides = array<i32>} : memref<1152x64xbf16, #tpu.memory_space<vmem>>, vector<128x4xbf16>,
    %78 = vector.extract_strided_slice %65 {offsets = [0, 24], sizes = [128, 4], strides = [1, 1]} : vector<128x36xbf16> to vector<128x4xbf16>
    %c768 = arith.constant 768 : index
    %c0_58 = arith.constant 0 : index
    %79 = vector.load %arg21[%c768, %c0_58] : memref<1152x64xbf16, #tpu.memory_space<vmem>>, vector<128x4xbf16>
    tpu.vector_store %arg21[%c768, %c0_58], %78 {strides = array<i32>} : memref<1152x64xbf16, #tpu.memory_space<vmem>>, vector<128x4xbf16>,
    %80 = vector.extract_strided_slice %65 {offsets = [0, 28], sizes = [128, 4], strides = [1, 1]} : vector<128x36xbf16> to vector<128x4xbf16>
    %c896 = arith.constant 896 : index
    %c0_59 = arith.constant 0 : index
    %81 = vector.load %arg21[%c896, %c0_59] : memref<1152x64xbf16, #tpu.memory_space<vmem>>, vector<128x4xbf16>
    tpu.vector_store %arg21[%c896, %c0_59], %80 {strides = array<i32>} : memref<1152x64xbf16, #tpu.memory_space<vmem>>, vector<128x4xbf16>,
    %82 = vector.extract_strided_slice %65 {offsets = [0, 32], sizes = [128, 4], strides = [1, 1]} : vector<128x36xbf16> to vector<128x4xbf16>
    %c1024 = arith.constant 1024 : index
    %c0_60 = arith.constant 0 : index
    %83 = vector.load %arg21[%c1024, %c0_60] : memref<1152x64xbf16, #tpu.memory_space<vmem>>, vector<128x4xbf16>
    tpu.vector_store %arg21[%c1024, %c0_60], %82 {strides = array<i32>} : memref<1152x64xbf16, #tpu.memory_space<vmem>>, vector<128x4xbf16>,
    %c0_61 = arith.constant 0 : index
    %c0_62 = arith.constant 0 : index
    %84 = vector.load %arg9[%c0_61, %c0_62] : memref<256x1152xbf16, #tpu.memory_space<vmem>>, vector<256x1152xbf16>
    %c0_63 = arith.constant 0 : index
    %c0_64 = arith.constant 0 : index
    %85 = vector.load %arg21[%c0_63, %c0_64] : memref<1152x64xbf16, #tpu.memory_space<vmem>>, vector<1152x4xbf16>
    %cst_65 = arith.constant dense<0.000000e+00> : vector<256x4xf32>
    %86 = tpu.matmul %84, %85, %cst_65 {dimension_numbers = #tpu.dot_dimension_numbers<[1], [0], [0], [1], [0, 0, 1, 1], [], []>} : vector<256x1152xbf16>, vector<1152x4xbf16>, vector<256x4xf32> -> vector<256x4xf32>
    %c0_66 = arith.constant 0 : index
    %c0_67 = arith.constant 0 : index
    %87 = vector.load %arg10[%c0_66, %c0_67] : memref<256x1xf32, #tpu.memory_space<vmem>>, vector<256x1xf32>
    %88 = vector.broadcast %87 : vector<256x1xf32> to vector<256x4xf32>
    %89 = arith.addf %86, %88 : vector<256x4xf32>
    %cst_68 = arith.constant 0.000000e+00 : f32
    %90 = vector.broadcast %cst_68 : f32 to vector<256x4xf32>
    %91 = arith.maximumf %89, %90 : vector<256x4xf32>
    %92 = arith.truncf %91 : vector<256x4xf32> to vector<256x4xbf16>
    %c0_69 = arith.constant 0 : index
    %c0_70 = arith.constant 0 : index
    %93 = vector.load %arg12[%c0_69, %c0_70] : memref<1152x256xbf16, #tpu.memory_space<vmem>>, vector<1152x256xbf16>
    %cst_71 = arith.constant dense<0.000000e+00> : vector<1152x4xf32>
    %94 = tpu.matmul %93, %92, %cst_71 {dimension_numbers = #tpu.dot_dimension_numbers<[1], [0], [0], [1], [0, 0, 1, 1], [], []>} : vector<1152x256xbf16>, vector<256x4xbf16>, vector<1152x4xf32> -> vector<1152x4xf32>
    %95 = arith.truncf %94 : vector<1152x4xf32> to vector<1152x4xbf16>
    %96 = vector.extract_strided_slice %95 {offsets = [0, 0], sizes = [128, 4], strides = [1, 1]} : vector<1152x4xbf16> to vector<128x4xbf16>
    %c0_72 = arith.constant 0 : index
    %c0_73 = arith.constant 0 : index
    %97 = vector.load %arg22[%c0_72, %c0_73] : memref<128x576xbf16, #tpu.memory_space<vmem>>, vector<128x4xbf16>
    tpu.vector_store %arg22[%c0_72, %c0_73], %96 {strides = array<i32>} : memref<128x576xbf16, #tpu.memory_space<vmem>>, vector<128x4xbf16>,
    %98 = vector.extract_strided_slice %95 {offsets = [128, 0], sizes = [128, 4], strides = [1, 1]} : vector<1152x4xbf16> to vector<128x4xbf16>
    %c0_74 = arith.constant 0 : index
    %c4 = arith.constant 4 : index
    %99 = vector.load %arg22[%c0_74, %c4] : memref<128x576xbf16, #tpu.memory_space<vmem>>, vector<128x4xbf16>
    tpu.vector_store %arg22[%c0_74, %c4], %98 {strides = array<i32>} : memref<128x576xbf16, #tpu.memory_space<vmem>>, vector<128x4xbf16>,
    %100 = vector.extract_strided_slice %95 {offsets = [256, 0], sizes = [128, 4], strides = [1, 1]} : vector<1152x4xbf16> to vector<128x4xbf16>
    %c0_75 = arith.constant 0 : index
    %c8_76 = arith.constant 8 : index
    %101 = vector.load %arg22[%c0_75, %c8_76] : memref<128x576xbf16, #tpu.memory_space<vmem>>, vector<128x4xbf16>
    tpu.vector_store %arg22[%c0_75, %c8_76], %100 {strides = array<i32>} : memref<128x576xbf16, #tpu.memory_space<vmem>>, vector<128x4xbf16>,
    %102 = vector.extract_strided_slice %95 {offsets = [384, 0], sizes = [128, 4], strides = [1, 1]} : vector<1152x4xbf16> to vector<128x4xbf16>
    %c0_77 = arith.constant 0 : index
    %c12 = arith.constant 12 : index
    %103 = vector.load %arg22[%c0_77, %c12] : memref<128x576xbf16, #tpu.memory_space<vmem>>, vector<128x4xbf16>
    tpu.vector_store %arg22[%c0_77, %c12], %102 {strides = array<i32>} : memref<128x576xbf16, #tpu.memory_space<vmem>>, vector<128x4xbf16>,
    %104 = vector.extract_strided_slice %95 {offsets = [512, 0], sizes = [128, 4], strides = [1, 1]} : vector<1152x4xbf16> to vector<128x4xbf16>
    %c0_78 = arith.constant 0 : index
    %c16_79 = arith.constant 16 : index
    %105 = vector.load %arg22[%c0_78, %c16_79] : memref<128x576xbf16, #tpu.memory_space<vmem>>, vector<128x4xbf16>
    tpu.vector_store %arg22[%c0_78, %c16_79], %104 {strides = array<i32>} : memref<128x576xbf16, #tpu.memory_space<vmem>>, vector<128x4xbf16>,
    %106 = vector.extract_strided_slice %95 {offsets = [640, 0], sizes = [128, 4], strides = [1, 1]} : vector<1152x4xbf16> to vector<128x4xbf16>
    %c0_80 = arith.constant 0 : index
    %c20 = arith.constant 20 : index
    %107 = vector.load %arg22[%c0_80, %c20] : memref<128x576xbf16, #tpu.memory_space<vmem>>, vector<128x4xbf16>
    tpu.vector_store %arg22[%c0_80, %c20], %106 {strides = array<i32>} : memref<128x576xbf16, #tpu.memory_space<vmem>>, vector<128x4xbf16>,
    %108 = vector.extract_strided_slice %95 {offsets = [768, 0], sizes = [128, 4], strides = [1, 1]} : vector<1152x4xbf16> to vector<128x4xbf16>
    %c0_81 = arith.constant 0 : index
    %c24_82 = arith.constant 24 : index
    %109 = vector.load %arg22[%c0_81, %c24_82] : memref<128x576xbf16, #tpu.memory_space<vmem>>, vector<128x4xbf16>
    tpu.vector_store %arg22[%c0_81, %c24_82], %108 {strides = array<i32>} : memref<128x576xbf16, #tpu.memory_space<vmem>>, vector<128x4xbf16>,
    %110 = vector.extract_strided_slice %95 {offsets = [896, 0], sizes = [128, 4], strides = [1, 1]} : vector<1152x4xbf16> to vector<128x4xbf16>
    %c0_83 = arith.constant 0 : index
    %c28 = arith.constant 28 : index
    %111 = vector.load %arg22[%c0_83, %c28] : memref<128x576xbf16, #tpu.memory_space<vmem>>, vector<128x4xbf16>
    tpu.vector_store %arg22[%c0_83, %c28], %110 {strides = array<i32>} : memref<128x576xbf16, #tpu.memory_space<vmem>>, vector<128x4xbf16>,
    %112 = vector.extract_strided_slice %95 {offsets = [1024, 0], sizes = [128, 4], strides = [1, 1]} : vector<1152x4xbf16> to vector<128x4xbf16>
    %c0_84 = arith.constant 0 : index
    %c32_85 = arith.constant 32 : index
    %113 = vector.load %arg22[%c0_84, %c32_85] : memref<128x576xbf16, #tpu.memory_space<vmem>>, vector<128x4xbf16>
    tpu.vector_store %arg22[%c0_84, %c32_85], %112 {strides = array<i32>} : memref<128x576xbf16, #tpu.memory_space<vmem>>, vector<128x4xbf16>,
    %c0_86 = arith.constant 0 : index
    %c0_87 = arith.constant 0 : index
    %114 = vector.load %arg22[%c0_86, %c0_87] : memref<128x576xbf16, #tpu.memory_space<vmem>>, vector<128x36xbf16>
    %c0_88 = arith.constant 0 : index
    %c0_89 = arith.constant 0 : index
    %115 = vector.load %arg11[%c0_88, %c0_89] : memref<36x16xbf16, #tpu.memory_space<vmem>>, vector<36x16xbf16>
    %cst_90 = arith.constant dense<0.000000e+00> : vector<128x16xf32>
    %116 = tpu.matmul %114, %115, %cst_90 {dimension_numbers = #tpu.dot_dimension_numbers<[1], [0], [0], [1], [0, 0, 1, 1], [], []>} : vector<128x36xbf16>, vector<36x16xbf16>, vector<128x16xf32> -> vector<128x16xf32>
    %c0_91 = arith.constant 0 : index
    %c0_92 = arith.constant 0 : index
    %117 = vector.load %arg13[%c0_91, %c0_92] : memref<128x1xf32, #tpu.memory_space<vmem>>, vector<128x1xf32>
    %118 = vector.broadcast %117 : vector<128x1xf32> to vector<128x16xf32>
    %119 = arith.addf %116, %118 : vector<128x16xf32>
    %cst_93 = arith.constant 0.000000e+00 : f32
    %120 = vector.broadcast %cst_93 : f32 to vector<128x16xf32>
    %121 = arith.maximumf %119, %120 : vector<128x16xf32>
    %122 = arith.truncf %121 : vector<128x16xf32> to vector<128x16xbf16>
    %c0_94 = arith.constant 0 : index
    %c0_95 = arith.constant 0 : index
    %123 = vector.load %arg15[%c0_94, %c0_95] : memref<576x128xbf16, #tpu.memory_space<vmem>>, vector<576x128xbf16>
    %cst_96 = arith.constant dense<0.000000e+00> : vector<576x16xf32>
    %124 = tpu.matmul %123, %122, %cst_96 {dimension_numbers = #tpu.dot_dimension_numbers<[1], [0], [0], [1], [0, 0, 1, 1], [], []>} : vector<576x128xbf16>, vector<128x16xbf16>, vector<576x16xf32> -> vector<576x16xf32>
    %125 = arith.truncf %124 : vector<576x16xf32> to vector<576x16xbf16>
    %126 = vector.extract_strided_slice %125 {offsets = [0, 0], sizes = [64, 16], strides = [1, 1]} : vector<576x16xbf16> to vector<64x16xbf16>
    %c0_97 = arith.constant 0 : index
    %c0_98 = arith.constant 0 : index
    %127 = vector.load %arg22[%c0_97, %c0_98] : memref<128x576xbf16, #tpu.memory_space<vmem>>, vector<64x16xbf16>
    tpu.vector_store %arg22[%c0_97, %c0_98], %126 {strides = array<i32>} : memref<128x576xbf16, #tpu.memory_space<vmem>>, vector<64x16xbf16>,
    %128 = vector.extract_strided_slice %125 {offsets = [64, 0], sizes = [64, 16], strides = [1, 1]} : vector<576x16xbf16> to vector<64x16xbf16>
    %c0_99 = arith.constant 0 : index
    %c16_100 = arith.constant 16 : index
    %129 = vector.load %arg22[%c0_99, %c16_100] : memref<128x576xbf16, #tpu.memory_space<vmem>>, vector<64x16xbf16>
    tpu.vector_store %arg22[%c0_99, %c16_100], %128 {strides = array<i32>} : memref<128x576xbf16, #tpu.memory_space<vmem>>, vector<64x16xbf16>,
    %130 = vector.extract_strided_slice %125 {offsets = [128, 0], sizes = [64, 16], strides = [1, 1]} : vector<576x16xbf16> to vector<64x16xbf16>
    %c0_101 = arith.constant 0 : index
    %c32_102 = arith.constant 32 : index
    %131 = vector.load %arg22[%c0_101, %c32_102] : memref<128x576xbf16, #tpu.memory_space<vmem>>, vector<64x16xbf16>
    tpu.vector_store %arg22[%c0_101, %c32_102], %130 {strides = array<i32>} : memref<128x576xbf16, #tpu.memory_space<vmem>>, vector<64x16xbf16>,
    %132 = vector.extract_strided_slice %125 {offsets = [192, 0], sizes = [64, 16], strides = [1, 1]} : vector<576x16xbf16> to vector<64x16xbf16>
    %c0_103 = arith.constant 0 : index
    %c48_104 = arith.constant 48 : index
    %133 = vector.load %arg22[%c0_103, %c48_104] : memref<128x576xbf16, #tpu.memory_space<vmem>>, vector<64x16xbf16>
    tpu.vector_store %arg22[%c0_103, %c48_104], %132 {strides = array<i32>} : memref<128x576xbf16, #tpu.memory_space<vmem>>, vector<64x16xbf16>,
    %134 = vector.extract_strided_slice %125 {offsets = [256, 0], sizes = [64, 16], strides = [1, 1]} : vector<576x16xbf16> to vector<64x16xbf16>
    %c0_105 = arith.constant 0 : index
    %c64_106 = arith.constant 64 : index
    %135 = vector.load %arg22[%c0_105, %c64_106] : memref<128x576xbf16, #tpu.memory_space<vmem>>, vector<64x16xbf16>
    tpu.vector_store %arg22[%c0_105, %c64_106], %134 {strides = array<i32>} : memref<128x576xbf16, #tpu.memory_space<vmem>>, vector<64x16xbf16>,
    %136 = vector.extract_strided_slice %125 {offsets = [320, 0], sizes = [64, 16], strides = [1, 1]} : vector<576x16xbf16> to vector<64x16xbf16>
    %c0_107 = arith.constant 0 : index
    %c80 = arith.constant 80 : index
    %137 = vector.load %arg22[%c0_107, %c80] : memref<128x576xbf16, #tpu.memory_space<vmem>>, vector<64x16xbf16>
    tpu.vector_store %arg22[%c0_107, %c80], %136 {strides = array<i32>} : memref<128x576xbf16, #tpu.memory_space<vmem>>, vector<64x16xbf16>,
    %138 = vector.extract_strided_slice %125 {offsets = [384, 0], sizes = [64, 16], strides = [1, 1]} : vector<576x16xbf16> to vector<64x16xbf16>
    %c0_108 = arith.constant 0 : index
    %c96 = arith.constant 96 : index
    %139 = vector.load %arg22[%c0_108, %c96] : memref<128x576xbf16, #tpu.memory_space<vmem>>, vector<64x16xbf16>
    tpu.vector_store %arg22[%c0_108, %c96], %138 {strides = array<i32>} : memref<128x576xbf16, #tpu.memory_space<vmem>>, vector<64x16xbf16>,
    %140 = vector.extract_strided_slice %125 {offsets = [448, 0], sizes = [64, 16], strides = [1, 1]} : vector<576x16xbf16> to vector<64x16xbf16>
    %c0_109 = arith.constant 0 : index
    %c112 = arith.constant 112 : index
    %141 = vector.load %arg22[%c0_109, %c112] : memref<128x576xbf16, #tpu.memory_space<vmem>>, vector<64x16xbf16>
    tpu.vector_store %arg22[%c0_109, %c112], %140 {strides = array<i32>} : memref<128x576xbf16, #tpu.memory_space<vmem>>, vector<64x16xbf16>,
    %142 = vector.extract_strided_slice %125 {offsets = [512, 0], sizes = [64, 16], strides = [1, 1]} : vector<576x16xbf16> to vector<64x16xbf16>
    %c0_110 = arith.constant 0 : index
    %c128_111 = arith.constant 128 : index
    %143 = vector.load %arg22[%c0_110, %c128_111] : memref<128x576xbf16, #tpu.memory_space<vmem>>, vector<64x16xbf16>
    tpu.vector_store %arg22[%c0_110, %c128_111], %142 {strides = array<i32>} : memref<128x576xbf16, #tpu.memory_space<vmem>>, vector<64x16xbf16>,
    %c0_112 = arith.constant 0 : index
    %c0_113 = arith.constant 0 : index
    %144 = vector.load %arg22[%c0_112, %c0_113] : memref<128x576xbf16, #tpu.memory_space<vmem>>, vector<64x144xbf16>
    %c0_114 = arith.constant 0 : index
    %c0_115 = arith.constant 0 : index
    %145 = vector.load %arg14[%c0_114, %c0_115] : memref<144x64xbf16, #tpu.memory_space<vmem>>, vector<144x64xbf16>
    %cst_116 = arith.constant dense<0.000000e+00> : vector<64x64xf32>
    %146 = tpu.matmul %144, %145, %cst_116 {dimension_numbers = #tpu.dot_dimension_numbers<[1], [0], [0], [1], [0, 0, 1, 1], [], []>} : vector<64x144xbf16>, vector<144x64xbf16>, vector<64x64xf32> -> vector<64x64xf32>
    %c0_117 = arith.constant 0 : index
    %c0_118 = arith.constant 0 : index
    %147 = vector.load %arg16[%c0_117, %c0_118] : memref<64x1xf32, #tpu.memory_space<vmem>>, vector<64x1xf32>
    %148 = vector.broadcast %147 : vector<64x1xf32> to vector<64x64xf32>
    %149 = arith.addf %146, %148 : vector<64x64xf32>
    %cst_119 = arith.constant 0.000000e+00 : f32
    %150 = vector.broadcast %cst_119 : f32 to vector<64x64xf32>
    %151 = arith.maximumf %149, %150 : vector<64x64xf32>
    %152 = arith.truncf %151 : vector<64x64xf32> to vector<64x64xbf16>
    %c0_120 = arith.constant 0 : index
    %c0_121 = arith.constant 0 : index
    %153 = vector.load %arg18[%c0_120, %c0_121] : memref<72x64xbf16, #tpu.memory_space<vmem>>, vector<72x64xbf16>
    %cst_122 = arith.constant dense<0.000000e+00> : vector<72x64xf32>
    %154 = tpu.matmul %153, %152, %cst_122 {dimension_numbers = #tpu.dot_dimension_numbers<[1], [0], [0], [1], [0, 0, 1, 1], [], []>} : vector<72x64xbf16>, vector<64x64xbf16>, vector<72x64xf32> -> vector<72x64xf32>
    %155 = arith.truncf %154 : vector<72x64xf32> to vector<72x64xbf16>
    %156 = vector.extract_strided_slice %155 {offsets = [0, 0], sizes = [8, 64], strides = [1, 1]} : vector<72x64xbf16> to vector<8x64xbf16>
    %c0_123 = arith.constant 0 : index
    %c0_124 = arith.constant 0 : index
    %157 = vector.load %arg22[%c0_123, %c0_124] : memref<128x576xbf16, #tpu.memory_space<vmem>>, vector<8x64xbf16>
    tpu.vector_store %arg22[%c0_123, %c0_124], %156 {strides = array<i32>} : memref<128x576xbf16, #tpu.memory_space<vmem>>, vector<8x64xbf16>,
    %158 = vector.extract_strided_slice %155 {offsets = [8, 0], sizes = [8, 64], strides = [1, 1]} : vector<72x64xbf16> to vector<8x64xbf16>
    %c0_125 = arith.constant 0 : index
    %c64_126 = arith.constant 64 : index
    %159 = vector.load %arg22[%c0_125, %c64_126] : memref<128x576xbf16, #tpu.memory_space<vmem>>, vector<8x64xbf16>
    tpu.vector_store %arg22[%c0_125, %c64_126], %158 {strides = array<i32>} : memref<128x576xbf16, #tpu.memory_space<vmem>>, vector<8x64xbf16>,
    %160 = vector.extract_strided_slice %155 {offsets = [16, 0], sizes = [8, 64], strides = [1, 1]} : vector<72x64xbf16> to vector<8x64xbf16>
    %c0_127 = arith.constant 0 : index
    %c128_128 = arith.constant 128 : index
    %161 = vector.load %arg22[%c0_127, %c128_128] : memref<128x576xbf16, #tpu.memory_space<vmem>>, vector<8x64xbf16>
    tpu.vector_store %arg22[%c0_127, %c128_128], %160 {strides = array<i32>} : memref<128x576xbf16, #tpu.memory_space<vmem>>, vector<8x64xbf16>,
    %162 = vector.extract_strided_slice %155 {offsets = [24, 0], sizes = [8, 64], strides = [1, 1]} : vector<72x64xbf16> to vector<8x64xbf16>
    %c0_129 = arith.constant 0 : index
    %c192_130 = arith.constant 192 : index
    %163 = vector.load %arg22[%c0_129, %c192_130] : memref<128x576xbf16, #tpu.memory_space<vmem>>, vector<8x64xbf16>
    tpu.vector_store %arg22[%c0_129, %c192_130], %162 {strides = array<i32>} : memref<128x576xbf16, #tpu.memory_space<vmem>>, vector<8x64xbf16>,
    %164 = vector.extract_strided_slice %155 {offsets = [32, 0], sizes = [8, 64], strides = [1, 1]} : vector<72x64xbf16> to vector<8x64xbf16>
    %c0_131 = arith.constant 0 : index
    %c256_132 = arith.constant 256 : index
    %165 = vector.load %arg22[%c0_131, %c256_132] : memref<128x576xbf16, #tpu.memory_space<vmem>>, vector<8x64xbf16>
    tpu.vector_store %arg22[%c0_131, %c256_132], %164 {strides = array<i32>} : memref<128x576xbf16, #tpu.memory_space<vmem>>, vector<8x64xbf16>,
    %166 = vector.extract_strided_slice %155 {offsets = [40, 0], sizes = [8, 64], strides = [1, 1]} : vector<72x64xbf16> to vector<8x64xbf16>
    %c0_133 = arith.constant 0 : index
    %c320_134 = arith.constant 320 : index
    %167 = vector.load %arg22[%c0_133, %c320_134] : memref<128x576xbf16, #tpu.memory_space<vmem>>, vector<8x64xbf16>
    tpu.vector_store %arg22[%c0_133, %c320_134], %166 {strides = array<i32>} : memref<128x576xbf16, #tpu.memory_space<vmem>>, vector<8x64xbf16>,
    %168 = vector.extract_strided_slice %155 {offsets = [48, 0], sizes = [8, 64], strides = [1, 1]} : vector<72x64xbf16> to vector<8x64xbf16>
    %c0_135 = arith.constant 0 : index
    %c384_136 = arith.constant 384 : index
    %169 = vector.load %arg22[%c0_135, %c384_136] : memref<128x576xbf16, #tpu.memory_space<vmem>>, vector<8x64xbf16>
    tpu.vector_store %arg22[%c0_135, %c384_136], %168 {strides = array<i32>} : memref<128x576xbf16, #tpu.memory_space<vmem>>, vector<8x64xbf16>,
    %170 = vector.extract_strided_slice %155 {offsets = [56, 0], sizes = [8, 64], strides = [1, 1]} : vector<72x64xbf16> to vector<8x64xbf16>
    %c0_137 = arith.constant 0 : index
    %c448_138 = arith.constant 448 : index
    %171 = vector.load %arg22[%c0_137, %c448_138] : memref<128x576xbf16, #tpu.memory_space<vmem>>, vector<8x64xbf16>
    tpu.vector_store %arg22[%c0_137, %c448_138], %170 {strides = array<i32>} : memref<128x576xbf16, #tpu.memory_space<vmem>>, vector<8x64xbf16>,
    %172 = vector.extract_strided_slice %155 {offsets = [64, 0], sizes = [8, 64], strides = [1, 1]} : vector<72x64xbf16> to vector<8x64xbf16>
    %c0_139 = arith.constant 0 : index
    %c512_140 = arith.constant 512 : index
    %173 = vector.load %arg22[%c0_139, %c512_140] : memref<128x576xbf16, #tpu.memory_space<vmem>>, vector<8x64xbf16>
    tpu.vector_store %arg22[%c0_139, %c512_140], %172 {strides = array<i32>} : memref<128x576xbf16, #tpu.memory_space<vmem>>, vector<8x64xbf16>,
    %c0_141 = arith.constant 0 : index
    %c0_142 = arith.constant 0 : index
    %174 = vector.load %arg22[%c0_141, %c0_142] : memref<128x576xbf16, #tpu.memory_space<vmem>>, vector<8x576xbf16>
    %c0_143 = arith.constant 0 : index
    %c0_144 = arith.constant 0 : index
    %175 = vector.load %arg17[%c0_143, %c0_144] : memref<576x256xbf16, #tpu.memory_space<vmem>>, vector<576x256xbf16>
    %cst_145 = arith.constant dense<0.000000e+00> : vector<8x256xf32>
    %176 = tpu.matmul %174, %175, %cst_145 {dimension_numbers = #tpu.dot_dimension_numbers<[1], [0], [0], [1], [0, 0, 1, 1], [], []>} : vector<8x576xbf16>, vector<576x256xbf16>, vector<8x256xf32> -> vector<8x256xf32>
    %c0_146 = arith.constant 0 : index
    %c0_147 = arith.constant 0 : index
    %177 = vector.load %arg19[%c0_146, %c0_147] : memref<8x1xf32, #tpu.memory_space<vmem>>, vector<8x1xf32>
    %178 = vector.broadcast %177 : vector<8x1xf32> to vector<8x256xf32>
    %179 = arith.addf %176, %178 : vector<8x256xf32>
    %180 = vector.extract_strided_slice %179 {offsets = [0, 0], sizes = [3, 256], strides = [1, 1]} : vector<8x256xf32> to vector<3x256xf32>
    %181 = arith.negf %180 : vector<3x256xf32>
    %182 = math.exp %181 : vector<3x256xf32>
    %cst_148 = arith.constant 1.000000e+00 : f32
    %183 = vector.broadcast %cst_148 : f32 to vector<3x256xf32>
    %184 = arith.addf %183, %182 : vector<3x256xf32>
    %185 = arith.divf %183, %184 : vector<3x256xf32>
    %c0_149 = arith.constant 0 : index
    %c0_150 = arith.constant 0 : index
    %c0_151 = arith.constant 0 : index
    %186 = vector.load %arg20[%c0_149, %c0_150, %c0_151] : memref<1x3x256xf32, #tpu.memory_space<vmem>>, vector<1x3x256xf32>
    %187 = vector.shape_cast %186 : vector<1x3x256xf32> to vector<3x256xf32>
    %188 = vector.shape_cast %185 : vector<3x256xf32> to vector<1x3x256xf32>
    tpu.vector_store %arg20[%c0_149, %c0_150, %c0_151], %188 {strides = array<i32>} : memref<1x3x256xf32, #tpu.memory_space<vmem>>, vector<1x3x256xf32>,
    return
  }
  func.func @transform_0(%arg0: i32) -> (i32, i32, i32) {
    %c0_i32 = arith.constant 0 : i32
    %c0_i32_0 = arith.constant 0 : i32
    %c0_i32_1 = arith.constant 0 : i32
    return %arg0, %c0_i32, %c0_i32_0 : i32, i32, i32
  }
  func.func @transform_1(%arg0: i32) -> (i32, i32) {
    %c0_i32 = arith.constant 0 : i32
    %c0_i32_0 = arith.constant 0 : i32
    %c0_i32_1 = arith.constant 0 : i32
    return %c0_i32, %c0_i32_0 : i32, i32
  }
  func.func @transform_2(%arg0: i32) -> (i32, i32) {
    %c0_i32 = arith.constant 0 : i32
    %c0_i32_0 = arith.constant 0 : i32
    %c0_i32_1 = arith.constant 0 : i32
    return %c0_i32, %c0_i32_0 : i32, i32
  }
  func.func @transform_3(%arg0: i32) -> (i32, i32) {
    %c0_i32 = arith.constant 0 : i32
    %c0_i32_0 = arith.constant 0 : i32
    %c0_i32_1 = arith.constant 0 : i32
    return %c0_i32, %c0_i32_0 : i32, i32
  }
  func.func @transform_4(%arg0: i32) -> (i32, i32) {
    %c0_i32 = arith.constant 0 : i32
    %c0_i32_0 = arith.constant 0 : i32
    %c0_i32_1 = arith.constant 0 : i32
    return %c0_i32, %c0_i32_0 : i32, i32
  }
  func.func @transform_5(%arg0: i32) -> (i32, i32) {
    %c0_i32 = arith.constant 0 : i32
    %c0_i32_0 = arith.constant 0 : i32
    %c0_i32_1 = arith.constant 0 : i32
    return %c0_i32, %c0_i32_0 : i32, i32
  }
  func.func @transform_6(%arg0: i32) -> (i32, i32) {
    %c0_i32 = arith.constant 0 : i32
    %c0_i32_0 = arith.constant 0 : i32
    %c0_i32_1 = arith.constant 0 : i32
    return %c0_i32, %c0_i32_0 : i32, i32
  }
  func.func @transform_7(%arg0: i32) -> (i32, i32) {
    %c0_i32 = arith.constant 0 : i32
    %c0_i32_0 = arith.constant 0 : i32
    %c0_i32_1 = arith.constant 0 : i32
    return %c0_i32, %c0_i32_0 : i32, i32
  }
  func.func @transform_8(%arg0: i32) -> (i32, i32) {
    %c0_i32 = arith.constant 0 : i32
    %c0_i32_0 = arith.constant 0 : i32
    %c0_i32_1 = arith.constant 0 : i32
    return %c0_i32, %c0_i32_0 : i32, i32
  }
  func.func @transform_9(%arg0: i32) -> (i32, i32) {
    %c0_i32 = arith.constant 0 : i32
    %c0_i32_0 = arith.constant 0 : i32
    %c0_i32_1 = arith.constant 0 : i32
    return %c0_i32, %c0_i32_0 : i32, i32
  }
  func.func @transform_10(%arg0: i32) -> (i32, i32) {
    %c0_i32 = arith.constant 0 : i32
    %c0_i32_0 = arith.constant 0 : i32
    %c0_i32_1 = arith.constant 0 : i32
    return %c0_i32, %c0_i32_0 : i32, i32
  }
  func.func @transform_11(%arg0: i32) -> (i32, i32) {
    %c0_i32 = arith.constant 0 : i32
    %c0_i32_0 = arith.constant 0 : i32
    %c0_i32_1 = arith.constant 0 : i32
    return %c0_i32, %c0_i32_0 : i32, i32
  }
  func.func @transform_12(%arg0: i32) -> (i32, i32) {
    %c0_i32 = arith.constant 0 : i32
    %c0_i32_0 = arith.constant 0 : i32
    %c0_i32_1 = arith.constant 0 : i32
    return %c0_i32, %c0_i32_0 : i32, i32
  }
  func.func @transform_13(%arg0: i32) -> (i32, i32) {
    %c0_i32 = arith.constant 0 : i32
    %c0_i32_0 = arith.constant 0 : i32
    %c0_i32_1 = arith.constant 0 : i32
    return %c0_i32, %c0_i32_0 : i32, i32
  }
  func.func @transform_14(%arg0: i32) -> (i32, i32) {
    %c0_i32 = arith.constant 0 : i32
    %c0_i32_0 = arith.constant 0 : i32
    %c0_i32_1 = arith.constant 0 : i32
    return %c0_i32, %c0_i32_0 : i32, i32
  }
  func.func @transform_15(%arg0: i32) -> (i32, i32) {
    %c0_i32 = arith.constant 0 : i32
    %c0_i32_0 = arith.constant 0 : i32
    %c0_i32_1 = arith.constant 0 : i32
    return %c0_i32, %c0_i32_0 : i32, i32
  }
  func.func @transform_16(%arg0: i32) -> (i32, i32) {
    %c0_i32 = arith.constant 0 : i32
    %c0_i32_0 = arith.constant 0 : i32
    %c0_i32_1 = arith.constant 0 : i32
    return %c0_i32, %c0_i32_0 : i32, i32
  }
  func.func @transform_17(%arg0: i32) -> (i32, i32) {
    %c0_i32 = arith.constant 0 : i32
    %c0_i32_0 = arith.constant 0 : i32
    %c0_i32_1 = arith.constant 0 : i32
    return %c0_i32, %c0_i32_0 : i32, i32
  }
  func.func @transform_18(%arg0: i32) -> (i32, i32) {
    %c0_i32 = arith.constant 0 : i32
    %c0_i32_0 = arith.constant 0 : i32
    %c0_i32_1 = arith.constant 0 : i32
    return %c0_i32, %c0_i32_0 : i32, i32
  }
  func.func @transform_19(%arg0: i32) -> (i32, i32, i32) {
    %c0_i32 = arith.constant 0 : i32
    %c0_i32_0 = arith.constant 0 : i32
    %c0_i32_1 = arith.constant 0 : i32
    return %arg0, %c0_i32, %c0_i32_0 : i32, i32, i32
  }
}

</mosaic_0001>

<bundles_post_ra>
// kernel: forward.1
= control target key start
LH: loop header
LB: loop body
LE: loop exit
PB: predicated region body
PF: predicated region fallthrough
CT: control target
= control target key end

     0   :  { %s14664_s0 = inlined_call_operand.vmem [shape: f32[2,8,256], index: 0, kind: input, shape index: {}]   ;;  %s14665_s1 = inlined_call_operand.vmem [shape: bf16[256,576], index: 1, kind: input, shape index: {}]   ;;  %s14666_s2 = inlined_call_operand.hbm [shape: bf16[64,72], index: 2, kind: input, shape index: {}]   ;;  %s14667_s3 = inlined_call_operand.vmem [shape: f32[64,1], index: 3, kind: input, shape index: {}]   ;;  %s14668_s4 = inlined_call_operand.hbm [shape: bf16[64,144], index: 4, kind: input, shape index: {}]   ;;  %s14669_s5 = inlined_call_operand.vmem [shape: bf16[128,576], index: 5, kind: input, shape index: {}]   ;;  %s14670_s6 = inlined_call_operand.vmem [shape: f32[128,1], index: 6, kind: input, shape index: {}]   ;;  %s14671_s7 = inlined_call_operand.hbm [shape: bf16[16,36], index: 7, kind: input, shape index: {}]   ;;  %s14672_s8 = inlined_call_operand.vmem [shape: bf16[256,1152], index: 8, kind: input, shape index: {}]   ;;  %s14673_s9 = inlined_call_operand.vmem [shape: f32[256,1], index: 9, kind: input, shape index: {}]   ;;  %s14674_s10 = inlined_call_operand.vmem [shape: bf16[36,16], index: 10, kind: input, shape index: {}]   ;;  %s14675_s11 = inlined_call_operand.vmem [shape: bf16[1152,256], index: 11, kind: input, shape index: {}]   ;;  %s14676_s12 = inlined_call_operand.vmem [shape: f32[128,1], index: 12, kind: input, shape index: {}]   ;;  %s14677_s13 = inlined_call_operand.vmem [shape: bf16[144,64], index: 13, kind: input, shape index: {}]   ;;  %s14678_s14 = inlined_call_operand.hbm [shape: bf16[576,128], index: 14, kind: input, shape index: {}]   ;;  %s14679_s15 = inlined_call_operand.vmem [shape: f32[64,1], index: 15, kind: input, shape index: {}]   ;;  %s14680_s16 = inlined_call_operand.vmem [shape: bf16[576,256], index: 16, kind: input, shape index: {}]   ;;  %s14681_s17 = inlined_call_operand.vmem [shape: bf16[72,64], index: 17, kind: input, shape index: {}]   ;;  %s14682_s18 = inlined_call_operand.vmem [shape: f32[8,1], index: 18, kind: input, shape index: {}]   ;;  %s14683_s19 = inlined_call_operand.vmem [shape: f32[2,3,256], index: 19, kind: output, shape index: {}]  }
   0x1   :  { %14697 = sst [smem:[#allocation30_spill]] %s14664_s0 }
   0x2   :  { %14698 = sst [smem:[#allocation31_spill]] %s14665_s1 }
   0x3   :  { %14699 = sst [smem:[#allocation32_spill]] %s14666_s2 }
   0x4   :  { %14700 = sst [smem:[#allocation33_spill]] %s14667_s3 }
   0x5   :  { %14701 = sst [smem:[#allocation34_spill]] %s14679_s15 }
   0x6   :  { %14702 = sst [smem:[#allocation35_spill]] %s14680_s16 }
   0x7   :  { %14703 = sst [smem:[#allocation36_spill]] %s14681_s17 }
   0x8   :  { %14704 = sst [smem:[#allocation37_spill]] %s14682_s18 }
   0x9   :  { %14705 = sst [smem:[#allocation38_spill]] %s14683_s19 }
   0xa   :  { %24 = vsyncpa [#allocation5], 0 }
   0xb   :  { %25 = vsyncpa [#allocation7], 0 }
   0xc   :  { %26 = vsyncpa [#allocation10], 0  ;;  %s11645_s0 = smov 0  }
   0xd LB: > { %14706 = sst [smem:[#allocation14_spill]] %s11513_s0  ;;  %s11515_s30 = smov [#allocation6]   ;;  %s11513_s0 = sphi %s11645_s0, %s32_s0  }
   0xe   : > { %s498_s20 = sshll.u32 %s11515_s30, 4  ;;  %s11651_s21 = sadd.s32 4294967295, %s11513_s0   ;;  %s11656_s20 = int_to_ptr.vmem [resolvable:$true] %s498_s20 }
   0xf   : > { %p8931_p0 = scmp.ge.s32.totalorder %s11513_s0, 1  ;;  %p467_p1 = scmp.lt.s32.totalorder %s11513_s0, 3 }
  0x10   : > { %p14691_p2 = scmp.eq.s32.totalorder %s11651_s21, 0  ;;  %s11516_s22 = smov [#allocation4]  }
  0x11   : > { %p11658_p3 = pnand %p8931_p0, %p467_p1  ;;  %s482_s2 = sshll.u32 %s11516_s22, 4  ;;  %s11664_s2 = int_to_ptr.vmem [resolvable:$true] %s482_s2 }
  0x12   : > { %s11517_s24 = smov [#allocation8]   ;;  %s11383_s27 = scalar_lea.hbm %s14668_s4, 1024 }
  0x13   : > { %s14707_s1 = scalar_select %p11658_p3, 1, 0 }
  0x14   : > { %p10546_p4 = pneg %p11658_p3  ;;  %s11672_s25 = sshll.u32 %s11517_s24, 4  ;;  %s518_s25 = int_to_ptr.vmem [resolvable:$true] %s11672_s25 }
  0x15   : > { %p11384_p6 = scmp.ne.s32.totalorder %s14668_s4, %s11383_s27  ;;  %p11390_p10 = scmp.lt.u32.totalorder %s11383_s27, %s14668_s4 }
  0x16   : > { %p11668_p5 = pnand %p14691_p2, %p10546_p4 }
  0x18   : > { %p11682_p7 = pneg %p11668_p5 }
  0x1a   : > { %p11386_p8 = pnand %p11682_p7, %p11384_p6 }
  0x1c   : > { %p11387_p9 = pneg %p11386_p8 }
  0x1e   : > { %p11392_p11 = pnand %p11390_p10, %p11387_p9 }
  0x20   : > { %11395 = shalt.err (!%p11392_p11)
}
  0x21   : > { %s11396_s3 = scalar_lea.vmem %s11656_s20, 1024  ;;  %p11404_p1 = scmp.lt.s32.totalorder %s11656_s20, %s11656_s20 }
  0x22   : > { %p11397_p12 = scmp.ne.s32.totalorder %s11656_s20, %s11396_s3  ;;  %p11405_p4 = scmp.lt.s32.totalorder %s11396_s3, %s11396_s3 }
  0x24   : > { %p11399_p13 = pnand %p11397_p12, %p11682_p7  ;;  %p11406_p6 = por %p11405_p4, %p11404_p1 }
  0x26   : > { %p11400_p0 = pneg %p11399_p13 }
  0x28   : > { %p11407_p8 = pnand %p11406_p6, %p11400_p0 }
  0x2a   : > { %11410 = shalt.err (!%p11407_p8)
}
  0x2b   : > { %s11518_s26 = smov 128   ;;  %s11519_s27 = smov 8  }
  0x2c   : > { %10552 = dma.hbm_to_vmem [thread:$0]  (!%p11668_p5), %s14668_s4, 1024, %s11656_s20, [#allocation7], %s11518_s26, %s11518_s26, %s11519_s27  }
  0x2d   : > { %s14710_s0 = sld [smem:[#allocation32_spill]] }
  0x33   : > { %s14711_s19 = smov %s14710_s0  ;;  %s11411_s18 = scalar_lea.hbm %s14710_s0, 512 }
  0x34   : > { %p11412_p9 = scmp.ne.s32.totalorder %s14711_s19, %s11411_s18  ;;  %p11418_p12 = scmp.lt.u32.totalorder %s11411_s18, %s14711_s19 }
  0x36   : > { %p11414_p10 = pnand %p11412_p9, %p11682_p7 }
  0x38   : > { %p11415_p11 = pneg %p11414_p10 }
  0x3a   : > { %p11420_p13 = pnand %p11418_p12, %p11415_p11 }
  0x3c   : > { %11423 = shalt.err (!%p11420_p13)
}
  0x3d   : > { %s11424_s20 = scalar_lea.vmem %s11664_s2, 512  ;;  %p11432_p6 = scmp.lt.s32.totalorder %s11664_s2, %s11664_s2 }
  0x3e   : > { %p11425_p0 = scmp.ne.s32.totalorder %s11664_s2, %s11424_s20  ;;  %p11433_p8 = scmp.lt.s32.totalorder %s11424_s20, %s11424_s20 }
  0x40   : > { %p11427_p1 = pnand %p11425_p0, %p11682_p7  ;;  %p11434_p9 = por %p11433_p8, %p11432_p6 }
  0x42   : > { %p11428_p4 = pneg %p11427_p1 }
  0x44   : > { %p11435_p10 = pnand %p11434_p9, %p11428_p4 }
  0x46   : > { %11438 = shalt.err (!%p11435_p10)
}
  0x47   : > { %s11520_s16 = smov 64   ;;  %s11521_s15 = smov 4  }
  0x48   : > { %10549 = dma.hbm_to_vmem [thread:$0]  (!%p11668_p5), %s14711_s19, 512, %s11664_s2, [#allocation5], %s11520_s16, %s11520_s16, %s11521_s15  }
  0x49   : > { %s11522_s0 = smov [#allocation9]   ;;  %s11439_s29 = scalar_lea.hbm %s14671_s7, 128 }
  0x4a   : > { %s548_s26 = sshll.u32 %s11522_s0, 4  ;;  %p11440_p11 = scmp.ne.s32.totalorder %s14671_s7, %s11439_s29  ;;  %s549_s26 = int_to_ptr.vmem [resolvable:$true] %s548_s26 }
  0x4b   : > { %p11446_p0 = scmp.lt.u32.totalorder %s11439_s29, %s14671_s7 }
  0x4c   : > { %p11442_p12 = pnand %p11440_p11, %p11682_p7 }
  0x4e   : > { %p11443_p13 = pneg %p11442_p12 }
  0x50   : > { %p11448_p1 = pnand %p11446_p0, %p11443_p13 }
  0x52   : > { %11451 = shalt.err (!%p11448_p1)
}
  0x53   : > { %s11452_s2 = scalar_lea.vmem %s518_s25, 128  ;;  %p11460_p9 = scmp.lt.s32.totalorder %s518_s25, %s518_s25 }
  0x54   : > { %p11453_p4 = scmp.ne.s32.totalorder %s518_s25, %s11452_s2  ;;  %p11461_p10 = scmp.lt.s32.totalorder %s11452_s2, %s11452_s2 }
  0x56   : > { %p11455_p6 = pnand %p11453_p4, %p11682_p7  ;;  %p11462_p2 = por %p11461_p10, %p11460_p9 }
  0x58   : > { %p11456_p8 = pneg %p11455_p6 }
  0x5a   : > { %p11463_p3 = pnand %p11462_p2, %p11456_p8 }
  0x5c   : > { %11466 = shalt.err (!%p11463_p3)
}
  0x5d   : > { %10555 = dma.hbm_to_vmem [thread:$0]  (!%p11668_p5), %s14671_s7, 128, %s518_s25, [#allocation7], %s11520_s16, %s11520_s16, %s11521_s15  }
  0x5e   : > { %s11467_s28 = scalar_lea.hbm %s14678_s14, 4608 }
  0x5f   : > { %p11468_p2 = scmp.ne.s32.totalorder %s14678_s14, %s11467_s28  ;;  %p11474_p12 = scmp.lt.u32.totalorder %s11467_s28, %s14678_s14 }
  0x61   : > { %p11470_p3 = pnand %p11468_p2, %p11682_p7 }
  0x63   : > { %p11471_p11 = pneg %p11470_p3 }
  0x65   : > { %p11476_p13 = pnand %p11474_p12, %p11471_p11 }
  0x67   : > { %11479 = shalt.err (!%p11476_p13)
}
  0x68   : > { %s11480_s20 = scalar_lea.vmem %s549_s26, 4608  ;;  %p11488_p6 = scmp.lt.s32.totalorder %s549_s26, %s549_s26 }
  0x69   : > { %p11481_p0 = scmp.ne.s32.totalorder %s549_s26, %s11480_s20  ;;  %p11489_p8 = scmp.lt.s32.totalorder %s11480_s20, %s11480_s20 }
  0x6b   : > { %p11483_p1 = pnand %p11481_p0, %p11682_p7  ;;  %p11490_p9 = por %p11489_p8, %p11488_p6 }
  0x6d   : > { %p11484_p4 = pneg %p11483_p1 }
  0x6f   : > { %p11491_p10 = pnand %p11490_p9, %p11484_p4 }
  0x71   : > { %11494 = shalt.err (!%p11491_p10)
}
  0x72   : > { %10558 = dma.hbm_to_vmem [thread:$0]  (!%p11668_p5), %s14678_s14, 4608, %s549_s26, [#allocation10], %s11520_s16, %s11520_s16, %s11521_s15  }
  0x73   : > { %p14712_p2 = scmp.ne.s32.totalorder %s14707_s1, 0 }
  0x75   : > { %584 = sbr.rel (%p14712_p2) target bundleno = 4950 (0x1356), region = 96 }
  0x7c   : > { %p14713_p7 = scmp.eq.s32.totalorder %s11651_s21, 0 }
  0x7e   : > { %11500 = dma.done.wait (%p14713_p7), [#allocation5], 512   ;;  %p14714_p3 = pmov %p14713_p7 }
  0x80   : > { %11502 = vsyncadd (%p14714_p3), [#allocation5], 4294966784  ;;  %p14715_p11 = pmov %p14714_p3 }
  0x81   : > { %p14716_p12 = pmov %p14714_p3 }
  0x82   : > { %11504 = dma.done.wait (%p14715_p11), [#allocation7], 1152  }
  0x83   : > { %11506 = vsyncadd (%p14716_p12), [#allocation7], 4294966144  ;;  %p14717_p13 = pmov %p14714_p3 }
  0x84   : > { %p14718_p5 = pmov %p14714_p3 }
  0x85   : > { %11508 = dma.done.wait (%p14717_p13), [#allocation10], 4608  }
  0x86   : > { %11510 = vsyncadd (%p14718_p5), [#allocation10], 4294962688  ;;  %s14719_s30 = sld [smem:[#allocation31_spill]]  ;;  %p652_p0 = scmp.lt.s32.totalorder %s11651_s21, 1  ;;  %vm1306_vm0 = vcmask 519168   ;;  %vm1418_vm1 = vcmask 588800  }
  0x87   : > { %s14720_s18 = sld [smem:[#allocation30_spill]]  ;;  %s14721_s1 = sld [smem:[#allocation33_spill]]  ;;  %vm1313_vm2 = vcmask 523268   ;;  %vm1431_vm3 = vcmask 1043456   ;;  %vm1560_vm4 = vcmask 523264   ;;  %vm1654_vm5 = vcmask 130048  }
  0x88   : > { %s14761_s21 = smov (!%p652_p0, %s11651_s21), 1  ;;  %s11525_s2 = smov 96   ;;  %vm2635_vm6 = vcmask 31744   ;;  %vm6506_vm7 = vcmask 64544   ;;  %vm6547_vm8 = vcmask 97344   ;;  %vm6588_vm9 = vcmask 130144  }
  0x89   : > { %s9538_s20 = sshll.u32 %s14761_s21, 4  ;;  %s14693_s23 = smov 80   ;;  %vm6629_vm10 = vcmask 162944   ;;  %vm6670_vm11 = vcmask 195744   ;;  %vm6711_vm12 = vcmask 228544   ;;  %vm6951_vm13 = vcmask 1041408  }
  0x8a   : > { %s11527_s16 = smov 112   ;;  %s11528_s15 = smov 32   ;;  %vm6752_vm14 = vcmask 261344   ;;  %vm6793_vm15 = vcmask 294144  }
  0x8b   : > { %s11529_s17 = smov 16   ;;  %s11531_s28 = smov 124  }
  0x8c   : > { %v10607_v0 = vld [vmem:[%s14719_s30 + $0x4] ss:$20 sps:$4 sm:$0xff]   ;;  %v10609_v1 = vld [vmem:[%s14719_s30 + $0xc] ss:$20 sps:$4 sm:$0xff]   ;;  %v10612_v3 = vld [vmem:[%s14719_s30 + $0x8] ss:$20 sps:$4 sm:$0xff]  }
  0x8d   : > { %1179 = vmatprep.subr.bf16.mxu0 %v10607_v0  ;;  %v10611_v2 = vld [vmem:[%s14719_s30] ss:$20 sps:$4 sm:$0xff]   ;;  %1220 = vmatprep.subr.bf16.mxu1 %v10609_v1  ;;  %v10617_v6 = vld [vmem:[%s14719_s30 + $0x28] ss:$20 sps:$4 sm:$0xff]   ;;  %v10618_v7 = vld [vmem:[%s14719_s30 + $0x30] ss:$20 sps:$4 sm:$0xff]   ;;  %s11926_s0 = scalar_lea.vmem %s14720_s18, %s9538_s20 }
  0x8e   : > { %v10613_v4 = vld [vmem:[%s14719_s30 + $0x2c] ss:$20 sps:$4 sm:$0xff]   ;;  %1180 = vmatpush1.bf16.msra.mxu0 %v10611_v2  ;;  %1221 = vmatpush1.bf16.msra.mxu1 %v10612_v3  ;;  %v10615_v5 = vld [vmem:[%s14719_s30 + $0x34] ss:$20 sps:$4 sm:$0xff]   ;;  %v10621_v9 = vld [vmem:[%s14719_s30 + $0x5c] ss:$20 sps:$4 sm:$0xff]  }
  0x8f   : > { %1181 = vmatprep.subr.bf16.mxu0 %v10613_v4  ;;  %1222 = vmatprep.subr.bf16.mxu1 %v10615_v5  ;;  %v10619_v8 = vld [vmem:[%s14719_s30 + $0x54] ss:$20 sps:$4 sm:$0xff]   ;;  %v10623_v10 = vld [vmem:[%s14719_s30 + $0x50] ss:$20 sps:$4 sm:$0xff]   ;;  %v10624_v11 = vld [vmem:[%s14719_s30 + $0x58] ss:$20 sps:$4 sm:$0xff]  }
  0x90   : > { %v10625_v12 = vld [vmem:[%s14719_s30 + $0x7c] ss:$20 sps:$4 sm:$0xff]   ;;  %v10627_v13 = vld [vmem:[%s14719_s30 + $0x84] ss:$20 sps:$4 sm:$0xff]   ;;  %v10630_v15 = vld [vmem:[%s14719_s30 + $0x80] ss:$20 sps:$4 sm:$0xff]  }
  0x91   : > { %v10629_v14 = vld [vmem:[%s14719_s30 + $0x78] ss:$20 sps:$4 sm:$0xff]   ;;  %v10635_v18 = vld [vmem:[%s14719_s30 + $0xa0] ss:$20 sps:$4 sm:$0xff]   ;;  %v10636_v19 = vld [vmem:[%s14719_s30 + $0xa8] ss:$20 sps:$4 sm:$0xff]  }
  0x92   : > { %1182 = vmatpush1.bf16.msra.mxu0 %v10617_v6  ;;  %1223 = vmatpush1.bf16.msra.mxu1 %v10618_v7  ;;  %v10631_v16 = vld [vmem:[%s14719_s30 + $0xa4] ss:$20 sps:$4 sm:$0xff]   ;;  %v10633_v17 = vld [vmem:[%s14719_s30 + $0xac] ss:$20 sps:$4 sm:$0xff]   ;;  %v10639_v21 = vld [vmem:[%s14719_s30 + $0xd4] ss:$20 sps:$4 sm:$0xff]  }
  0x93   : > { %1183 = vmatprep.subr.bf16.mxu0 %v10619_v8  ;;  %1224 = vmatprep.subr.bf16.mxu1 %v10621_v9  ;;  %v10637_v20 = vld [vmem:[%s14719_s30 + $0xcc] ss:$20 sps:$4 sm:$0xff]   ;;  %v10641_v22 = vld [vmem:[%s14719_s30 + $0xc8] ss:$20 sps:$4 sm:$0xff]   ;;  %v10642_v23 = vld [vmem:[%s14719_s30 + $0xd0] ss:$20 sps:$4 sm:$0xff]  }
  0x94   : > { %v10643_v24 = vld [vmem:[%s14719_s30 + $0xf4] ss:$20 sps:$4 sm:$0xff]   ;;  %v10645_v25 = vld [vmem:[%s14719_s30 + $0xfc] ss:$20 sps:$4 sm:$0xff]   ;;  %v10648_v27 = vld [vmem:[%s14719_s30 + $0xf8] ss:$20 sps:$4 sm:$0xff]  }
  0x95   : > { %v10647_v26 = vld [vmem:[%s14719_s30 + $0xf0] ss:$20 sps:$4 sm:$0xff]   ;;  %v10653_v30 = vld [vmem:[%s14719_s30 + $0x118] ss:$20 sps:$4 sm:$0xff]   ;;  %v10654_v31 = vld [vmem:[%s14719_s30 + $0x120] ss:$20 sps:$4 sm:$0xff]  }
  0x96   : > { %1184 = vmatpush1.bf16.msra.mxu0 %v10623_v10  ;;  %1225 = vmatpush1.bf16.msra.mxu1 %v10624_v11  ;;  %v10649_v28 = vld [vmem:[%s14719_s30 + $0x11c] ss:$20 sps:$4 sm:$0xff]   ;;  %v10651_v29 = vld [vmem:[%s14719_s30 + $0x124] ss:$20 sps:$4 sm:$0xff]   ;;  %v10657_v33 = vld [vmem:[%s14719_s30 + $0x14c] ss:$20 sps:$4 sm:$0xff]  }
  0x97   : > { %1185 = vmatprep.subr.bf16.mxu0 %v10625_v12  ;;  %1226 = vmatprep.subr.bf16.mxu1 %v10627_v13  ;;  %v10655_v32 = vld [vmem:[%s14719_s30 + $0x144] ss:$20 sps:$4 sm:$0xff]   ;;  %v10659_v34 = vld [vmem:[%s14719_s30 + $0x140] ss:$20 sps:$4 sm:$0xff]   ;;  %v10660_v35 = vld [vmem:[%s14719_s30 + $0x148] ss:$20 sps:$4 sm:$0xff]  }
  0x98   : > { %v10661_v36 = vld [vmem:[%s14719_s30 + $0x16c] ss:$20 sps:$4 sm:$0xff]   ;;  %v10663_v37 = vld [vmem:[%s14719_s30 + $0x174] ss:$20 sps:$4 sm:$0xff]   ;;  %v10666_v39 = vld [vmem:[%s14719_s30 + $0x170] ss:$20 sps:$4 sm:$0xff]  }
  0x99   : > { %v10665_v38 = vld [vmem:[%s14719_s30 + $0x168] ss:$20 sps:$4 sm:$0xff]   ;;  %v10671_v42 = vld [vmem:[%s14719_s30 + $0x190] ss:$20 sps:$4 sm:$0xff]   ;;  %v10672_v43 = vld [vmem:[%s14719_s30 + $0x198] ss:$20 sps:$4 sm:$0xff]  }
  0x9a   : > { %1186 = vmatpush1.bf16.msra.mxu0 %v10629_v14  ;;  %1227 = vmatpush1.bf16.msra.mxu1 %v10630_v15  ;;  %v10667_v40 = vld [vmem:[%s14719_s30 + $0x194] ss:$20 sps:$4 sm:$0xff]   ;;  %v10669_v41 = vld [vmem:[%s14719_s30 + $0x19c] ss:$20 sps:$4 sm:$0xff]   ;;  %v10675_v45 = vld [vmem:[%s14719_s30 + $0x1c4] ss:$20 sps:$4 sm:$0xff]  }
  0x9b   : > { %1187 = vmatprep.subr.bf16.mxu0 %v10631_v16  ;;  %1228 = vmatprep.subr.bf16.mxu1 %v10633_v17  ;;  %v10673_v44 = vld [vmem:[%s14719_s30 + $0x1bc] ss:$20 sps:$4 sm:$0xff]   ;;  %v10677_v46 = vld [vmem:[%s14719_s30 + $0x1b8] ss:$20 sps:$4 sm:$0xff]   ;;  %v10678_v48 = vld [vmem:[%s14719_s30 + $0x1c0] ss:$20 sps:$4 sm:$0xff]  }
  0x9c   : > { %v664_v47 = vld [vmem:[%s11926_s0 + $0x8] sm:$0xff]  ;;  %v10679_v50 = vld [vmem:[%s14719_s30 + $0x1e4] ss:$20 sps:$4 sm:$0xff]   ;;  %v10683_v52 = vld [vmem:[%s14719_s30 + $0x1e0] ss:$20 sps:$4 sm:$0xff]   ;;  %s11523_s20 = smov 64  }
  0x9d   : > { %v666_v49 = vpack.c.bf16 %v664_v47, %v664_v47  ;;  %v10681_v51 = vld [vmem:[%s14719_s30 + $0x1ec] ss:$20 sps:$4 sm:$0xff]   ;;  %v10684_v53 = vld [vmem:[%s14719_s30 + $0x1e8] ss:$20 sps:$4 sm:$0xff]   ;;  %v10690_v57 = vld [vmem:[%s14719_s30 + $0x210] ss:$20 sps:$4 sm:$0xff]  }
  0x9e   : > { %1188 = vmatpush1.bf16.msra.mxu0 %v10635_v18  ;;  %1229 = vmatpush1.bf16.msra.mxu1 %v10636_v19  ;;  %v10685_v54 = vld [vmem:[%s14719_s30 + $0x20c] ss:$20 sps:$4 sm:$0xff]   ;;  %v10687_v55 = vld [vmem:[%s14719_s30 + $0x214] ss:$20 sps:$4 sm:$0xff]   ;;  %v10693_v59 = vld [vmem:[%s14719_s30 + $0x23c] ss:$20 sps:$4 sm:$0xff]  }
  0x9f   : > { %1189 = vmatprep.subr.bf16.mxu0 %v10637_v20  ;;  %1230 = vmatprep.subr.bf16.mxu1 %v10639_v21  ;;  %v10689_v56 = vld [vmem:[%s14719_s30 + $0x208] ss:$20 sps:$4 sm:$0xff]   ;;  %v10695_v60 = vld [vmem:[%s14719_s30 + $0x230] ss:$20 sps:$4 sm:$0xff]   ;;  %v10696_v61 = vld [vmem:[%s14719_s30 + $0x238] ss:$20 sps:$4 sm:$0xff]  }
  0xa0   : > { %1211 = vmatprep.mubr.bf16.mxu0 %v666_v49  ;;  %1252 = vmatprep.mubr.bf16.mxu1 %v666_v49  ;;  %v10691_v58 = vld [vmem:[%s14719_s30 + $0x234] ss:$20 sps:$4 sm:$0xff]   ;;  %v10697_v62 = vld [vmem:[%s14719_s30 + $0x25c] ss:$20 sps:$4 sm:$0xff]   ;;  %v10699_v63 = vld [vmem:[%s14719_s30 + $0x264] ss:$20 sps:$4 sm:$0xff]  }
  0xa1   : > { %v10701_v0 = vld [vmem:[%s14719_s30 + $0x258] ss:$20 sps:$4 sm:$0xff]   ;;  %v10702_v1 = vld [vmem:[%s14719_s30 + $0x260] ss:$20 sps:$4 sm:$0xff]   ;;  %v10703_v3 = vld [vmem:[%s14719_s30 + $0x150] ss:$20 sps:$4 sm:$0xff]  }
  0xa2   : > { %1190 = vmatpush1.bf16.msra.mxu0 %v10641_v22  ;;  %1231 = vmatpush1.bf16.msra.mxu1 %v10642_v23  ;;  %v663_v2 = vld [vmem:[%s11926_s0] sm:$0xff]  ;;  %v10705_v6 = vld [vmem:[%s14719_s30 + $0x178] ss:$20 sps:$4 sm:$0xff]   ;;  %v10709_v10 = vld [vmem:[%s14719_s30 + $0x1c8] ss:$20 sps:$4 sm:$0xff]   ;;  %s11530_s18 = smov 48  }
  0xa3   : > { %1191 = vmatprep.subr.bf16.mxu0 %v10643_v24  ;;  %1232 = vmatprep.subr.bf16.mxu1 %v10645_v25  ;;  %v10704_v4 = vld [vmem:[%s14719_s30 + $0x10] ss:$20 sps:$4 sm:$0xff]   ;;  %v665_v5 = vpack.c.bf16 %v663_v2, %v663_v2  ;;  %v10706_v7 = vld [vmem:[%s14719_s30 + $0x38] ss:$20 sps:$4 sm:$0xff]   ;;  %v10707_v8 = vld [vmem:[%s14719_s30 + $0x1a0] ss:$20 sps:$4 sm:$0xff]  }
  0xa4   : > { %v10708_v9 = vld [vmem:[%s14719_s30 + $0x60] ss:$20 sps:$4 sm:$0xff]   ;;  %v10710_v11 = vld [vmem:[%s14719_s30 + $0x88] ss:$20 sps:$4 sm:$0xff]   ;;  %v10711_v12 = vld [vmem:[%s14719_s30 + $0x1f0] ss:$20 sps:$4 sm:$0xff]  }
  0xa5   : > { %v10712_v13 = vld [vmem:[%s14719_s30 + $0xb0] ss:$20 sps:$4 sm:$0xff]   ;;  %v10713_v14 = vld [vmem:[%s14719_s30 + $0x218] ss:$20 sps:$4 sm:$0xff]   ;;  %v10715_v16 = vld [vmem:[%s14719_s30 + $0x240] ss:$20 sps:$4 sm:$0xff]  }
  0xa6   : > { %1192 = vmatpush1.bf16.msra.mxu0 %v10647_v26  ;;  %1233 = vmatpush1.bf16.msra.mxu1 %v10648_v27  ;;  %v10714_v15 = vld [vmem:[%s14719_s30 + $0xd8] ss:$20 sps:$4 sm:$0xff]   ;;  %v10716_v17 = vld [vmem:[%s14719_s30 + $0x100] ss:$20 sps:$4 sm:$0xff]   ;;  %v10717_v18 = vld [vmem:[%s14719_s30 + $0x268] ss:$20 sps:$4 sm:$0xff]  }
  0xa7   : > { %1193 = vmatprep.subr.bf16.mxu0 %v10649_v28  ;;  %1234 = vmatprep.subr.bf16.mxu1 %v10651_v29  ;;  %v10718_v19 = vld [vmem:[%s14719_s30 + $0x128] ss:$20 sps:$4 sm:$0xff]   ;;  %v1354_v47 = vld [vmem:[%s14721_s1 + $0x20] sm:$0xff]  ;;  %s11532_s24 = smov 120   ;;  %s11534_s3 = smov 108  }
  0xa8   : > { %v10728_v2 = vld [vmem:[#allocation6 + $0x14] ss:$8 sps:$4 sm:$0xff]   ;;  %s11535_s0 = smov 104   ;;  %s11536_s27 = smov 100  }
  0xa9   : > { %s11540_s25 = smov 20  }
  0xaa   : > { %1194 = vmatpush1.bf16.msra.mxu0 %v10653_v30  ;;  %1235 = vmatpush1.bf16.msra.mxu1 %v10654_v31 }
  0xab   : > { %1195 = vmatprep.subr.bf16.mxu0 %v10655_v32  ;;  %1236 = vmatprep.subr.bf16.mxu1 %v10657_v33 }
  0xae   : > { %1196 = vmatpush1.bf16.msra.mxu0 %v10659_v34  ;;  %1237 = vmatpush1.bf16.msra.mxu1 %v10660_v35 }
  0xaf   : > { %1197 = vmatprep.subr.bf16.mxu0 %v10661_v36  ;;  %1238 = vmatprep.subr.bf16.mxu1 %v10663_v37  ;;  %v10719_v36 = vld [vmem:[#allocation4] sm:$0xff]   ;;  %v1351_v37 = vld [vmem:[%s14721_s1 + $0x8] sm:$0xff] }
  0xb2   : > { %1198 = vmatpush1.bf16.msra.mxu0 %v10665_v38  ;;  %1239 = vmatpush1.bf16.msra.mxu1 %v10666_v39  ;;  %v1350_v38 = vld [vmem:[%s14721_s1] sm:$0xff]  ;;  %v14695_v39 = vmov 0  }
  0xb3   : > { %1199 = vmatprep.subr.bf16.mxu0 %v10667_v40  ;;  %1240 = vmatprep.subr.bf16.mxu1 %v10669_v41  ;;  %v1352_v40 = vld [vmem:[%s14721_s1 + $0x10] sm:$0xff]  ;;  %v1353_v41 = vld [vmem:[%s14721_s1 + $0x18] sm:$0xff] }
  0xb4   : > { %10606 = vset.pattern.permute.xlu1 %v14695_v39  ;;  %10605 = vset.pattern.permute.xlu0 %v14695_v39 }
  0xb6   : > { %1200 = vmatpush1.bf16.msra.mxu0 %v10671_v42  ;;  %1241 = vmatpush1.bf16.msra.mxu1 %v10672_v43 }
  0xb7   : > { %1201 = vmatprep.subr.bf16.mxu0 %v10673_v44  ;;  %1242 = vmatprep.subr.bf16.mxu1 %v10675_v45 }
  0xba   : > { %1202 = vmatpush1.bf16.msra.mxu0 %v10677_v46  ;;  %1243 = vmatpush1.bf16.msra.mxu1 %v10678_v48  ;;  %v1355_v48 = vld [vmem:[%s14721_s1 + $0x28] sm:$0xff] }
  0xbb   : > { %1203 = vmatprep.subr.bf16.mxu0 %v10679_v50  ;;  %1244 = vmatprep.subr.bf16.mxu1 %v10681_v51  ;;  %v1356_v50 = vld [vmem:[%s14721_s1 + $0x30] sm:$0xff]  ;;  %v1357_v51 = vld [vmem:[%s14721_s1 + $0x38] sm:$0xff] }
  0xbe   : > { %1204 = vmatpush1.bf16.msra.mxu0 %v10683_v52  ;;  %1245 = vmatpush1.bf16.msra.mxu1 %v10684_v53 }
  0xbf   : > { %1205 = vmatprep.subr.bf16.mxu0 %v10685_v54  ;;  %1246 = vmatprep.subr.bf16.mxu1 %v10687_v55 }
  0xc2   : > { %1206 = vmatpush1.bf16.msra.mxu0 %v10689_v56  ;;  %1247 = vmatpush1.bf16.msra.mxu1 %v10690_v57 }
  0xc3   : > { %1207 = vmatprep.subr.bf16.mxu0 %v10691_v58  ;;  %1248 = vmatprep.subr.bf16.mxu1 %v10693_v59 }
  0xc6   : > { %1208 = vmatpush1.bf16.msra.mxu0 %v10695_v60  ;;  %1249 = vmatpush1.bf16.msra.mxu1 %v10696_v61 }
  0xc7   : > { %1209 = vmatprep.subr.bf16.mxu0 %v10697_v62  ;;  %1250 = vmatprep.subr.bf16.mxu1 %v10699_v63  ;;  %v10725_v62 = vld [vmem:[#allocation6 + $0x4] ss:$8 sps:$4 sm:$0xff]  }
  0xc8   : > { %v10720_v63 = vld [vmem:[#allocation4 + $0x8] sm:$0xff]  }
  0xca   : > { %1210 = vmatpush1.bf16.msra.mxu0 %v10701_v0  ;;  %1251 = vmatpush1.bf16.msra.mxu1 %v10702_v1  ;;  %v10721_v0 = vld [vmem:[#allocation4 + $0x10] sm:$0xff]   ;;  %v10723_v1 = vld [vmem:[#allocation6] ss:$8 sps:$4 sm:$0xff]  }
  0xcb   : > { %9540 = vmatprep.subr.bf16.mxu0 %v10703_v3  ;;  %v10726_v3 = vld [vmem:[#allocation6 + $0x10] ss:$8 sps:$4 sm:$0xff]  }
  0xcd   : > { %1212 = vmatmul.mubr.bf16.vlgmr.msra.gmra.mrb[0].mxu0 %v665_v5  ;;  %1253 = vmatmul.mubr.bf16.vlgmr.msra.gmra.mrb[0].mxu1 %v665_v5 }
  0xce   : > { %9541 = vmatpush3.bf16.msra.mxu0 %v10704_v4  ;;  %1293 = vmatprep.mubr.bf16.mxu0 %v666_v49  ;;  %v10722_v4 = vld [vmem:[#allocation4 + $0x18] sm:$0xff]  }
  0xcf   : > { %9542 = vmatprep.subr.bf16.mxu0 %v10705_v6  ;;  %10266 = vmatprep.mubr.msk.bf16.mxu1 %vm1418_vm1, %v10719_v36  ;;  %v10729_v6 = vld [vmem:[#allocation6 + $0x20] ss:$8 sps:$4 sm:$0xff]  }
  0xd2   : > { %9543 = vmatpush3.bf16.msra.mxu0 %v10706_v7  ;;  %v10734_v7 = vld [vmem:[#allocation6 + $0x34] ss:$8 sps:$4 sm:$0xff]  }
  0xd3   : > { %9544 = vmatprep.subr.bf16.mxu0 %v10707_v8  ;;  %v10732_v8 = vld [vmem:[#allocation6 + $0x30] ss:$8 sps:$4 sm:$0xff]  }
  0xd6   : > { %9545 = vmatpush3.bf16.msra.mxu0 %v10708_v9 }
  0xd7   : > { %9546 = vmatprep.subr.bf16.mxu0 %v10709_v10 }
  0xda   : > { %9547 = vmatpush3.bf16.msra.mxu0 %v10710_v11 }
  0xdb   : > { %9548 = vmatprep.subr.bf16.mxu0 %v10711_v12 }
  0xde   : > { %9549 = vmatpush3.bf16.msra.mxu0 %v10712_v13 }
  0xdf   : > { %9550 = vmatprep.subr.bf16.mxu0 %v10713_v14 }
  0xe2   : > { %9551 = vmatpush3.bf16.msra.mxu0 %v10714_v15 }
  0xe3   : > { %9552 = vmatprep.subr.bf16.mxu0 %v10715_v16 }
  0xe6   : > { %9553 = vmatpush3.bf16.msra.mxu0 %v10716_v17 }
  0xe7   : > { %9554 = vmatprep.subr.bf16.mxu0 %v10717_v18 }
  0xea   : > { %9555 = vmatpush3.bf16.msra.mxu0 %v10718_v19 }
  0xed   : > { %1294 = vmatmul.mubr.bf16.vlgmr.msra.gmra.mrb[4].mxu0 %v665_v5  ;;  %v10731_v5 = vld [vmem:[#allocation6 + $0x24] ss:$8 sps:$4 sm:$0xff]  }
 0x1a0   : > { %v1213_v20 = vpop.f32.mrb[0].mxu0  ;;  %v1254_v21 = vpop.f32.mrb[0].mxu1 }
 0x1a1   : > { %v1215_v22 = vpop.f32.mrb[1].mxu0  ;;  %v1256_v23 = vpop.f32.mrb[1].mxu1  ;;  %v1303_v24 = vpack.c.bf16 %v1254_v21, %v1254_v21  ;;  %v1301_v25 = vpack.c.bf16 %v1213_v20, %v1213_v20 }
 0x1a2   : > { %v1302_v26 = vpack.c.bf16 %v1215_v22, %v1215_v22  ;;  %v1217_v27 = vpop.f32.mrb[2].mxu0  ;;  %v1304_v28 = vpack.c.bf16 %v1256_v23, %v1256_v23  ;;  %v1258_v29 = vpop.f32.mrb[2].mxu1 }
 0x1a3   : > { %v1218_v30 = vpop.f32.mrb[3].mxu0  ;;  %v1324_v31 = vrot.slane %v1303_v24, 4  ;;  %1322 = vst.msk [vmem:[#allocation2 + $0x10] sm:$0xf] %vm1306_vm0, %v1303_v24  ;;  %v1309_v32 = vrot.slane %v1301_v25, 4  ;;  %v1259_v33 = vpop.f32.mrb[3].mxu1 }
 0x1a4   : > { %1307 = vst.msk [vmem:[#allocation2] sm:$0xf] %vm1306_vm0, %v1301_v25  ;;  %1315 = vst.msk [vmem:[#allocation2 + $0x8] sm:$0xf] %vm1306_vm0, %v1302_v26  ;;  %v1331_v34 = vrot.slane %v1304_v28, 4  ;;  %v1317_v35 = vrot.slane %v1302_v26, 4 }
 0x1a5   : > { %1329 = vst.msk [vmem:[#allocation2 + $0x18] sm:$0xf] %vm1306_vm0, %v1304_v28  ;;  %1325 = vrot.lane.b32.xlu1 %v1324_v31, %s11523_s20  ;;  %1310 = vrot.lane.b32.xlu0 %v1309_v32, %s11523_s20 }
 0x1a9   : > { %1332 = vrot.lane.b32.xlu1 %v1331_v34, %s11523_s20  ;;  %1318 = vrot.lane.b32.xlu0 %v1317_v35, %s11523_s20 }
 0x1ad   : > { %1365 = vperm.xlu1 %10606, %v1351_v37   ;;  %1360 = vperm.xlu0 %10605, %v1350_v38  }
 0x1b1   : > { %1370 = vperm.xlu1 %10606, %v1352_v40   ;;  %1375 = vperm.xlu0 %10605, %v1353_v41  }
 0x1b5   : > { %1380 = vperm.xlu1 %10606, %v1354_v47   ;;  %1385 = vperm.xlu0 %10605, %v1355_v48  }
 0x1b9   : > { %1390 = vperm.xlu1 %10606, %v1356_v50   ;;  %1395 = vperm.xlu0 %10605, %v1357_v51  }
 0x1c0   : > { %v9556_v42 = vpop.f32.mrb[4].mxu0 }
 0x1c1   : > { %v9557_v43 = vpop.f32.mrb[5].mxu0 }
 0x1c2   : > { %v9558_v44 = vadd.f32 %v9557_v43, %v9556_v42  ;;  %v9559_v45 = vpop.f32.mrb[6].mxu0 }
 0x1c3   : > { %v9560_v46 = vpop.f32.mrb[7].mxu0 }
 0x1c4   : > { %v1305_v49 = vpack.c.bf16 %v9558_v44, %v9558_v44 }
 0x1c6   : > { %1336 = vst.msk [vmem:[#allocation2 + $0x20] sm:$0xf] %vm1306_vm0, %v1305_v49 }
 0x1cd   : > { %v1349_v60 = vld [vmem:[#allocation2 + $0x20] sm:$0xf] }
 0x1ce   : > { %v1433_v61 = vsel %vm1431_vm3, %v1349_v60, 0 }
 0x217   : > { %v1326_v52 = vpop.permute.xlu1 %1325  ;;  %v1311_v53 = vpop.permute.xlu0 %1310 }
 0x218   : > { %1328 = vst.msk [vmem:[#allocation2 + $0x10] sm:$0xf0] %vm1313_vm2, %v1326_v52  ;;  %1314 = vst.msk [vmem:[#allocation2] sm:$0xf0] %vm1313_vm2, %v1311_v53 }
 0x21b   : > { %v1333_v54 = vpop.permute.xlu1 %1332  ;;  %v1319_v55 = vpop.permute.xlu0 %1318 }
 0x21c   : > { %1335 = vst.msk [vmem:[#allocation2 + $0x18] sm:$0xf0] %vm1313_vm2, %v1333_v54  ;;  %1321 = vst.msk [vmem:[#allocation2 + $0x8] sm:$0xf0] %vm1313_vm2, %v1319_v55  ;;  %vm7741_vm2 = vcmask 261248  }
 0x21f   : > { %v1345_v56 = vld [vmem:[#allocation2] sm:$0xff]  ;;  %v1347_v58 = vld [vmem:[#allocation2 + $0x10] sm:$0xff] }
 0x220   : > { %10256 = vmatprep.subr.bf16.mxu1 %v1345_v56 }
 0x221   : > { %10257 = vmatpush3.bf16.msra.mxu1 %v1345_v56 }
 0x223   : > { %v1346_v57 = vld [vmem:[#allocation2 + $0x8] sm:$0xff]  ;;  %v1348_v59 = vld [vmem:[#allocation2 + $0x18] sm:$0xff] }
 0x224   : > { %10258 = vmatprep.subr.bf16.mxu1 %v1346_v57 }
 0x225   : > { %10259 = vmatpush3.bf16.msra.mxu1 %v1346_v57 }
 0x226   : > { %10260 = vmatprep.subr.bf16.mxu1 %v1347_v58 }
 0x229   : > { %10261 = vmatpush3.bf16.msra.mxu1 %v1347_v58 }
 0x22a   : > { %10262 = vmatprep.subr.bf16.mxu1 %v1348_v59 }
 0x22c   : > { %v1366_v9 = vpop.permute.xlu1 %1365  ;;  %v1361_v10 = vpop.permute.xlu0 %1360 }
 0x22d   : > { %10263 = vmatpush3.bf16.msra.mxu1 %v1348_v59 }
 0x22e   : > { %10528 = vmatprep.subr.msk.bf16.mxu1 %vm1431_vm3, %v1349_v60  ;;  %vm7762_vm3 = vcmask 392448  }
 0x230   : > { %v1371_v11 = vpop.permute.xlu1 %1370  ;;  %v1376_v12 = vpop.permute.xlu0 %1375 }
 0x231   : > { %10265 = vmatpush3.bf16.msra.mxu1 %v1433_v61 }
 0x232   : > { %1573 = vmatprep.subr.bf16.mxu1 %v10725_v62 }
 0x234   : > { %10267 = vmatmul.mubr.msk.bf16.vlgmr.msra.gmra.mrb[4].mxu1 %vm1418_vm1, %v10720_v63  ;;  %v1381_v16 = vpop.permute.xlu1 %1380  ;;  %v1386_v21 = vpop.permute.xlu0 %1385 }
 0x235   : > { %10270 = vmatprep.mubr.msk.bf16.mxu1 %vm1418_vm1, %v10721_v0  ;;  %1574 = vmatpush1.bf16.msra.mxu1 %v10723_v1 }
 0x236   : > { %1575 = vmatprep.subr.bf16.mxu1 %v10728_v2 }
 0x238   : > { %v1391_v28 = vpop.permute.xlu1 %1390  ;;  %v1396_v33 = vpop.permute.xlu0 %1395 }
 0x239   : > { %1576 = vmatpush1.bf16.msra.mxu1 %v10726_v3 }
 0x23a   : > { %1577 = vmatprep.subr.bf16.mxu1 %v10731_v5 }
 0x23c   : > { %10271 = vmatmul.mubr.msk.bf16.gmra.mrb[8].mxu1 %vm1418_vm1, %v10722_v4  ;;  %vm6926_vm1 = vcmask 293888  }
 0x23d   : > { %1605 = vmatprep.mubr.bf16.mxu1 %v14695_v39  ;;  %1578 = vmatpush1.bf16.msra.mxu1 %v10729_v6  ;;  %v10737_v6 = vld [vmem:[%s14669_s5 + $0x4] ss:$20 sps:$4 sm:$0xff]  }
 0x23e   : > { %1579 = vmatprep.subr.bf16.mxu1 %v10734_v7  ;;  %2215 = vmatprep.mubr.bf16.mxu0 %v10737_v6  ;;  %v1863_v7 = vld [vmem:[%s14670_s6] sm:$0xff] }
 0x241   : > { %1580 = vmatpush1.bf16.msra.mxu1 %v10732_v8  ;;  %v10749_v8 = vld [vmem:[%s14669_s5 + $0xc] ss:$20 sps:$4 sm:$0xff]  }
 0x307   : > { %v10268_v13 = vpop.f32.mrb[4].mxu1 }
 0x308   : > { %v1478_v14 = vadd.f32 %v10268_v13, %v1371_v11  ;;  %v1469_v15 = vpop.f32.mrb[5].mxu1  ;;  %v1864_v11 = vld [vmem:[%s14670_s6 + $0x8] sm:$0xff]  ;;  %v1866_v13 = vld [vmem:[%s14670_s6 + $0x18] sm:$0xff] }
 0x309   : > { %v1470_v17 = vadd.f32 %v1469_v15, %v1361_v10  ;;  %v10269_v18 = vpop.f32.mrb[6].mxu1  ;;  %v1867_v10 = vld [vmem:[%s14670_s6 + $0x20] sm:$0xff]  ;;  %v1868_v15 = vld [vmem:[%s14670_s6 + $0x28] sm:$0xff] }
 0x30a   : > { %v1481_v19 = vadd.f32 %v10269_v18, %v1376_v12  ;;  %v1472_v20 = vpop.f32.mrb[7].mxu1  ;;  %v1502_v23 = vmax.f32 %v1478_v14, 0.0  ;;  %v1869_v12 = vld [vmem:[%s14670_s6 + $0x30] sm:$0xff]  ;;  %v1871_v14 = vld [vmem:[%s14670_s6 + $0x40] sm:$0xff] }
 0x30b   : > { %v1473_v22 = vadd.f32 %v1472_v20, %v1366_v9  ;;  %v1500_v25 = vmax.f32 %v1470_v17, 0.0  ;;  %v1865_v9 = vld [vmem:[%s14670_s6 + $0x10] sm:$0xff]  ;;  %v1870_v17 = vld [vmem:[%s14670_s6 + $0x38] sm:$0xff]  ;;  %v1875_v18 = vld [vmem:[%s14670_s6 + $0x60] sm:$0xff] }
 0x30c   : > { %v1503_v24 = vmax.f32 %v1481_v19, 0.0  ;;  %v1872_v19 = vld [vmem:[%s14670_s6 + $0x48] sm:$0xff]  ;;  %v1877_v20 = vld [vmem:[%s14670_s6 + $0x70] sm:$0xff] }
 0x30d   : > { %v1501_v26 = vmax.f32 %v1473_v22, 0.0  ;;  %v1876_v22 = vld [vmem:[%s14670_s6 + $0x68] sm:$0xff] }
 0x30e   : > { %v1509_v27 = vpack.c.bf16 %v1503_v24, %v1502_v23  ;;  %v1878_v23 = vld [vmem:[%s14670_s6 + $0x78] sm:$0xff] }
 0x30f   : > { %v1508_v29 = vpack.c.bf16 %v1501_v26, %v1500_v25  ;;  %v10272_v30 = vpop.f32.mrb[8].mxu1 }
 0x310   : > { %v1494_v31 = vadd.f32 %v10272_v30, %v1391_v28  ;;  %v1485_v32 = vpop.f32.mrb[9].mxu1 }
 0x311   : > { %v1486_v34 = vadd.f32 %v1485_v32, %v1381_v16  ;;  %v10273_v35 = vpop.f32.mrb[10].mxu1  ;;  %9042 = vmatmul.mubr.msk.bf16.vlgmr.msra.gmra.mrb[12].mxu1 %vm1560_vm4, %v1508_v29  ;;  %v1873_v16 = vld [vmem:[%s14670_s6 + $0x50] sm:$0xff] }
 0x312   : > { %v1497_v36 = vadd.f32 %v10273_v35, %v1396_v33  ;;  %v1488_v37 = vpop.f32.mrb[11].mxu1  ;;  %1615 = vmatprep.mubr.bf16.mxu1 %v14695_v39  ;;  %v1506_v40 = vmax.f32 %v1494_v31, 0.0 }
 0x313   : > { %v1489_v38 = vadd.f32 %v1488_v37, %v1386_v21  ;;  %v1504_v42 = vmax.f32 %v1486_v34, 0.0  ;;  %v1874_v21 = vld [vmem:[%s14670_s6 + $0x58] sm:$0xff] }
 0x314   : > { %v1507_v41 = vmax.f32 %v1497_v36, 0.0 }
 0x315   : > { %v1505_v43 = vmax.f32 %v1489_v38, 0.0 }
 0x316   : > { %v1511_v44 = vpack.c.bf16 %v1507_v41, %v1506_v40 }
 0x317   : > { %v1510_v45 = vpack.c.bf16 %v1505_v43, %v1504_v42 }
 0x319   : > { %9043 = vmatmul.mubr.msk.bf16.gmra.mrb[16].mxu1 %vm1560_vm4, %v1509_v27 }
 0x31a   : > { %1625 = vmatprep.mubr.bf16.mxu1 %v14695_v39 }
 0x321   : > { %9044 = vmatmul.mubr.msk.bf16.gmra.mrb[20].mxu1 %vm1560_vm4, %v1510_v45 }
 0x322   : > { %1635 = vmatprep.mubr.bf16.mxu1 %v14695_v39 }
 0x329   : > { %9045 = vmatmul.mubr.msk.bf16.gmra.mrb[24].mxu1 %vm1560_vm4, %v1511_v44 }
 0x32a   : > { %2312 = vmatprep.mubr.bf16.mxu1 %v10749_v8  ;;  %v10740_v8 = vld [vmem:[%s14669_s5 + $0x28] ss:$20 sps:$4 sm:$0xff]  }
 0x3e4   : > { %v1607_v46 = vpop.f32.mrb[12].mxu1 }
 0x3e5   : > { %v1609_v47 = vpop.f32.mrb[13].mxu1 }
 0x3e6   : > { %v1611_v48 = vpop.f32.mrb[14].mxu1 }
 0x3e7   : > { %v1646_v49 = vpack.c.bf16 %v1611_v48, %v1607_v46  ;;  %v1613_v50 = vpop.f32.mrb[15].mxu1 }
 0x3e8   : > { %v1647_v51 = vpack.c.bf16 %v1613_v50, %v1609_v47 }
 0x3e9   : > { %1655 = vst.msk [vmem:[#allocation2] sm:$0xff] %vm1654_vm5, %v1646_v49  ;;  %1679 = vrot.lane.b32.xlu1 %v1646_v49, %s11525_s2 }
 0x3ea   : > { %1775 = vst.msk [vmem:[#allocation2 + $0x100] sm:$0xff] %vm1654_vm5, %v1647_v51 }
 0x3ec   : > { %v1617_v52 = vpop.f32.mrb[16].mxu1 }
 0x3ed   : > { %v1619_v53 = vpop.f32.mrb[17].mxu1 }
 0x3ee   : > { %v1621_v54 = vpop.f32.mrb[18].mxu1 }
 0x3ef   : > { %v1648_v55 = vpack.c.bf16 %v1621_v54, %v1617_v52  ;;  %v1623_v56 = vpop.f32.mrb[19].mxu1 }
 0x3f0   : > { %v1649_v57 = vpack.c.bf16 %v1623_v56, %v1619_v53  ;;  %v1827_v27 = vld [vmem:[#allocation2] sm:$0xff] }
 0x3f1   : > { %1656 = vst.msk [vmem:[#allocation2 + $0x8] sm:$0xff] %vm1654_vm5, %v1648_v55  ;;  %1681 = vrot.lane.b32.xlu0 %v1648_v55, %s11525_s2 }
 0x3f2   : > { %1776 = vst.msk [vmem:[#allocation2 + $0x108] sm:$0xff] %vm1654_vm5, %v1649_v57 }
 0x3f4   : > { %v1627_v58 = vpop.f32.mrb[20].mxu1 }
 0x3f5   : > { %v1629_v59 = vpop.f32.mrb[21].mxu1 }
 0x3f6   : > { %v1631_v60 = vpop.f32.mrb[22].mxu1 }
 0x3f7   : > { %v1650_v61 = vpack.c.bf16 %v1631_v60, %v1627_v58  ;;  %v1633_v62 = vpop.f32.mrb[23].mxu1  ;;  %v10735_v60 = vld [vmem:[%s14669_s5] ss:$20 sps:$4 sm:$0xff]  }
 0x3f8   : > { %v1651_v63 = vpack.c.bf16 %v1633_v62, %v1629_v59  ;;  %v1828_v30 = vld [vmem:[#allocation2 + $0x8] sm:$0xff] }
 0x3f9   : > { %1657 = vst.msk [vmem:[#allocation2 + $0x10] sm:$0xff] %vm1654_vm5, %v1650_v61  ;;  %1683 = vrot.lane.b32.xlu1 %v1650_v61, %s11525_s2  ;;  %v10738_v62 = vld [vmem:[%s14669_s5 + $0x2c] ss:$20 sps:$4 sm:$0xff]  }
 0x3fa   : > { %1777 = vst.msk [vmem:[#allocation2 + $0x110] sm:$0xff] %vm1654_vm5, %v1651_v63 }
 0x3fc   : > { %v1637_v0 = vpop.f32.mrb[24].mxu1 }
 0x3fd   : > { %1695 = vrot.lane.b32.xlu1 %v1646_v49, %s14693_s23  ;;  %v1639_v1 = vpop.f32.mrb[25].mxu1 }
 0x3fe   : > { %v1641_v2 = vpop.f32.mrb[26].mxu1 }
 0x3ff   : > { %v1652_v3 = vpack.c.bf16 %v1641_v2, %v1637_v0  ;;  %v1643_v4 = vpop.f32.mrb[27].mxu1 }
 0x400   : > { %v1653_v5 = vpack.c.bf16 %v1643_v4, %v1639_v1  ;;  %v1829_v35 = vld [vmem:[#allocation2 + $0x10] sm:$0xff] }
 0x401   : > { %1658 = vst.msk [vmem:[#allocation2 + $0x18] sm:$0xff] %vm1654_vm5, %v1652_v3  ;;  %1697 = vrot.lane.b32.xlu1 %v1648_v55, %s14693_s23  ;;  %1685 = vrot.lane.b32.xlu0 %v1652_v3, %s11525_s2 }
 0x402   : > { %1778 = vst.msk [vmem:[#allocation2 + $0x118] sm:$0xff] %vm1654_vm5, %v1653_v5 }
 0x405   : > { %1699 = vrot.lane.b32.xlu1 %v1650_v61, %s14693_s23  ;;  %1663 = vrot.lane.b32.xlu0 %v1646_v49, %s11527_s16 }
 0x408   : > { %v1830_v42 = vld [vmem:[#allocation2 + $0x18] sm:$0xff] }
 0x409   : > { %1701 = vrot.lane.b32.xlu1 %v1652_v3, %s14693_s23  ;;  %1665 = vrot.lane.b32.xlu0 %v1648_v55, %s11527_s16  ;;  %s11533_s23 = smov 116  }
 0x40d   : > { %1743 = vrot.lane.b32.xlu1 %v1646_v49, %s11528_s15  ;;  %1667 = vrot.lane.b32.xlu0 %v1650_v61, %s11527_s16 }
 0x411   : > { %1745 = vrot.lane.b32.xlu1 %v1648_v55, %s11528_s15  ;;  %1669 = vrot.lane.b32.xlu0 %v1652_v3, %s11527_s16 }
 0x415   : > { %1747 = vrot.lane.b32.xlu1 %v1650_v61, %s11528_s15  ;;  %1711 = vrot.lane.b32.xlu0 %v1646_v49, %s11523_s20 }
 0x419   : > { %1749 = vrot.lane.b32.xlu1 %v1652_v3, %s11528_s15  ;;  %1713 = vrot.lane.b32.xlu0 %v1648_v55, %s11523_s20 }
 0x41d   : > { %1759 = vrot.lane.b32.xlu1 %v1646_v49, %s11529_s17  ;;  %1715 = vrot.lane.b32.xlu0 %v1650_v61, %s11523_s20 }
 0x421   : > { %1761 = vrot.lane.b32.xlu1 %v1648_v55, %s11529_s17  ;;  %1717 = vrot.lane.b32.xlu0 %v1652_v3, %s11523_s20 }
 0x425   : > { %1763 = vrot.lane.b32.xlu1 %v1650_v61, %s11529_s17  ;;  %1727 = vrot.lane.b32.xlu0 %v1646_v49, %s11530_s18 }
 0x429   : > { %1765 = vrot.lane.b32.xlu1 %v1652_v3, %s11529_s17  ;;  %1729 = vrot.lane.b32.xlu0 %v1648_v55, %s11530_s18 }
 0x42d   : > { %1881 = vperm.xlu1 %10606, %v1863_v7   ;;  %1731 = vrot.lane.b32.xlu0 %v1650_v61, %s11530_s18  ;;  %v1859_v61 = vld [vmem:[#allocation2 + $0x100] sm:$0xff] }
 0x431   : > { %1891 = vperm.xlu1 %10606, %v1865_v9   ;;  %1733 = vrot.lane.b32.xlu0 %v1652_v3, %s11530_s18  ;;  %v1860_v3 = vld [vmem:[#allocation2 + $0x108] sm:$0xff]  ;;  %v1861_v9 = vld [vmem:[#allocation2 + $0x110] sm:$0xff] }
 0x435   : > { %1901 = vperm.xlu1 %10606, %v1867_v10   ;;  %1886 = vperm.xlu0 %10605, %v1864_v11   ;;  %v10741_v10 = vld [vmem:[%s14669_s5 + $0x54] ss:$20 sps:$4 sm:$0xff]  }
 0x439   : > { %1911 = vperm.xlu1 %10606, %v1869_v12   ;;  %1896 = vperm.xlu0 %10605, %v1866_v13  }
 0x43d   : > { %1921 = vperm.xlu1 %10606, %v1871_v14   ;;  %1906 = vperm.xlu0 %10605, %v1868_v15   ;;  %v1862_v15 = vld [vmem:[#allocation2 + $0x118] sm:$0xff] }
 0x441   : > { %1931 = vperm.xlu1 %10606, %v1873_v16   ;;  %1916 = vperm.xlu0 %10605, %v1870_v17  }
 0x445   : > { %1941 = vperm.xlu1 %10606, %v1875_v18   ;;  %1926 = vperm.xlu0 %10605, %v1872_v19  }
 0x449   : > { %1951 = vperm.xlu1 %10606, %v1877_v20   ;;  %1936 = vperm.xlu0 %10605, %v1874_v21   ;;  %v10743_v20 = vld [vmem:[%s14669_s5 + $0x50] ss:$20 sps:$4 sm:$0xff]  }
 0x44a   : > { %v10744_v21 = vld [vmem:[%s14669_s5 + $0x7c] ss:$20 sps:$4 sm:$0xff]  }
 0x44d   : > { %1946 = vperm.xlu0 %10605, %v1876_v22  }
 0x451   : > { %1956 = vperm.xlu0 %10605, %v1878_v23  }
 0x45b   : > { %v1680_v24 = vpop.permute.xlu1 %1679 }
 0x45c   : > { %1691 = vst.msk [vmem:[#allocation2 + $0x40] sm:$0xff] %vm1654_vm5, %v1680_v24 }
 0x463   : > { %v1682_v25 = vpop.permute.xlu0 %1681  ;;  %v1835_v26 = vld [vmem:[#allocation2 + $0x40] sm:$0xff] }
 0x464   : > { %1692 = vst.msk [vmem:[#allocation2 + $0x48] sm:$0xff] %vm1654_vm5, %v1682_v25  ;;  %9571 = vmatprep.subr.bf16.mxu0 %v1835_v26 }
 0x465   : > { %9572 = vmatpush3.bf16.msra.mxu0 %v1827_v27 }
 0x46b   : > { %v1684_v28 = vpop.permute.xlu1 %1683  ;;  %v1836_v29 = vld [vmem:[#allocation2 + $0x48] sm:$0xff] }
 0x46c   : > { %1693 = vst.msk [vmem:[#allocation2 + $0x50] sm:$0xff] %vm1654_vm5, %v1684_v28  ;;  %9573 = vmatprep.subr.bf16.mxu0 %v1836_v29  ;;  %v10746_v28 = vld [vmem:[%s14669_s5 + $0x78] ss:$20 sps:$4 sm:$0xff]  }
 0x46d   : > { %9574 = vmatpush3.bf16.msra.mxu0 %v1828_v30  ;;  %v10750_v29 = vld [vmem:[%s14669_s5 + $0xa4] ss:$20 sps:$4 sm:$0xff]  }
 0x46f   : > { %v1696_v31 = vpop.permute.xlu1 %1695 }
 0x470   : > { %1707 = vst.msk [vmem:[#allocation2 + $0x60] sm:$0xff] %vm1654_vm5, %v1696_v31 }
 0x473   : > { %v1698_v32 = vpop.permute.xlu1 %1697  ;;  %v1686_v33 = vpop.permute.xlu0 %1685  ;;  %v1837_v34 = vld [vmem:[#allocation2 + $0x50] sm:$0xff] }
 0x474   : > { %1708 = vst.msk [vmem:[#allocation2 + $0x68] sm:$0xff] %vm1654_vm5, %v1698_v32  ;;  %1694 = vst.msk [vmem:[#allocation2 + $0x58] sm:$0xff] %vm1654_vm5, %v1686_v33  ;;  %9575 = vmatprep.subr.bf16.mxu0 %v1837_v34  ;;  %v10747_v33 = vld [vmem:[%s14669_s5 + $0x8] ss:$20 sps:$4 sm:$0xff]   ;;  %v10752_v34 = vld [vmem:[%s14669_s5 + $0xa0] ss:$20 sps:$4 sm:$0xff]  }
 0x475   : > { %9576 = vmatpush3.bf16.msra.mxu0 %v1829_v35  ;;  %v10753_v35 = vld [vmem:[%s14669_s5 + $0x34] ss:$20 sps:$4 sm:$0xff]  }
 0x477   : > { %v1700_v36 = vpop.permute.xlu1 %1699  ;;  %v1664_v37 = vpop.permute.xlu0 %1663  ;;  %v1839_v43 = vld [vmem:[#allocation2 + $0x60] sm:$0xff] }
 0x478   : > { %1709 = vst.msk [vmem:[#allocation2 + $0x70] sm:$0xff] %vm1654_vm5, %v1700_v36  ;;  %1675 = vst.msk [vmem:[#allocation2 + $0x20] sm:$0xff] %vm1654_vm5, %v1664_v37  ;;  %v10755_v36 = vld [vmem:[%s14669_s5 + $0xcc] ss:$20 sps:$4 sm:$0xff]   ;;  %v10757_v37 = vld [vmem:[%s14669_s5 + $0x30] ss:$20 sps:$4 sm:$0xff]  }
 0x47b   : > { %v1702_v38 = vpop.permute.xlu1 %1701  ;;  %v1666_v40 = vpop.permute.xlu0 %1665  ;;  %v1838_v41 = vld [vmem:[#allocation2 + $0x58] sm:$0xff]  ;;  %v1840_v47 = vld [vmem:[#allocation2 + $0x68] sm:$0xff] }
 0x47c   : > { %1710 = vst.msk [vmem:[#allocation2 + $0x78] sm:$0xff] %vm1654_vm5, %v1702_v38  ;;  %1676 = vst.msk [vmem:[#allocation2 + $0x28] sm:$0xff] %vm1654_vm5, %v1666_v40  ;;  %9577 = vmatprep.subr.bf16.mxu0 %v1838_v41  ;;  %v10758_v38 = vld [vmem:[%s14669_s5 + $0xc8] ss:$20 sps:$4 sm:$0xff]  }
 0x47d   : > { %9578 = vmatpush3.bf16.msra.mxu0 %v1830_v42  ;;  %v10759_v40 = vld [vmem:[%s14669_s5 + $0x5c] ss:$20 sps:$4 sm:$0xff]   ;;  %v10761_v41 = vld [vmem:[%s14669_s5 + $0xf4] ss:$20 sps:$4 sm:$0xff]   ;;  %v10763_v42 = vld [vmem:[%s14669_s5 + $0x58] ss:$20 sps:$4 sm:$0xff]  }
 0x47e   : > { %9579 = vmatprep.subr.bf16.mxu0 %v1839_v43  ;;  %v10764_v43 = vld [vmem:[%s14669_s5 + $0xf0] ss:$20 sps:$4 sm:$0xff]  }
 0x47f   : > { %v1744_v44 = vpop.permute.xlu1 %1743  ;;  %v1668_v45 = vpop.permute.xlu0 %1667  ;;  %v1831_v46 = vld [vmem:[#allocation2 + $0x20] sm:$0xff]  ;;  %v1841_v51 = vld [vmem:[#allocation2 + $0x70] sm:$0xff] }
 0x480   : > { %1755 = vst.msk [vmem:[#allocation2 + $0xc0] sm:$0xff] %vm1654_vm5, %v1744_v44  ;;  %1677 = vst.msk [vmem:[#allocation2 + $0x30] sm:$0xff] %vm1654_vm5, %v1668_v45  ;;  %v10765_v44 = vld [vmem:[%s14669_s5 + $0x84] ss:$20 sps:$4 sm:$0xff]   ;;  %v10767_v45 = vld [vmem:[%s14669_s5 + $0x11c] ss:$20 sps:$4 sm:$0xff]  }
 0x481   : > { %9580 = vmatpush3.bf16.msra.mxu0 %v1831_v46  ;;  %v10769_v46 = vld [vmem:[%s14669_s5 + $0x80] ss:$20 sps:$4 sm:$0xff]  }
 0x482   : > { %9581 = vmatprep.subr.bf16.mxu0 %v1840_v47  ;;  %v10770_v47 = vld [vmem:[%s14669_s5 + $0x118] ss:$20 sps:$4 sm:$0xff]  }
 0x483   : > { %v1746_v48 = vpop.permute.xlu1 %1745  ;;  %v1670_v49 = vpop.permute.xlu0 %1669  ;;  %v1832_v50 = vld [vmem:[#allocation2 + $0x28] sm:$0xff]  ;;  %v1842_v56 = vld [vmem:[#allocation2 + $0x78] sm:$0xff] }
 0x484   : > { %1756 = vst.msk [vmem:[#allocation2 + $0xc8] sm:$0xff] %vm1654_vm5, %v1746_v48  ;;  %1678 = vst.msk [vmem:[#allocation2 + $0x38] sm:$0xff] %vm1654_vm5, %v1670_v49  ;;  %v10771_v48 = vld [vmem:[%s14669_s5 + $0xac] ss:$20 sps:$4 sm:$0xff]   ;;  %v10774_v49 = vld [vmem:[%s14669_s5 + $0x10] ss:$20 sps:$4 sm:$0xff]  }
 0x485   : > { %9582 = vmatpush3.bf16.msra.mxu0 %v1832_v50  ;;  %v10773_v50 = vld [vmem:[%s14669_s5 + $0xa8] ss:$20 sps:$4 sm:$0xff]  }
 0x486   : > { %9583 = vmatprep.subr.bf16.mxu0 %v1841_v51  ;;  %v10775_v51 = vld [vmem:[%s14669_s5 + $0x38] ss:$20 sps:$4 sm:$0xff]  }
 0x487   : > { %v1748_v52 = vpop.permute.xlu1 %1747  ;;  %v1712_v53 = vpop.permute.xlu0 %1711  ;;  %v1851_v54 = vld [vmem:[#allocation2 + $0xc0] sm:$0xff]  ;;  %v1833_v55 = vld [vmem:[#allocation2 + $0x30] sm:$0xff] }
 0x488   : > { %1757 = vst.msk [vmem:[#allocation2 + $0xd0] sm:$0xff] %vm1654_vm5, %v1748_v52  ;;  %1723 = vst.msk [vmem:[#allocation2 + $0x80] sm:$0xff] %vm1654_vm5, %v1712_v53  ;;  %9635 = vmatprep.subr.bf16.mxu1 %v1851_v54  ;;  %v10776_v52 = vld [vmem:[%s14669_s5 + $0xd4] ss:$20 sps:$4 sm:$0xff]   ;;  %v10778_v54 = vld [vmem:[%s14669_s5 + $0xd0] ss:$20 sps:$4 sm:$0xff]  }
 0x489   : > { %9584 = vmatpush3.bf16.msra.mxu0 %v1833_v55  ;;  %v10779_v53 = vld [vmem:[%s14669_s5 + $0x60] ss:$20 sps:$4 sm:$0xff]   ;;  %v10780_v55 = vld [vmem:[%s14669_s5 + $0x88] ss:$20 sps:$4 sm:$0xff]  }
 0x48a   : > { %9585 = vmatprep.subr.bf16.mxu0 %v1842_v56  ;;  %v10781_v56 = vld [vmem:[%s14669_s5 + $0xfc] ss:$20 sps:$4 sm:$0xff]  }
 0x48b   : > { %v1750_v57 = vpop.permute.xlu1 %1749  ;;  %v1714_v58 = vpop.permute.xlu0 %1713  ;;  %v1834_v59 = vld [vmem:[#allocation2 + $0x38] sm:$0xff]  ;;  %v1852_v2 = vld [vmem:[#allocation2 + $0xc8] sm:$0xff] }
 0x48c   : > { %1758 = vst.msk [vmem:[#allocation2 + $0xd8] sm:$0xff] %vm1654_vm5, %v1750_v57  ;;  %1724 = vst.msk [vmem:[#allocation2 + $0x88] sm:$0xff] %vm1654_vm5, %v1714_v58  ;;  %v10784_v57 = vld [vmem:[%s14669_s5 + $0xb0] ss:$20 sps:$4 sm:$0xff]   ;;  %v10783_v58 = vld [vmem:[%s14669_s5 + $0xf8] ss:$20 sps:$4 sm:$0xff]  }
 0x48d   : > { %9586 = vmatpush3.bf16.msra.mxu0 %v1834_v59  ;;  %v10785_v59 = vld [vmem:[%s14669_s5 + $0xd8] ss:$20 sps:$4 sm:$0xff]  }
 0x48e   : > { %10274 = vmatprep.subr.bf16.mxu0 %v1859_v61 }
 0x48f   : > { %v1760_v63 = vpop.permute.xlu1 %1759  ;;  %v1716_v0 = vpop.permute.xlu0 %1715  ;;  %v1843_v1 = vld [vmem:[#allocation2 + $0x80] sm:$0xff]  ;;  %v1853_v7 = vld [vmem:[#allocation2 + $0xd0] sm:$0xff] }
 0x490   : > { %1771 = vst.msk [vmem:[#allocation2 + $0xe0] sm:$0xff] %vm1654_vm5, %v1760_v63  ;;  %1725 = vst.msk [vmem:[#allocation2 + $0x90] sm:$0xff] %vm1654_vm5, %v1716_v0  ;;  %2216 = vmatmul.mubr.bf16.vlgmr.msra.gmra.mrb[8].mxu0 %v10735_v60  ;;  %9636 = vmatpush3.bf16.msra.mxu1 %v1843_v1  ;;  %v10786_v60 = vld [vmem:[%s14669_s5 + $0x124] ss:$20 sps:$4 sm:$0xff]   ;;  %v10790_v63 = vld [vmem:[%s14669_s5 + $0x128] ss:$20 sps:$4 sm:$0xff]  }
 0x491   : > { %9637 = vmatprep.subr.bf16.mxu1 %v1852_v2  ;;  %10275 = vmatpush3.bf16.msra.mxu0 %v1859_v61  ;;  %v10789_v61 = vld [vmem:[%s14669_s5 + $0x100] ss:$20 sps:$4 sm:$0xff]  }
 0x492   : > { %10276 = vmatprep.subr.bf16.mxu0 %v1860_v3  ;;  %2223 = vmatprep.mubr.bf16.mxu0 %v10738_v62  ;;  %v10788_v62 = vld [vmem:[%s14669_s5 + $0x120] ss:$20 sps:$4 sm:$0xff]  }
 0x493   : > { %v1762_v4 = vpop.permute.xlu1 %1761  ;;  %v1718_v5 = vpop.permute.xlu0 %1717  ;;  %v1844_v6 = vld [vmem:[#allocation2 + $0x88] sm:$0xff]  ;;  %v1854_v14 = vld [vmem:[#allocation2 + $0xd8] sm:$0xff]  ;;  %v10791_v0 = vld [vmem:[#allocation8] sm:$0xff]  }
 0x494   : > { %1772 = vst.msk [vmem:[#allocation2 + $0xe8] sm:$0xff] %vm1654_vm5, %v1762_v4  ;;  %1726 = vst.msk [vmem:[#allocation2 + $0x98] sm:$0xff] %vm1654_vm5, %v1718_v5  ;;  %9638 = vmatpush3.bf16.msra.mxu1 %v1844_v6 }
 0x495   : > { %9639 = vmatprep.subr.bf16.mxu1 %v1853_v7  ;;  %10277 = vmatpush3.bf16.msra.mxu0 %v1860_v3 }
 0x496   : > { %10278 = vmatprep.subr.bf16.mxu0 %v1861_v9 }
 0x497   : > { %v1764_v11 = vpop.permute.xlu1 %1763  ;;  %v1728_v12 = vpop.permute.xlu0 %1727  ;;  %v1845_v13 = vld [vmem:[#allocation2 + $0x90] sm:$0xff]  ;;  %v1855_v19 = vld [vmem:[#allocation2 + $0xe0] sm:$0xff] }
 0x498   : > { %1773 = vst.msk [vmem:[#allocation2 + $0xf0] sm:$0xff] %vm1654_vm5, %v1764_v11  ;;  %1739 = vst.msk [vmem:[#allocation2 + $0xa0] sm:$0xff] %vm1654_vm5, %v1728_v12  ;;  %2224 = vmatmul.mubr.bf16.gmra.mrb[12].mxu0 %v10740_v8  ;;  %9640 = vmatpush3.bf16.msra.mxu1 %v1845_v13 }
 0x499   : > { %9641 = vmatprep.subr.bf16.mxu1 %v1854_v14  ;;  %10279 = vmatpush3.bf16.msra.mxu0 %v1861_v9 }
 0x49a   : > { %10280 = vmatprep.subr.bf16.mxu0 %v1862_v15  ;;  %2231 = vmatprep.mubr.bf16.mxu0 %v10741_v10 }
 0x49b   : > { %v1766_v16 = vpop.permute.xlu1 %1765  ;;  %v1730_v17 = vpop.permute.xlu0 %1729  ;;  %v1846_v18 = vld [vmem:[#allocation2 + $0x98] sm:$0xff]  ;;  %v1856_v24 = vld [vmem:[#allocation2 + $0xe8] sm:$0xff] }
 0x49c   : > { %1774 = vst.msk [vmem:[#allocation2 + $0xf8] sm:$0xff] %vm1654_vm5, %v1766_v16  ;;  %1740 = vst.msk [vmem:[#allocation2 + $0xa8] sm:$0xff] %vm1654_vm5, %v1730_v17  ;;  %9642 = vmatpush3.bf16.msra.mxu1 %v1846_v18 }
 0x49d   : > { %9643 = vmatprep.subr.bf16.mxu1 %v1855_v19  ;;  %10281 = vmatpush3.bf16.msra.mxu0 %v1862_v15 }
 0x49f   : > { %v1732_v22 = vpop.permute.xlu0 %1731  ;;  %v1847_v23 = vld [vmem:[#allocation2 + $0xa0] sm:$0xff]  ;;  %v1857_v27 = vld [vmem:[#allocation2 + $0xf0] sm:$0xff] }
 0x4a0   : > { %1741 = vst.msk [vmem:[#allocation2 + $0xb0] sm:$0xff] %vm1654_vm5, %v1732_v22  ;;  %2232 = vmatmul.mubr.bf16.gmra.mrb[16].mxu0 %v10743_v20  ;;  %9644 = vmatpush3.bf16.msra.mxu1 %v1847_v23 }
 0x4a1   : > { %9645 = vmatprep.subr.bf16.mxu1 %v1856_v24  ;;  %2239 = vmatprep.mubr.bf16.mxu0 %v10744_v21 }
 0x4a3   : > { %v1734_v25 = vpop.permute.xlu0 %1733  ;;  %v1848_v26 = vld [vmem:[#allocation2 + $0xa8] sm:$0xff]  ;;  %v1858_v31 = vld [vmem:[#allocation2 + $0xf8] sm:$0xff] }
 0x4a4   : > { %1742 = vst.msk [vmem:[#allocation2 + $0xb8] sm:$0xff] %vm1654_vm5, %v1734_v25  ;;  %9646 = vmatpush3.bf16.msra.mxu1 %v1848_v26 }
 0x4a5   : > { %9647 = vmatprep.subr.bf16.mxu1 %v1857_v27 }
 0x4a7   : > { %v1849_v30 = vld [vmem:[#allocation2 + $0xb0] sm:$0xff] }
 0x4a8   : > { %2240 = vmatmul.mubr.bf16.gmra.mrb[20].mxu0 %v10746_v28  ;;  %9648 = vmatpush3.bf16.msra.mxu1 %v1849_v30 }
 0x4a9   : > { %9649 = vmatprep.subr.bf16.mxu1 %v1858_v31  ;;  %2247 = vmatprep.mubr.bf16.mxu0 %v10750_v29 }
 0x4ab   : > { %v1850_v32 = vld [vmem:[#allocation2 + $0xb8] sm:$0xff] }
 0x4ac   : > { %9650 = vmatpush3.bf16.msra.mxu1 %v1850_v32  ;;  %v1882_v25 = vpop.permute.xlu1 %1881 }
 0x4ad   : > { %10298 = vmatprep.subr.bf16.mxu1 %v10791_v0 }
 0x4af   : > { %2313 = vmatmul.mubr.bf16.vlgmr.msra.gmra.mrb[28].mxu1 %v10747_v33 }
 0x4b0   : > { %2248 = vmatmul.mubr.bf16.gmra.mrb[24].mxu0 %v10752_v34  ;;  %2320 = vmatprep.mubr.bf16.mxu1 %v10753_v35 }
 0x4b1   : > { %2255 = vmatprep.mubr.bf16.mxu0 %v10755_v36  ;;  %10299 = vmatpush3.bf16.msra.mxu1 %v10791_v0 }
 0x4b4   : > { %v1887_v26 = vpop.permute.xlu0 %1886 }
 0x4b7   : > { %2321 = vmatmul.mubr.bf16.gmra.mrb[32].mxu1 %v10757_v37 }
 0x4b8   : > { %2256 = vmatmul.mubr.bf16.gmra.mrb[28].mxu0 %v10758_v38  ;;  %2328 = vmatprep.mubr.bf16.mxu1 %v10759_v40 }
 0x4b9   : > { %2263 = vmatprep.mubr.bf16.mxu0 %v10761_v41 }
 0x4bf   : > { %2329 = vmatmul.mubr.bf16.gmra.mrb[36].mxu1 %v10763_v42 }
 0x4c0   : > { %2264 = vmatmul.mubr.bf16.gmra.mrb[32].mxu0 %v10764_v43  ;;  %2336 = vmatprep.mubr.bf16.mxu1 %v10765_v44  ;;  %v1892_v44 = vpop.permute.xlu1 %1891 }
 0x4c1   : > { %2271 = vmatprep.mubr.bf16.mxu0 %v10767_v45  ;;  %v1897_v45 = vpop.permute.xlu0 %1896 }
 0x4c7   : > { %2337 = vmatmul.mubr.bf16.gmra.mrb[40].mxu1 %v10769_v46 }
 0x4c8   : > { %2272 = vmatmul.mubr.bf16.gmra.mrb[36].mxu0 %v10770_v47  ;;  %2344 = vmatprep.mubr.bf16.mxu1 %v10771_v48 }
 0x4c9   : > { %10282 = vmatprep.mubr.msk.bf16.mxu0 %vm1560_vm4, %v10774_v49 }
 0x4cf   : > { %2345 = vmatmul.mubr.bf16.gmra.mrb[44].mxu1 %v10773_v50 }
 0x4d0   : > { %10283 = vmatmul.mubr.msk.bf16.vlgmr.msra.gmra.mrb[40].mxu0 %vm1560_vm4, %v10775_v51  ;;  %2352 = vmatprep.mubr.bf16.mxu1 %v10776_v52 }
 0x4d1   : > { %10286 = vmatprep.mubr.msk.bf16.mxu0 %vm1560_vm4, %v10779_v53 }
 0x4d7   : > { %2353 = vmatmul.mubr.bf16.gmra.mrb[48].mxu1 %v10778_v54 }
 0x4d8   : > { %10287 = vmatmul.mubr.msk.bf16.gmra.mrb[44].mxu0 %vm1560_vm4, %v10780_v55  ;;  %2360 = vmatprep.mubr.bf16.mxu1 %v10781_v56 }
 0x4d9   : > { %10290 = vmatprep.mubr.msk.bf16.mxu0 %vm1560_vm4, %v10784_v57 }
 0x4df   : > { %2361 = vmatmul.mubr.bf16.gmra.mrb[52].mxu1 %v10783_v58 }
 0x4e0   : > { %10291 = vmatmul.mubr.msk.bf16.gmra.mrb[48].mxu0 %vm1560_vm4, %v10785_v59  ;;  %2368 = vmatprep.mubr.bf16.mxu1 %v10786_v60 }
 0x4e1   : > { %10294 = vmatprep.mubr.msk.bf16.mxu0 %vm1560_vm4, %v10789_v61 }
 0x4e7   : > { %2369 = vmatmul.mubr.bf16.gmra.mrb[56].mxu1 %v10788_v62  ;;  %v1902_v62 = vpop.permute.xlu1 %1901 }
 0x4e8   : > { %10295 = vmatmul.mubr.msk.bf16.gmra.mrb[52].mxu0 %vm1560_vm4, %v10790_v63  ;;  %v1907_v63 = vpop.permute.xlu0 %1906 }
 0x563   : > { %v9587_v1 = vpop.f32.mrb[8].mxu0 }
 0x564   : > { %v9588_v2 = vpop.f32.mrb[9].mxu0 }
 0x565   : > { %v9589_v3 = vadd.f32 %v9588_v2, %v9587_v1  ;;  %v9590_v4 = vpop.f32.mrb[10].mxu0 }
 0x566   : > { %v9591_v5 = vpop.f32.mrb[11].mxu0 }
 0x567   : > { %v9592_v6 = vadd.f32 %v9591_v5, %v9590_v4  ;;  %v2218_v30 = vadd.f32 %v9589_v3, %v1882_v25 }
 0x569   : > { %v2221_v37 = vadd.f32 %v9592_v6, %v1887_v26 }
 0x56b   : > { %v9593_v7 = vpop.f32.mrb[12].mxu0 }
 0x56c   : > { %v9594_v8 = vpop.f32.mrb[13].mxu0 }
 0x56d   : > { %v9595_v9 = vadd.f32 %v9594_v8, %v9593_v7  ;;  %v9596_v10 = vpop.f32.mrb[14].mxu0 }
 0x56e   : > { %v9597_v11 = vpop.f32.mrb[15].mxu0 }
 0x56f   : > { %v9598_v12 = vadd.f32 %v9597_v11, %v9596_v10  ;;  %v2226_v49 = vadd.f32 %v9595_v9, %v1892_v44 }
 0x571   : > { %v2229_v56 = vadd.f32 %v9598_v12, %v1897_v45 }
 0x573   : > { %v9599_v13 = vpop.f32.mrb[16].mxu0 }
 0x574   : > { %v9600_v14 = vpop.f32.mrb[17].mxu0 }
 0x575   : > { %v9601_v15 = vadd.f32 %v9600_v14, %v9599_v13  ;;  %v9602_v16 = vpop.f32.mrb[18].mxu0 }
 0x576   : > { %v9603_v17 = vpop.f32.mrb[19].mxu0 }
 0x577   : > { %v9604_v18 = vadd.f32 %v9603_v17, %v9602_v16  ;;  %v2234_v3 = vadd.f32 %v9601_v15, %v1902_v62  ;;  %v1912_v17 = vpop.permute.xlu1 %1911 }
 0x579   : > { %v2237_v10 = vadd.f32 %v9604_v18, %v1907_v63 }
 0x57b   : > { %v9605_v19 = vpop.f32.mrb[20].mxu0 }
 0x57c   : > { %v9606_v20 = vpop.f32.mrb[21].mxu0 }
 0x57d   : > { %v12325_v21 = vadd.f32 %v9606_v20, %v9605_v19  ;;  %v9608_v22 = vpop.f32.mrb[22].mxu0  ;;  %v1917_v19 = vpop.permute.xlu0 %1916 }
 0x57e   : > { %v9609_v23 = vpop.f32.mrb[23].mxu0 }
 0x57f   : > { %v12327_v24 = vadd.f32 %v9609_v23, %v9608_v22  ;;  %v2242_v23 = vadd.f32 %v12325_v21, %v1912_v17 }
 0x582   : > { %v9651_v27 = vpop.f32.mrb[28].mxu1 }
 0x583   : > { %v9611_v28 = vpop.f32.mrb[24].mxu0  ;;  %v9652_v29 = vpop.f32.mrb[29].mxu1 }
 0x584   : > { %v9653_v31 = vadd.f32 %v9652_v29, %v9651_v27  ;;  %v9612_v32 = vpop.f32.mrb[25].mxu0  ;;  %v9654_v33 = vpop.f32.mrb[30].mxu1 }
 0x585   : > { %v12329_v34 = vadd.f32 %v9612_v32, %v9611_v28  ;;  %v9614_v35 = vpop.f32.mrb[26].mxu0  ;;  %v9655_v36 = vpop.f32.mrb[31].mxu1 }
 0x586   : > { %v9656_v38 = vadd.f32 %v9655_v36, %v9654_v33  ;;  %v9615_v40 = vpop.f32.mrb[27].mxu0  ;;  %v12331_v41 = vadd.f32 %v9653_v31, %v2218_v30  ;;  %v2245_v30 = vadd.f32 %v12327_v24, %v1917_v19 }
 0x587   : > { %v12333_v42 = vadd.f32 %v9615_v40, %v9614_v35 }
 0x588   : > { %v12335_v43 = vadd.f32 %v9656_v38, %v2221_v37  ;;  %v1922_v37 = vpop.permute.xlu1 %1921  ;;  %v1927_v38 = vpop.permute.xlu0 %1926 }
 0x589   : > { %v2250_v45 = vadd.f32 %v12329_v34, %v1922_v37 }
 0x58a   : > { %v9657_v46 = vpop.f32.mrb[32].mxu1 }
 0x58b   : > { %v9617_v47 = vpop.f32.mrb[28].mxu0  ;;  %v9658_v48 = vpop.f32.mrb[33].mxu1 }
 0x58c   : > { %v9659_v50 = vadd.f32 %v9658_v48, %v9657_v46  ;;  %v9618_v51 = vpop.f32.mrb[29].mxu0  ;;  %v9660_v52 = vpop.f32.mrb[34].mxu1 }
 0x58d   : > { %v12337_v53 = vadd.f32 %v9618_v51, %v9617_v47  ;;  %v9620_v54 = vpop.f32.mrb[30].mxu0  ;;  %v9661_v55 = vpop.f32.mrb[35].mxu1 }
 0x58e   : > { %v9662_v57 = vadd.f32 %v9661_v55, %v9660_v52  ;;  %v9621_v58 = vpop.f32.mrb[31].mxu0  ;;  %v2323_v59 = vadd.f32 %v9659_v50, %v2226_v49  ;;  %v2253_v52 = vadd.f32 %v12333_v42, %v1927_v38  ;;  %v1932_v34 = vpop.permute.xlu1 %1931 }
 0x58f   : > { %v12339_v60 = vadd.f32 %v9621_v58, %v9620_v54  ;;  %v2258_v42 = vadd.f32 %v12337_v53, %v1932_v34 }
 0x590   : > { %v2326_v61 = vadd.f32 %v9662_v57, %v2229_v56 }
 0x592   : > { %v9663_v0 = vpop.f32.mrb[36].mxu1 }
 0x593   : > { %v9623_v1 = vpop.f32.mrb[32].mxu0  ;;  %v9664_v2 = vpop.f32.mrb[37].mxu1 }
 0x594   : > { %v9665_v4 = vadd.f32 %v9664_v2, %v9663_v0  ;;  %v9624_v5 = vpop.f32.mrb[33].mxu0  ;;  %v9666_v6 = vpop.f32.mrb[38].mxu1 }
 0x595   : > { %v12341_v7 = vadd.f32 %v9624_v5, %v9623_v1  ;;  %v9626_v8 = vpop.f32.mrb[34].mxu0  ;;  %v9667_v9 = vpop.f32.mrb[39].mxu1 }
 0x596   : > { %v9668_v11 = vadd.f32 %v9667_v9, %v9666_v6  ;;  %v9627_v12 = vpop.f32.mrb[35].mxu0  ;;  %v2331_v13 = vadd.f32 %v9665_v4, %v2234_v3  ;;  %v1937_v2 = vpop.permute.xlu0 %1936 }
 0x597   : > { %v12343_v14 = vadd.f32 %v9627_v12, %v9626_v8  ;;  %v2261_v17 = vadd.f32 %v12339_v60, %v1937_v2 }
 0x598   : > { %v12345_v16 = vadd.f32 %v9668_v11, %v2237_v10 }
 0x59a   : > { %v9669_v20 = vpop.f32.mrb[40].mxu1 }
 0x59b   : > { %v9629_v22 = vpop.f32.mrb[36].mxu0  ;;  %v9670_v15 = vpop.f32.mrb[41].mxu1 }
 0x59c   : > { %v9671_v25 = vadd.f32 %v9670_v15, %v9669_v20  ;;  %v9630_v26 = vpop.f32.mrb[37].mxu0  ;;  %v9672_v27 = vpop.f32.mrb[42].mxu1 }
 0x59d   : > { %v12348_v28 = vadd.f32 %v9630_v26, %v9629_v22  ;;  %v9632_v18 = vpop.f32.mrb[38].mxu0  ;;  %v9673_v29 = vpop.f32.mrb[43].mxu1 }
 0x59e   : > { %v9674_v31 = vadd.f32 %v9673_v29, %v9672_v27  ;;  %v9633_v32 = vpop.f32.mrb[39].mxu0  ;;  %v2339_v33 = vadd.f32 %v9671_v25, %v2242_v23  ;;  %v1942_v27 = vpop.permute.xlu1 %1941 }
 0x59f   : > { %v12351_v35 = vadd.f32 %v9633_v32, %v9632_v18  ;;  %v1947_v29 = vpop.permute.xlu0 %1946 }
 0x5a0   : > { %v2342_v36 = vadd.f32 %v9674_v31, %v2245_v30 }
 0x5a2   : > { %v9675_v40 = vpop.f32.mrb[44].mxu1 }
 0x5a3   : > { %v9676_v44 = vpop.f32.mrb[45].mxu1  ;;  %v10284_v21 = vpop.f32.mrb[40].mxu0 }
 0x5a4   : > { %v9677_v46 = vadd.f32 %v9676_v44, %v9675_v40  ;;  %v2420_v47 = vadd.f32 %v10284_v21, %v2323_v59  ;;  %v9678_v48 = vpop.f32.mrb[46].mxu1  ;;  %v2411_v49 = vpop.f32.mrb[41].mxu0 }
 0x5a5   : > { %v2412_v50 = vadd.f32 %v2411_v49, %v12331_v41  ;;  %v9679_v24 = vpop.f32.mrb[47].mxu1  ;;  %v10285_v51 = vpop.f32.mrb[42].mxu0 }
 0x5a6   : > { %v9680_v54 = vadd.f32 %v9679_v24, %v9678_v48  ;;  %v2423_v55 = vadd.f32 %v10285_v51, %v2326_v61  ;;  %v2414_v56 = vpop.f32.mrb[43].mxu0  ;;  %v2347_v57 = vadd.f32 %v9677_v46, %v2250_v45  ;;  %v2476_v62 = vmax.f32 %v2420_v47, 0.0 }
 0x5a7   : > { %v2415_v58 = vadd.f32 %v2414_v56, %v12335_v43  ;;  %v2474_v1 = vmax.f32 %v2412_v50, 0.0  ;;  %v2269_v46 = vadd.f32 %v12343_v14, %v1947_v29 }
 0x5a8   : > { %v2477_v63 = vmax.f32 %v2423_v55, 0.0  ;;  %v2350_v0 = vadd.f32 %v9680_v54, %v2253_v52  ;;  %v1952_v54 = vpop.permute.xlu1 %1951 }
 0x5a9   : > { %v2475_v59 = vmax.f32 %v2415_v58, 0.0  ;;  %v2274_v14 = vadd.f32 %v12348_v28, %v1952_v54 }
 0x5aa   : > { %v2491_v3 = vpack.c.bf16 %v2477_v63, %v2476_v62  ;;  %v9681_v4 = vpop.f32.mrb[48].mxu1 }
 0x5ab   : > { %v2490_v41 = vpack.c.bf16 %v2475_v59, %v2474_v1  ;;  %v9682_v5 = vpop.f32.mrb[49].mxu1  ;;  %v10288_v6 = vpop.f32.mrb[44].mxu0 }
 0x5ac   : > { %v9683_v8 = vadd.f32 %v9682_v5, %v9681_v4  ;;  %v2436_v61 = vadd.f32 %v10288_v6, %v2339_v33  ;;  %v9684_v9 = vpop.f32.mrb[50].mxu1  ;;  %v2427_v10 = vpop.f32.mrb[45].mxu0 }
 0x5ad   : > { %v2428_v11 = vadd.f32 %v2427_v10, %v2331_v13  ;;  %v9685_v43 = vpop.f32.mrb[51].mxu1  ;;  %v10289_v12 = vpop.f32.mrb[46].mxu0  ;;  %10300 = vmatprep.mubr.msk.bf16.mxu1 %vm1654_vm5, %v2490_v41 }
 0x5ae   : > { %v9686_v19 = vadd.f32 %v9685_v43, %v9684_v9  ;;  %v2439_v20 = vadd.f32 %v10289_v12, %v2342_v36  ;;  %v2430_v22 = vpop.f32.mrb[47].mxu0  ;;  %10301 = vmatmul.mubr.msk.bf16.vlgmr.msra.gmra.mrb[60].mxu1 %vm1654_vm5, %v2491_v3  ;;  %v2355_v15 = vadd.f32 %v9683_v8, %v2258_v42  ;;  %v2480_v53 = vmax.f32 %v2436_v61, 0.0 }
 0x5af   : > { %v2431_v23 = vadd.f32 %v2430_v22, %v12345_v16  ;;  %v2478_v18 = vmax.f32 %v2428_v11, 0.0  ;;  %v2266_v36 = vadd.f32 %v12341_v7, %v1942_v27 }
 0x5b0   : > { %v2481_v25 = vmax.f32 %v2439_v20, 0.0  ;;  %v2358_v26 = vadd.f32 %v9686_v19, %v2261_v17 }
 0x5b1   : > { %v2479_v13 = vmax.f32 %v2431_v23, 0.0 }
 0x5b2   : > { %v2493_v30 = vpack.c.bf16 %v2481_v25, %v2480_v53  ;;  %v9687_v31 = vpop.f32.mrb[52].mxu1 }
 0x5b3   : > { %v2492_v32 = vpack.c.bf16 %v2479_v13, %v2478_v18  ;;  %v9688_v33 = vpop.f32.mrb[53].mxu1  ;;  %v10292_v60 = vpop.f32.mrb[48].mxu0 }
 0x5b4   : > { %v9689_v37 = vadd.f32 %v9688_v33, %v9687_v31  ;;  %v2452_v38 = vadd.f32 %v10292_v60, %v2355_v15  ;;  %v9690_v40 = vpop.f32.mrb[54].mxu1  ;;  %v2443_v44 = vpop.f32.mrb[49].mxu0 }
 0x5b5   : > { %v2444_v21 = vadd.f32 %v2443_v44, %v2347_v57  ;;  %v9691_v16 = vpop.f32.mrb[55].mxu1  ;;  %v10293_v45 = vpop.f32.mrb[50].mxu0  ;;  %10304 = vmatprep.mubr.msk.bf16.mxu1 %vm1654_vm5, %v2492_v32 }
 0x5b6   : > { %v9692_v47 = vadd.f32 %v9691_v16, %v9690_v40  ;;  %v2455_v48 = vadd.f32 %v10293_v45, %v2358_v26  ;;  %v2446_v49 = vpop.f32.mrb[51].mxu0  ;;  %10305 = vmatmul.mubr.msk.bf16.gmra.mrb[64].mxu1 %vm1654_vm5, %v2493_v30  ;;  %v2363_v50 = vadd.f32 %v9689_v37, %v2266_v36  ;;  %v2484_v51 = vmax.f32 %v2452_v38, 0.0  ;;  %v1957_v57 = vpop.permute.xlu0 %1956 }
 0x5b7   : > { %v2447_v24 = vadd.f32 %v2446_v49, %v2350_v0  ;;  %v2482_v55 = vmax.f32 %v2444_v21, 0.0  ;;  %v2277_v5 = vadd.f32 %v12351_v35, %v1957_v57 }
 0x5b8   : > { %v2485_v7 = vmax.f32 %v2455_v48, 0.0  ;;  %v2366_v52 = vadd.f32 %v9692_v47, %v2269_v46  ;;  %v10794_v46 = vld [vmem:[%s14672_s8 + $0x4] ss:$36 sps:$4 sm:$0xff]   ;;  %v10818_v47 = vld [vmem:[%s14672_s8 + $0x294] ss:$36 sps:$4 sm:$0xff]  }
 0x5b9   : > { %v2483_v56 = vmax.f32 %v2447_v24, 0.0  ;;  %4100 = vmatprep.mubr.bf16.mxu0 %v10794_v46 }
 0x5ba   : > { %v2495_v58 = vpack.c.bf16 %v2485_v7, %v2484_v51  ;;  %v9693_v62 = vpop.f32.mrb[56].mxu1 }
 0x5bb   : > { %v2494_v63 = vpack.c.bf16 %v2483_v56, %v2482_v55  ;;  %v9694_v34 = vpop.f32.mrb[57].mxu1  ;;  %v10296_v1 = vpop.f32.mrb[52].mxu0 }
 0x5bc   : > { %v9695_v59 = vadd.f32 %v9694_v34, %v9693_v62  ;;  %v9696_v2 = vpop.f32.mrb[58].mxu1  ;;  %v2459_v3 = vpop.f32.mrb[53].mxu0 }
 0x5bd   : > { %v2460_v4 = vadd.f32 %v2459_v3, %v2363_v50  ;;  %v9697_v41 = vpop.f32.mrb[59].mxu1  ;;  %v10297_v0 = vpop.f32.mrb[54].mxu0  ;;  %10308 = vmatprep.mubr.msk.bf16.mxu1 %vm1654_vm5, %v2494_v63 }
 0x5be   : > { %v2371_v6 = vadd.f32 %v9695_v59, %v2274_v14  ;;  %v9698_v42 = vadd.f32 %v9697_v41, %v9696_v2  ;;  %v2462_v8 = vpop.f32.mrb[55].mxu0  ;;  %10309 = vmatmul.mubr.msk.bf16.gmra.mrb[68].mxu1 %vm1654_vm5, %v2495_v58  ;;  %v3140_v2 = vld [vmem:[%s14673_s9] sm:$0xff]  ;;  %v3143_v41 = vld [vmem:[%s14673_s9 + $0x18] sm:$0xff] }
 0x5bf   : > { %v2463_v61 = vadd.f32 %v2462_v8, %v2366_v52  ;;  %v2486_v11 = vmax.f32 %v2460_v4, 0.0  ;;  %v3145_v8 = vld [vmem:[%s14673_s9 + $0x28] sm:$0xff] }
 0x5c0   : > { %v2468_v9 = vadd.f32 %v10296_v1, %v2371_v6  ;;  %v2374_v10 = vadd.f32 %v9698_v42, %v2277_v5  ;;  %v3141_v1 = vld [vmem:[%s14673_s9 + $0x8] sm:$0xff]  ;;  %v3142_v6 = vld [vmem:[%s14673_s9 + $0x10] sm:$0xff] }
 0x5c1   : > { %v2487_v28 = vmax.f32 %v2463_v61, 0.0 }
 0x5c2   : > { %v2471_v43 = vadd.f32 %v10297_v0, %v2374_v10  ;;  %v2488_v17 = vmax.f32 %v2468_v9, 0.0  ;;  %v3144_v9 = vld [vmem:[%s14673_s9 + $0x20] sm:$0xff] }
 0x5c3   : > { %v2496_v12 = vpack.c.bf16 %v2487_v28, %v2486_v11 }
 0x5c4   : > { %v2489_v19 = vmax.f32 %v2471_v43, 0.0 }
 0x5c5   : > { %10312 = vmatprep.mubr.msk.bf16.mxu1 %vm1654_vm5, %v2496_v12  ;;  %v3147_v12 = vld [vmem:[%s14673_s9 + $0x38] sm:$0xff] }
 0x5c6   : > { %v2497_v20 = vpack.c.bf16 %v2489_v19, %v2488_v17  ;;  %v3146_v19 = vld [vmem:[%s14673_s9 + $0x30] sm:$0xff] }
 0x5c8   : > { %10313 = vmatmul.mubr.msk.bf16.gmra.mrb[72].mxu1 %vm1654_vm5, %v2497_v20 }
 0x5c9   : > { %4333 = vmatprep.mubr.bf16.mxu1 %v10818_v47  ;;  %v3155_v47 = vld [vmem:[%s14673_s9 + $0x78] sm:$0xff] }
 0x681   : > { %v10302_v35 = vpop.f32.mrb[60].mxu1 }
 0x682   : > { %v2564_v22 = vpop.f32.mrb[61].mxu1 }
 0x683   : > { %v10303_v15 = vpop.f32.mrb[62].mxu1 }
 0x684   : > { %v12372_v23 = vpack.c.bf16 %v10303_v15, %v10302_v35  ;;  %v2567_v53 = vpop.f32.mrb[63].mxu1  ;;  %v10792_v15 = vld [vmem:[%s14672_s8] ss:$36 sps:$4 sm:$0xff]  }
 0x685   : > { %v12374_v25 = vpack.c.bf16 %v2567_v53, %v2564_v22  ;;  %v3149_v53 = vld [vmem:[%s14673_s9 + $0x48] sm:$0xff] }
 0x686   : > { %2654 = vrot.lane.b32.xlu0 %v12372_v23, %s11531_s28  ;;  %2637 = vst.msk [vmem:[#allocation2 + $0x8] sm:$0xff] %vm2635_vm6, %v12372_v23 }
 0x687   : > { %2652 = vrot.lane.b32.xlu1 %v12374_v25, %s11531_s28  ;;  %2636 = vst.msk [vmem:[#allocation2] sm:$0xff] %vm2635_vm6, %v12374_v25 }
 0x689   : > { %v10306_v26 = vpop.f32.mrb[64].mxu1 }
 0x68a   : > { %v2580_v27 = vpop.f32.mrb[65].mxu1 }
 0x68b   : > { %v10307_v18 = vpop.f32.mrb[66].mxu1 }
 0x68c   : > { %v12384_v13 = vpack.c.bf16 %v10307_v18, %v10306_v26  ;;  %v2583_v29 = vpop.f32.mrb[67].mxu1  ;;  %v3148_v26 = vld [vmem:[%s14673_s9 + $0x40] sm:$0xff] }
 0x68d   : > { %v12386_v30 = vpack.c.bf16 %v2583_v29, %v2580_v27  ;;  %v3069_v54 = vld [vmem:[#allocation2 + $0x8] sm:$0xff] }
 0x68e   : > { %2658 = vrot.lane.b32.xlu0 %v12384_v13, %s11531_s28  ;;  %2639 = vst.msk [vmem:[#allocation2 + $0x18] sm:$0xff] %vm2635_vm6, %v12384_v13  ;;  %v3068_v7 = vld [vmem:[#allocation2] sm:$0xff] }
 0x68f   : > { %2656 = vrot.lane.b32.xlu1 %v12386_v30, %s11531_s28  ;;  %2638 = vst.msk [vmem:[#allocation2 + $0x10] sm:$0xff] %vm2635_vm6, %v12386_v30 }
 0x691   : > { %v10310_v31 = vpop.f32.mrb[68].mxu1 }
 0x692   : > { %v2596_v32 = vpop.f32.mrb[69].mxu1 }
 0x693   : > { %v10311_v33 = vpop.f32.mrb[70].mxu1 }
 0x694   : > { %v12396_v60 = vpack.c.bf16 %v10311_v33, %v10310_v31  ;;  %v2599_v36 = vpop.f32.mrb[71].mxu1 }
 0x695   : > { %v12398_v37 = vpack.c.bf16 %v2599_v36, %v2596_v32  ;;  %v3071_v63 = vld [vmem:[#allocation2 + $0x18] sm:$0xff]  ;;  %v3150_v32 = vld [vmem:[%s14673_s9 + $0x50] sm:$0xff]  ;;  %v10797_v36 = vld [vmem:[%s14672_s8 + $0x48] ss:$36 sps:$4 sm:$0xff]  }
 0x696   : > { %2662 = vrot.lane.b32.xlu0 %v12396_v60, %s11531_s28  ;;  %2641 = vst.msk [vmem:[#allocation2 + $0x28] sm:$0xff] %vm2635_vm6, %v12396_v60  ;;  %v3070_v58 = vld [vmem:[#allocation2 + $0x10] sm:$0xff] }
 0x697   : > { %2660 = vrot.lane.b32.xlu1 %v12398_v37, %s11531_s28  ;;  %2640 = vst.msk [vmem:[#allocation2 + $0x20] sm:$0xff] %vm2635_vm6, %v12398_v37 }
 0x69b   : > { %v10314_v38 = vpop.f32.mrb[72].mxu1 }
 0x69c   : > { %v2612_v40 = vpop.f32.mrb[73].mxu1 }
 0x69d   : > { %v10315_v44 = vpop.f32.mrb[74].mxu1  ;;  %v3073_v5 = vld [vmem:[#allocation2 + $0x28] sm:$0xff] }
 0x69e   : > { %v12408_v21 = vpack.c.bf16 %v10315_v44, %v10314_v38  ;;  %v2615_v16 = vpop.f32.mrb[75].mxu1  ;;  %v3072_v59 = vld [vmem:[#allocation2 + $0x20] sm:$0xff]  ;;  %v3153_v38 = vld [vmem:[%s14673_s9 + $0x68] sm:$0xff] }
 0x69f   : > { %v12410_v45 = vpack.c.bf16 %v2615_v16, %v2612_v40  ;;  %v3152_v44 = vld [vmem:[%s14673_s9 + $0x60] sm:$0xff] }
 0x6a0   : > { %2666 = vrot.lane.b32.xlu0 %v12408_v21, %s11531_s28  ;;  %2643 = vst.msk [vmem:[#allocation2 + $0x38] sm:$0xff] %vm2635_vm6, %v12408_v21 }
 0x6a1   : > { %2664 = vrot.lane.b32.xlu1 %v12410_v45, %s11531_s28  ;;  %2642 = vst.msk [vmem:[#allocation2 + $0x30] sm:$0xff] %vm2635_vm6, %v12410_v45  ;;  %s11539_s28 = smov 12  }
 0x6a4   : > { %2684 = vrot.lane.b32.xlu0 %v12374_v25, %s11532_s24 }
 0x6a5   : > { %2716 = vrot.lane.b32.xlu1 %v12374_v25, %s11533_s23 }
 0x6a7   : > { %v3075_v22 = vld [vmem:[#allocation2 + $0x38] sm:$0xff] }
 0x6a8   : > { %2686 = vrot.lane.b32.xlu0 %v12372_v23, %s11532_s24  ;;  %v3074_v28 = vld [vmem:[#allocation2 + $0x30] sm:$0xff] }
 0x6a9   : > { %2718 = vrot.lane.b32.xlu1 %v12372_v23, %s11533_s23 }
 0x6ac   : > { %2688 = vrot.lane.b32.xlu0 %v12386_v30, %s11532_s24 }
 0x6ad   : > { %2720 = vrot.lane.b32.xlu1 %v12386_v30, %s11533_s23 }
 0x6b0   : > { %2690 = vrot.lane.b32.xlu0 %v12384_v13, %s11532_s24 }
 0x6b1   : > { %2722 = vrot.lane.b32.xlu1 %v12384_v13, %s11533_s23 }
 0x6b4   : > { %2692 = vrot.lane.b32.xlu0 %v12398_v37, %s11532_s24 }
 0x6b5   : > { %2724 = vrot.lane.b32.xlu1 %v12398_v37, %s11533_s23 }
 0x6b8   : > { %2694 = vrot.lane.b32.xlu0 %v12396_v60, %s11532_s24 }
 0x6b9   : > { %2726 = vrot.lane.b32.xlu1 %v12396_v60, %s11533_s23 }
 0x6bc   : > { %2696 = vrot.lane.b32.xlu0 %v12410_v45, %s11532_s24 }
 0x6bd   : > { %2728 = vrot.lane.b32.xlu1 %v12410_v45, %s11533_s23 }
 0x6c0   : > { %2698 = vrot.lane.b32.xlu0 %v12408_v21, %s11532_s24  ;;  %s11541_s24 = smov 24  }
 0x6c1   : > { %2730 = vrot.lane.b32.xlu1 %v12408_v21, %s11533_s23  ;;  %s11538_s23 = smov 8  }
 0x6c4   : > { %2748 = vrot.lane.b32.xlu0 %v12374_v25, %s11527_s16 }
 0x6c5   : > { %2780 = vrot.lane.b32.xlu1 %v12374_v25, %s11534_s3 }
 0x6c8   : > { %2750 = vrot.lane.b32.xlu0 %v12372_v23, %s11527_s16 }
 0x6c9   : > { %2782 = vrot.lane.b32.xlu1 %v12372_v23, %s11534_s3 }
 0x6cc   : > { %2752 = vrot.lane.b32.xlu0 %v12386_v30, %s11527_s16 }
 0x6cd   : > { %2784 = vrot.lane.b32.xlu1 %v12386_v30, %s11534_s3 }
 0x6d0   : > { %2754 = vrot.lane.b32.xlu0 %v12384_v13, %s11527_s16 }
 0x6d1   : > { %2786 = vrot.lane.b32.xlu1 %v12384_v13, %s11534_s3 }
 0x6d4   : > { %2756 = vrot.lane.b32.xlu0 %v12398_v37, %s11527_s16 }
 0x6d5   : > { %2788 = vrot.lane.b32.xlu1 %v12398_v37, %s11534_s3 }
 0x6d8   : > { %2758 = vrot.lane.b32.xlu0 %v12396_v60, %s11527_s16 }
 0x6d9   : > { %2790 = vrot.lane.b32.xlu1 %v12396_v60, %s11534_s3 }
 0x6dc   : > { %2760 = vrot.lane.b32.xlu0 %v12410_v45, %s11527_s16 }
 0x6dd   : > { %2792 = vrot.lane.b32.xlu1 %v12410_v45, %s11534_s3 }
 0x6e0   : > { %2762 = vrot.lane.b32.xlu0 %v12408_v21, %s11527_s16 }
 0x6e1   : > { %2794 = vrot.lane.b32.xlu1 %v12408_v21, %s11534_s3  ;;  %s14757_s3 = sld [smem:[#allocation37_spill]] }
 0x6e4   : > { %2812 = vrot.lane.b32.xlu0 %v12374_v25, %s11535_s0 }
 0x6e5   : > { %2844 = vrot.lane.b32.xlu1 %v12374_v25, %s11536_s27 }
 0x6e8   : > { %2814 = vrot.lane.b32.xlu0 %v12372_v23, %s11535_s0 }
 0x6e9   : > { %2846 = vrot.lane.b32.xlu1 %v12372_v23, %s11536_s27 }
 0x6ec   : > { %2816 = vrot.lane.b32.xlu0 %v12386_v30, %s11535_s0 }
 0x6ed   : > { %2848 = vrot.lane.b32.xlu1 %v12386_v30, %s11536_s27 }
 0x6f0   : > { %2818 = vrot.lane.b32.xlu0 %v12384_v13, %s11535_s0 }
 0x6f1   : > { %2850 = vrot.lane.b32.xlu1 %v12384_v13, %s11536_s27 }
 0x6f4   : > { %2820 = vrot.lane.b32.xlu0 %v12398_v37, %s11535_s0 }
 0x6f5   : > { %2852 = vrot.lane.b32.xlu1 %v12398_v37, %s11536_s27 }
 0x6f8   : > { %v2655_v48 = vpop.permute.xlu0 %2654  ;;  %2822 = vrot.lane.b32.xlu0 %v12396_v60, %s11535_s0 }
 0x6f9   : > { %2677 = vst.msk [vmem:[#allocation2 + $0x48] sm:$0xff] %vm2635_vm6, %v2655_v48  ;;  %v2653_v49 = vpop.permute.xlu1 %2652  ;;  %2854 = vrot.lane.b32.xlu1 %v12396_v60, %s11536_s27 }
 0x6fa   : > { %2676 = vst.msk [vmem:[#allocation2 + $0x40] sm:$0xff] %vm2635_vm6, %v2653_v49  ;;  %v3154_v49 = vld [vmem:[%s14673_s9 + $0x70] sm:$0xff] }
 0x6fc   : > { %2824 = vrot.lane.b32.xlu0 %v12410_v45, %s11535_s0 }
 0x6fd   : > { %2856 = vrot.lane.b32.xlu1 %v12410_v45, %s11536_s27 }
 0x700   : > { %v2659_v50 = vpop.permute.xlu0 %2658  ;;  %2826 = vrot.lane.b32.xlu0 %v12408_v21, %s11535_s0  ;;  %v3077_v52 = vld [vmem:[#allocation2 + $0x48] sm:$0xff]  ;;  %s11537_s0 = smov 4  }
 0x701   : > { %2679 = vst.msk [vmem:[#allocation2 + $0x58] sm:$0xff] %vm2635_vm6, %v2659_v50  ;;  %v2657_v24 = vpop.permute.xlu1 %2656  ;;  %2858 = vrot.lane.b32.xlu1 %v12408_v21, %s11536_s27  ;;  %v3076_v51 = vld [vmem:[#allocation2 + $0x40] sm:$0xff] }
 0x702   : > { %2678 = vst.msk [vmem:[#allocation2 + $0x50] sm:$0xff] %vm2635_vm6, %v2657_v24  ;;  %9720 = vmatprep.subr.bf16.mxu0 %v3076_v51  ;;  %v10800_v51 = vld [vmem:[%s14672_s8 + $0x90] ss:$36 sps:$4 sm:$0xff]  }
 0x703   : > { %9721 = vmatpush3.bf16.msra.mxu0 %v3068_v7 }
 0x704   : > { %9722 = vmatprep.subr.bf16.mxu0 %v3077_v52  ;;  %2878 = vrot.lane.b32.xlu0 %v12372_v23, %s11525_s2  ;;  %v3157_v52 = vld [vmem:[%s14673_s9 + $0x88] sm:$0xff] }
 0x705   : > { %2876 = vrot.lane.b32.xlu1 %v12374_v25, %s11525_s2 }
 0x707   : > { %9723 = vmatpush3.bf16.msra.mxu0 %v3069_v54 }
 0x708   : > { %v2663_v55 = vpop.permute.xlu0 %2662  ;;  %2882 = vrot.lane.b32.xlu0 %v12384_v13, %s11525_s2  ;;  %v3079_v62 = vld [vmem:[#allocation2 + $0x58] sm:$0xff]  ;;  %v10795_v13 = vld [vmem:[%s14672_s8 + $0x4c] ss:$36 sps:$4 sm:$0xff]  }
 0x709   : > { %2681 = vst.msk [vmem:[#allocation2 + $0x68] sm:$0xff] %vm2635_vm6, %v2663_v55  ;;  %v2661_v56 = vpop.permute.xlu1 %2660  ;;  %2880 = vrot.lane.b32.xlu1 %v12386_v30, %s11525_s2  ;;  %v3078_v57 = vld [vmem:[#allocation2 + $0x50] sm:$0xff]  ;;  %v3151_v30 = vld [vmem:[%s14673_s9 + $0x58] sm:$0xff]  ;;  %v3156_v55 = vld [vmem:[%s14673_s9 + $0x80] sm:$0xff] }
 0x70a   : > { %2680 = vst.msk [vmem:[#allocation2 + $0x60] sm:$0xff] %vm2635_vm6, %v2661_v56  ;;  %9724 = vmatprep.subr.bf16.mxu0 %v3078_v57 }
 0x70b   : > { %9725 = vmatpush3.bf16.msra.mxu0 %v3070_v58  ;;  %v10801_v58 = vld [vmem:[%s14672_s8 + $0xdc] ss:$36 sps:$4 sm:$0xff]  }
 0x70c   : > { %9726 = vmatprep.subr.bf16.mxu0 %v3079_v62  ;;  %2886 = vrot.lane.b32.xlu0 %v12396_v60, %s11525_s2 }
 0x70d   : > { %2884 = vrot.lane.b32.xlu1 %v12398_v37, %s11525_s2 }
 0x70f   : > { %9727 = vmatpush3.bf16.msra.mxu0 %v3071_v63  ;;  %v3159_v63 = vld [vmem:[%s14673_s9 + $0x98] sm:$0xff] }
 0x710   : > { %2890 = vrot.lane.b32.xlu0 %v12408_v21, %s11525_s2  ;;  %v3081_v4 = vld [vmem:[#allocation2 + $0x68] sm:$0xff] }
 0x711   : > { %2888 = vrot.lane.b32.xlu1 %v12410_v45, %s11525_s2  ;;  %v3080_v34 = vld [vmem:[#allocation2 + $0x60] sm:$0xff]  ;;  %v10798_v45 = vld [vmem:[%s14672_s8 + $0x94] ss:$36 sps:$4 sm:$0xff]  }
 0x712   : > { %9728 = vmatprep.subr.bf16.mxu0 %v3080_v34  ;;  %v2667_v14 = vpop.permute.xlu0 %2666 }
 0x713   : > { %2683 = vst.msk [vmem:[#allocation2 + $0x78] sm:$0xff] %vm2635_vm6, %v2667_v14  ;;  %9729 = vmatpush3.bf16.msra.mxu0 %v3072_v59  ;;  %v2665_v3 = vpop.permute.xlu1 %2664 }
 0x714   : > { %2682 = vst.msk [vmem:[#allocation2 + $0x70] sm:$0xff] %vm2635_vm6, %v2665_v3  ;;  %9730 = vmatprep.subr.bf16.mxu0 %v3081_v4  ;;  %3179 = vperm.xlu0 %10605, %v3141_v1   ;;  %v3158_v1 = vld [vmem:[%s14673_s9 + $0x90] sm:$0xff]  ;;  %v3161_v4 = vld [vmem:[%s14673_s9 + $0xa8] sm:$0xff] }
 0x715   : > { %3174 = vperm.xlu1 %10606, %v3140_v2   ;;  %v10803_v2 = vld [vmem:[%s14672_s8 + $0xd8] ss:$36 sps:$4 sm:$0xff]  }
 0x716   : > { %v2685_v0 = vpop.permute.xlu0 %2684 }
 0x717   : > { %2708 = vst.msk [vmem:[#allocation2 + $0x80] sm:$0xff] %vm2635_vm6, %v2685_v0  ;;  %9731 = vmatpush3.bf16.msra.mxu0 %v3073_v5  ;;  %v2717_v42 = vpop.permute.xlu1 %2716  ;;  %v3160_v0 = vld [vmem:[%s14673_s9 + $0xa0] sm:$0xff] }
 0x718   : > { %2740 = vst.msk [vmem:[#allocation2 + $0xc0] sm:$0xff] %vm2635_vm6, %v2717_v42  ;;  %3189 = vperm.xlu0 %10605, %v3143_v41   ;;  %v10804_v42 = vld [vmem:[%s14672_s8 + $0x124] ss:$36 sps:$4 sm:$0xff]  }
 0x719   : > { %3184 = vperm.xlu1 %10606, %v3142_v6  }
 0x71a   : > { %v2687_v61 = vpop.permute.xlu0 %2686  ;;  %v3083_v43 = vld [vmem:[#allocation2 + $0x78] sm:$0xff] }
 0x71b   : > { %2709 = vst.msk [vmem:[#allocation2 + $0x88] sm:$0xff] %vm2635_vm6, %v2687_v61  ;;  %v2719_v10 = vpop.permute.xlu1 %2718  ;;  %v3082_v11 = vld [vmem:[#allocation2 + $0x70] sm:$0xff]  ;;  %v3163_v61 = vld [vmem:[%s14673_s9 + $0xb8] sm:$0xff] }
 0x71c   : > { %2741 = vst.msk [vmem:[#allocation2 + $0xc8] sm:$0xff] %vm2635_vm6, %v2719_v10  ;;  %3199 = vperm.xlu0 %10605, %v3145_v8   ;;  %9732 = vmatprep.subr.bf16.mxu0 %v3082_v11  ;;  %v3162_v11 = vld [vmem:[%s14673_s9 + $0xb0] sm:$0xff] }
 0x71d   : > { %3194 = vperm.xlu1 %10606, %v3144_v9   ;;  %9733 = vmatpush3.bf16.msra.mxu0 %v3074_v28  ;;  %v10816_v9 = vld [vmem:[%s14672_s8 + $0x290] ss:$36 sps:$4 sm:$0xff]   ;;  %v10828_v28 = vld [vmem:[%s14672_s8 + $0x2dc] ss:$36 sps:$4 sm:$0xff]  }
 0x71e   : > { %v2689_v17 = vpop.permute.xlu0 %2688  ;;  %9734 = vmatprep.subr.bf16.mxu0 %v3083_v43  ;;  %v3084_v23 = vld [vmem:[#allocation2 + $0x80] sm:$0xff] }
 0x71f   : > { %2710 = vst.msk [vmem:[#allocation2 + $0x90] sm:$0xff] %vm2635_vm6, %v2689_v17  ;;  %v2721_v20 = vpop.permute.xlu1 %2720  ;;  %v3092_v35 = vld [vmem:[#allocation2 + $0xc0] sm:$0xff]  ;;  %v3165_v17 = vld [vmem:[%s14673_s9 + $0xc8] sm:$0xff] }
 0x720   : > { %2742 = vst.msk [vmem:[#allocation2 + $0xd0] sm:$0xff] %vm2635_vm6, %v2721_v20  ;;  %3209 = vperm.xlu0 %10605, %v3147_v12   ;;  %10502 = vmatprep.subr.bf16.mxu1 %v3092_v35  ;;  %v10806_v12 = vld [vmem:[%s14672_s8 + $0x120] ss:$36 sps:$4 sm:$0xff]   ;;  %v10807_v20 = vld [vmem:[%s14672_s8 + $0x16c] ss:$36 sps:$4 sm:$0xff]  }
 0x721   : > { %3204 = vperm.xlu1 %10606, %v3146_v19   ;;  %9735 = vmatpush3.bf16.msra.mxu0 %v3075_v22  ;;  %v3164_v19 = vld [vmem:[%s14673_s9 + $0xc0] sm:$0xff] }
 0x722   : > { %10510 = vmatpush3.bf16.msra.mxu1 %v3084_v23  ;;  %v2691_v25 = vpop.permute.xlu0 %2690  ;;  %9832 = vmatprep.subr.bf16.mxu0 %v3092_v35  ;;  %v3085_v29 = vld [vmem:[#allocation2 + $0x88] sm:$0xff] }
 0x723   : > { %2711 = vst.msk [vmem:[#allocation2 + $0x98] sm:$0xff] %vm2635_vm6, %v2691_v25  ;;  %v2723_v27 = vpop.permute.xlu1 %2722  ;;  %v3093_v18 = vld [vmem:[#allocation2 + $0xc8] sm:$0xff]  ;;  %v3167_v25 = vld [vmem:[%s14673_s9 + $0xd8] sm:$0xff] }
 0x724   : > { %2743 = vst.msk [vmem:[#allocation2 + $0xd8] sm:$0xff] %vm2635_vm6, %v2723_v27  ;;  %3219 = vperm.xlu0 %10605, %v3149_v53   ;;  %4101 = vmatmul.mubr.bf16.vlgmr.msra.gmra.mrb[56].mxu0 %v10792_v15  ;;  %v3009_v15 = vld [vmem:[%s14672_s8 + $0x2d8] sm:$0xff] }
 0x725   : > { %10503 = vmatprep.subr.bf16.mxu1 %v3093_v18  ;;  %3214 = vperm.xlu1 %10606, %v3148_v26  }
 0x726   : > { %9833 = vmatpush3.bf16.msra.mxu0 %v3084_v23  ;;  %10511 = vmatpush3.bf16.msra.mxu1 %v3085_v29  ;;  %v2693_v31 = vpop.permute.xlu0 %2692  ;;  %v3086_v37 = vld [vmem:[#allocation2 + $0x90] sm:$0xff]  ;;  %v3014_v23 = vld [vmem:[%s14672_s8 + $0x2fc] sm:$0xff] }
 0x727   : > { %2712 = vst.msk [vmem:[#allocation2 + $0xa0] sm:$0xff] %vm2635_vm6, %v2693_v31  ;;  %9834 = vmatprep.subr.bf16.mxu0 %v3093_v18  ;;  %v2725_v33 = vpop.permute.xlu1 %2724  ;;  %v3094_v60 = vld [vmem:[#allocation2 + $0xd0] sm:$0xff]  ;;  %4108 = vmatprep.mubr.bf16.mxu0 %v10795_v13  ;;  %v9195_v26 = vcombine.low %v3009_v15, %v3014_v23  ;;  %v10833_v13 = vld [vmem:[%s14672_s8 + $0x324] ss:$36 sps:$4 sm:$0xff]   ;;  %v10891_v15 = vld [vmem:[%s14672_s8 + $0x1c] ss:$36 sps:$4 sm:$0xff]  }
 0x728   : > { %2744 = vst.msk [vmem:[#allocation2 + $0xe0] sm:$0xff] %vm2635_vm6, %v2725_v33  ;;  %3229 = vperm.xlu0 %10605, %v3151_v30   ;;  %10504 = vmatprep.subr.bf16.mxu1 %v3094_v60  ;;  %v3166_v18 = vld [vmem:[%s14673_s9 + $0xd0] sm:$0xff]  ;;  %v10809_v30 = vld [vmem:[%s14672_s8 + $0x168] ss:$36 sps:$4 sm:$0xff]  }
 0x729   : > { %3224 = vperm.xlu1 %10606, %v3150_v32   ;;  %v3169_v31 = vld [vmem:[%s14673_s9 + $0xe8] sm:$0xff]  ;;  %v10810_v32 = vld [vmem:[%s14672_s8 + $0x1b4] ss:$36 sps:$4 sm:$0xff]  }
 0x72a   : > { %9835 = vmatpush3.bf16.msra.mxu0 %v3085_v29  ;;  %10512 = vmatpush3.bf16.msra.mxu1 %v3086_v37  ;;  %v2695_v40 = vpop.permute.xlu0 %2694  ;;  %v3087_v46 = vld [vmem:[#allocation2 + $0x98] sm:$0xff] }
 0x72b   : > { %2713 = vst.msk [vmem:[#allocation2 + $0xa8] sm:$0xff] %vm2635_vm6, %v2695_v40  ;;  %9836 = vmatprep.subr.bf16.mxu0 %v3094_v60  ;;  %v2727_v21 = vpop.permute.xlu1 %2726  ;;  %v3095_v16 = vld [vmem:[#allocation2 + $0xd8] sm:$0xff]  ;;  %v3168_v60 = vld [vmem:[%s14673_s9 + $0xe0] sm:$0xff] }
 0x72c   : > { %2745 = vst.msk [vmem:[#allocation2 + $0xe8] sm:$0xff] %vm2635_vm6, %v2727_v21  ;;  %3239 = vperm.xlu0 %10605, %v3153_v38   ;;  %4109 = vmatmul.mubr.bf16.gmra.mrb[60].mxu0 %v10797_v36  ;;  %v3019_v36 = vld [vmem:[%s14672_s8 + $0x320] sm:$0xff]  ;;  %v3171_v40 = vld [vmem:[%s14673_s9 + $0xf8] sm:$0xff] }
 0x72d   : > { %10505 = vmatprep.subr.bf16.mxu1 %v3095_v16  ;;  %3234 = vperm.xlu1 %10606, %v3152_v44  }
 0x72e   : > { %9837 = vmatpush3.bf16.msra.mxu0 %v3086_v37  ;;  %10513 = vmatpush3.bf16.msra.mxu1 %v3087_v46  ;;  %v2697_v48 = vpop.permute.xlu0 %2696  ;;  %v3088_v7 = vld [vmem:[#allocation2 + $0xa0] sm:$0xff] }
 0x72f   : > { %2714 = vst.msk [vmem:[#allocation2 + $0xb0] sm:$0xff] %vm2635_vm6, %v2697_v48  ;;  %9838 = vmatprep.subr.bf16.mxu0 %v3095_v16  ;;  %v2729_v50 = vpop.permute.xlu1 %2728  ;;  %v3096_v24 = vld [vmem:[#allocation2 + $0xe0] sm:$0xff]  ;;  %4116 = vmatprep.mubr.bf16.mxu0 %v10798_v45  ;;  %v3170_v16 = vld [vmem:[%s14673_s9 + $0xf0] sm:$0xff] }
 0x730   : > { %2746 = vst.msk [vmem:[#allocation2 + $0xf0] sm:$0xff] %vm2635_vm6, %v2729_v50  ;;  %3249 = vperm.xlu0 %10605, %v3155_v47   ;;  %10506 = vmatprep.subr.bf16.mxu1 %v3096_v24  ;;  %v3024_v37 = vld [vmem:[%s14672_s8 + $0x344] sm:$0xff]  ;;  %v10838_v45 = vld [vmem:[%s14672_s8 + $0x36c] ss:$36 sps:$4 sm:$0xff]   ;;  %v10813_v48 = vld [vmem:[%s14672_s8 + $0x1fc] ss:$36 sps:$4 sm:$0xff]  }
 0x731   : > { %3244 = vperm.xlu1 %10606, %v3154_v49   ;;  %v9204_v44 = vcombine.low %v3019_v36, %v3024_v37  ;;  %v10812_v47 = vld [vmem:[%s14672_s8 + $0x1b0] ss:$36 sps:$4 sm:$0xff]  }
 0x732   : > { %9839 = vmatpush3.bf16.msra.mxu0 %v3087_v46  ;;  %10514 = vmatpush3.bf16.msra.mxu1 %v3088_v7  ;;  %v2699_v54 = vpop.permute.xlu0 %2698  ;;  %v3089_v62 = vld [vmem:[#allocation2 + $0xa8] sm:$0xff] }
 0x733   : > { %2715 = vst.msk [vmem:[#allocation2 + $0xb8] sm:$0xff] %vm2635_vm6, %v2699_v54  ;;  %9840 = vmatprep.subr.bf16.mxu0 %v3096_v24  ;;  %v2731_v56 = vpop.permute.xlu1 %2730  ;;  %v3097_v57 = vld [vmem:[#allocation2 + $0xe8] sm:$0xff]  ;;  %v10815_v54 = vld [vmem:[%s14672_s8 + $0x1f8] ss:$36 sps:$4 sm:$0xff]  }
 0x734   : > { %2747 = vst.msk [vmem:[#allocation2 + $0xf8] sm:$0xff] %vm2635_vm6, %v2731_v56  ;;  %3259 = vperm.xlu0 %10605, %v3157_v52   ;;  %4117 = vmatmul.mubr.bf16.gmra.mrb[64].mxu0 %v10800_v51  ;;  %v10840_v24 = vld [vmem:[%s14672_s8 + $0x368] ss:$36 sps:$4 sm:$0xff]  }
 0x735   : > { %10507 = vmatprep.subr.bf16.mxu1 %v3097_v57  ;;  %3254 = vperm.xlu1 %10606, %v3156_v55   ;;  %v10819_v55 = vld [vmem:[%s14672_s8 + $0x244] ss:$36 sps:$4 sm:$0xff]  }
 0x736   : > { %9841 = vmatpush3.bf16.msra.mxu0 %v3088_v7  ;;  %10515 = vmatpush3.bf16.msra.mxu1 %v3089_v62  ;;  %v2749_v34 = vpop.permute.xlu0 %2748  ;;  %v3090_v3 = vld [vmem:[#allocation2 + $0xb0] sm:$0xff] }
 0x737   : > { %2772 = vst.msk [vmem:[#allocation2 + $0x100] sm:$0xff] %vm2635_vm6, %v2749_v34  ;;  %9842 = vmatprep.subr.bf16.mxu0 %v3097_v57  ;;  %v2781_v14 = vpop.permute.xlu1 %2780  ;;  %v3098_v59 = vld [vmem:[#allocation2 + $0xf0] sm:$0xff]  ;;  %4124 = vmatprep.mubr.bf16.mxu0 %v10801_v58 }
 0x738   : > { %2804 = vst.msk [vmem:[#allocation2 + $0x140] sm:$0xff] %vm2635_vm6, %v2781_v14  ;;  %3269 = vperm.xlu0 %10605, %v3159_v63   ;;  %10508 = vmatprep.subr.bf16.mxu1 %v3098_v59  ;;  %v10844_v7 = vld [vmem:[%s14672_s8 + $0x3b4] ss:$36 sps:$4 sm:$0xff]  }
 0x739   : > { %3264 = vperm.xlu1 %10606, %v3158_v1   ;;  %v10850_v1 = vld [vmem:[%s14672_s8 + $0x3fc] ss:$36 sps:$4 sm:$0xff]  }
 0x73a   : > { %9843 = vmatpush3.bf16.msra.mxu0 %v3089_v62  ;;  %10516 = vmatpush3.bf16.msra.mxu1 %v3090_v3  ;;  %v2751_v41 = vpop.permute.xlu0 %2750  ;;  %v3091_v8 = vld [vmem:[#allocation2 + $0xb8] sm:$0xff]  ;;  %v10846_v62 = vld [vmem:[%s14672_s8 + $0x3b0] ss:$36 sps:$4 sm:$0xff]  }
 0x73b   : > { %2773 = vst.msk [vmem:[#allocation2 + $0x108] sm:$0xff] %vm2635_vm6, %v2751_v41  ;;  %9844 = vmatprep.subr.bf16.mxu0 %v3098_v59  ;;  %v2783_v5 = vpop.permute.xlu1 %2782  ;;  %v3099_v6 = vld [vmem:[#allocation2 + $0xf8] sm:$0xff]  ;;  %v10821_v59 = vld [vmem:[%s14672_s8 + $0x240] ss:$36 sps:$4 sm:$0xff]  }
 0x73c   : > { %2805 = vst.msk [vmem:[#allocation2 + $0x148] sm:$0xff] %vm2635_vm6, %v2783_v5  ;;  %3279 = vperm.xlu0 %10605, %v3161_v4   ;;  %4125 = vmatmul.mubr.bf16.gmra.mrb[68].mxu0 %v10803_v2  ;;  %v10822_v2 = vld [vmem:[%s14672_s8 + $0x28c] ss:$36 sps:$4 sm:$0xff]  }
 0x73d   : > { %10509 = vmatprep.subr.bf16.mxu1 %v3099_v6  ;;  %3274 = vperm.xlu1 %10606, %v3160_v0  }
 0x73e   : > { %9845 = vmatpush3.bf16.msra.mxu0 %v3090_v3  ;;  %10517 = vmatpush3.bf16.msra.mxu1 %v3091_v8  ;;  %v2753_v10 = vpop.permute.xlu0 %2752 }
 0x73f   : > { %2774 = vst.msk [vmem:[#allocation2 + $0x110] sm:$0xff] %vm2635_vm6, %v2753_v10  ;;  %9846 = vmatprep.subr.bf16.mxu0 %v3099_v6  ;;  %v2785_v43 = vpop.permute.xlu1 %2784  ;;  %4132 = vmatprep.mubr.bf16.mxu0 %v10804_v42  ;;  %v3108_v22 = vld [vmem:[#allocation2 + $0x140] sm:$0xff]  ;;  %v10852_v6 = vld [vmem:[%s14672_s8 + $0x3f8] ss:$36 sps:$4 sm:$0xff]   ;;  %v10824_v10 = vld [vmem:[%s14672_s8 + $0x288] ss:$36 sps:$4 sm:$0xff]  }
 0x740   : > { %2806 = vst.msk [vmem:[#allocation2 + $0x150] sm:$0xff] %vm2635_vm6, %v2785_v43  ;;  %3289 = vperm.xlu0 %10605, %v3163_v61   ;;  %v10856_v61 = vld [vmem:[%s14672_s8 + $0x444] ss:$36 sps:$4 sm:$0xff]  }
 0x741   : > { %3284 = vperm.xlu1 %10606, %v3162_v11   ;;  %4334 = vmatmul.mubr.bf16.vlgmr.msra.gmra.mrb[76].mxu1 %v10816_v9  ;;  %v10825_v11 = vld [vmem:[%s14672_s8 + $0x2d4] ss:$36 sps:$4 sm:$0xff]  }
 0x742   : > { %9847 = vmatpush3.bf16.msra.mxu0 %v3091_v8  ;;  %v2755_v35 = vpop.permute.xlu0 %2754  ;;  %4341 = vmatprep.mubr.bf16.mxu1 %v10828_v28 }
 0x743   : > { %2775 = vst.msk [vmem:[#allocation2 + $0x118] sm:$0xff] %vm2635_vm6, %v2755_v35  ;;  %9944 = vmatprep.subr.bf16.mxu0 %v3108_v22  ;;  %v2787_v53 = vpop.permute.xlu1 %2786 }
 0x744   : > { %2807 = vst.msk [vmem:[#allocation2 + $0x158] sm:$0xff] %vm2635_vm6, %v2787_v53  ;;  %3299 = vperm.xlu0 %10605, %v3165_v17   ;;  %4133 = vmatmul.mubr.bf16.gmra.mrb[72].mxu0 %v10806_v12  ;;  %v10827_v53 = vld [vmem:[%s14672_s8 + $0x2d0] ss:$36 sps:$4 sm:$0xff]  }
 0x745   : > { %3294 = vperm.xlu1 %10606, %v3164_v19   ;;  %4140 = vmatprep.mubr.bf16.mxu0 %v10807_v20  ;;  %v10858_v20 = vld [vmem:[%s14672_s8 + $0x440] ss:$36 sps:$4 sm:$0xff]  }
 0x746   : > { %v2757_v27 = vpop.permute.xlu0 %2756 }
 0x747   : > { %2776 = vst.msk [vmem:[#allocation2 + $0x120] sm:$0xff] %vm2635_vm6, %v2757_v27  ;;  %v2789_v29 = vpop.permute.xlu1 %2788 }
 0x748   : > { %2808 = vst.msk [vmem:[#allocation2 + $0x160] sm:$0xff] %vm2635_vm6, %v2789_v29  ;;  %3309 = vperm.xlu0 %10605, %v3167_v25   ;;  %v10830_v25 = vld [vmem:[%s14672_s8 + $0x31c] ss:$36 sps:$4 sm:$0xff]  }
 0x749   : > { %3304 = vperm.xlu1 %10606, %v3166_v18   ;;  %4342 = vmatmul.mubr.bf16.gmra.mrb[80].mxu1 %v9195_v26 }
 0x74a   : > { %v2759_v33 = vpop.permute.xlu0 %2758  ;;  %4349 = vmatprep.mubr.bf16.mxu1 %v10833_v13 }
 0x74b   : > { %2777 = vst.msk [vmem:[#allocation2 + $0x128] sm:$0xff] %vm2635_vm6, %v2759_v33  ;;  %v2791_v38 = vpop.permute.xlu1 %2790  ;;  %v10832_v33 = vld [vmem:[%s14672_s8 + $0x318] ss:$36 sps:$4 sm:$0xff]  }
 0x74c   : > { %2809 = vst.msk [vmem:[#allocation2 + $0x168] sm:$0xff] %vm2635_vm6, %v2791_v38  ;;  %3319 = vperm.xlu0 %10605, %v3169_v31   ;;  %4141 = vmatmul.mubr.bf16.gmra.mrb[76].mxu0 %v10809_v30 }
 0x74d   : > { %3314 = vperm.xlu1 %10606, %v3168_v60   ;;  %4148 = vmatprep.mubr.bf16.mxu0 %v10810_v32  ;;  %v10835_v60 = vld [vmem:[%s14672_s8 + $0x364] ss:$36 sps:$4 sm:$0xff]  }
 0x74e   : > { %v2761_v21 = vpop.permute.xlu0 %2760 }
 0x74f   : > { %2778 = vst.msk [vmem:[#allocation2 + $0x130] sm:$0xff] %vm2635_vm6, %v2761_v21  ;;  %v2793_v46 = vpop.permute.xlu1 %2792  ;;  %v10895_v21 = vld [vmem:[%s14672_s8 + $0x64] ss:$36 sps:$4 sm:$0xff]  }
 0x750   : > { %2810 = vst.msk [vmem:[#allocation2 + $0x170] sm:$0xff] %vm2635_vm6, %v2793_v46  ;;  %3329 = vperm.xlu0 %10605, %v3171_v40   ;;  %v10837_v46 = vld [vmem:[%s14672_s8 + $0x360] ss:$36 sps:$4 sm:$0xff]  }
 0x751   : > { %3324 = vperm.xlu1 %10606, %v3170_v16   ;;  %4350 = vmatmul.mubr.bf16.gmra.mrb[84].mxu1 %v9204_v44  ;;  %v10889_v44 = vld [vmem:[%s14672_s8 + $0x18] ss:$36 sps:$4 sm:$0xff]  }
 0x752   : > { %v2763_v49 = vpop.permute.xlu0 %2762  ;;  %4357 = vmatprep.mubr.bf16.mxu1 %v10838_v45 }
 0x753   : > { %2779 = vst.msk [vmem:[#allocation2 + $0x138] sm:$0xff] %vm2635_vm6, %v2763_v49  ;;  %v2795_v50 = vpop.permute.xlu1 %2794 }
 0x754   : > { %2811 = vst.msk [vmem:[#allocation2 + $0x178] sm:$0xff] %vm2635_vm6, %v2795_v50  ;;  %4149 = vmatmul.mubr.bf16.gmra.mrb[80].mxu0 %v10812_v47  ;;  %v10841_v47 = vld [vmem:[%s14672_s8 + $0x3ac] ss:$36 sps:$4 sm:$0xff]   ;;  %v10897_v50 = vld [vmem:[%s14672_s8 + $0x60] ss:$36 sps:$4 sm:$0xff]  }
 0x755   : > { %4156 = vmatprep.mubr.bf16.mxu0 %v10813_v48 }
 0x756   : > { %v2813_v51 = vpop.permute.xlu0 %2812 }
 0x757   : > { %2836 = vst.msk [vmem:[#allocation2 + $0x180] sm:$0xff] %vm2635_vm6, %v2813_v51  ;;  %v2845_v52 = vpop.permute.xlu1 %2844  ;;  %v10843_v51 = vld [vmem:[%s14672_s8 + $0x3a8] ss:$36 sps:$4 sm:$0xff]  }
 0x758   : > { %2868 = vst.msk [vmem:[#allocation2 + $0x1c0] sm:$0xff] %vm2635_vm6, %v2845_v52  ;;  %v10903_v52 = vld [vmem:[%s14672_s8 + $0xa8] ss:$36 sps:$4 sm:$0xff]  }
 0x759   : > { %4358 = vmatmul.mubr.bf16.gmra.mrb[88].mxu1 %v10840_v24  ;;  %v10901_v24 = vld [vmem:[%s14672_s8 + $0xac] ss:$36 sps:$4 sm:$0xff]  }
 0x75a   : > { %v2815_v56 = vpop.permute.xlu0 %2814  ;;  %4365 = vmatprep.mubr.bf16.mxu1 %v10844_v7  ;;  %v10847_v7 = vld [vmem:[%s14672_s8 + $0x3f4] ss:$36 sps:$4 sm:$0xff]  }
 0x75b   : > { %2837 = vst.msk [vmem:[#allocation2 + $0x188] sm:$0xff] %vm2635_vm6, %v2815_v56  ;;  %v2847_v57 = vpop.permute.xlu1 %2846  ;;  %v10853_v56 = vld [vmem:[%s14672_s8 + $0x43c] ss:$36 sps:$4 sm:$0xff]  }
 0x75c   : > { %2869 = vst.msk [vmem:[#allocation2 + $0x1c8] sm:$0xff] %vm2635_vm6, %v2847_v57  ;;  %4157 = vmatmul.mubr.bf16.gmra.mrb[84].mxu0 %v10815_v54  ;;  %v10907_v54 = vld [vmem:[%s14672_s8 + $0xf4] ss:$36 sps:$4 sm:$0xff]  }
 0x75d   : > { %4164 = vmatprep.mubr.bf16.mxu0 %v10819_v55  ;;  %v10849_v55 = vld [vmem:[%s14672_s8 + $0x3f0] ss:$36 sps:$4 sm:$0xff]  }
 0x75e   : > { %v2817_v58 = vpop.permute.xlu0 %2816  ;;  %v3116_v14 = vld [vmem:[#allocation2 + $0x180] sm:$0xff]  ;;  %v10909_v57 = vld [vmem:[%s14672_s8 + $0xf0] ss:$36 sps:$4 sm:$0xff]  }
 0x75f   : > { %2838 = vst.msk [vmem:[#allocation2 + $0x190] sm:$0xff] %vm2635_vm6, %v2817_v58  ;;  %v2849_v63 = vpop.permute.xlu1 %2848  ;;  %v3124_v34 = vld [vmem:[#allocation2 + $0x1c0] sm:$0xff] }
 0x760   : > { %2870 = vst.msk [vmem:[#allocation2 + $0x1d0] sm:$0xff] %vm2635_vm6, %v2849_v63  ;;  %10056 = vmatprep.subr.bf16.mxu1 %v3124_v34  ;;  %v10913_v58 = vld [vmem:[%s14672_s8 + $0x13c] ss:$36 sps:$4 sm:$0xff]   ;;  %v10861_v63 = vld [vmem:[%s14672_s8 + $0xc] ss:$36 sps:$4 sm:$0xff]  }
 0x761   : > { %10057 = vmatpush3.bf16.msra.mxu1 %v3116_v14  ;;  %v10915_v34 = vld [vmem:[%s14672_s8 + $0x138] ss:$36 sps:$4 sm:$0xff]   ;;  %v10859_v14 = vld [vmem:[%s14672_s8 + $0x8] ss:$36 sps:$4 sm:$0xff]  }
 0x762   : > { %v2819_v3 = vpop.permute.xlu0 %2818  ;;  %4366 = vmatmul.mubr.bf16.gmra.mrb[92].mxu1 %v10846_v62  ;;  %v3117_v0 = vld [vmem:[#allocation2 + $0x188] sm:$0xff]  ;;  %v10855_v62 = vld [vmem:[%s14672_s8 + $0x438] ss:$36 sps:$4 sm:$0xff]  }
 0x763   : > { %2839 = vst.msk [vmem:[#allocation2 + $0x198] sm:$0xff] %vm2635_vm6, %v2819_v3  ;;  %v2851_v4 = vpop.permute.xlu1 %2850  ;;  %v3125_v41 = vld [vmem:[#allocation2 + $0x1c8] sm:$0xff]  ;;  %4373 = vmatprep.mubr.bf16.mxu1 %v10850_v1  ;;  %v10921_v3 = vld [vmem:[%s14672_s8 + $0x180] ss:$36 sps:$4 sm:$0xff]  }
 0x764   : > { %2871 = vst.msk [vmem:[#allocation2 + $0x1d8] sm:$0xff] %vm2635_vm6, %v2851_v4  ;;  %4165 = vmatmul.mubr.bf16.gmra.mrb[88].mxu0 %v10821_v59  ;;  %10058 = vmatprep.subr.bf16.mxu1 %v3125_v41  ;;  %v10919_v1 = vld [vmem:[%s14672_s8 + $0x184] ss:$36 sps:$4 sm:$0xff]   ;;  %v10862_v59 = vld [vmem:[%s14672_s8 + $0x54] ss:$36 sps:$4 sm:$0xff]  }
 0x765   : > { %10059 = vmatpush3.bf16.msra.mxu1 %v3117_v0  ;;  %4172 = vmatprep.mubr.bf16.mxu0 %v10822_v2  ;;  %v3100_v2 = vld [vmem:[#allocation2 + $0x100] sm:$0xff]  ;;  %v3109_v4 = vld [vmem:[#allocation2 + $0x148] sm:$0xff] }
 0x766   : > { %v2821_v5 = vpop.permute.xlu0 %2820  ;;  %v3118_v9 = vld [vmem:[#allocation2 + $0x190] sm:$0xff]  ;;  %v3101_v0 = vld [vmem:[#allocation2 + $0x108] sm:$0xff] }
 0x767   : > { %2840 = vst.msk [vmem:[#allocation2 + $0x1a0] sm:$0xff] %vm2635_vm6, %v2821_v5  ;;  %v2853_v42 = vpop.permute.xlu1 %2852  ;;  %v3126_v8 = vld [vmem:[#allocation2 + $0x1d0] sm:$0xff] }
 0x768   : > { %2872 = vst.msk [vmem:[#allocation2 + $0x1e0] sm:$0xff] %vm2635_vm6, %v2853_v42  ;;  %10060 = vmatprep.subr.bf16.mxu1 %v3126_v8  ;;  %v10925_v41 = vld [vmem:[%s14672_s8 + $0x1cc] ss:$36 sps:$4 sm:$0xff]   ;;  %v10865_v42 = vld [vmem:[%s14672_s8 + $0x9c] ss:$36 sps:$4 sm:$0xff]  }
 0x769   : > { %10061 = vmatpush3.bf16.msra.mxu1 %v3118_v9  ;;  %v10864_v5 = vld [vmem:[%s14672_s8 + $0x50] ss:$36 sps:$4 sm:$0xff]   ;;  %v3111_v9 = vld [vmem:[#allocation2 + $0x158] sm:$0xff] }
 0x76a   : > { %v2823_v28 = vpop.permute.xlu0 %2822  ;;  %4374 = vmatmul.mubr.bf16.gmra.mrb[96].mxu1 %v10852_v6  ;;  %v3119_v17 = vld [vmem:[#allocation2 + $0x198] sm:$0xff]  ;;  %v3110_v6 = vld [vmem:[#allocation2 + $0x150] sm:$0xff] }
 0x76b   : > { %2841 = vst.msk [vmem:[#allocation2 + $0x1a8] sm:$0xff] %vm2635_vm6, %v2823_v28  ;;  %v2855_v43 = vpop.permute.xlu1 %2854  ;;  %v3127_v12 = vld [vmem:[#allocation2 + $0x1d8] sm:$0xff]  ;;  %4381 = vmatprep.mubr.bf16.mxu1 %v10856_v61  ;;  %v3102_v8 = vld [vmem:[#allocation2 + $0x110] sm:$0xff]  ;;  %v10927_v61 = vld [vmem:[%s14672_s8 + $0x1c8] ss:$36 sps:$4 sm:$0xff]  }
 0x76c   : > { %2873 = vst.msk [vmem:[#allocation2 + $0x1e8] sm:$0xff] %vm2635_vm6, %v2855_v43  ;;  %4173 = vmatmul.mubr.bf16.gmra.mrb[92].mxu0 %v10824_v10  ;;  %10062 = vmatprep.subr.bf16.mxu1 %v3127_v12  ;;  %v10931_v10 = vld [vmem:[%s14672_s8 + $0x214] ss:$36 sps:$4 sm:$0xff]   ;;  %v3112_v43 = vld [vmem:[#allocation2 + $0x160] sm:$0xff] }
 0x76d   : > { %10063 = vmatpush3.bf16.msra.mxu1 %v3119_v17  ;;  %4180 = vmatprep.mubr.bf16.mxu0 %v10825_v11  ;;  %v3103_v11 = vld [vmem:[#allocation2 + $0x118] sm:$0xff]  ;;  %v10868_v12 = vld [vmem:[%s14672_s8 + $0xe4] ss:$36 sps:$4 sm:$0xff]  }
 0x76e   : > { %v2825_v19 = vpop.permute.xlu0 %2824  ;;  %v3120_v23 = vld [vmem:[#allocation2 + $0x1a0] sm:$0xff]  ;;  %v10867_v28 = vld [vmem:[%s14672_s8 + $0x98] ss:$36 sps:$4 sm:$0xff]  }
 0x76f   : > { %2842 = vst.msk [vmem:[#allocation2 + $0x1b0] sm:$0xff] %vm2635_vm6, %v2825_v19  ;;  %v2857_v35 = vpop.permute.xlu1 %2856  ;;  %v3128_v22 = vld [vmem:[#allocation2 + $0x1e0] sm:$0xff]  ;;  %v10933_v19 = vld [vmem:[%s14672_s8 + $0x210] ss:$36 sps:$4 sm:$0xff]  }
 0x770   : > { %2874 = vst.msk [vmem:[#allocation2 + $0x1f0] sm:$0xff] %vm2635_vm6, %v2857_v35  ;;  %10064 = vmatprep.subr.bf16.mxu1 %v3128_v22  ;;  %v3104_v17 = vld [vmem:[#allocation2 + $0x120] sm:$0xff]  ;;  %v3105_v22 = vld [vmem:[#allocation2 + $0x128] sm:$0xff] }
 0x771   : > { %10065 = vmatpush3.bf16.msra.mxu1 %v3120_v23  ;;  %v10937_v35 = vld [vmem:[%s14672_s8 + $0x25c] ss:$36 sps:$4 sm:$0xff]   ;;  %v3114_v23 = vld [vmem:[#allocation2 + $0x170] sm:$0xff] }
 0x772   : > { %v2827_v26 = vpop.permute.xlu0 %2826  ;;  %4382 = vmatmul.mubr.bf16.gmra.mrb[100].mxu1 %v10858_v20  ;;  %v3121_v13 = vld [vmem:[#allocation2 + $0x1a8] sm:$0xff] }
 0x773   : > { %2843 = vst.msk [vmem:[#allocation2 + $0x1b8] sm:$0xff] %vm2635_vm6, %v2827_v26  ;;  %v2859_v27 = vpop.permute.xlu1 %2858  ;;  %v3129_v18 = vld [vmem:[#allocation2 + $0x1e8] sm:$0xff]  ;;  %4583 = vmatprep.mubr.bf16.mxu1 %v10891_v15  ;;  %v10870_v15 = vld [vmem:[%s14672_s8 + $0xe0] ss:$36 sps:$4 sm:$0xff]   ;;  %v10939_v26 = vld [vmem:[%s14672_s8 + $0x258] ss:$36 sps:$4 sm:$0xff]  }
 0x774   : > { %2875 = vst.msk [vmem:[#allocation2 + $0x1f8] sm:$0xff] %vm2635_vm6, %v2859_v27  ;;  %4181 = vmatmul.mubr.bf16.gmra.mrb[96].mxu0 %v10827_v53  ;;  %10066 = vmatprep.subr.bf16.mxu1 %v3129_v18  ;;  %v3113_v20 = vld [vmem:[#allocation2 + $0x168] sm:$0xff]  ;;  %v3115_v27 = vld [vmem:[#allocation2 + $0x178] sm:$0xff] }
 0x775   : > { %10067 = vmatpush3.bf16.msra.mxu1 %v3121_v13  ;;  %4188 = vmatprep.mubr.bf16.mxu0 %v10830_v25  ;;  %v10871_v53 = vld [vmem:[%s14672_s8 + $0x12c] ss:$36 sps:$4 sm:$0xff]   ;;  %v10943_v18 = vld [vmem:[%s14672_s8 + $0x2a4] ss:$36 sps:$4 sm:$0xff]   ;;  %v3107_v13 = vld [vmem:[#allocation2 + $0x138] sm:$0xff] }
 0x776   : > { %v2879_v29 = vpop.permute.xlu0 %2878  ;;  %v3122_v32 = vld [vmem:[#allocation2 + $0x1b0] sm:$0xff] }
 0x777   : > { %2901 = vst.msk [vmem:[#allocation2 + $0x208] sm:$0xff] %vm2635_vm6, %v2879_v29  ;;  %v2877_v30 = vpop.permute.xlu1 %2876  ;;  %v3130_v31 = vld [vmem:[#allocation2 + $0x1f0] sm:$0xff]  ;;  %v10873_v29 = vld [vmem:[%s14672_s8 + $0x128] ss:$36 sps:$4 sm:$0xff]  }
 0x778   : > { %2900 = vst.msk [vmem:[#allocation2 + $0x200] sm:$0xff] %vm2635_vm6, %v2877_v30  ;;  %10068 = vmatprep.subr.bf16.mxu1 %v3130_v31  ;;  %v3106_v25 = vld [vmem:[#allocation2 + $0x130] sm:$0xff] }
 0x779   : > { %10069 = vmatpush3.bf16.msra.mxu1 %v3122_v32  ;;  %v10874_v31 = vld [vmem:[%s14672_s8 + $0x174] ss:$36 sps:$4 sm:$0xff]   ;;  %v10945_v32 = vld [vmem:[%s14672_s8 + $0x2a0] ss:$36 sps:$4 sm:$0xff]  }
 0x77a   : > { %v2883_v36 = vpop.permute.xlu0 %2882  ;;  %v3123_v40 = vld [vmem:[#allocation2 + $0x1b8] sm:$0xff] }
 0x77b   : > { %2903 = vst.msk [vmem:[#allocation2 + $0x218] sm:$0xff] %vm2635_vm6, %v2883_v36  ;;  %v2881_v37 = vpop.permute.xlu1 %2880  ;;  %v3131_v38 = vld [vmem:[#allocation2 + $0x1f8] sm:$0xff] }
 0x77c   : > { %2902 = vst.msk [vmem:[#allocation2 + $0x210] sm:$0xff] %vm2635_vm6, %v2881_v37  ;;  %4189 = vmatmul.mubr.bf16.gmra.mrb[100].mxu0 %v10832_v33  ;;  %10070 = vmatprep.subr.bf16.mxu1 %v3131_v38  ;;  %v10949_v33 = vld [vmem:[%s14672_s8 + $0x2ec] ss:$36 sps:$4 sm:$0xff]   ;;  %v10877_v36 = vld [vmem:[%s14672_s8 + $0x1bc] ss:$36 sps:$4 sm:$0xff]  }
 0x77d   : > { %10071 = vmatpush3.bf16.msra.mxu1 %v3123_v40  ;;  %4196 = vmatprep.mubr.bf16.mxu0 %v10835_v60  ;;  %v10876_v60 = vld [vmem:[%s14672_s8 + $0x170] ss:$36 sps:$4 sm:$0xff]   ;;  %v10951_v37 = vld [vmem:[%s14672_s8 + $0x2e8] ss:$36 sps:$4 sm:$0xff]   ;;  %v10879_v40 = vld [vmem:[%s14672_s8 + $0x1b8] ss:$36 sps:$4 sm:$0xff]  }
 0x77e   : > { %v2887_v16 = vpop.permute.xlu0 %2886  ;;  %5785 = vmatprep.subr.bf16.mxu1 %v14695_v39  ;;  %v10955_v38 = vld [vmem:[%s14672_s8 + $0x334] ss:$36 sps:$4 sm:$0xff]  }
 0x77f   : > { %2905 = vst.msk [vmem:[#allocation2 + $0x228] sm:$0xff] %vm2635_vm6, %v2887_v16  ;;  %v2885_v45 = vpop.permute.xlu1 %2884  ;;  %v3132_v30 = vld [vmem:[#allocation2 + $0x200] sm:$0xff] }
 0x780   : > { %2904 = vst.msk [vmem:[#allocation2 + $0x220] sm:$0xff] %vm2635_vm6, %v2885_v45  ;;  %4584 = vmatmul.mubr.bf16.vlgmr.msra.gmra.mrb[104].mxu1 %v10889_v44  ;;  %v10880_v44 = vld [vmem:[%s14672_s8 + $0x204] ss:$36 sps:$4 sm:$0xff]   ;;  %v10961_v16 = vld [vmem:[%s14672_s8 + $0x37c] ss:$36 sps:$4 sm:$0xff]  }
 0x781   : > { %4591 = vmatprep.mubr.bf16.mxu1 %v10895_v21  ;;  %v10957_v21 = vld [vmem:[%s14672_s8 + $0x330] ss:$36 sps:$4 sm:$0xff]   ;;  %v10882_v45 = vld [vmem:[%s14672_s8 + $0x200] ss:$36 sps:$4 sm:$0xff]  }
 0x782   : > { %v2891_v48 = vpop.permute.xlu0 %2890 }
 0x783   : > { %2907 = vst.msk [vmem:[#allocation2 + $0x238] sm:$0xff] %vm2635_vm6, %v2891_v48  ;;  %v2889_v49 = vpop.permute.xlu1 %2888  ;;  %v10967_v48 = vld [vmem:[%s14672_s8 + $0x3c4] ss:$36 sps:$4 sm:$0xff]  }
 0x784   : > { %2906 = vst.msk [vmem:[#allocation2 + $0x230] sm:$0xff] %vm2635_vm6, %v2889_v49  ;;  %4197 = vmatmul.mubr.bf16.gmra.mrb[104].mxu0 %v10837_v46  ;;  %v10883_v46 = vld [vmem:[%s14672_s8 + $0x24c] ss:$36 sps:$4 sm:$0xff]  }
 0x785   : > { %4204 = vmatprep.mubr.bf16.mxu0 %v10841_v47  ;;  %v10963_v47 = vld [vmem:[%s14672_s8 + $0x378] ss:$36 sps:$4 sm:$0xff]   ;;  %v10885_v49 = vld [vmem:[%s14672_s8 + $0x248] ss:$36 sps:$4 sm:$0xff]  }
 0x788   : > { %4592 = vmatmul.mubr.bf16.gmra.mrb[108].mxu1 %v10897_v50  ;;  %v10888_v50 = vld [vmem:[%s14672_s8 + $0x14] ss:$36 sps:$4 sm:$0xff]  }
 0x789   : > { %4599 = vmatprep.mubr.bf16.mxu1 %v10901_v24  ;;  %v10969_v24 = vld [vmem:[%s14672_s8 + $0x3c0] ss:$36 sps:$4 sm:$0xff]  }
 0x78c   : > { %4205 = vmatmul.mubr.bf16.gmra.mrb[108].mxu0 %v10843_v51  ;;  %v10973_v51 = vld [vmem:[%s14672_s8 + $0x40c] ss:$36 sps:$4 sm:$0xff]  }
 0x78d   : > { %4212 = vmatprep.mubr.bf16.mxu0 %v10847_v7  ;;  %v10886_v7 = vld [vmem:[%s14672_s8 + $0x10] ss:$36 sps:$4 sm:$0xff]  }
 0x790   : > { %4600 = vmatmul.mubr.bf16.gmra.mrb[112].mxu1 %v10903_v52  ;;  %v10892_v52 = vld [vmem:[%s14672_s8 + $0x5c] ss:$36 sps:$4 sm:$0xff]  }
 0x791   : > { %4607 = vmatprep.mubr.bf16.mxu1 %v10907_v54  ;;  %v10975_v54 = vld [vmem:[%s14672_s8 + $0x408] ss:$36 sps:$4 sm:$0xff]  }
 0x794   : > { %4213 = vmatmul.mubr.bf16.gmra.mrb[112].mxu0 %v10849_v55  ;;  %v3133_v55 = vld [vmem:[#allocation2 + $0x208] sm:$0xff] }
 0x795   : > { %4220 = vmatprep.mubr.bf16.mxu0 %v10853_v56  ;;  %v10979_v56 = vld [vmem:[%s14672_s8 + $0x454] ss:$36 sps:$4 sm:$0xff]  }
 0x798   : > { %4608 = vmatmul.mubr.bf16.gmra.mrb[116].mxu1 %v10909_v57  ;;  %v10894_v57 = vld [vmem:[%s14672_s8 + $0x58] ss:$36 sps:$4 sm:$0xff]  }
 0x799   : > { %4615 = vmatprep.mubr.bf16.mxu1 %v10913_v58  ;;  %v3134_v58 = vld [vmem:[#allocation2 + $0x210] sm:$0xff] }
 0x79c   : > { %4221 = vmatmul.mubr.bf16.gmra.mrb[116].mxu0 %v10855_v62  ;;  %v10898_v62 = vld [vmem:[%s14672_s8 + $0xa4] ss:$36 sps:$4 sm:$0xff]  }
 0x79d   : > { %4261 = vmatprep.mubr.bf16.mxu0 %v10861_v63  ;;  %v10981_v63 = vld [vmem:[%s14672_s8 + $0x450] ss:$36 sps:$4 sm:$0xff]  }
 0x7a0   : > { %4616 = vmatmul.mubr.bf16.gmra.mrb[120].mxu1 %v10915_v34  ;;  %v3135_v34 = vld [vmem:[#allocation2 + $0x218] sm:$0xff] }
 0x7a1   : > { %4623 = vmatprep.mubr.bf16.mxu1 %v10919_v1 }
 0x7a4   : > { %4262 = vmatmul.mubr.bf16.vlgmr.msra.gmra.mrb[120].mxu0 %v10859_v14 }
 0x7a5   : > { %9945 = vmatpush3.bf16.msra.mxu0 %v3100_v2  ;;  %4269 = vmatprep.mubr.bf16.mxu0 %v10862_v59  ;;  %v10900_v59 = vld [vmem:[%s14672_s8 + $0xa0] ss:$36 sps:$4 sm:$0xff]  }
 0x7a6   : > { %9946 = vmatprep.subr.bf16.mxu0 %v3109_v4  ;;  %v3136_v4 = vld [vmem:[#allocation2 + $0x220] sm:$0xff] }
 0x7a8   : > { %4624 = vmatmul.mubr.bf16.gmra.mrb[124].mxu1 %v10921_v3 }
 0x7a9   : > { %9947 = vmatpush3.bf16.msra.mxu0 %v3101_v0  ;;  %4631 = vmatprep.mubr.bf16.mxu1 %v10925_v41  ;;  %v10904_v41 = vld [vmem:[%s14672_s8 + $0xec] ss:$36 sps:$4 sm:$0xff]  }
 0x7aa   : > { %9948 = vmatprep.subr.bf16.mxu0 %v3110_v6  ;;  %v3137_v6 = vld [vmem:[#allocation2 + $0x228] sm:$0xff] }
 0x7ac   : > { %4270 = vmatmul.mubr.bf16.gmra.mrb[124].mxu0 %v10864_v5 }
 0x7ad   : > { %9949 = vmatpush3.bf16.msra.mxu0 %v3102_v8  ;;  %4277 = vmatprep.mubr.bf16.mxu0 %v10865_v42 }
 0x7ae   : > { %9950 = vmatprep.subr.bf16.mxu0 %v3111_v9 }
 0x7b0   : > { %4632 = vmatmul.mubr.bf16.gmra.mrb[128].mxu1 %v10927_v61  ;;  %v10906_v61 = vld [vmem:[%s14672_s8 + $0xe8] ss:$36 sps:$4 sm:$0xff]  }
 0x7b1   : > { %9951 = vmatpush3.bf16.msra.mxu0 %v3103_v11  ;;  %4639 = vmatprep.mubr.bf16.mxu1 %v10931_v10  ;;  %v3138_v11 = vld [vmem:[#allocation2 + $0x230] sm:$0xff] }
 0x7b2   : > { %9952 = vmatprep.subr.bf16.mxu0 %v3112_v43 }
 0x7b4   : > { %4278 = vmatmul.mubr.bf16.gmra.mrb[128].mxu0 %v10867_v28  ;;  %v10910_v28 = vld [vmem:[%s14672_s8 + $0x134] ss:$36 sps:$4 sm:$0xff]  }
 0x7b5   : > { %9953 = vmatpush3.bf16.msra.mxu0 %v3104_v17  ;;  %4285 = vmatprep.mubr.bf16.mxu0 %v10868_v12  ;;  %v3139_v17 = vld [vmem:[#allocation2 + $0x238] sm:$0xff] }
 0x7b6   : > { %9954 = vmatprep.subr.bf16.mxu0 %v3113_v20 }
 0x7b8   : > { %4640 = vmatmul.mubr.bf16.gmra.mrb[132].mxu1 %v10933_v19 }
 0x7b9   : > { %9955 = vmatpush3.bf16.msra.mxu0 %v3105_v22  ;;  %4647 = vmatprep.mubr.bf16.mxu1 %v10937_v35  ;;  %v10912_v35 = vld [vmem:[%s14672_s8 + $0x130] ss:$36 sps:$4 sm:$0xff]  }
 0x7ba   : > { %9956 = vmatprep.subr.bf16.mxu0 %v3114_v23  ;;  %v10916_v23 = vld [vmem:[%s14672_s8 + $0x17c] ss:$36 sps:$4 sm:$0xff]  }
 0x7bc   : > { %4286 = vmatmul.mubr.bf16.gmra.mrb[132].mxu0 %v10870_v15 }
 0x7bd   : > { %9957 = vmatpush3.bf16.msra.mxu0 %v3106_v25  ;;  %4293 = vmatprep.mubr.bf16.mxu0 %v10871_v53  ;;  %v12990_v53 = vpop.permute.xlu0 %3179 }
 0x7be   : > { %9958 = vmatprep.subr.bf16.mxu0 %v3115_v27  ;;  %v12994_v27 = vpop.permute.xlu1 %3174 }
 0x7c0   : > { %4648 = vmatmul.mubr.bf16.gmra.mrb[136].mxu1 %v10939_v26 }
 0x7c1   : > { %9959 = vmatpush3.bf16.msra.mxu0 %v3107_v13  ;;  %4655 = vmatprep.mubr.bf16.mxu1 %v10943_v18  ;;  %v12996_v13 = vpop.permute.xlu0 %3189 }
 0x7c2   : > { %10316 = vmatprep.subr.bf16.mxu0 %v3132_v30 }
 0x7c4   : > { %4294 = vmatmul.mubr.bf16.gmra.mrb[136].mxu0 %v10873_v29 }
 0x7c5   : > { %4301 = vmatprep.mubr.bf16.mxu0 %v10874_v31 }
 0x7c8   : > { %4656 = vmatmul.mubr.bf16.gmra.mrb[140].mxu1 %v10945_v32 }
 0x7c9   : > { %4663 = vmatprep.mubr.bf16.mxu1 %v10949_v33  ;;  %v10922_v33 = vld [vmem:[%s14672_s8 + $0x1c4] ss:$36 sps:$4 sm:$0xff]  }
 0x7cc   : > { %4302 = vmatmul.mubr.bf16.gmra.mrb[140].mxu0 %v10876_v60  ;;  %v13006_v60 = vpop.permute.xlu1 %3184 }
 0x7cd   : > { %4309 = vmatprep.mubr.bf16.mxu0 %v10877_v36 }
 0x7d0   : > { %4664 = vmatmul.mubr.bf16.gmra.mrb[144].mxu1 %v10951_v37 }
 0x7d1   : > { %4671 = vmatprep.mubr.bf16.mxu1 %v10955_v38 }
 0x7d4   : > { %4310 = vmatmul.mubr.bf16.gmra.mrb[144].mxu0 %v10879_v40 }
 0x7d5   : > { %4317 = vmatprep.mubr.bf16.mxu0 %v10880_v44  ;;  %v13010_v44 = vpop.permute.xlu0 %3199 }
 0x7d8   : > { %4672 = vmatmul.mubr.bf16.gmra.mrb[148].mxu1 %v10957_v21 }
 0x7d9   : > { %4679 = vmatprep.mubr.bf16.mxu1 %v10961_v16 }
 0x7dc   : > { %4318 = vmatmul.mubr.bf16.gmra.mrb[148].mxu0 %v10882_v45 }
 0x7dd   : > { %4325 = vmatprep.mubr.bf16.mxu0 %v10883_v46 }
 0x7e0   : > { %4680 = vmatmul.mubr.bf16.gmra.mrb[152].mxu1 %v10963_v47  ;;  %v13014_v47 = vpop.permute.xlu1 %3194 }
 0x7e1   : > { %4687 = vmatprep.mubr.bf16.mxu1 %v10967_v48 }
 0x7e4   : > { %4326 = vmatmul.mubr.bf16.gmra.mrb[152].mxu0 %v10885_v49  ;;  %v10924_v49 = vld [vmem:[%s14672_s8 + $0x1c0] ss:$36 sps:$4 sm:$0xff]  }
 0x7e5   : > { %4422 = vmatprep.mubr.bf16.mxu0 %v10888_v50 }
 0x7e8   : > { %4688 = vmatmul.mubr.bf16.gmra.mrb[156].mxu1 %v10969_v24 }
 0x7e9   : > { %4695 = vmatprep.mubr.bf16.mxu1 %v10973_v51 }
 0x7ec   : > { %4423 = vmatmul.mubr.bf16.vlgmr.msra.gmra.mrb[156].mxu0 %v10886_v7  ;;  %v10928_v7 = vld [vmem:[%s14672_s8 + $0x20c] ss:$36 sps:$4 sm:$0xff]  }
 0x7ed   : > { %10317 = vmatpush3.bf16.msra.mxu0 %v3132_v30  ;;  %4430 = vmatprep.mubr.bf16.mxu0 %v10892_v52  ;;  %v10918_v30 = vld [vmem:[%s14672_s8 + $0x178] ss:$36 sps:$4 sm:$0xff]  }
 0x7ee   : > { %10318 = vmatprep.subr.bf16.mxu0 %v3133_v55 }
 0x7f0   : > { %4696 = vmatmul.mubr.bf16.gmra.mrb[160].mxu1 %v10975_v54 }
 0x7f1   : > { %10319 = vmatpush3.bf16.msra.mxu0 %v3133_v55  ;;  %4703 = vmatprep.mubr.bf16.mxu1 %v10979_v56  ;;  %v13028_v55 = vpop.permute.xlu0 %3209 }
 0x7f2   : > { %10320 = vmatprep.subr.bf16.mxu0 %v3134_v58 }
 0x7f4   : > { %4431 = vmatmul.mubr.bf16.gmra.mrb[160].mxu0 %v10894_v57 }
 0x7f5   : > { %10321 = vmatpush3.bf16.msra.mxu0 %v3134_v58  ;;  %4438 = vmatprep.mubr.bf16.mxu0 %v10898_v62  ;;  %v13030_v58 = vpop.permute.xlu1 %3204 }
 0x7f6   : > { %10322 = vmatprep.subr.bf16.mxu0 %v3135_v34 }
 0x7f7   : > { %v9736_v1 = vpop.f32.mrb[56].mxu0 }
 0x7f8   : > { %v9737_v14 = vpop.f32.mrb[57].mxu0  ;;  %4704 = vmatmul.mubr.bf16.gmra.mrb[164].mxu1 %v10981_v63 }
 0x7f9   : > { %v12965_v2 = vadd.f32 %v9737_v14, %v9736_v1  ;;  %10323 = vmatpush3.bf16.msra.mxu0 %v3135_v34  ;;  %v9739_v3 = vpop.f32.mrb[58].mxu0 }
 0x7fa   : > { %10324 = vmatprep.subr.bf16.mxu0 %v3136_v4  ;;  %v9740_v0 = vpop.f32.mrb[59].mxu0 }
 0x7fb   : > { %v12970_v5 = vadd.f32 %v9740_v0, %v9739_v3  ;;  %v10934_v0 = vld [vmem:[%s14672_s8 + $0x254] ss:$36 sps:$4 sm:$0xff]  }
 0x7fc   : > { %4439 = vmatmul.mubr.bf16.gmra.mrb[164].mxu0 %v10900_v59  ;;  %v10930_v59 = vld [vmem:[%s14672_s8 + $0x208] ss:$36 sps:$4 sm:$0xff]  }
 0x7fd   : > { %10325 = vmatpush3.bf16.msra.mxu0 %v3136_v4  ;;  %4446 = vmatprep.mubr.bf16.mxu0 %v10904_v41 }
 0x7fe   : > { %10326 = vmatprep.subr.bf16.mxu0 %v3137_v6 }
 0x7ff   : > { %v9742_v42 = vpop.f32.mrb[60].mxu0 }
 0x800   : > { %v9743_v8 = vpop.f32.mrb[61].mxu0 }
 0x801   : > { %v12975_v9 = vadd.f32 %v9743_v8, %v9742_v42  ;;  %10327 = vmatpush3.bf16.msra.mxu0 %v3137_v6  ;;  %v9745_v10 = vpop.f32.mrb[62].mxu0  ;;  %v13044_v6 = vpop.permute.xlu0 %3219 }
 0x802   : > { %10328 = vmatprep.subr.bf16.mxu0 %v3138_v11  ;;  %v9746_v43 = vpop.f32.mrb[63].mxu0 }
 0x803   : > { %v12980_v12 = vadd.f32 %v9746_v43, %v9745_v10 }
 0x804   : > { %4447 = vmatmul.mubr.bf16.gmra.mrb[168].mxu0 %v10906_v61  ;;  %v13048_v61 = vpop.permute.xlu1 %3214 }
 0x805   : > { %10329 = vmatpush3.bf16.msra.mxu0 %v3138_v11  ;;  %4454 = vmatprep.mubr.bf16.mxu0 %v10910_v28 }
 0x806   : > { %10330 = vmatprep.subr.bf16.mxu0 %v3139_v17 }
 0x807   : > { %v9748_v19 = vpop.f32.mrb[64].mxu0 }
 0x808   : > { %v9749_v20 = vpop.f32.mrb[65].mxu0 }
 0x809   : > { %v12985_v22 = vadd.f32 %v9749_v20, %v9748_v19  ;;  %10331 = vmatpush3.bf16.msra.mxu0 %v3139_v17  ;;  %v9751_v15 = vpop.f32.mrb[66].mxu0  ;;  %v13052_v20 = vpop.permute.xlu0 %3229 }
 0x80a   : > { %v9752_v25 = vpop.f32.mrb[67].mxu0 }
 0x80b   : > { %v12992_v26 = vadd.f32 %v9752_v25, %v9751_v15  ;;  %v10936_v15 = vld [vmem:[%s14672_s8 + $0x250] ss:$36 sps:$4 sm:$0xff]  }
 0x80c   : > { %4455 = vmatmul.mubr.bf16.gmra.mrb[172].mxu0 %v10912_v35 }
 0x80d   : > { %4462 = vmatprep.mubr.bf16.mxu0 %v10916_v23 }
 0x80f   : > { %v9754_v18 = vpop.f32.mrb[68].mxu0 }
 0x810   : > { %v9755_v29 = vpop.f32.mrb[69].mxu0 }
 0x811   : > { %v13001_v31 = vadd.f32 %v9755_v29, %v9754_v18  ;;  %v9757_v32 = vpop.f32.mrb[70].mxu0  ;;  %v10940_v29 = vld [vmem:[%s14672_s8 + $0x29c] ss:$36 sps:$4 sm:$0xff]  }
 0x812   : > { %v9758_v36 = vpop.f32.mrb[71].mxu0 }
 0x813   : > { %v13008_v37 = vadd.f32 %v9758_v36, %v9757_v32 }
 0x814   : > { %4463 = vmatmul.mubr.bf16.gmra.mrb[176].mxu0 %v10918_v30  ;;  %v9902_v38 = vpop.f32.mrb[76].mxu1  ;;  %v13064_v30 = vpop.permute.xlu1 %3224 }
 0x815   : > { %4470 = vmatprep.mubr.bf16.mxu0 %v10922_v33  ;;  %v9903_v40 = vpop.f32.mrb[77].mxu1 }
 0x816   : > { %v13012_v21 = vadd.f32 %v9903_v40, %v9902_v38  ;;  %v9905_v16 = vpop.f32.mrb[78].mxu1  ;;  %v13068_v40 = vpop.permute.xlu0 %3239 }
 0x817   : > { %v9760_v45 = vpop.f32.mrb[72].mxu0  ;;  %v9906_v46 = vpop.f32.mrb[79].mxu1 }
 0x818   : > { %v9761_v48 = vpop.f32.mrb[73].mxu0  ;;  %v13019_v50 = vadd.f32 %v9906_v46, %v9905_v16 }
 0x819   : > { %v13021_v24 = vadd.f32 %v9761_v48, %v9760_v45  ;;  %v9763_v51 = vpop.f32.mrb[74].mxu0 }
 0x81a   : > { %v9764_v52 = vpop.f32.mrb[75].mxu0 }
 0x81b   : > { %v13026_v54 = vadd.f32 %v9764_v52, %v9763_v51 }
 0x81c   : > { %4471 = vmatmul.mubr.bf16.gmra.mrb[180].mxu0 %v10924_v49  ;;  %v9908_v56 = vpop.f32.mrb[80].mxu1  ;;  %v13072_v49 = vpop.permute.xlu1 %3234 }
 0x81d   : > { %4478 = vmatprep.mubr.bf16.mxu0 %v10928_v7  ;;  %v9909_v57 = vpop.f32.mrb[81].mxu1  ;;  %v10942_v7 = vld [vmem:[%s14672_s8 + $0x298] ss:$36 sps:$4 sm:$0xff]  }
 0x81e   : > { %v13032_v62 = vadd.f32 %v9909_v57, %v9908_v56  ;;  %v9911_v63 = vpop.f32.mrb[82].mxu1 }
 0x81f   : > { %v9766_v34 = vpop.f32.mrb[76].mxu0  ;;  %v9912_v1 = vpop.f32.mrb[83].mxu1 }
 0x820   : > { %v9767_v14 = vpop.f32.mrb[77].mxu0  ;;  %v13037_v3 = vadd.f32 %v9912_v1, %v9911_v63  ;;  %v10946_v63 = vld [vmem:[%s14672_s8 + $0x2e4] ss:$36 sps:$4 sm:$0xff]  }
 0x821   : > { %v13039_v4 = vadd.f32 %v9767_v14, %v9766_v34  ;;  %v9769_v41 = vpop.f32.mrb[78].mxu0  ;;  %v13086_v14 = vpop.permute.xlu0 %3249 }
 0x822   : > { %v9770_v42 = vpop.f32.mrb[79].mxu0 }
 0x823   : > { %v13046_v8 = vadd.f32 %v9770_v42, %v9769_v41  ;;  %v13088_v41 = vpop.permute.xlu1 %3244 }
 0x824   : > { %4479 = vmatmul.mubr.bf16.gmra.mrb[184].mxu0 %v10930_v59  ;;  %v9914_v10 = vpop.f32.mrb[84].mxu1 }
 0x825   : > { %4486 = vmatprep.mubr.bf16.mxu0 %v10934_v0  ;;  %v9915_v11 = vpop.f32.mrb[85].mxu1 }
 0x826   : > { %v13050_v28 = vadd.f32 %v9915_v11, %v9914_v10  ;;  %v9917_v43 = vpop.f32.mrb[86].mxu1 }
 0x827   : > { %v9772_v17 = vpop.f32.mrb[80].mxu0  ;;  %v9918_v19 = vpop.f32.mrb[87].mxu1 }
 0x828   : > { %v9773_v35 = vpop.f32.mrb[81].mxu0  ;;  %v13057_v23 = vadd.f32 %v9918_v19, %v9917_v43 }
 0x829   : > { %v13059_v25 = vadd.f32 %v9773_v35, %v9772_v17  ;;  %v9775_v18 = vpop.f32.mrb[82].mxu0  ;;  %v10948_v17 = vld [vmem:[%s14672_s8 + $0x2e0] ss:$36 sps:$4 sm:$0xff]  }
 0x82a   : > { %v9776_v32 = vpop.f32.mrb[83].mxu0 }
 0x82b   : > { %v13066_v33 = vadd.f32 %v9776_v32, %v9775_v18  ;;  %v10952_v18 = vld [vmem:[%s14672_s8 + $0x32c] ss:$36 sps:$4 sm:$0xff]  }
 0x82c   : > { %4487 = vmatmul.mubr.bf16.gmra.mrb[188].mxu0 %v10936_v15  ;;  %v9920_v36 = vpop.f32.mrb[88].mxu1 }
 0x82d   : > { %4494 = vmatprep.mubr.bf16.mxu0 %v10940_v29  ;;  %v9921_v38 = vpop.f32.mrb[89].mxu1 }
 0x82e   : > { %v13070_v16 = vadd.f32 %v9921_v38, %v9920_v36  ;;  %v9923_v45 = vpop.f32.mrb[90].mxu1  ;;  %v13104_v38 = vpop.permute.xlu1 %3254 }
 0x82f   : > { %v9778_v46 = vpop.f32.mrb[84].mxu0  ;;  %v9924_v48 = vpop.f32.mrb[91].mxu1 }
 0x830   : > { %v9779_v51 = vpop.f32.mrb[85].mxu0  ;;  %v13077_v52 = vadd.f32 %v9924_v48, %v9923_v45 }
 0x831   : > { %v13079_v56 = vadd.f32 %v9779_v51, %v9778_v46  ;;  %v9781_v57 = vpop.f32.mrb[86].mxu0  ;;  %v13106_v46 = vpop.permute.xlu0 %3259 }
 0x832   : > { %v9782_v34 = vpop.f32.mrb[87].mxu0  ;;  %14723 = vst [vmem:[#allocation16_spill] sm:$0xff] %v13106_v46 }
 0x833   : > { %v13084_v1 = vadd.f32 %v9782_v34, %v9781_v57  ;;  %v10954_v34 = vld [vmem:[%s14672_s8 + $0x328] ss:$36 sps:$4 sm:$0xff]  }
 0x834   : > { %4495 = vmatmul.mubr.bf16.gmra.mrb[192].mxu0 %v10942_v7 }
 0x835   : > { %4502 = vmatprep.mubr.bf16.mxu0 %v10946_v63  ;;  %v9926_v59 = vpop.f32.mrb[92].mxu1 }
 0x836   : > { %v9927_v0 = vpop.f32.mrb[93].mxu1 }
 0x837   : > { %v9784_v42 = vpop.f32.mrb[88].mxu0  ;;  %v13090_v10 = vadd.f32 %v9927_v0, %v9926_v59  ;;  %v9929_v11 = vpop.f32.mrb[94].mxu1 }
 0x838   : > { %v9785_v43 = vpop.f32.mrb[89].mxu0  ;;  %v9930_v19 = vpop.f32.mrb[95].mxu1 }
 0x839   : > { %v13095_v35 = vadd.f32 %v9785_v43, %v9784_v42  ;;  %v9787_v15 = vpop.f32.mrb[90].mxu0  ;;  %v13100_v29 = vadd.f32 %v9930_v19, %v9929_v11  ;;  %v10958_v11 = vld [vmem:[%s14672_s8 + $0x374] ss:$36 sps:$4 sm:$0xff]  }
 0x83a   : > { %v9788_v32 = vpop.f32.mrb[91].mxu0 }
 0x83b   : > { %v13102_v36 = vadd.f32 %v9788_v32, %v9787_v15  ;;  %v3270_v32 = vpop.permute.xlu0 %3269 }
 0x83c   : > { %4503 = vmatmul.mubr.bf16.gmra.mrb[196].mxu0 %v10948_v17  ;;  %v3265_v17 = vpop.permute.xlu1 %3264 }
 0x83d   : > { %14722 = vst [vmem:[#allocation15_spill] sm:$0xff] %v13102_v36  ;;  %4510 = vmatprep.mubr.bf16.mxu0 %v10952_v18  ;;  %v9932_v45 = vpop.f32.mrb[96].mxu1 }
 0x83e   : > { %v9933_v48 = vpop.f32.mrb[97].mxu1 }
 0x83f   : > { %v9790_v51 = vpop.f32.mrb[92].mxu0  ;;  %v13108_v7 = vadd.f32 %v9933_v48, %v9932_v45  ;;  %v9935_v57 = vpop.f32.mrb[98].mxu1 }
 0x840   : > { %v9791_v63 = vpop.f32.mrb[93].mxu0  ;;  %v9936_v59 = vpop.f32.mrb[99].mxu1 }
 0x841   : > { %v9792_v0 = vadd.f32 %v9791_v63, %v9790_v51  ;;  %v9793_v42 = vpop.f32.mrb[94].mxu0  ;;  %v13116_v43 = vadd.f32 %v9936_v59, %v9935_v57 }
 0x842   : > { %v9794_v19 = vpop.f32.mrb[95].mxu0 }
 0x843   : > { %v4175_v15 = vadd.f32 %v9792_v0, %v3265_v17  ;;  %v9795_v18 = vadd.f32 %v9794_v19, %v9793_v42  ;;  %v10960_v0 = vld [vmem:[%s14672_s8 + $0x370] ss:$36 sps:$4 sm:$0xff]   ;;  %v3275_v19 = vpop.permute.xlu1 %3274 }
 0x844   : > { %4511 = vmatmul.mubr.bf16.gmra.mrb[200].mxu0 %v10954_v34 }
 0x845   : > { %v4178_v45 = vadd.f32 %v9795_v18, %v3270_v32  ;;  %4518 = vmatprep.mubr.bf16.mxu0 %v10958_v11  ;;  %v9938_v48 = vpop.f32.mrb[100].mxu1  ;;  %v13119_v39 = vadd.f32 %v13012_v21, %v4175_v15  ;;  %v10964_v21 = vld [vmem:[%s14672_s8 + $0x3bc] ss:$36 sps:$4 sm:$0xff]  }
 0x846   : > { %v9939_v51 = vpop.f32.mrb[101].mxu1 }
 0x847   : > { %v9796_v63 = vpop.f32.mrb[96].mxu0  ;;  %v13121_v36 = vadd.f32 %v9939_v51, %v9938_v48  ;;  %v9941_v46 = vpop.f32.mrb[102].mxu1  ;;  %v13124_v57 = vadd.f32 %v13019_v50, %v4178_v45 }
 0x848   : > { %v9797_v59 = vpop.f32.mrb[97].mxu0  ;;  %v9942_v34 = vpop.f32.mrb[103].mxu1 }
 0x849   : > { %14724 = vst [vmem:[#allocation17_spill] sm:$0xff] %v13124_v57  ;;  %v9798_v42 = vadd.f32 %v9797_v59, %v9796_v63  ;;  %v9799_v11 = vpop.f32.mrb[98].mxu0  ;;  %v13132_v17 = vadd.f32 %v9942_v34, %v9941_v46  ;;  %v3280_v50 = vpop.permute.xlu0 %3279  ;;  %v10966_v46 = vld [vmem:[%s14672_s8 + $0x3b8] ss:$36 sps:$4 sm:$0xff]  }
 0x84a   : > { %v9800_v15 = vpop.f32.mrb[99].mxu0 }
 0x84b   : > { %v4183_v18 = vadd.f32 %v9798_v42, %v3275_v19  ;;  %v9801_v32 = vadd.f32 %v9800_v15, %v9799_v11  ;;  %v3285_v42 = vpop.permute.xlu1 %3284 }
 0x84c   : > { %4519 = vmatmul.mubr.bf16.gmra.mrb[204].mxu0 %v10960_v0  ;;  %v10970_v0 = vld [vmem:[%s14672_s8 + $0x404] ss:$36 sps:$4 sm:$0xff]  }
 0x84d   : > { %v4186_v45 = vadd.f32 %v9801_v32, %v3280_v50  ;;  %4526 = vmatprep.mubr.bf16.mxu0 %v10964_v21  ;;  %v13135_v48 = vadd.f32 %v13032_v62, %v4183_v18  ;;  %v3290_v15 = vpop.permute.xlu0 %3289 }
 0x84f   : > { %14725 = vst [vmem:[#allocation18_spill] sm:$0xff] %v13135_v48  ;;  %v9802_v51 = vpop.f32.mrb[100].mxu0  ;;  %v13138_v63 = vadd.f32 %v13037_v3, %v4186_v45 }
 0x850   : > { %v9803_v59 = vpop.f32.mrb[101].mxu0 }
 0x851   : > { %14726 = vst [vmem:[#allocation19_spill] sm:$0xff] %v13138_v63  ;;  %v9804_v34 = vadd.f32 %v9803_v59, %v9802_v51  ;;  %v9805_v57 = vpop.f32.mrb[102].mxu0 }
 0x852   : > { %v9806_v11 = vpop.f32.mrb[103].mxu0 }
 0x853   : > { %v4191_v21 = vadd.f32 %v9804_v34, %v3285_v42  ;;  %v9807_v62 = vadd.f32 %v9806_v11, %v9805_v57  ;;  %v10072_v19 = vpop.f32.mrb[104].mxu1  ;;  %v10976_v42 = vld [vmem:[%s14672_s8 + $0x44c] ss:$36 sps:$4 sm:$0xff]  }
 0x854   : > { %4527 = vmatmul.mubr.bf16.gmra.mrb[208].mxu0 %v10966_v46  ;;  %v10073_v3 = vpop.f32.mrb[105].mxu1  ;;  %v10972_v46 = vld [vmem:[%s14672_s8 + $0x400] ss:$36 sps:$4 sm:$0xff]  }
 0x855   : > { %v4194_v18 = vadd.f32 %v9807_v62, %v3290_v15  ;;  %4534 = vmatprep.mubr.bf16.mxu0 %v10970_v0  ;;  %v13146_v32 = vadd.f32 %v10073_v3, %v10072_v19  ;;  %v10075_v50 = vpop.f32.mrb[106].mxu1  ;;  %v13149_v45 = vadd.f32 %v13050_v28, %v4191_v21  ;;  %v3295_v28 = vpop.permute.xlu1 %3294 }
 0x856   : > { %v10076_v51 = vpop.f32.mrb[107].mxu1  ;;  %v3300_v15 = vpop.permute.xlu0 %3299 }
 0x857   : > { %14727 = vst [vmem:[#allocation20_spill] sm:$0xff] %v13149_v45  ;;  %v9808_v59 = vpop.f32.mrb[104].mxu0  ;;  %v13151_v63 = vadd.f32 %v10076_v51, %v10075_v50  ;;  %v13154_v48 = vadd.f32 %v13057_v23, %v4194_v18 }
 0x858   : > { %v9809_v57 = vpop.f32.mrb[105].mxu0 }
 0x859   : > { %14728 = vst [vmem:[#allocation21_spill] sm:$0xff] %v13154_v48  ;;  %v9810_v34 = vadd.f32 %v9809_v57, %v9808_v59  ;;  %v9811_v0 = vpop.f32.mrb[106].mxu0 }
 0x85a   : > { %v9812_v11 = vpop.f32.mrb[107].mxu0 }
 0x85b   : > { %v4199_v21 = vadd.f32 %v9810_v34, %v3295_v28  ;;  %v9813_v62 = vadd.f32 %v9812_v11, %v9811_v0  ;;  %v10078_v19 = vpop.f32.mrb[108].mxu1  ;;  %v10982_v28 = vld [vmem:[%s14672_s8 + $0x20] ss:$36 sps:$4 sm:$0xff]  }
 0x85c   : > { %4535 = vmatmul.mubr.bf16.gmra.mrb[212].mxu0 %v10972_v46  ;;  %v10079_v23 = vpop.f32.mrb[109].mxu1  ;;  %v10978_v46 = vld [vmem:[%s14672_s8 + $0x448] ss:$36 sps:$4 sm:$0xff]  }
 0x85d   : > { %v4202_v3 = vadd.f32 %v9813_v62, %v3300_v15  ;;  %4542 = vmatprep.mubr.bf16.mxu0 %v10976_v42  ;;  %v13162_v18 = vadd.f32 %v10079_v23, %v10078_v19  ;;  %v10081_v50 = vpop.f32.mrb[110].mxu1  ;;  %v13165_v51 = vadd.f32 %v13070_v16, %v4199_v21  ;;  %v3305_v16 = vpop.permute.xlu1 %3304 }
 0x85e   : > { %v10082_v59 = vpop.f32.mrb[111].mxu1  ;;  %v3310_v15 = vpop.permute.xlu0 %3309 }
 0x85f   : > { %14729 = vst [vmem:[#allocation22_spill] sm:$0xff] %v13165_v51  ;;  %v9814_v57 = vpop.f32.mrb[108].mxu0  ;;  %v13167_v48 = vadd.f32 %v10082_v59, %v10081_v50  ;;  %v13170_v45 = vadd.f32 %v13077_v52, %v4202_v3 }
 0x860   : > { %v9815_v34 = vpop.f32.mrb[109].mxu0 }
 0x861   : > { %14730 = vst [vmem:[#allocation23_spill] sm:$0xff] %v13170_v45  ;;  %v9816_v0 = vadd.f32 %v9815_v34, %v9814_v57  ;;  %v9817_v42 = vpop.f32.mrb[110].mxu0 }
 0x862   : > { %v9818_v11 = vpop.f32.mrb[111].mxu0 }
 0x863   : > { %v4207_v21 = vadd.f32 %v9816_v0, %v3305_v16  ;;  %v9819_v62 = vadd.f32 %v9818_v11, %v9817_v42  ;;  %v10084_v19 = vpop.f32.mrb[112].mxu1  ;;  %v10984_v16 = vld [vmem:[%s14672_s8 + $0xb0] ss:$36 sps:$4 sm:$0xff]  }
 0x864   : > { %4543 = vmatmul.mubr.bf16.gmra.mrb[216].mxu0 %v10978_v46  ;;  %v10085_v52 = vpop.f32.mrb[113].mxu1  ;;  %v10983_v46 = vld [vmem:[%s14672_s8 + $0x68] ss:$36 sps:$4 sm:$0xff]  }
 0x865   : > { %v4210_v23 = vadd.f32 %v9819_v62, %v3310_v15  ;;  %10332 = vmatprep.mubr.bf16.mxu0 %v10982_v28  ;;  %v13178_v3 = vadd.f32 %v10085_v52, %v10084_v19  ;;  %v10087_v50 = vpop.f32.mrb[114].mxu1  ;;  %v13181_v59 = vadd.f32 %v13090_v10, %v4207_v21  ;;  %v3315_v10 = vpop.permute.xlu1 %3314 }
 0x866   : > { %v10088_v57 = vpop.f32.mrb[115].mxu1  ;;  %v3320_v15 = vpop.permute.xlu0 %3319 }
 0x867   : > { %14731 = vst [vmem:[#allocation24_spill] sm:$0xff] %v13181_v59  ;;  %v9820_v34 = vpop.f32.mrb[112].mxu0  ;;  %v13183_v45 = vadd.f32 %v10088_v57, %v10087_v50  ;;  %v13186_v51 = vadd.f32 %v13100_v29, %v4210_v23 }
 0x868   : > { %v9821_v0 = vpop.f32.mrb[113].mxu0 }
 0x869   : > { %14732 = vst [vmem:[#allocation25_spill] sm:$0xff] %v13186_v51  ;;  %v9822_v42 = vadd.f32 %v9821_v0, %v9820_v34  ;;  %v9823_v28 = vpop.f32.mrb[114].mxu0 }
 0x86a   : > { %v9824_v11 = vpop.f32.mrb[115].mxu0 }
 0x86b   : > { %v4215_v21 = vadd.f32 %v9822_v42, %v3315_v10  ;;  %v9825_v62 = vadd.f32 %v9824_v11, %v9823_v28  ;;  %v10090_v19 = vpop.f32.mrb[116].mxu1  ;;  %v10986_v10 = vld [vmem:[%s14672_s8 + $0x140] ss:$36 sps:$4 sm:$0xff]  }
 0x86c   : > { %10333 = vmatmul.mubr.bf16.vlgmr.msra.gmra.mrb[220].mxu0 %v10983_v46  ;;  %v10091_v29 = vpop.f32.mrb[117].mxu1  ;;  %v10985_v46 = vld [vmem:[%s14672_s8 + $0xf8] ss:$36 sps:$4 sm:$0xff]  }
 0x86d   : > { %v4218_v52 = vadd.f32 %v9825_v62, %v3320_v15  ;;  %10336 = vmatprep.mubr.bf16.mxu0 %v10984_v16  ;;  %v13194_v23 = vadd.f32 %v10091_v29, %v10090_v19  ;;  %v10093_v50 = vpop.f32.mrb[118].mxu1  ;;  %v13197_v57 = vadd.f32 %v13108_v7, %v4215_v21  ;;  %v3325_v7 = vpop.permute.xlu1 %3324 }
 0x86e   : > { %v10094_v34 = vpop.f32.mrb[119].mxu1  ;;  %v3330_v15 = vpop.permute.xlu0 %3329 }
 0x86f   : > { %14733 = vst [vmem:[#allocation26_spill] sm:$0xff] %v13197_v57  ;;  %v9826_v0 = vpop.f32.mrb[116].mxu0  ;;  %v13199_v51 = vadd.f32 %v10094_v34, %v10093_v50  ;;  %v13202_v59 = vadd.f32 %v13116_v43, %v4218_v52 }
 0x870   : > { %v9827_v42 = vpop.f32.mrb[117].mxu0 }
 0x871   : > { %14734 = vst [vmem:[#allocation27_spill] sm:$0xff] %v13202_v59  ;;  %v9828_v28 = vadd.f32 %v9827_v42, %v9826_v0  ;;  %v9829_v16 = vpop.f32.mrb[118].mxu0 }
 0x872   : > { %v9830_v11 = vpop.f32.mrb[119].mxu0 }
 0x873   : > { %v4223_v21 = vadd.f32 %v9828_v28, %v3325_v7  ;;  %v9831_v62 = vadd.f32 %v9830_v11, %v9829_v16  ;;  %v10096_v19 = vpop.f32.mrb[120].mxu1  ;;  %v4103_v16 = vadd.f32 %v12965_v2, %v12994_v27 }
 0x874   : > { %10337 = vmatmul.mubr.bf16.gmra.mrb[224].mxu0 %v10985_v46  ;;  %v10097_v43 = vpop.f32.mrb[121].mxu1  ;;  %v10987_v46 = vld [vmem:[%s14672_s8 + $0x188] ss:$36 sps:$4 sm:$0xff]  }
 0x875   : > { %v4226_v29 = vadd.f32 %v9831_v62, %v3330_v15  ;;  %10340 = vmatprep.mubr.bf16.mxu0 %v10986_v10  ;;  %v13210_v52 = vadd.f32 %v10097_v43, %v10096_v19  ;;  %v10099_v50 = vpop.f32.mrb[122].mxu1  ;;  %v13213_v34 = vadd.f32 %v13121_v36, %v4223_v21  ;;  %v10988_v36 = vld [vmem:[%s14672_s8 + $0x1d0] ss:$36 sps:$4 sm:$0xff]   ;;  %v4106_v21 = vadd.f32 %v12970_v5, %v12990_v53  ;;  %v10989_v5 = vld [vmem:[%s14672_s8 + $0x218] ss:$36 sps:$4 sm:$0xff]  }
 0x876   : > { %v10100_v0 = vpop.f32.mrb[123].mxu1  ;;  %v4111_v53 = vadd.f32 %v12975_v9, %v13006_v60 }
 0x877   : > { %14735 = vst [vmem:[#allocation28_spill] sm:$0xff] %v13213_v34  ;;  %v9848_v42 = vpop.f32.mrb[120].mxu0  ;;  %v13215_v59 = vadd.f32 %v10100_v0, %v10099_v50  ;;  %v13218_v57 = vadd.f32 %v13132_v17, %v4226_v29 }
 0x878   : > { %v9849_v28 = vpop.f32.mrb[121].mxu0 }
 0x879   : > { %14736 = vst [vmem:[#allocation29_spill] sm:$0xff] %v13218_v57  ;;  %v9851_v10 = vpop.f32.mrb[122].mxu0  ;;  %v9850_v7 = vadd.f32 %v9849_v28, %v9848_v42 }
 0x87a   : > { %v9852_v11 = vpop.f32.mrb[123].mxu0 }
 0x87b   : > { %v13230_v17 = vadd.f32 %v9850_v7, %v4103_v16  ;;  %v9853_v62 = vadd.f32 %v9852_v11, %v9851_v10  ;;  %v10102_v19 = vpop.f32.mrb[124].mxu1  ;;  %v10990_v16 = vld [vmem:[%s14672_s8 + $0x260] ss:$36 sps:$4 sm:$0xff]   ;;  %v4114_v7 = vadd.f32 %v12980_v12, %v12996_v13  ;;  %v4119_v12 = vadd.f32 %v12985_v22, %v13014_v47 }
 0x87c   : > { %10341 = vmatmul.mubr.bf16.gmra.mrb[228].mxu0 %v10987_v46  ;;  %v10103_v15 = vpop.f32.mrb[125].mxu1 }
 0x87d   : > { %10344 = vmatprep.mubr.bf16.mxu0 %v10988_v36  ;;  %v13232_v43 = vadd.f32 %v9853_v62, %v4106_v21  ;;  %v13234_v2 = vadd.f32 %v10103_v15, %v10102_v19  ;;  %v10105_v27 = vpop.f32.mrb[126].mxu1 }
 0x87e   : > { %v10106_v29 = vpop.f32.mrb[127].mxu1 }
 0x87f   : > { %v9854_v50 = vpop.f32.mrb[124].mxu0  ;;  %v13236_v0 = vadd.f32 %v10106_v29, %v10105_v27 }
 0x880   : > { %v9855_v42 = vpop.f32.mrb[125].mxu0 }
 0x881   : > { %v9856_v28 = vadd.f32 %v9855_v42, %v9854_v50  ;;  %v9857_v46 = vpop.f32.mrb[126].mxu0  ;;  %v10991_v42 = vld [vmem:[%s14672_s8 + $0x2a8] ss:$36 sps:$4 sm:$0xff]  }
 0x882   : > { %v9858_v10 = vpop.f32.mrb[127].mxu0 }
 0x883   : > { %v13246_v36 = vadd.f32 %v9856_v28, %v4111_v53  ;;  %v9859_v11 = vadd.f32 %v9858_v10, %v9857_v46  ;;  %v10108_v21 = vpop.f32.mrb[128].mxu1  ;;  %v10992_v53 = vld [vmem:[%s14672_s8 + $0x2f0] ss:$36 sps:$4 sm:$0xff]  }
 0x884   : > { %10345 = vmatmul.mubr.bf16.gmra.mrb[232].mxu0 %v10989_v5  ;;  %v10109_v62 = vpop.f32.mrb[129].mxu1 }
 0x885   : > { %v13250_v19 = vadd.f32 %v9859_v11, %v4114_v7  ;;  %10348 = vmatprep.mubr.bf16.mxu0 %v10990_v16  ;;  %v13252_v9 = vadd.f32 %v10109_v62, %v10108_v21  ;;  %v10111_v60 = vpop.f32.mrb[130].mxu1  ;;  %v4122_v16 = vadd.f32 %v12992_v26, %v13010_v44  ;;  %v4127_v26 = vadd.f32 %v13001_v31, %v13030_v58 }
 0x886   : > { %v10112_v15 = vpop.f32.mrb[131].mxu1 }
 0x887   : > { %v9860_v27 = vpop.f32.mrb[128].mxu0  ;;  %v13254_v29 = vadd.f32 %v10112_v15, %v10111_v60 }
 0x888   : > { %v9861_v50 = vpop.f32.mrb[129].mxu0 }
 0x889   : > { %v9862_v13 = vadd.f32 %v9861_v50, %v9860_v27  ;;  %v9863_v5 = vpop.f32.mrb[130].mxu0  ;;  %v10993_v50 = vld [vmem:[%s14672_s8 + $0x338] ss:$36 sps:$4 sm:$0xff]  }
 0x88a   : > { %v9864_v28 = vpop.f32.mrb[131].mxu0 }
 0x88b   : > { %v13264_v46 = vadd.f32 %v9862_v13, %v4119_v12  ;;  %v9865_v10 = vadd.f32 %v9864_v28, %v9863_v5  ;;  %v10114_v7 = vpop.f32.mrb[132].mxu1  ;;  %v10994_v12 = vld [vmem:[%s14672_s8 + $0x380] ss:$36 sps:$4 sm:$0xff]  }
 0x88c   : > { %10349 = vmatmul.mubr.bf16.gmra.mrb[236].mxu0 %v10991_v42  ;;  %v10115_v11 = vpop.f32.mrb[133].mxu1 }
 0x88d   : > { %v13268_v21 = vadd.f32 %v9865_v10, %v4122_v16  ;;  %10352 = vmatprep.mubr.bf16.mxu0 %v10992_v53  ;;  %v13270_v22 = vadd.f32 %v10115_v11, %v10114_v7  ;;  %v10117_v47 = vpop.f32.mrb[134].mxu1  ;;  %v4130_v53 = vadd.f32 %v13008_v37, %v13028_v55  ;;  %v4135_v37 = vadd.f32 %v13021_v24, %v13048_v61 }
 0x88e   : > { %v10118_v62 = vpop.f32.mrb[135].mxu1 }
 0x88f   : > { %v9866_v60 = vpop.f32.mrb[132].mxu0  ;;  %v13272_v15 = vadd.f32 %v10118_v62, %v10117_v47 }
 0x890   : > { %v9867_v27 = vpop.f32.mrb[133].mxu0 }
 0x891   : > { %v9868_v44 = vadd.f32 %v9867_v27, %v9866_v60  ;;  %v9869_v42 = vpop.f32.mrb[134].mxu0  ;;  %v10995_v27 = vld [vmem:[%s14672_s8 + $0x3c8] ss:$36 sps:$4 sm:$0xff]  }
 0x892   : > { %v9870_v13 = vpop.f32.mrb[135].mxu0 }
 0x893   : > { %v13282_v5 = vadd.f32 %v9868_v44, %v4127_v26  ;;  %v9871_v28 = vadd.f32 %v9870_v13, %v9869_v42  ;;  %v10120_v16 = vpop.f32.mrb[136].mxu1  ;;  %v10996_v26 = vld [vmem:[%s14672_s8 + $0x410] ss:$36 sps:$4 sm:$0xff]  }
 0x894   : > { %10353 = vmatmul.mubr.bf16.gmra.mrb[240].mxu0 %v10993_v50  ;;  %v10121_v10 = vpop.f32.mrb[137].mxu1 }
 0x895   : > { %v13286_v7 = vadd.f32 %v9871_v28, %v4130_v53  ;;  %10356 = vmatprep.mubr.bf16.mxu0 %v10994_v12  ;;  %v13288_v31 = vadd.f32 %v10121_v10, %v10120_v16  ;;  %v10123_v58 = vpop.f32.mrb[138].mxu1  ;;  %v4138_v12 = vadd.f32 %v13026_v54, %v13044_v6  ;;  %v4143_v54 = vadd.f32 %v13039_v4, %v13064_v30 }
 0x896   : > { %v10124_v11 = vpop.f32.mrb[139].mxu1 }
 0x897   : > { %v9872_v47 = vpop.f32.mrb[136].mxu0  ;;  %v13290_v62 = vadd.f32 %v10124_v11, %v10123_v58 }
 0x898   : > { %v9873_v60 = vpop.f32.mrb[137].mxu0 }
 0x899   : > { %v9874_v55 = vadd.f32 %v9873_v60, %v9872_v47  ;;  %v9875_v50 = vpop.f32.mrb[138].mxu0  ;;  %v10997_v60 = vld [vmem:[%s14672_s8 + $0x458] ss:$36 sps:$4 sm:$0xff]  }
 0x89a   : > { %v9876_v44 = vpop.f32.mrb[139].mxu0 }
 0x89b   : > { %v13300_v42 = vadd.f32 %v9874_v55, %v4135_v37  ;;  %v9877_v13 = vadd.f32 %v9876_v44, %v9875_v50  ;;  %v10126_v53 = vpop.f32.mrb[140].mxu1  ;;  %v4146_v50 = vadd.f32 %v13046_v8, %v13052_v20 }
 0x89c   : > { %10357 = vmatmul.mubr.bf16.gmra.mrb[244].mxu0 %v10995_v27  ;;  %v10127_v28 = vpop.f32.mrb[141].mxu1 }
 0x89d   : > { %v13304_v16 = vadd.f32 %v9877_v13, %v4138_v12  ;;  %10360 = vmatprep.mubr.bf16.mxu0 %v10996_v26  ;;  %v13306_v24 = vadd.f32 %v10127_v28, %v10126_v53  ;;  %v10129_v61 = vpop.f32.mrb[142].mxu1 }
 0x89e   : > { %v10130_v10 = vpop.f32.mrb[143].mxu1 }
 0x89f   : > { %v9878_v58 = vpop.f32.mrb[140].mxu0  ;;  %v13308_v11 = vadd.f32 %v10130_v10, %v10129_v61 }
 0x8a0   : > { %v9879_v47 = vpop.f32.mrb[141].mxu0 }
 0x8a1   : > { %v9880_v6 = vadd.f32 %v9879_v47, %v9878_v58  ;;  %v9881_v27 = vpop.f32.mrb[142].mxu0  ;;  %v4151_v58 = vadd.f32 %v13059_v25, %v13072_v49  ;;  %v4159_v49 = vadd.f32 %v13079_v56, %v13088_v41  ;;  %v4167_v41 = vadd.f32 %v13095_v35, %v13104_v38 }
 0x8a2   : > { %v9882_v37 = vpop.f32.mrb[143].mxu0 }
 0x8a3   : > { %v13315_v55 = vadd.f32 %v9880_v6, %v4143_v54  ;;  %v9883_v26 = vadd.f32 %v9882_v37, %v9881_v27  ;;  %v10132_v44 = vpop.f32.mrb[144].mxu1 }
 0x8a4   : > { %10361 = vmatmul.mubr.bf16.gmra.mrb[248].mxu0 %v10997_v60  ;;  %v10133_v12 = vpop.f32.mrb[145].mxu1  ;;  %v4154_v60 = vadd.f32 %v13066_v33, %v13068_v40  ;;  %v4162_v40 = vadd.f32 %v13084_v1, %v13086_v14  ;;  %v14737_v14 = vld [vmem:[#allocation16_spill] sm:$0xff] }
 0x8a5   : > { %v13319_v13 = vadd.f32 %v9883_v26, %v4146_v50  ;;  %v13321_v53 = vadd.f32 %v10133_v12, %v10132_v44  ;;  %v10135_v28 = vpop.f32.mrb[146].mxu1 }
 0x8a6   : > { %v10136_v61 = vpop.f32.mrb[147].mxu1 }
 0x8a7   : > { %v9884_v10 = vpop.f32.mrb[144].mxu0  ;;  %v13323_v4 = vadd.f32 %v10136_v61, %v10135_v28 }
 0x8a8   : > { %v9885_v30 = vpop.f32.mrb[145].mxu0 }
 0x8a9   : > { %v9886_v47 = vadd.f32 %v9885_v30, %v9884_v10  ;;  %v9887_v54 = vpop.f32.mrb[146].mxu0 }
 0x8aa   : > { %v9888_v8 = vpop.f32.mrb[147].mxu0 }
 0x8ab   : > { %v13327_v20 = vadd.f32 %v9886_v47, %v4151_v58  ;;  %v9889_v6 = vadd.f32 %v9888_v8, %v9887_v54  ;;  %v10138_v27 = vpop.f32.mrb[148].mxu1 }
 0x8ac   : > { %v10139_v37 = vpop.f32.mrb[149].mxu1 }
 0x8ad   : > { %v13331_v50 = vadd.f32 %v9889_v6, %v4154_v60  ;;  %v13333_v26 = vadd.f32 %v10139_v37, %v10138_v27  ;;  %v10141_v44 = vpop.f32.mrb[150].mxu1 }
 0x8ae   : > { %v10142_v12 = vpop.f32.mrb[151].mxu1 }
 0x8af   : > { %v9890_v28 = vpop.f32.mrb[148].mxu0  ;;  %v13335_v61 = vadd.f32 %v10142_v12, %v10141_v44 }
 0x8b0   : > { %v9891_v25 = vpop.f32.mrb[149].mxu0 }
 0x8b1   : > { %v9892_v10 = vadd.f32 %v9891_v25, %v9890_v28  ;;  %v9893_v30 = vpop.f32.mrb[150].mxu0 }
 0x8b2   : > { %v9894_v58 = vpop.f32.mrb[151].mxu0 }
 0x8b3   : > { %v13339_v33 = vadd.f32 %v9892_v10, %v4159_v49  ;;  %v9895_v47 = vadd.f32 %v9894_v58, %v9893_v30  ;;  %v10144_v54 = vpop.f32.mrb[152].mxu1  ;;  %v14738_v10 = vld [vmem:[#allocation15_spill] sm:$0xff] }
 0x8b4   : > { %v10145_v8 = vpop.f32.mrb[153].mxu1  ;;  %v4170_v30 = vadd.f32 %v14738_v10, %v14737_v14 }
 0x8b5   : > { %v13343_v60 = vadd.f32 %v9895_v47, %v4162_v40  ;;  %v13345_v6 = vadd.f32 %v10145_v8, %v10144_v54  ;;  %v10147_v27 = vpop.f32.mrb[154].mxu1 }
 0x8b6   : > { %v10148_v37 = vpop.f32.mrb[155].mxu1 }
 0x8b7   : > { %v9896_v44 = vpop.f32.mrb[152].mxu0  ;;  %v13347_v12 = vadd.f32 %v10148_v37, %v10147_v27 }
 0x8b8   : > { %v9897_v56 = vpop.f32.mrb[153].mxu0 }
 0x8b9   : > { %v9898_v28 = vadd.f32 %v9897_v56, %v9896_v44  ;;  %v9899_v25 = vpop.f32.mrb[154].mxu0 }
 0x8ba   : > { %v9900_v49 = vpop.f32.mrb[155].mxu0 }
 0x8bb   : > { %v13351_v1 = vadd.f32 %v9898_v28, %v4167_v41  ;;  %v9901_v58 = vadd.f32 %v9900_v49, %v9899_v25  ;;  %v10150_v40 = vpop.f32.mrb[156].mxu1 }
 0x8bc   : > { %v10151_v47 = vpop.f32.mrb[157].mxu1 }
 0x8bd   : > { %v13355_v54 = vadd.f32 %v9901_v58, %v4170_v30  ;;  %v13357_v8 = vadd.f32 %v10151_v47, %v10150_v40  ;;  %v10153_v27 = vpop.f32.mrb[158].mxu1 }
 0x8be   : > { %v10154_v37 = vpop.f32.mrb[159].mxu1 }
 0x8bf   : > { %v9960_v57 = vpop.f32.mrb[156].mxu0  ;;  %v13359_v34 = vadd.f32 %v10154_v37, %v10153_v27 }
 0x8c0   : > { %v9961_v35 = vpop.f32.mrb[157].mxu0 }
 0x8c1   : > { %v9962_v38 = vadd.f32 %v9961_v35, %v9960_v57  ;;  %v9963_v44 = vpop.f32.mrb[158].mxu0 }
 0x8c2   : > { %v9964_v56 = vpop.f32.mrb[159].mxu0 }
 0x8c3   : > { %v4425_v41 = vadd.f32 %v9962_v38, %v13230_v17  ;;  %v9965_v28 = vadd.f32 %v9964_v56, %v9963_v44  ;;  %v10156_v14 = vpop.f32.mrb[160].mxu1 }
 0x8c4   : > { %v10157_v25 = vpop.f32.mrb[161].mxu1 }
 0x8c5   : > { %v4428_v49 = vadd.f32 %v9965_v28, %v13232_v43  ;;  %v13363_v10 = vadd.f32 %v10157_v25, %v10156_v14  ;;  %v10159_v30 = vpop.f32.mrb[162].mxu1  ;;  %v13366_v58 = vadd.f32 %v13146_v32, %v4425_v41 }
 0x8c6   : > { %v10160_v40 = vpop.f32.mrb[163].mxu1 }
 0x8c7   : > { %v9966_v47 = vpop.f32.mrb[160].mxu0  ;;  %v13368_v27 = vadd.f32 %v10160_v40, %v10159_v30  ;;  %v13371_v57 = vadd.f32 %v13151_v63, %v4428_v49 }
 0x8c8   : > { %v9967_v37 = vpop.f32.mrb[161].mxu0 }
 0x8c9   : > { %v9968_v17 = vadd.f32 %v9967_v37, %v9966_v47  ;;  %v9969_v35 = vpop.f32.mrb[162].mxu0 }
 0x8ca   : > { %v9970_v38 = vpop.f32.mrb[163].mxu0 }
 0x8cb   : > { %v4433_v44 = vadd.f32 %v9968_v17, %v13246_v36  ;;  %v9971_v43 = vadd.f32 %v9970_v38, %v9969_v35  ;;  %v10162_v56 = vpop.f32.mrb[164].mxu1 }
 0x8cc   : > { %v10163_v28 = vpop.f32.mrb[165].mxu1 }
 0x8cd   : > { %v4436_v14 = vadd.f32 %v9971_v43, %v13250_v19  ;;  %v13375_v32 = vadd.f32 %v10163_v28, %v10162_v56  ;;  %v10165_v41 = vpop.f32.mrb[166].mxu1  ;;  %v13378_v25 = vadd.f32 %v13162_v18, %v4433_v44 }
 0x8ce   : > { %v10166_v30 = vpop.f32.mrb[167].mxu1 }
 0x8cf   : > { %v9972_v63 = vpop.f32.mrb[164].mxu0  ;;  %v13380_v49 = vadd.f32 %v10166_v30, %v10165_v41  ;;  %v13383_v40 = vadd.f32 %v13167_v48, %v4436_v14 }
 0x8d0   : > { %v9973_v47 = vpop.f32.mrb[165].mxu0 }
 0x8d1   : > { %v9974_v36 = vadd.f32 %v9973_v47, %v9972_v63  ;;  %v9975_v37 = vpop.f32.mrb[166].mxu0 }
 0x8d2   : > { %v9976_v17 = vpop.f32.mrb[167].mxu0 }
 0x8d3   : > { %v4441_v35 = vadd.f32 %v9974_v36, %v13264_v46  ;;  %v9977_v19 = vadd.f32 %v9976_v17, %v9975_v37 }
 0x8d5   : > { %v4444_v38 = vadd.f32 %v9977_v19, %v13268_v21  ;;  %v13388_v43 = vadd.f32 %v13178_v3, %v4441_v35 }
 0x8d7   : > { %v9978_v18 = vpop.f32.mrb[168].mxu0  ;;  %v13391_v44 = vadd.f32 %v13183_v45, %v4444_v38 }
 0x8d8   : > { %v9979_v56 = vpop.f32.mrb[169].mxu0 }
 0x8d9   : > { %v9980_v28 = vadd.f32 %v9979_v56, %v9978_v18  ;;  %v9981_v48 = vpop.f32.mrb[170].mxu0 }
 0x8da   : > { %v9982_v14 = vpop.f32.mrb[171].mxu0 }
 0x8db   : > { %v4449_v41 = vadd.f32 %v9980_v28, %v13282_v5  ;;  %v9983_v30 = vadd.f32 %v9982_v14, %v9981_v48 }
 0x8dd   : > { %v4452_v63 = vadd.f32 %v9983_v30, %v13286_v7  ;;  %v13396_v46 = vadd.f32 %v13194_v23, %v4449_v41 }
 0x8df   : > { %v9984_v21 = vpop.f32.mrb[172].mxu0  ;;  %v13399_v3 = vadd.f32 %v13199_v51, %v4452_v63 }
 0x8e0   : > { %v9985_v47 = vpop.f32.mrb[173].mxu0 }
 0x8e1   : > { %v9986_v36 = vadd.f32 %v9985_v47, %v9984_v21  ;;  %v9987_v45 = vpop.f32.mrb[174].mxu0 }
 0x8e2   : > { %v9988_v37 = vpop.f32.mrb[175].mxu0 }
 0x8e3   : > { %v4457_v17 = vadd.f32 %v9986_v36, %v13300_v42  ;;  %v9989_v35 = vadd.f32 %v9988_v37, %v9987_v45 }
 0x8e5   : > { %v4460_v19 = vadd.f32 %v9989_v35, %v13304_v16  ;;  %v13404_v5 = vadd.f32 %v13210_v52, %v4457_v17 }
 0x8e7   : > { %v9990_v7 = vpop.f32.mrb[176].mxu0  ;;  %v13407_v23 = vadd.f32 %v13215_v59, %v4460_v19 }
 0x8e8   : > { %v9991_v38 = vpop.f32.mrb[177].mxu0 }
 0x8e9   : > { %v9992_v18 = vadd.f32 %v9991_v38, %v9990_v7  ;;  %v9993_v51 = vpop.f32.mrb[178].mxu0 }
 0x8ea   : > { %v9994_v56 = vpop.f32.mrb[179].mxu0 }
 0x8eb   : > { %v4465_v28 = vadd.f32 %v9992_v18, %v13315_v55  ;;  %v9995_v48 = vadd.f32 %v9994_v56, %v9993_v51 }
 0x8ed   : > { %v4468_v14 = vadd.f32 %v9995_v48, %v13319_v13  ;;  %v13412_v42 = vadd.f32 %v13234_v2, %v4465_v28 }
 0x8ef   : > { %v9996_v16 = vpop.f32.mrb[180].mxu0  ;;  %v13415_v52 = vadd.f32 %v13236_v0, %v4468_v14 }
 0x8f0   : > { %v9997_v41 = vpop.f32.mrb[181].mxu0 }
 0x8f1   : > { %v9998_v30 = vadd.f32 %v9997_v41, %v9996_v16  ;;  %v9999_v59 = vpop.f32.mrb[182].mxu0 }
 0x8f2   : > { %v10000_v63 = vpop.f32.mrb[183].mxu0 }
 0x8f3   : > { %v4473_v21 = vadd.f32 %v9998_v30, %v13327_v20  ;;  %v10001_v47 = vadd.f32 %v10000_v63, %v9999_v59 }
 0x8f5   : > { %v4476_v36 = vadd.f32 %v10001_v47, %v13331_v50  ;;  %v13420_v55 = vadd.f32 %v13252_v9, %v4473_v21 }
 0x8f7   : > { %v10002_v13 = vpop.f32.mrb[184].mxu0  ;;  %v13423_v2 = vadd.f32 %v13254_v29, %v4476_v36 }
 0x8f8   : > { %v10003_v45 = vpop.f32.mrb[185].mxu0 }
 0x8f9   : > { %v10004_v37 = vadd.f32 %v10003_v45, %v10002_v13  ;;  %v10005_v0 = vpop.f32.mrb[186].mxu0 }
 0x8fa   : > { %v10006_v17 = vpop.f32.mrb[187].mxu0 }
 0x8fb   : > { %v4481_v35 = vadd.f32 %v10004_v37, %v13339_v33  ;;  %v10007_v19 = vadd.f32 %v10006_v17, %v10005_v0  ;;  %v14740_v37 = vld [vmem:[#allocation18_spill] sm:$0xff] }
 0x8fd   : > { %v4484_v7 = vadd.f32 %v10007_v19, %v13343_v60  ;;  %v13428_v20 = vadd.f32 %v13270_v22, %v4481_v35  ;;  %v11000_v22 = vld [vmem:[%s14675_s11 + $0x4] ss:$8 sps:$4 sm:$0xff]  }
 0x8fe   : > { %5817 = vmatprep.mubr.bf16.mxu1 %v11000_v22  ;;  %v14741_v35 = vld [vmem:[#allocation19_spill] sm:$0xff] }
 0x8ff   : > { %v10008_v50 = vpop.f32.mrb[188].mxu0  ;;  %v13431_v9 = vadd.f32 %v13272_v15, %v4484_v7 }
 0x900   : > { %v10009_v38 = vpop.f32.mrb[189].mxu0 }
 0x901   : > { %v10010_v18 = vadd.f32 %v10009_v38, %v10008_v50  ;;  %v10011_v29 = vpop.f32.mrb[190].mxu0 }
 0x902   : > { %v10012_v51 = vpop.f32.mrb[191].mxu0 }
 0x903   : > { %v4489_v56 = vadd.f32 %v10010_v18, %v13351_v1  ;;  %v10013_v28 = vadd.f32 %v10012_v51, %v10011_v29  ;;  %v14742_v29 = vld [vmem:[#allocation20_spill] sm:$0xff] }
 0x905   : > { %v4492_v48 = vadd.f32 %v10013_v28, %v13355_v54  ;;  %v13436_v33 = vadd.f32 %v13288_v31, %v4489_v56  ;;  %v14739_v54 = vld [vmem:[#allocation17_spill] sm:$0xff] }
 0x906   : > { %v14743_v28 = vld [vmem:[#allocation21_spill] sm:$0xff] }
 0x907   : > { %v10014_v60 = vpop.f32.mrb[192].mxu0  ;;  %v13442_v15 = vadd.f32 %v13290_v62, %v4492_v48 }
 0x908   : > { %v10015_v14 = vpop.f32.mrb[193].mxu0 }
 0x909   : > { %v10016_v16 = vadd.f32 %v10015_v14, %v10014_v60  ;;  %v10017_v41 = vpop.f32.mrb[194].mxu0 }
 0x90a   : > { %v10018_v30 = vpop.f32.mrb[195].mxu0 }
 0x90b   : > { %v4497_v1 = vadd.f32 %v10016_v16, %v13119_v39  ;;  %v10019_v59 = vadd.f32 %v10018_v30, %v10017_v41  ;;  %v14744_v30 = vld [vmem:[#allocation22_spill] sm:$0xff] }
 0x90d   : > { %v4500_v63 = vadd.f32 %v10019_v59, %v14739_v54  ;;  %v13447_v31 = vadd.f32 %v13306_v24, %v4497_v1  ;;  %v14745_v54 = vld [vmem:[#allocation23_spill] sm:$0xff] }
 0x90f   : > { %v10020_v21 = vpop.f32.mrb[196].mxu0  ;;  %v13450_v47 = vadd.f32 %v13308_v11, %v4500_v63 }
 0x910   : > { %v10021_v36 = vpop.f32.mrb[197].mxu0 }
 0x911   : > { %v10022_v62 = vadd.f32 %v10021_v36, %v10020_v21  ;;  %v10023_v13 = vpop.f32.mrb[198].mxu0 }
 0x912   : > { %v10024_v45 = vpop.f32.mrb[199].mxu0 }
 0x913   : > { %v4505_v0 = vadd.f32 %v10022_v62, %v14740_v37  ;;  %v10025_v17 = vadd.f32 %v10024_v45, %v10023_v13  ;;  %v14746_v37 = vld [vmem:[#allocation24_spill] sm:$0xff] }
 0x915   : > { %v4508_v19 = vadd.f32 %v10025_v17, %v14741_v35  ;;  %v13455_v39 = vadd.f32 %v13321_v53, %v4505_v0  ;;  %v14747_v35 = vld [vmem:[#allocation25_spill] sm:$0xff] }
 0x917   : > { %v10026_v7 = vpop.f32.mrb[200].mxu0  ;;  %v13458_v24 = vadd.f32 %v13323_v4, %v4508_v19 }
 0x918   : > { %v10027_v50 = vpop.f32.mrb[201].mxu0 }
 0x919   : > { %v10028_v38 = vadd.f32 %v10027_v50, %v10026_v7  ;;  %v10029_v11 = vpop.f32.mrb[202].mxu0 }
 0x91a   : > { %v10030_v18 = vpop.f32.mrb[203].mxu0 }
 0x91b   : > { %v4513_v51 = vadd.f32 %v10028_v38, %v14742_v29  ;;  %v10031_v56 = vadd.f32 %v10030_v18, %v10029_v11  ;;  %v14748_v29 = vld [vmem:[#allocation26_spill] sm:$0xff] }
 0x91d   : > { %v4516_v48 = vadd.f32 %v10031_v56, %v14743_v28  ;;  %v13463_v22 = vadd.f32 %v13333_v26, %v4513_v51  ;;  %v14749_v28 = vld [vmem:[#allocation27_spill] sm:$0xff] }
 0x91f   : > { %v10032_v60 = vpop.f32.mrb[204].mxu0  ;;  %v13466_v53 = vadd.f32 %v13335_v61, %v4516_v48 }
 0x920   : > { %v10033_v14 = vpop.f32.mrb[205].mxu0 }
 0x921   : > { %v10034_v16 = vadd.f32 %v10033_v14, %v10032_v60  ;;  %v10035_v4 = vpop.f32.mrb[206].mxu0 }
 0x922   : > { %v10036_v41 = vpop.f32.mrb[207].mxu0 }
 0x923   : > { %v4521_v1 = vadd.f32 %v10034_v16, %v14744_v30  ;;  %v10037_v59 = vadd.f32 %v10036_v41, %v10035_v4  ;;  %v14750_v30 = vld [vmem:[#allocation28_spill] sm:$0xff] }
 0x925   : > { %v4524_v63 = vadd.f32 %v10037_v59, %v14745_v54  ;;  %v13471_v21 = vadd.f32 %v13345_v6, %v4521_v1  ;;  %v14751_v54 = vld [vmem:[#allocation29_spill] sm:$0xff] }
 0x927   : > { %v10038_v36 = vpop.f32.mrb[208].mxu0  ;;  %v13474_v26 = vadd.f32 %v13347_v12, %v4524_v63 }
 0x928   : > { %v10039_v62 = vpop.f32.mrb[209].mxu0 }
 0x929   : > { %v10040_v13 = vadd.f32 %v10039_v62, %v10038_v36  ;;  %v10041_v61 = vpop.f32.mrb[210].mxu0 }
 0x92a   : > { %v10042_v45 = vpop.f32.mrb[211].mxu0 }
 0x92b   : > { %v4529_v0 = vadd.f32 %v10040_v13, %v14746_v37  ;;  %v10043_v17 = vadd.f32 %v10042_v45, %v10041_v61 }
 0x92d   : > { %v4532_v19 = vadd.f32 %v10043_v17, %v14747_v35  ;;  %v13479_v7 = vadd.f32 %v13357_v8, %v4529_v0 }
 0x92f   : > { %v10044_v50 = vpop.f32.mrb[212].mxu0  ;;  %v13482_v6 = vadd.f32 %v13359_v34, %v4532_v19 }
 0x930   : > { %v10045_v38 = vpop.f32.mrb[213].mxu0 }
 0x931   : > { %v10046_v11 = vadd.f32 %v10045_v38, %v10044_v50  ;;  %v10047_v12 = vpop.f32.mrb[214].mxu0 }
 0x932   : > { %v10048_v18 = vpop.f32.mrb[215].mxu0 }
 0x933   : > { %v4537_v51 = vadd.f32 %v10046_v11, %v14748_v29  ;;  %v10049_v56 = vadd.f32 %v10048_v18, %v10047_v12 }
 0x935   : > { %v4540_v48 = vadd.f32 %v10049_v56, %v14749_v28  ;;  %v13487_v60 = vadd.f32 %v13363_v10, %v4537_v51  ;;  %v14752_v51 = vmov 0  }
 0x937   : > { %v10050_v14 = vpop.f32.mrb[216].mxu0  ;;  %v13490_v8 = vadd.f32 %v13368_v27, %v4540_v48 }
 0x938   : > { %v10051_v16 = vpop.f32.mrb[217].mxu0 }
 0x939   : > { %v10052_v4 = vadd.f32 %v10051_v16, %v10050_v14  ;;  %v10053_v34 = vpop.f32.mrb[218].mxu0 }
 0x93a   : > { %v10054_v41 = vpop.f32.mrb[219].mxu0 }
 0x93b   : > { %v4545_v1 = vadd.f32 %v10052_v4, %v14750_v30  ;;  %v10055_v59 = vadd.f32 %v10054_v41, %v10053_v34 }
 0x93d   : > { %v4548_v63 = vadd.f32 %v10055_v59, %v14751_v54  ;;  %v13495_v36 = vadd.f32 %v13375_v32, %v4545_v1 }
 0x93f   : > { %v10334_v62 = vpop.f32.mrb[220].mxu0  ;;  %v13498_v10 = vadd.f32 %v13380_v49, %v4548_v63 }
 0x940   : > { %v4755_v13 = vadd.f32 %v10334_v62, %v13378_v25  ;;  %v4746_v27 = vpop.f32.mrb[221].mxu0 }
 0x941   : > { %v4747_v61 = vadd.f32 %v4746_v27, %v13366_v58  ;;  %v10335_v45 = vpop.f32.mrb[222].mxu0 }
 0x942   : > { %v4758_v37 = vadd.f32 %v10335_v45, %v13383_v40  ;;  %v4749_v0 = vpop.f32.mrb[223].mxu0  ;;  %v4875_v35 = vmax.f32 %v4755_v13, 0.0 }
 0x943   : > { %v4750_v17 = vadd.f32 %v4749_v0, %v13371_v57  ;;  %v4873_v50 = vmax.f32 %v4747_v61, 0.0 }
 0x944   : > { %v4876_v19 = vmax.f32 %v4758_v37, 0.0 }
 0x945   : > { %v4874_v32 = vmax.f32 %v4750_v17, 0.0 }
 0x946   : > { %v4906_v38 = vpack.c.bf16 %v4876_v19, %v4875_v35 }
 0x947   : > { %v4905_v11 = vpack.c.bf16 %v4874_v32, %v4873_v50  ;;  %v10338_v12 = vpop.f32.mrb[224].mxu0 }
 0x948   : > { %v4771_v49 = vadd.f32 %v10338_v12, %v13396_v46  ;;  %v4762_v18 = vpop.f32.mrb[225].mxu0 }
 0x949   : > { %v4763_v25 = vadd.f32 %v4762_v18, %v13388_v43  ;;  %v10339_v29 = vpop.f32.mrb[226].mxu0  ;;  %5786 = vmatpush1.bf16.msra.mxu1 %v4905_v11 }
 0x94a   : > { %v4774_v58 = vadd.f32 %v10339_v29, %v13399_v3  ;;  %v4765_v40 = vpop.f32.mrb[227].mxu0  ;;  %5787 = vmatprep.subr.bf16.mxu1 %v14752_v51  ;;  %v4879_v56 = vmax.f32 %v4771_v49, 0.0 }
 0x94b   : > { %v4766_v57 = vadd.f32 %v4765_v40, %v13391_v44  ;;  %v4877_v48 = vmax.f32 %v4763_v25, 0.0 }
 0x94c   : > { %v4880_v28 = vmax.f32 %v4774_v58, 0.0 }
 0x94d   : > { %v4878_v14 = vmax.f32 %v4766_v57, 0.0  ;;  %5788 = vmatpush1.bf16.msra.mxu1 %v4906_v38 }
 0x94e   : > { %v4908_v16 = vpack.c.bf16 %v4880_v28, %v4879_v56  ;;  %5789 = vmatprep.subr.bf16.mxu1 %v14752_v51 }
 0x94f   : > { %v4907_v46 = vpack.c.bf16 %v4878_v14, %v4877_v48  ;;  %v10342_v4 = vpop.f32.mrb[228].mxu0 }
 0x950   : > { %v4787_v43 = vadd.f32 %v10342_v4, %v13412_v42  ;;  %v4778_v34 = vpop.f32.mrb[229].mxu0 }
 0x951   : > { %v4779_v3 = vadd.f32 %v4778_v34, %v13404_v5  ;;  %v10343_v41 = vpop.f32.mrb[230].mxu0  ;;  %5790 = vmatpush1.bf16.msra.mxu1 %v4907_v46 }
 0x952   : > { %v4790_v30 = vadd.f32 %v10343_v41, %v13415_v52  ;;  %v4781_v44 = vpop.f32.mrb[231].mxu0  ;;  %5791 = vmatprep.subr.bf16.mxu1 %v14752_v51  ;;  %v4883_v59 = vmax.f32 %v4787_v43, 0.0 }
 0x953   : > { %v4782_v1 = vadd.f32 %v4781_v44, %v13407_v23  ;;  %v4881_v63 = vmax.f32 %v4779_v3, 0.0 }
 0x954   : > { %v4884_v54 = vmax.f32 %v4790_v30, 0.0 }
 0x955   : > { %v4882_v62 = vmax.f32 %v4782_v1, 0.0  ;;  %5792 = vmatpush1.bf16.msra.mxu1 %v4908_v16 }
 0x956   : > { %v4910_v13 = vpack.c.bf16 %v4884_v54, %v4883_v59  ;;  %5793 = vmatprep.subr.bf16.mxu1 %v14752_v51 }
 0x957   : > { %v4909_v42 = vpack.c.bf16 %v4882_v62, %v4881_v63  ;;  %v10346_v27 = vpop.f32.mrb[232].mxu0 }
 0x958   : > { %v4803_v5 = vadd.f32 %v10346_v27, %v13428_v20  ;;  %v4794_v61 = vpop.f32.mrb[233].mxu0 }
 0x959   : > { %v4795_v52 = vadd.f32 %v4794_v61, %v13420_v55  ;;  %v10347_v45 = vpop.f32.mrb[234].mxu0  ;;  %5794 = vmatpush1.bf16.msra.mxu1 %v4909_v42 }
 0x95a   : > { %v4806_v37 = vadd.f32 %v10347_v45, %v13431_v9  ;;  %v4797_v23 = vpop.f32.mrb[235].mxu0  ;;  %5795 = vmatprep.subr.bf16.mxu1 %v14752_v51  ;;  %v4887_v17 = vmax.f32 %v4803_v5, 0.0 }
 0x95b   : > { %v4798_v0 = vadd.f32 %v4797_v23, %v13423_v2  ;;  %v4885_v19 = vmax.f32 %v4795_v52, 0.0 }
 0x95c   : > { %v4888_v35 = vmax.f32 %v4806_v37, 0.0 }
 0x95d   : > { %v4886_v50 = vmax.f32 %v4798_v0, 0.0  ;;  %5796 = vmatpush1.bf16.msra.mxu1 %v4910_v13 }
 0x95e   : > { %v4912_v32 = vpack.c.bf16 %v4888_v35, %v4887_v17  ;;  %5797 = vmatprep.subr.bf16.mxu1 %v14752_v51 }
 0x95f   : > { %v4911_v20 = vpack.c.bf16 %v4886_v50, %v4885_v19  ;;  %v10350_v38 = vpop.f32.mrb[236].mxu0  ;;  %v11004_v19 = vld [vmem:[%s14675_s11 + $0x24] ss:$8 sps:$4 sm:$0xff]   ;;  %v11006_v50 = vld [vmem:[%s14675_s11 + $0x20] ss:$8 sps:$4 sm:$0xff]  }
 0x960   : > { %v4819_v55 = vadd.f32 %v10350_v38, %v13447_v31  ;;  %v4810_v11 = vpop.f32.mrb[237].mxu0  ;;  %v11010_v38 = vld [vmem:[%s14675_s11 + $0x44] ss:$8 sps:$4 sm:$0xff]  }
 0x961   : > { %v4811_v9 = vadd.f32 %v4810_v11, %v13436_v33  ;;  %v10351_v12 = vpop.f32.mrb[238].mxu0  ;;  %5798 = vmatpush1.bf16.msra.mxu1 %v4911_v20  ;;  %v11009_v20 = vld [vmem:[%s14675_s11 + $0x30] ss:$8 sps:$4 sm:$0xff]   ;;  %v11013_v11 = vld [vmem:[%s14675_s11 + $0x54] ss:$8 sps:$4 sm:$0xff]  }
 0x962   : > { %v4822_v49 = vadd.f32 %v10351_v12, %v13450_v47  ;;  %v4813_v2 = vpop.f32.mrb[239].mxu0  ;;  %5799 = vmatprep.subr.bf16.mxu1 %v14752_v51  ;;  %v4891_v25 = vmax.f32 %v4819_v55, 0.0  ;;  %v11012_v55 = vld [vmem:[%s14675_s11 + $0x40] ss:$8 sps:$4 sm:$0xff]   ;;  %v11016_v12 = vld [vmem:[%s14675_s11 + $0x64] ss:$8 sps:$4 sm:$0xff]  }
 0x963   : > { %v4814_v18 = vadd.f32 %v4813_v2, %v13442_v15  ;;  %v4889_v58 = vmax.f32 %v4811_v9, 0.0  ;;  %v11015_v9 = vld [vmem:[%s14675_s11 + $0x50] ss:$8 sps:$4 sm:$0xff]   ;;  %v11019_v2 = vld [vmem:[%s14675_s11 + $0x74] ss:$8 sps:$4 sm:$0xff]  }
 0x964   : > { %v4892_v29 = vmax.f32 %v4822_v49, 0.0  ;;  %v11018_v49 = vld [vmem:[%s14675_s11 + $0x60] ss:$8 sps:$4 sm:$0xff]  }
 0x965   : > { %v4890_v40 = vmax.f32 %v4814_v18, 0.0  ;;  %5800 = vmatpush1.bf16.msra.mxu1 %v4912_v32  ;;  %v11007_v32 = vld [vmem:[%s14675_s11 + $0x34] ss:$8 sps:$4 sm:$0xff]   ;;  %v11021_v18 = vld [vmem:[%s14675_s11 + $0x70] ss:$8 sps:$4 sm:$0xff]  }
 0x966   : > { %v4914_v57 = vpack.c.bf16 %v4892_v29, %v4891_v25  ;;  %5801 = vmatprep.subr.bf16.mxu1 %v14752_v51  ;;  %v11022_v25 = vld [vmem:[%s14675_s11 + $0x84] ss:$8 sps:$4 sm:$0xff]   ;;  %v11024_v29 = vld [vmem:[%s14675_s11 + $0x80] ss:$8 sps:$4 sm:$0xff]  }
 0x967   : > { %v4913_v31 = vpack.c.bf16 %v4890_v40, %v4889_v58  ;;  %v10354_v56 = vpop.f32.mrb[240].mxu0  ;;  %v11025_v58 = vld [vmem:[%s14675_s11 + $0x94] ss:$8 sps:$4 sm:$0xff]   ;;  %v11027_v40 = vld [vmem:[%s14675_s11 + $0x90] ss:$8 sps:$4 sm:$0xff]  }
 0x968   : > { %v4835_v33 = vadd.f32 %v10354_v56, %v13463_v22  ;;  %v4826_v28 = vpop.f32.mrb[241].mxu0  ;;  %v11031_v56 = vld [vmem:[%s14675_s11 + $0xb4] ss:$8 sps:$4 sm:$0xff]  }
 0x969   : > { %v4827_v47 = vadd.f32 %v4826_v28, %v13455_v39  ;;  %v10355_v48 = vpop.f32.mrb[242].mxu0  ;;  %5802 = vmatpush1.bf16.msra.mxu1 %v4913_v31  ;;  %v11030_v31 = vld [vmem:[%s14675_s11 + $0xa0] ss:$8 sps:$4 sm:$0xff]   ;;  %v11034_v28 = vld [vmem:[%s14675_s11 + $0xc4] ss:$8 sps:$4 sm:$0xff]  }
 0x96a   : > { %v4838_v14 = vadd.f32 %v10355_v48, %v13466_v53  ;;  %v4829_v15 = vpop.f32.mrb[243].mxu0  ;;  %5803 = vmatprep.subr.bf16.mxu1 %v14752_v51  ;;  %v4895_v46 = vmax.f32 %v4835_v33, 0.0  ;;  %v11033_v33 = vld [vmem:[%s14675_s11 + $0xb0] ss:$8 sps:$4 sm:$0xff]   ;;  %v11037_v48 = vld [vmem:[%s14675_s11 + $0xd4] ss:$8 sps:$4 sm:$0xff]  }
 0x96b   : > { %v4830_v16 = vadd.f32 %v4829_v15, %v13458_v24  ;;  %v4893_v43 = vmax.f32 %v4827_v47, 0.0  ;;  %v11036_v47 = vld [vmem:[%s14675_s11 + $0xc0] ss:$8 sps:$4 sm:$0xff]   ;;  %v11040_v15 = vld [vmem:[%s14675_s11 + $0xe4] ss:$8 sps:$4 sm:$0xff]  }
 0x96c   : > { %v4896_v4 = vmax.f32 %v4838_v14, 0.0  ;;  %v11039_v14 = vld [vmem:[%s14675_s11 + $0xd0] ss:$8 sps:$4 sm:$0xff]  }
 0x96d   : > { %v4894_v34 = vmax.f32 %v4830_v16, 0.0  ;;  %5804 = vmatpush1.bf16.msra.mxu1 %v4914_v57  ;;  %v11028_v57 = vld [vmem:[%s14675_s11 + $0xa4] ss:$8 sps:$4 sm:$0xff]   ;;  %v11042_v16 = vld [vmem:[%s14675_s11 + $0xe0] ss:$8 sps:$4 sm:$0xff]  }
 0x96e   : > { %v4916_v3 = vpack.c.bf16 %v4896_v4, %v4895_v46  ;;  %5805 = vmatprep.subr.bf16.mxu1 %v14752_v51  ;;  %v11043_v46 = vld [vmem:[%s14675_s11 + $0xf4] ss:$8 sps:$4 sm:$0xff]   ;;  %v11045_v4 = vld [vmem:[%s14675_s11 + $0xf0] ss:$8 sps:$4 sm:$0xff]  }
 0x96f   : > { %v4915_v22 = vpack.c.bf16 %v4894_v34, %v4893_v43  ;;  %v10358_v41 = vpop.f32.mrb[244].mxu0  ;;  %v11046_v43 = vld [vmem:[%s14675_s11 + $0x104] ss:$8 sps:$4 sm:$0xff]   ;;  %v11048_v34 = vld [vmem:[%s14675_s11 + $0x100] ss:$8 sps:$4 sm:$0xff]  }
 0x970   : > { %v4851_v39 = vadd.f32 %v10358_v41, %v13479_v7  ;;  %v4842_v30 = vpop.f32.mrb[245].mxu0  ;;  %v11052_v41 = vld [vmem:[%s14675_s11 + $0x124] ss:$8 sps:$4 sm:$0xff]  }
 0x971   : > { %v4843_v53 = vadd.f32 %v4842_v30, %v13471_v21  ;;  %v10359_v44 = vpop.f32.mrb[246].mxu0  ;;  %5806 = vmatpush1.bf16.msra.mxu1 %v4915_v22  ;;  %v11051_v22 = vld [vmem:[%s14675_s11 + $0x110] ss:$8 sps:$4 sm:$0xff]   ;;  %v11055_v30 = vld [vmem:[%s14675_s11 + $0x134] ss:$8 sps:$4 sm:$0xff]  }
 0x972   : > { %v4854_v1 = vadd.f32 %v10359_v44, %v13482_v6  ;;  %v4845_v24 = vpop.f32.mrb[247].mxu0  ;;  %5807 = vmatprep.subr.bf16.mxu1 %v14752_v51  ;;  %v4899_v54 = vmax.f32 %v4851_v39, 0.0  ;;  %v11054_v39 = vld [vmem:[%s14675_s11 + $0x120] ss:$8 sps:$4 sm:$0xff]   ;;  %v11058_v44 = vld [vmem:[%s14675_s11 + $0x144] ss:$8 sps:$4 sm:$0xff]  }
 0x973   : > { %v4846_v59 = vadd.f32 %v4845_v24, %v13474_v26  ;;  %v4897_v62 = vmax.f32 %v4843_v53, 0.0  ;;  %v11057_v53 = vld [vmem:[%s14675_s11 + $0x130] ss:$8 sps:$4 sm:$0xff]   ;;  %v11061_v24 = vld [vmem:[%s14675_s11 + $0x154] ss:$8 sps:$4 sm:$0xff]  }
 0x974   : > { %v4900_v63 = vmax.f32 %v4854_v1, 0.0  ;;  %v11060_v1 = vld [vmem:[%s14675_s11 + $0x140] ss:$8 sps:$4 sm:$0xff]  }
 0x975   : > { %v4898_v13 = vmax.f32 %v4846_v59, 0.0  ;;  %5808 = vmatpush1.bf16.msra.mxu1 %v4916_v3  ;;  %v11049_v3 = vld [vmem:[%s14675_s11 + $0x114] ss:$8 sps:$4 sm:$0xff]   ;;  %v11063_v59 = vld [vmem:[%s14675_s11 + $0x150] ss:$8 sps:$4 sm:$0xff]  }
 0x976   : > { %v4918_v42 = vpack.c.bf16 %v4900_v63, %v4899_v54  ;;  %5809 = vmatprep.subr.bf16.mxu1 %v14752_v51  ;;  %v11066_v54 = vld [vmem:[%s14675_s11 + $0x164] ss:$8 sps:$4 sm:$0xff]   ;;  %v11064_v63 = vld [vmem:[%s14675_s11 + $0x160] ss:$8 sps:$4 sm:$0xff]  }
 0x977   : > { %v4917_v7 = vpack.c.bf16 %v4898_v13, %v4897_v62  ;;  %v10362_v27 = vpop.f32.mrb[248].mxu0  ;;  %v11069_v62 = vld [vmem:[%s14675_s11 + $0x174] ss:$8 sps:$4 sm:$0xff]   ;;  %v11067_v13 = vld [vmem:[%s14675_s11 + $0x170] ss:$8 sps:$4 sm:$0xff]  }
 0x978   : > { %v4867_v21 = vadd.f32 %v10362_v27, %v13495_v36  ;;  %v4858_v5 = vpop.f32.mrb[249].mxu0  ;;  %v11075_v27 = vld [vmem:[%s14675_s11 + $0x194] ss:$8 sps:$4 sm:$0xff]  }
 0x979   : > { %v4859_v6 = vadd.f32 %v4858_v5, %v13487_v60  ;;  %v10363_v61 = vpop.f32.mrb[250].mxu0  ;;  %5810 = vmatpush1.bf16.msra.mxu1 %v4917_v7  ;;  %v10998_v60 = vld [vmem:[%s14675_s11] ss:$8 sps:$4 sm:$0xff]   ;;  %v11078_v5 = vld [vmem:[%s14675_s11 + $0x1a4] ss:$8 sps:$4 sm:$0xff]  }
 0x97a   : > { %v4870_v52 = vadd.f32 %v10363_v61, %v13498_v10  ;;  %v4861_v26 = vpop.f32.mrb[251].mxu0  ;;  %5811 = vmatprep.subr.bf16.mxu1 %v14752_v51  ;;  %v4903_v37 = vmax.f32 %v4867_v21, 0.0  ;;  %v11003_v10 = vld [vmem:[%s14675_s11 + $0x10] ss:$8 sps:$4 sm:$0xff]   ;;  %v11070_v7 = vld [vmem:[%s14675_s11 + $0x180] ss:$8 sps:$4 sm:$0xff]  }
 0x97b   : > { %v4862_v45 = vadd.f32 %v4861_v26, %v13490_v8  ;;  %v4901_v0 = vmax.f32 %v4859_v6, 0.0  ;;  %v11001_v8 = vld [vmem:[%s14675_s11 + $0x14] ss:$8 sps:$4 sm:$0xff]   ;;  %v11073_v21 = vld [vmem:[%s14675_s11 + $0x190] ss:$8 sps:$4 sm:$0xff]  }
 0x97c   : > { %v4904_v23 = vmax.f32 %v4870_v52, 0.0  ;;  %v11076_v6 = vld [vmem:[%s14675_s11 + $0x1a0] ss:$8 sps:$4 sm:$0xff]   ;;  %v11081_v61 = vld [vmem:[%s14675_s11 + $0x1b4] ss:$8 sps:$4 sm:$0xff]  }
 0x97d   : > { %v4902_v17 = vmax.f32 %v4862_v45, 0.0  ;;  %5812 = vmatpush1.bf16.msra.mxu1 %v4918_v42  ;;  %v11072_v42 = vld [vmem:[%s14675_s11 + $0x184] ss:$8 sps:$4 sm:$0xff]   ;;  %v11079_v26 = vld [vmem:[%s14675_s11 + $0x1b0] ss:$8 sps:$4 sm:$0xff]  }
 0x97e   : > { %v4920_v35 = vpack.c.bf16 %v4904_v23, %v4903_v37  ;;  %5813 = vmatprep.subr.bf16.mxu1 %v14752_v51  ;;  %v11084_v37 = vld [vmem:[%s14675_s11 + $0x1c4] ss:$8 sps:$4 sm:$0xff]  }
 0x97f   : > { %v4919_v36 = vpack.c.bf16 %v4902_v17, %v4901_v0 }
 0x981   : > { %5814 = vmatpush1.bf16.msra.mxu1 %v4919_v36  ;;  %v11082_v36 = vld [vmem:[%s14675_s11 + $0x1c0] ss:$8 sps:$4 sm:$0xff]  }
 0x982   : > { %5815 = vmatprep.subr.bf16.mxu1 %v14752_v51 }
 0x985   : > { %5816 = vmatpush1.bf16.msra.mxu1 %v4920_v35 }
 0x988   : > { %5818 = vmatmul.mubr.bf16.vlgmr.msra.gmra.mrb[168].mxu1 %v10998_v60 }
 0x989   : > { %5825 = vmatprep.mubr.bf16.mxu1 %v11001_v8  ;;  %v11087_v8 = vld [vmem:[%s14675_s11 + $0x1d4] ss:$8 sps:$4 sm:$0xff]  }
 0x990   : > { %5826 = vmatmul.mubr.bf16.gmra.mrb[172].mxu1 %v11003_v10 }
 0x991   : > { %5833 = vmatprep.mubr.bf16.mxu1 %v11004_v19 }
 0x998   : > { %5834 = vmatmul.mubr.bf16.gmra.mrb[176].mxu1 %v11006_v50 }
 0x999   : > { %5841 = vmatprep.mubr.bf16.mxu1 %v11007_v32 }
 0x9a0   : > { %5842 = vmatmul.mubr.bf16.gmra.mrb[180].mxu1 %v11009_v20  ;;  %v11085_v20 = vld [vmem:[%s14675_s11 + $0x1d0] ss:$8 sps:$4 sm:$0xff]  }
 0x9a1   : > { %5849 = vmatprep.mubr.bf16.mxu1 %v11010_v38 }
 0x9a8   : > { %5850 = vmatmul.mubr.bf16.gmra.mrb[184].mxu1 %v11012_v55  ;;  %v11090_v55 = vld [vmem:[%s14675_s11 + $0x1e4] ss:$8 sps:$4 sm:$0xff]  }
 0x9a9   : > { %5857 = vmatprep.mubr.bf16.mxu1 %v11013_v11 }
 0x9b0   : > { %5858 = vmatmul.mubr.bf16.gmra.mrb[188].mxu1 %v11015_v9 }
 0x9b1   : > { %5865 = vmatprep.mubr.bf16.mxu1 %v11016_v12 }
 0x9b8   : > { %5866 = vmatmul.mubr.bf16.gmra.mrb[192].mxu1 %v11018_v49 }
 0x9b9   : > { %5873 = vmatprep.mubr.bf16.mxu1 %v11019_v2  ;;  %v11088_v2 = vld [vmem:[%s14675_s11 + $0x1e0] ss:$8 sps:$4 sm:$0xff]  }
 0x9c0   : > { %5874 = vmatmul.mubr.bf16.gmra.mrb[196].mxu1 %v11021_v18 }
 0x9c1   : > { %5881 = vmatprep.mubr.bf16.mxu1 %v11022_v25  ;;  %v11093_v25 = vld [vmem:[%s14675_s11 + $0x1f4] ss:$8 sps:$4 sm:$0xff]  }
 0x9c8   : > { %5882 = vmatmul.mubr.bf16.gmra.mrb[200].mxu1 %v11024_v29 }
 0x9c9   : > { %5889 = vmatprep.mubr.bf16.mxu1 %v11025_v58 }
 0x9d0   : > { %5890 = vmatmul.mubr.bf16.gmra.mrb[204].mxu1 %v11027_v40 }
 0x9d1   : > { %5897 = vmatprep.mubr.bf16.mxu1 %v11028_v57 }
 0x9d8   : > { %5898 = vmatmul.mubr.bf16.gmra.mrb[208].mxu1 %v11030_v31  ;;  %v11091_v31 = vld [vmem:[%s14675_s11 + $0x1f0] ss:$8 sps:$4 sm:$0xff]  }
 0x9d9   : > { %5905 = vmatprep.mubr.bf16.mxu1 %v11031_v56 }
 0x9e0   : > { %5906 = vmatmul.mubr.bf16.gmra.mrb[212].mxu1 %v11033_v33  ;;  %v11096_v33 = vld [vmem:[%s14675_s11 + $0x204] ss:$8 sps:$4 sm:$0xff]  }
 0x9e1   : > { %5913 = vmatprep.mubr.bf16.mxu1 %v11034_v28 }
 0x9e8   : > { %5914 = vmatmul.mubr.bf16.gmra.mrb[216].mxu1 %v11036_v47 }
 0x9e9   : > { %5921 = vmatprep.mubr.bf16.mxu1 %v11037_v48 }
 0x9f0   : > { %5922 = vmatmul.mubr.bf16.gmra.mrb[220].mxu1 %v11039_v14 }
 0x9f1   : > { %5929 = vmatprep.mubr.bf16.mxu1 %v11040_v15  ;;  %v11094_v15 = vld [vmem:[%s14675_s11 + $0x200] ss:$8 sps:$4 sm:$0xff]  }
 0x9f8   : > { %5930 = vmatmul.mubr.bf16.gmra.mrb[224].mxu1 %v11042_v16 }
 0x9f9   : > { %5937 = vmatprep.mubr.bf16.mxu1 %v11043_v46  ;;  %v11099_v46 = vld [vmem:[%s14675_s11 + $0x214] ss:$8 sps:$4 sm:$0xff]  }
 0xa00   : > { %5938 = vmatmul.mubr.bf16.gmra.mrb[228].mxu1 %v11045_v4 }
 0xa01   : > { %5945 = vmatprep.mubr.bf16.mxu1 %v11046_v43 }
 0xa08   : > { %5946 = vmatmul.mubr.bf16.gmra.mrb[232].mxu1 %v11048_v34 }
 0xa09   : > { %5953 = vmatprep.mubr.bf16.mxu1 %v11049_v3 }
 0xa10   : > { %5954 = vmatmul.mubr.bf16.gmra.mrb[236].mxu1 %v11051_v22  ;;  %v11097_v22 = vld [vmem:[%s14675_s11 + $0x210] ss:$8 sps:$4 sm:$0xff]  }
 0xa11   : > { %5961 = vmatprep.mubr.bf16.mxu1 %v11052_v41 }
 0xa18   : > { %5962 = vmatmul.mubr.bf16.gmra.mrb[240].mxu1 %v11054_v39  ;;  %v11102_v39 = vld [vmem:[%s14675_s11 + $0x224] ss:$8 sps:$4 sm:$0xff]  }
 0xa19   : > { %5969 = vmatprep.mubr.bf16.mxu1 %v11055_v30 }
 0xa20   : > { %5970 = vmatmul.mubr.bf16.gmra.mrb[244].mxu1 %v11057_v53 }
 0xa21   : > { %5977 = vmatprep.mubr.bf16.mxu1 %v11058_v44 }
 0xa28   : > { %5978 = vmatmul.mubr.bf16.gmra.mrb[248].mxu1 %v11060_v1 }
 0xa29   : > { %5985 = vmatprep.mubr.bf16.mxu1 %v11061_v24  ;;  %v11100_v24 = vld [vmem:[%s14675_s11 + $0x220] ss:$8 sps:$4 sm:$0xff]  }
 0xa30   : > { %5986 = vmatmul.mubr.bf16.gmra.mrb[252].mxu1 %v11063_v59 }
 0xa31   : > { %5993 = vmatprep.mubr.bf16.mxu1 %v11066_v54  ;;  %v11105_v54 = vld [vmem:[%s14675_s11 + $0x234] ss:$8 sps:$4 sm:$0xff]  }
 0xa38   : > { %5994 = vmatmul.mubr.bf16.gmra.mrb[0].mxu1 %v11064_v63 }
 0xa39   : > { %6001 = vmatprep.mubr.bf16.mxu1 %v11069_v62 }
 0xa40   : > { %6002 = vmatmul.mubr.bf16.gmra.mrb[4].mxu1 %v11067_v13 }
 0xa41   : > { %6009 = vmatprep.mubr.bf16.mxu1 %v11072_v42 }
 0xa48   : > { %6010 = vmatmul.mubr.bf16.gmra.mrb[8].mxu1 %v11070_v7  ;;  %v11103_v7 = vld [vmem:[%s14675_s11 + $0x230] ss:$8 sps:$4 sm:$0xff]  }
 0xa49   : > { %6017 = vmatprep.mubr.bf16.mxu1 %v11075_v27 }
 0xa50   : > { %6018 = vmatmul.mubr.bf16.gmra.mrb[12].mxu1 %v11073_v21  ;;  %v11108_v21 = vld [vmem:[%s14675_s11 + $0x244] ss:$8 sps:$4 sm:$0xff]  }
 0xa51   : > { %6025 = vmatprep.mubr.bf16.mxu1 %v11078_v5 }
 0xa58   : > { %6026 = vmatmul.mubr.bf16.gmra.mrb[16].mxu1 %v11076_v6 }
 0xa59   : > { %6033 = vmatprep.mubr.bf16.mxu1 %v11081_v61 }
 0xa5b   : > { %v5819_v52 = vpop.f32.mrb[168].mxu1 }
 0xa5c   : > { %v5821_v45 = vpop.f32.mrb[169].mxu1 }
 0xa5d   : > { %v5822_v23 = vpop.f32.mrb[170].mxu1 }
 0xa5e   : > { %v6394_v0 = vpack.c.bf16 %v5822_v23, %v5819_v52  ;;  %v5824_v17 = vpop.f32.mrb[171].mxu1 }
 0xa60   : > { %6034 = vmatmul.mubr.bf16.gmra.mrb[20].mxu1 %v11079_v26  ;;  %6466 = vst.msk [vmem:[#allocation3] sm:$0xff] %vm2635_vm6, %v6394_v0  ;;  %v11106_v26 = vld [vmem:[%s14675_s11 + $0x240] ss:$8 sps:$4 sm:$0xff]  }
 0xa61   : > { %6041 = vmatprep.mubr.bf16.mxu1 %v11084_v37  ;;  %v11111_v37 = vld [vmem:[%s14675_s11 + $0x254] ss:$8 sps:$4 sm:$0xff]  }
 0xa63   : > { %v5827_v35 = vpop.f32.mrb[172].mxu1 }
 0xa64   : > { %v5829_v60 = vpop.f32.mrb[173].mxu1 }
 0xa65   : > { %v5830_v10 = vpop.f32.mrb[174].mxu1 }
 0xa66   : > { %v6395_v19 = vpack.c.bf16 %v5830_v10, %v5827_v35  ;;  %v5832_v50 = vpop.f32.mrb[175].mxu1 }
 0xa68   : > { %6042 = vmatmul.mubr.bf16.gmra.mrb[24].mxu1 %v11082_v36  ;;  %6467 = vst.msk [vmem:[#allocation3 + $0x28] sm:$0xff] %vm2635_vm6, %v6395_v19  ;;  %v11109_v36 = vld [vmem:[%s14675_s11 + $0x250] ss:$8 sps:$4 sm:$0xff]  }
 0xa69   : > { %6049 = vmatprep.mubr.bf16.mxu1 %v11087_v8  ;;  %v11114_v8 = vld [vmem:[%s14675_s11 + $0x264] ss:$8 sps:$4 sm:$0xff]  }
 0xa6b   : > { %v5835_v32 = vpop.f32.mrb[176].mxu1 }
 0xa6c   : > { %v5837_v38 = vpop.f32.mrb[177].mxu1 }
 0xa6d   : > { %v5838_v11 = vpop.f32.mrb[178].mxu1 }
 0xa6e   : > { %v6396_v9 = vpack.c.bf16 %v5838_v11, %v5835_v32  ;;  %v5840_v12 = vpop.f32.mrb[179].mxu1 }
 0xa70   : > { %6050 = vmatmul.mubr.bf16.gmra.mrb[28].mxu1 %v11085_v20  ;;  %6468 = vst.msk [vmem:[#allocation3 + $0x50] sm:$0xff] %vm2635_vm6, %v6396_v9  ;;  %v11112_v20 = vld [vmem:[%s14675_s11 + $0x260] ss:$8 sps:$4 sm:$0xff]  }
 0xa71   : > { %6057 = vmatprep.mubr.bf16.mxu1 %v11090_v55  ;;  %v11117_v55 = vld [vmem:[%s14675_s11 + $0x274] ss:$8 sps:$4 sm:$0xff]  }
 0xa73   : > { %v5843_v49 = vpop.f32.mrb[180].mxu1 }
 0xa74   : > { %v5845_v18 = vpop.f32.mrb[181].mxu1 }
 0xa75   : > { %v5846_v29 = vpop.f32.mrb[182].mxu1 }
 0xa76   : > { %v6397_v58 = vpack.c.bf16 %v5846_v29, %v5843_v49  ;;  %v5848_v40 = vpop.f32.mrb[183].mxu1 }
 0xa78   : > { %6058 = vmatmul.mubr.bf16.gmra.mrb[32].mxu1 %v11088_v2  ;;  %6469 = vst.msk [vmem:[#allocation3 + $0x78] sm:$0xff] %vm2635_vm6, %v6397_v58  ;;  %v11115_v2 = vld [vmem:[%s14675_s11 + $0x270] ss:$8 sps:$4 sm:$0xff]  }
 0xa79   : > { %6065 = vmatprep.mubr.bf16.mxu1 %v11093_v25  ;;  %v11120_v25 = vld [vmem:[%s14675_s11 + $0x284] ss:$8 sps:$4 sm:$0xff]  }
 0xa7b   : > { %v5851_v57 = vpop.f32.mrb[184].mxu1 }
 0xa7c   : > { %v5853_v56 = vpop.f32.mrb[185].mxu1 }
 0xa7d   : > { %v5854_v28 = vpop.f32.mrb[186].mxu1 }
 0xa7e   : > { %v6398_v47 = vpack.c.bf16 %v5854_v28, %v5851_v57  ;;  %v5856_v48 = vpop.f32.mrb[187].mxu1 }
 0xa80   : > { %6066 = vmatmul.mubr.bf16.gmra.mrb[36].mxu1 %v11091_v31  ;;  %6470 = vst.msk [vmem:[#allocation3 + $0xa0] sm:$0xff] %vm2635_vm6, %v6398_v47  ;;  %v11118_v31 = vld [vmem:[%s14675_s11 + $0x280] ss:$8 sps:$4 sm:$0xff]  }
 0xa81   : > { %6073 = vmatprep.mubr.bf16.mxu1 %v11096_v33  ;;  %v11123_v33 = vld [vmem:[%s14675_s11 + $0x294] ss:$8 sps:$4 sm:$0xff]  }
 0xa83   : > { %v5859_v14 = vpop.f32.mrb[188].mxu1 }
 0xa84   : > { %v5861_v16 = vpop.f32.mrb[189].mxu1 }
 0xa85   : > { %v5862_v4 = vpop.f32.mrb[190].mxu1 }
 0xa86   : > { %v6399_v43 = vpack.c.bf16 %v5862_v4, %v5859_v14  ;;  %v5864_v34 = vpop.f32.mrb[191].mxu1 }
 0xa88   : > { %6074 = vmatmul.mubr.bf16.gmra.mrb[40].mxu1 %v11094_v15  ;;  %6471 = vst.msk [vmem:[#allocation3 + $0xc8] sm:$0xff] %vm2635_vm6, %v6399_v43  ;;  %v11121_v15 = vld [vmem:[%s14675_s11 + $0x290] ss:$8 sps:$4 sm:$0xff]  }
 0xa89   : > { %6081 = vmatprep.mubr.bf16.mxu1 %v11099_v46  ;;  %v11126_v46 = vld [vmem:[%s14675_s11 + $0x2a4] ss:$8 sps:$4 sm:$0xff]  }
 0xa8b   : > { %v5867_v3 = vpop.f32.mrb[192].mxu1 }
 0xa8c   : > { %v5869_v41 = vpop.f32.mrb[193].mxu1 }
 0xa8d   : > { %v5870_v30 = vpop.f32.mrb[194].mxu1 }
 0xa8e   : > { %v6400_v53 = vpack.c.bf16 %v5870_v30, %v5867_v3  ;;  %v5872_v44 = vpop.f32.mrb[195].mxu1 }
 0xa90   : > { %6082 = vmatmul.mubr.bf16.gmra.mrb[44].mxu1 %v11097_v22  ;;  %6472 = vst.msk [vmem:[#allocation3 + $0xf0] sm:$0xff] %vm2635_vm6, %v6400_v53  ;;  %v11124_v22 = vld [vmem:[%s14675_s11 + $0x2a0] ss:$8 sps:$4 sm:$0xff]  }
 0xa91   : > { %6089 = vmatprep.mubr.bf16.mxu1 %v11102_v39  ;;  %v11129_v39 = vld [vmem:[%s14675_s11 + $0x2b4] ss:$8 sps:$4 sm:$0xff]  }
 0xa93   : > { %v5875_v1 = vpop.f32.mrb[196].mxu1 }
 0xa94   : > { %v5877_v59 = vpop.f32.mrb[197].mxu1 }
 0xa95   : > { %v5878_v63 = vpop.f32.mrb[198].mxu1 }
 0xa96   : > { %v6401_v62 = vpack.c.bf16 %v5878_v63, %v5875_v1  ;;  %v5880_v13 = vpop.f32.mrb[199].mxu1 }
 0xa98   : > { %6090 = vmatmul.mubr.bf16.gmra.mrb[48].mxu1 %v11100_v24  ;;  %6473 = vst.msk [vmem:[#allocation3 + $0x118] sm:$0xff] %vm2635_vm6, %v6401_v62  ;;  %v11127_v24 = vld [vmem:[%s14675_s11 + $0x2b0] ss:$8 sps:$4 sm:$0xff]   ;;  %vm7783_vm6 = vcmask 523648  }
 0xa99   : > { %6097 = vmatprep.mubr.bf16.mxu1 %v11105_v54  ;;  %v11132_v54 = vld [vmem:[%s14675_s11 + $0x2c4] ss:$8 sps:$4 sm:$0xff]  }
 0xa9b   : > { %v5883_v42 = vpop.f32.mrb[200].mxu1 }
 0xa9c   : > { %v5885_v27 = vpop.f32.mrb[201].mxu1 }
 0xa9d   : > { %v5886_v5 = vpop.f32.mrb[202].mxu1 }
 0xa9e   : > { %v6402_v6 = vpack.c.bf16 %v5886_v5, %v5883_v42  ;;  %v5888_v61 = vpop.f32.mrb[203].mxu1 }
 0xaa0   : > { %6098 = vmatmul.mubr.bf16.gmra.mrb[52].mxu1 %v11103_v7  ;;  %6482 = vrot.lane.b32.xlu1 %v6402_v6, %s11537_s0  ;;  %v11130_v7 = vld [vmem:[%s14675_s11 + $0x2c0] ss:$8 sps:$4 sm:$0xff]  }
 0xaa1   : > { %6105 = vmatprep.mubr.bf16.mxu1 %v11108_v21  ;;  %v11135_v21 = vld [vmem:[%s14675_s11 + $0x2d4] ss:$8 sps:$4 sm:$0xff]  }
 0xaa3   : > { %v5891_v52 = vpop.f32.mrb[204].mxu1 }
 0xaa4   : > { %v5893_v45 = vpop.f32.mrb[205].mxu1 }
 0xaa5   : > { %v5894_v23 = vpop.f32.mrb[206].mxu1 }
 0xaa6   : > { %v6403_v0 = vpack.c.bf16 %v5894_v23, %v5891_v52  ;;  %v5896_v17 = vpop.f32.mrb[207].mxu1 }
 0xaa8   : > { %6106 = vmatmul.mubr.bf16.gmra.mrb[56].mxu1 %v11106_v26  ;;  %6484 = vrot.lane.b32.xlu0 %v6403_v0, %s11537_s0  ;;  %v11133_v26 = vld [vmem:[%s14675_s11 + $0x2d0] ss:$8 sps:$4 sm:$0xff]  }
 0xaa9   : > { %6113 = vmatprep.mubr.bf16.mxu1 %v11111_v37  ;;  %v11138_v37 = vld [vmem:[%s14675_s11 + $0x2e4] ss:$8 sps:$4 sm:$0xff]  }
 0xaab   : > { %v5899_v35 = vpop.f32.mrb[208].mxu1 }
 0xaac   : > { %v5901_v60 = vpop.f32.mrb[209].mxu1 }
 0xaad   : > { %v5902_v10 = vpop.f32.mrb[210].mxu1 }
 0xaae   : > { %v6404_v19 = vpack.c.bf16 %v5902_v10, %v5899_v35  ;;  %v5904_v50 = vpop.f32.mrb[211].mxu1 }
 0xab0   : > { %6114 = vmatmul.mubr.bf16.gmra.mrb[60].mxu1 %v11109_v36  ;;  %6486 = vrot.lane.b32.xlu0 %v6404_v19, %s11537_s0  ;;  %v11136_v36 = vld [vmem:[%s14675_s11 + $0x2e0] ss:$8 sps:$4 sm:$0xff]  }
 0xab1   : > { %6121 = vmatprep.mubr.bf16.mxu1 %v11114_v8  ;;  %v11141_v8 = vld [vmem:[%s14675_s11 + $0x2f4] ss:$8 sps:$4 sm:$0xff]  }
 0xab3   : > { %v5907_v32 = vpop.f32.mrb[212].mxu1 }
 0xab4   : > { %v5909_v38 = vpop.f32.mrb[213].mxu1 }
 0xab5   : > { %v5910_v11 = vpop.f32.mrb[214].mxu1 }
 0xab6   : > { %v6405_v9 = vpack.c.bf16 %v5910_v11, %v5907_v32  ;;  %v5912_v12 = vpop.f32.mrb[215].mxu1 }
 0xab8   : > { %6122 = vmatmul.mubr.bf16.gmra.mrb[64].mxu1 %v11112_v20  ;;  %6488 = vrot.lane.b32.xlu0 %v6405_v9, %s11537_s0  ;;  %v11139_v20 = vld [vmem:[%s14675_s11 + $0x2f0] ss:$8 sps:$4 sm:$0xff]  }
 0xab9   : > { %6129 = vmatprep.mubr.bf16.mxu1 %v11117_v55  ;;  %v11144_v55 = vld [vmem:[%s14675_s11 + $0x304] ss:$8 sps:$4 sm:$0xff]  }
 0xabb   : > { %v5915_v49 = vpop.f32.mrb[216].mxu1 }
 0xabc   : > { %v5917_v18 = vpop.f32.mrb[217].mxu1 }
 0xabd   : > { %v5918_v29 = vpop.f32.mrb[218].mxu1 }
 0xabe   : > { %v6406_v58 = vpack.c.bf16 %v5918_v29, %v5915_v49  ;;  %v5920_v40 = vpop.f32.mrb[219].mxu1 }
 0xac0   : > { %6130 = vmatmul.mubr.bf16.gmra.mrb[68].mxu1 %v11115_v2  ;;  %6490 = vrot.lane.b32.xlu0 %v6406_v58, %s11537_s0  ;;  %v11142_v2 = vld [vmem:[%s14675_s11 + $0x300] ss:$8 sps:$4 sm:$0xff]  }
 0xac1   : > { %6137 = vmatprep.mubr.bf16.mxu1 %v11120_v25  ;;  %v11147_v25 = vld [vmem:[%s14675_s11 + $0x314] ss:$8 sps:$4 sm:$0xff]  }
 0xac3   : > { %v5923_v57 = vpop.f32.mrb[220].mxu1 }
 0xac4   : > { %v5925_v56 = vpop.f32.mrb[221].mxu1 }
 0xac5   : > { %v5926_v28 = vpop.f32.mrb[222].mxu1 }
 0xac6   : > { %v6407_v47 = vpack.c.bf16 %v5926_v28, %v5923_v57  ;;  %v5928_v48 = vpop.f32.mrb[223].mxu1 }
 0xac8   : > { %6138 = vmatmul.mubr.bf16.gmra.mrb[72].mxu1 %v11118_v31  ;;  %6492 = vrot.lane.b32.xlu0 %v6407_v47, %s11537_s0  ;;  %v11145_v31 = vld [vmem:[%s14675_s11 + $0x310] ss:$8 sps:$4 sm:$0xff]  }
 0xac9   : > { %6145 = vmatprep.mubr.bf16.mxu1 %v11123_v33  ;;  %v11150_v33 = vld [vmem:[%s14675_s11 + $0x324] ss:$8 sps:$4 sm:$0xff]  }
 0xacb   : > { %v5931_v14 = vpop.f32.mrb[224].mxu1 }
 0xacc   : > { %v5933_v16 = vpop.f32.mrb[225].mxu1 }
 0xacd   : > { %v5934_v4 = vpop.f32.mrb[226].mxu1  ;;  %v11148_v16 = vld [vmem:[%s14675_s11 + $0x320] ss:$8 sps:$4 sm:$0xff]  }
 0xace   : > { %v6408_v43 = vpack.c.bf16 %v5934_v4, %v5931_v14  ;;  %v5936_v34 = vpop.f32.mrb[227].mxu1  ;;  %v11153_v4 = vld [vmem:[%s14675_s11 + $0x334] ss:$8 sps:$4 sm:$0xff]  }
 0xad0   : > { %6146 = vmatmul.mubr.bf16.gmra.mrb[76].mxu1 %v11121_v15  ;;  %6494 = vrot.lane.b32.xlu0 %v6408_v43, %s11537_s0 }
 0xad1   : > { %6153 = vmatprep.mubr.bf16.mxu1 %v11126_v46 }
 0xad3   : > { %v5939_v3 = vpop.f32.mrb[228].mxu1 }
 0xad4   : > { %v5941_v41 = vpop.f32.mrb[229].mxu1 }
 0xad5   : > { %v5942_v30 = vpop.f32.mrb[230].mxu1 }
 0xad6   : > { %v6409_v53 = vpack.c.bf16 %v5942_v30, %v5939_v3  ;;  %v5944_v44 = vpop.f32.mrb[231].mxu1 }
 0xad8   : > { %6154 = vmatmul.mubr.bf16.gmra.mrb[80].mxu1 %v11124_v22  ;;  %6496 = vrot.lane.b32.xlu0 %v6409_v53, %s11537_s0  ;;  %v11156_v53 = vld [vmem:[%s14675_s11 + $0x344] ss:$8 sps:$4 sm:$0xff]   ;;  %s11542_s0 = smov 28  }
 0xad9   : > { %6161 = vmatprep.mubr.bf16.mxu1 %v11129_v39  ;;  %v11151_v39 = vld [vmem:[%s14675_s11 + $0x330] ss:$8 sps:$4 sm:$0xff]  }
 0xadb   : > { %v5947_v1 = vpop.f32.mrb[232].mxu1 }
 0xadc   : > { %v5949_v59 = vpop.f32.mrb[233].mxu1 }
 0xadd   : > { %v5950_v63 = vpop.f32.mrb[234].mxu1 }
 0xade   : > { %v6410_v62 = vpack.c.bf16 %v5950_v63, %v5947_v1  ;;  %v5952_v13 = vpop.f32.mrb[235].mxu1  ;;  %v11154_v63 = vld [vmem:[%s14675_s11 + $0x340] ss:$8 sps:$4 sm:$0xff]  }
 0xadf   : > { %v11159_v13 = vld [vmem:[%s14675_s11 + $0x354] ss:$8 sps:$4 sm:$0xff]  }
 0xae0   : > { %6162 = vmatmul.mubr.bf16.gmra.mrb[84].mxu1 %v11127_v24  ;;  %6523 = vrot.lane.b32.xlu1 %v6410_v62, %s11538_s23 }
 0xae1   : > { %6169 = vmatprep.mubr.bf16.mxu1 %v11132_v54 }
 0xae3   : > { %v5955_v42 = vpop.f32.mrb[236].mxu1 }
 0xae4   : > { %v5957_v27 = vpop.f32.mrb[237].mxu1 }
 0xae5   : > { %v5958_v5 = vpop.f32.mrb[238].mxu1 }
 0xae6   : > { %v6411_v6 = vpack.c.bf16 %v5958_v5, %v5955_v42  ;;  %v5960_v61 = vpop.f32.mrb[239].mxu1 }
 0xae8   : > { %6170 = vmatmul.mubr.bf16.gmra.mrb[88].mxu1 %v11130_v7  ;;  %6525 = vrot.lane.b32.xlu0 %v6411_v6, %s11538_s23  ;;  %v11157_v6 = vld [vmem:[%s14675_s11 + $0x350] ss:$8 sps:$4 sm:$0xff]  }
 0xae9   : > { %6177 = vmatprep.mubr.bf16.mxu1 %v11135_v21 }
 0xaeb   : > { %v5963_v52 = vpop.f32.mrb[240].mxu1 }
 0xaec   : > { %v5965_v45 = vpop.f32.mrb[241].mxu1 }
 0xaed   : > { %v5966_v23 = vpop.f32.mrb[242].mxu1 }
 0xaee   : > { %v6412_v0 = vpack.c.bf16 %v5966_v23, %v5963_v52  ;;  %v5968_v17 = vpop.f32.mrb[243].mxu1  ;;  %v11162_v52 = vld [vmem:[%s14675_s11 + $0x364] ss:$8 sps:$4 sm:$0xff]  }
 0xaef   : > { %v11160_v17 = vld [vmem:[%s14675_s11 + $0x360] ss:$8 sps:$4 sm:$0xff]  }
 0xaf0   : > { %6178 = vmatmul.mubr.bf16.gmra.mrb[92].mxu1 %v11133_v26  ;;  %6527 = vrot.lane.b32.xlu1 %v6412_v0, %s11538_s23 }
 0xaf1   : > { %6185 = vmatprep.mubr.bf16.mxu1 %v11138_v37 }
 0xaf3   : > { %v5971_v35 = vpop.f32.mrb[244].mxu1 }
 0xaf4   : > { %v5973_v60 = vpop.f32.mrb[245].mxu1 }
 0xaf5   : > { %v5974_v10 = vpop.f32.mrb[246].mxu1 }
 0xaf6   : > { %v6413_v19 = vpack.c.bf16 %v5974_v10, %v5971_v35  ;;  %v5976_v50 = vpop.f32.mrb[247].mxu1 }
 0xaf8   : > { %6186 = vmatmul.mubr.bf16.gmra.mrb[96].mxu1 %v11136_v36  ;;  %6529 = vrot.lane.b32.xlu0 %v6413_v19, %s11538_s23  ;;  %v11165_v36 = vld [vmem:[%s14675_s11 + $0x374] ss:$8 sps:$4 sm:$0xff]  }
 0xaf9   : > { %6193 = vmatprep.mubr.bf16.mxu1 %v11141_v8 }
 0xafb   : > { %v5979_v32 = vpop.f32.mrb[248].mxu1 }
 0xafc   : > { %v5981_v38 = vpop.f32.mrb[249].mxu1 }
 0xafd   : > { %v5982_v11 = vpop.f32.mrb[250].mxu1  ;;  %v11168_v38 = vld [vmem:[%s14675_s11 + $0x384] ss:$8 sps:$4 sm:$0xff]  }
 0xafe   : > { %v6414_v9 = vpack.c.bf16 %v5982_v11, %v5979_v32  ;;  %v5984_v12 = vpop.f32.mrb[251].mxu1  ;;  %v11163_v32 = vld [vmem:[%s14675_s11 + $0x370] ss:$8 sps:$4 sm:$0xff]  }
 0xb00   : > { %6194 = vmatmul.mubr.bf16.gmra.mrb[100].mxu1 %v11139_v20  ;;  %6531 = vrot.lane.b32.xlu1 %v6414_v9, %s11538_s23 }
 0xb01   : > { %6201 = vmatprep.mubr.bf16.mxu1 %v11144_v55 }
 0xb03   : > { %v5987_v49 = vpop.f32.mrb[252].mxu1 }
 0xb04   : > { %v5989_v18 = vpop.f32.mrb[253].mxu1 }
 0xb05   : > { %v5990_v29 = vpop.f32.mrb[254].mxu1 }
 0xb06   : > { %v6415_v58 = vpack.c.bf16 %v5990_v29, %v5987_v49  ;;  %v5992_v40 = vpop.f32.mrb[255].mxu1 }
 0xb08   : > { %6202 = vmatmul.mubr.bf16.gmra.mrb[104].mxu1 %v11142_v2  ;;  %6533 = vrot.lane.b32.xlu0 %v6415_v58, %s11538_s23  ;;  %v11166_v2 = vld [vmem:[%s14675_s11 + $0x380] ss:$8 sps:$4 sm:$0xff]  }
 0xb09   : > { %6209 = vmatprep.mubr.bf16.mxu1 %v11147_v25  ;;  %v11171_v25 = vld [vmem:[%s14675_s11 + $0x394] ss:$8 sps:$4 sm:$0xff]  }
 0xb0b   : > { %v5995_v57 = vpop.f32.mrb[0].mxu1 }
 0xb0c   : > { %v5997_v56 = vpop.f32.mrb[1].mxu1 }
 0xb0d   : > { %v5998_v28 = vpop.f32.mrb[2].mxu1  ;;  %v11169_v56 = vld [vmem:[%s14675_s11 + $0x390] ss:$8 sps:$4 sm:$0xff]  }
 0xb0e   : > { %v6416_v47 = vpack.c.bf16 %v5998_v28, %v5995_v57  ;;  %v6000_v48 = vpop.f32.mrb[3].mxu1  ;;  %v11174_v28 = vld [vmem:[%s14675_s11 + $0x3a4] ss:$8 sps:$4 sm:$0xff]  }
 0xb10   : > { %6210 = vmatmul.mubr.bf16.gmra.mrb[108].mxu1 %v11145_v31  ;;  %6535 = vrot.lane.b32.xlu1 %v6416_v47, %s11538_s23 }
 0xb11   : > { %6217 = vmatprep.mubr.bf16.mxu1 %v11150_v33 }
 0xb12   : > { %v6483_v14 = vpop.permute.xlu1 %6482 }
 0xb13   : > { %6507 = vst.msk [vmem:[#allocation3] sm:$0xff] %vm6506_vm7, %v6483_v14  ;;  %v6003_v15 = vpop.f32.mrb[4].mxu1 }
 0xb14   : > { %v6005_v46 = vpop.f32.mrb[5].mxu1 }
 0xb15   : > { %v6006_v43 = vpop.f32.mrb[6].mxu1  ;;  %v11172_v46 = vld [vmem:[%s14675_s11 + $0x3a0] ss:$8 sps:$4 sm:$0xff]  }
 0xb16   : > { %v6417_v34 = vpack.c.bf16 %v6006_v43, %v6003_v15  ;;  %v6008_v3 = vpop.f32.mrb[7].mxu1  ;;  %v11177_v43 = vld [vmem:[%s14675_s11 + $0x3b4] ss:$8 sps:$4 sm:$0xff]  }
 0xb18   : > { %6218 = vmatmul.mubr.bf16.gmra.mrb[112].mxu1 %v11148_v16  ;;  %6537 = vrot.lane.b32.xlu0 %v6417_v34, %s11538_s23  ;;  %s14758_s23 = sld [smem:[#allocation38_spill]] }
 0xb19   : > { %6225 = vmatprep.mubr.bf16.mxu1 %v11153_v4 }
 0xb1a   : > { %v6485_v22 = vpop.permute.xlu0 %6484 }
 0xb1b   : > { %6508 = vst.msk [vmem:[#allocation3 + $0x28] sm:$0xff] %vm6506_vm7, %v6485_v22  ;;  %v6011_v41 = vpop.f32.mrb[8].mxu1 }
 0xb1c   : > { %v6013_v30 = vpop.f32.mrb[9].mxu1 }
 0xb1d   : > { %v6014_v44 = vpop.f32.mrb[10].mxu1  ;;  %v11175_v30 = vld [vmem:[%s14675_s11 + $0x3b0] ss:$8 sps:$4 sm:$0xff]  }
 0xb1e   : > { %v6418_v1 = vpack.c.bf16 %v6014_v44, %v6011_v41  ;;  %v6016_v24 = vpop.f32.mrb[11].mxu1  ;;  %v11180_v44 = vld [vmem:[%s14675_s11 + $0x3c4] ss:$8 sps:$4 sm:$0xff]  }
 0xb20   : > { %6226 = vmatmul.mubr.bf16.gmra.mrb[116].mxu1 %v11151_v39  ;;  %6564 = vrot.lane.b32.xlu1 %v6418_v1, %s11539_s28 }
 0xb21   : > { %6233 = vmatprep.mubr.bf16.mxu1 %v11156_v53 }
 0xb22   : > { %v6487_v59 = vpop.permute.xlu0 %6486 }
 0xb23   : > { %6509 = vst.msk [vmem:[#allocation3 + $0x50] sm:$0xff] %vm6506_vm7, %v6487_v59  ;;  %v6019_v54 = vpop.f32.mrb[12].mxu1 }
 0xb24   : > { %v6021_v62 = vpop.f32.mrb[13].mxu1 }
 0xb25   : > { %v6022_v42 = vpop.f32.mrb[14].mxu1  ;;  %v11178_v62 = vld [vmem:[%s14675_s11 + $0x3c0] ss:$8 sps:$4 sm:$0xff]  }
 0xb26   : > { %v6419_v7 = vpack.c.bf16 %v6022_v42, %v6019_v54  ;;  %v6024_v27 = vpop.f32.mrb[15].mxu1  ;;  %v11183_v42 = vld [vmem:[%s14675_s11 + $0x3d4] ss:$8 sps:$4 sm:$0xff]  }
 0xb28   : > { %6234 = vmatmul.mubr.bf16.gmra.mrb[120].mxu1 %v11154_v63  ;;  %6566 = vrot.lane.b32.xlu0 %v6419_v7, %s11539_s28 }
 0xb29   : > { %6241 = vmatprep.mubr.bf16.mxu1 %v11159_v13 }
 0xb2a   : > { %v6489_v21 = vpop.permute.xlu0 %6488 }
 0xb2b   : > { %6510 = vst.msk [vmem:[#allocation3 + $0x78] sm:$0xff] %vm6506_vm7, %v6489_v21  ;;  %v6027_v5 = vpop.f32.mrb[16].mxu1 }
 0xb2c   : > { %v6029_v61 = vpop.f32.mrb[17].mxu1 }
 0xb2d   : > { %v6030_v26 = vpop.f32.mrb[18].mxu1  ;;  %v11181_v61 = vld [vmem:[%s14675_s11 + $0x3d0] ss:$8 sps:$4 sm:$0xff]  }
 0xb2e   : > { %v6420_v45 = vpack.c.bf16 %v6030_v26, %v6027_v5  ;;  %v6032_v37 = vpop.f32.mrb[19].mxu1  ;;  %v11186_v26 = vld [vmem:[%s14675_s11 + $0x3e4] ss:$8 sps:$4 sm:$0xff]  }
 0xb30   : > { %6242 = vmatmul.mubr.bf16.gmra.mrb[124].mxu1 %v11157_v6  ;;  %6568 = vrot.lane.b32.xlu1 %v6420_v45, %s11539_s28 }
 0xb31   : > { %6249 = vmatprep.mubr.bf16.mxu1 %v11162_v52 }
 0xb32   : > { %v6491_v23 = vpop.permute.xlu0 %6490 }
 0xb33   : > { %6511 = vst.msk [vmem:[#allocation3 + $0xa0] sm:$0xff] %vm6506_vm7, %v6491_v23  ;;  %v6035_v0 = vpop.f32.mrb[20].mxu1 }
 0xb34   : > { %v6037_v35 = vpop.f32.mrb[21].mxu1 }
 0xb35   : > { %v6038_v60 = vpop.f32.mrb[22].mxu1  ;;  %v11184_v35 = vld [vmem:[%s14675_s11 + $0x3e0] ss:$8 sps:$4 sm:$0xff]  }
 0xb36   : > { %v6421_v8 = vpack.c.bf16 %v6038_v60, %v6035_v0  ;;  %v6040_v10 = vpop.f32.mrb[23].mxu1  ;;  %v11189_v60 = vld [vmem:[%s14675_s11 + $0x3f4] ss:$8 sps:$4 sm:$0xff]  }
 0xb38   : > { %6250 = vmatmul.mubr.bf16.gmra.mrb[128].mxu1 %v11160_v17  ;;  %6570 = vrot.lane.b32.xlu0 %v6421_v8, %s11539_s28 }
 0xb39   : > { %6257 = vmatprep.mubr.bf16.mxu1 %v11165_v36 }
 0xb3a   : > { %v6493_v19 = vpop.permute.xlu0 %6492 }
 0xb3b   : > { %6512 = vst.msk [vmem:[#allocation3 + $0xc8] sm:$0xff] %vm6506_vm7, %v6493_v19  ;;  %v6043_v50 = vpop.f32.mrb[24].mxu1 }
 0xb3c   : > { %v6045_v20 = vpop.f32.mrb[25].mxu1 }
 0xb3d   : > { %v6046_v55 = vpop.f32.mrb[26].mxu1  ;;  %v11187_v20 = vld [vmem:[%s14675_s11 + $0x3f0] ss:$8 sps:$4 sm:$0xff]  }
 0xb3e   : > { %v6422_v11 = vpack.c.bf16 %v6046_v55, %v6043_v50  ;;  %v6048_v9 = vpop.f32.mrb[27].mxu1  ;;  %v11192_v55 = vld [vmem:[%s14675_s11 + $0x404] ss:$8 sps:$4 sm:$0xff]  }
 0xb40   : > { %6258 = vmatmul.mubr.bf16.gmra.mrb[132].mxu1 %v11163_v32  ;;  %6572 = vrot.lane.b32.xlu1 %v6422_v11, %s11539_s28 }
 0xb41   : > { %6265 = vmatprep.mubr.bf16.mxu1 %v11168_v38 }
 0xb42   : > { %v6495_v12 = vpop.permute.xlu0 %6494 }
 0xb43   : > { %6513 = vst.msk [vmem:[#allocation3 + $0xf0] sm:$0xff] %vm6506_vm7, %v6495_v12  ;;  %v6051_v49 = vpop.f32.mrb[28].mxu1 }
 0xb44   : > { %v6053_v18 = vpop.f32.mrb[29].mxu1 }
 0xb45   : > { %v6054_v29 = vpop.f32.mrb[30].mxu1  ;;  %v11190_v18 = vld [vmem:[%s14675_s11 + $0x400] ss:$8 sps:$4 sm:$0xff]  }
 0xb46   : > { %v6423_v58 = vpack.c.bf16 %v6054_v29, %v6051_v49  ;;  %v6056_v40 = vpop.f32.mrb[31].mxu1  ;;  %v11195_v29 = vld [vmem:[%s14675_s11 + $0x414] ss:$8 sps:$4 sm:$0xff]  }
 0xb48   : > { %6266 = vmatmul.mubr.bf16.gmra.mrb[136].mxu1 %v11166_v2  ;;  %6574 = vrot.lane.b32.xlu0 %v6423_v58, %s11539_s28 }
 0xb49   : > { %6273 = vmatprep.mubr.bf16.mxu1 %v11171_v25 }
 0xb4a   : > { %v6497_v57 = vpop.permute.xlu0 %6496 }
 0xb4b   : > { %6514 = vst.msk [vmem:[#allocation3 + $0x118] sm:$0xff] %vm6506_vm7, %v6497_v57  ;;  %v6059_v31 = vpop.f32.mrb[32].mxu1  ;;  %vm7804_vm7 = vcmask 654848  }
 0xb4c   : > { %v6061_v33 = vpop.f32.mrb[33].mxu1 }
 0xb4d   : > { %v6062_v47 = vpop.f32.mrb[34].mxu1  ;;  %v11193_v33 = vld [vmem:[%s14675_s11 + $0x410] ss:$8 sps:$4 sm:$0xff]  }
 0xb4e   : > { %v6424_v48 = vpack.c.bf16 %v6062_v47, %v6059_v31  ;;  %v6064_v14 = vpop.f32.mrb[35].mxu1  ;;  %v11198_v47 = vld [vmem:[%s14675_s11 + $0x424] ss:$8 sps:$4 sm:$0xff]  }
 0xb50   : > { %6274 = vmatmul.mubr.bf16.gmra.mrb[140].mxu1 %v11169_v56  ;;  %6576 = vrot.lane.b32.xlu1 %v6424_v48, %s11539_s28 }
 0xb51   : > { %6281 = vmatprep.mubr.bf16.mxu1 %v11174_v28 }
 0xb52   : > { %v6524_v15 = vpop.permute.xlu1 %6523 }
 0xb53   : > { %6548 = vst.msk [vmem:[#allocation3] sm:$0xff] %vm6547_vm8, %v6524_v15  ;;  %v6067_v16 = vpop.f32.mrb[36].mxu1 }
 0xb54   : > { %v6069_v4 = vpop.f32.mrb[37].mxu1 }
 0xb55   : > { %v6070_v34 = vpop.f32.mrb[38].mxu1  ;;  %v11196_v4 = vld [vmem:[%s14675_s11 + $0x420] ss:$8 sps:$4 sm:$0xff]  }
 0xb56   : > { %v6425_v3 = vpack.c.bf16 %v6070_v34, %v6067_v16  ;;  %v6072_v22 = vpop.f32.mrb[39].mxu1  ;;  %v11201_v34 = vld [vmem:[%s14675_s11 + $0x434] ss:$8 sps:$4 sm:$0xff]  }
 0xb58   : > { %6282 = vmatmul.mubr.bf16.gmra.mrb[144].mxu1 %v11172_v46  ;;  %6578 = vrot.lane.b32.xlu0 %v6425_v3, %s11539_s28 }
 0xb59   : > { %6289 = vmatprep.mubr.bf16.mxu1 %v11177_v43 }
 0xb5a   : > { %v6526_v41 = vpop.permute.xlu0 %6525 }
 0xb5b   : > { %6549 = vst.msk [vmem:[#allocation3 + $0x28] sm:$0xff] %vm6547_vm8, %v6526_v41  ;;  %v6075_v39 = vpop.f32.mrb[40].mxu1 }
 0xb5c   : > { %v6077_v53 = vpop.f32.mrb[41].mxu1 }
 0xb5d   : > { %v6078_v1 = vpop.f32.mrb[42].mxu1  ;;  %v11199_v53 = vld [vmem:[%s14675_s11 + $0x430] ss:$8 sps:$4 sm:$0xff]  }
 0xb5e   : > { %v6426_v24 = vpack.c.bf16 %v6078_v1, %v6075_v39  ;;  %v6080_v59 = vpop.f32.mrb[43].mxu1  ;;  %v11204_v1 = vld [vmem:[%s14675_s11 + $0x444] ss:$8 sps:$4 sm:$0xff]  }
 0xb60   : > { %6290 = vmatmul.mubr.bf16.gmra.mrb[148].mxu1 %v11175_v30  ;;  %6605 = vrot.lane.b32.xlu1 %v6426_v24, %s11529_s17 }
 0xb61   : > { %6297 = vmatprep.mubr.bf16.mxu1 %v11180_v44 }
 0xb62   : > { %v6528_v54 = vpop.permute.xlu1 %6527 }
 0xb63   : > { %6550 = vst.msk [vmem:[#allocation3 + $0x50] sm:$0xff] %vm6547_vm8, %v6528_v54  ;;  %v6083_v63 = vpop.f32.mrb[44].mxu1 }
 0xb64   : > { %v6085_v13 = vpop.f32.mrb[45].mxu1 }
 0xb65   : > { %v6086_v7 = vpop.f32.mrb[46].mxu1  ;;  %v11202_v13 = vld [vmem:[%s14675_s11 + $0x440] ss:$8 sps:$4 sm:$0xff]  }
 0xb66   : > { %v6427_v27 = vpack.c.bf16 %v6086_v7, %v6083_v63  ;;  %v6088_v21 = vpop.f32.mrb[47].mxu1  ;;  %v11207_v7 = vld [vmem:[%s14675_s11 + $0x454] ss:$8 sps:$4 sm:$0xff]  }
 0xb68   : > { %6298 = vmatmul.mubr.bf16.gmra.mrb[152].mxu1 %v11178_v62  ;;  %6607 = vrot.lane.b32.xlu0 %v6427_v27, %s11529_s17 }
 0xb69   : > { %6305 = vmatprep.mubr.bf16.mxu1 %v11183_v42 }
 0xb6a   : > { %v6530_v5 = vpop.permute.xlu0 %6529 }
 0xb6b   : > { %6551 = vst.msk [vmem:[#allocation3 + $0x78] sm:$0xff] %vm6547_vm8, %v6530_v5  ;;  %v6091_v6 = vpop.f32.mrb[48].mxu1 }
 0xb6c   : > { %v6093_v52 = vpop.f32.mrb[49].mxu1 }
 0xb6d   : > { %v6094_v45 = vpop.f32.mrb[50].mxu1  ;;  %v11205_v52 = vld [vmem:[%s14675_s11 + $0x450] ss:$8 sps:$4 sm:$0xff]  }
 0xb6e   : > { %v6428_v37 = vpack.c.bf16 %v6094_v45, %v6091_v6  ;;  %v6096_v23 = vpop.f32.mrb[51].mxu1  ;;  %v11210_v45 = vld [vmem:[%s14675_s11 + $0x464] ss:$8 sps:$4 sm:$0xff]  }
 0xb70   : > { %6306 = vmatmul.mubr.bf16.gmra.mrb[156].mxu1 %v11181_v61  ;;  %6609 = vrot.lane.b32.xlu1 %v6428_v37, %s11529_s17 }
 0xb71   : > { %6313 = vmatprep.mubr.bf16.mxu1 %v11186_v26 }
 0xb72   : > { %v6532_v0 = vpop.permute.xlu1 %6531 }
 0xb73   : > { %6552 = vst.msk [vmem:[#allocation3 + $0xa0] sm:$0xff] %vm6547_vm8, %v6532_v0  ;;  %v6099_v17 = vpop.f32.mrb[52].mxu1 }
 0xb74   : > { %v6101_v36 = vpop.f32.mrb[53].mxu1 }
 0xb75   : > { %v6102_v8 = vpop.f32.mrb[54].mxu1  ;;  %v11208_v36 = vld [vmem:[%s14675_s11 + $0x460] ss:$8 sps:$4 sm:$0xff]  }
 0xb76   : > { %v6429_v10 = vpack.c.bf16 %v6102_v8, %v6099_v17  ;;  %v6104_v19 = vpop.f32.mrb[55].mxu1  ;;  %v11213_v8 = vld [vmem:[%s14675_s11 + $0x474] ss:$8 sps:$4 sm:$0xff]  }
 0xb78   : > { %6314 = vmatmul.mubr.bf16.gmra.mrb[160].mxu1 %v11184_v35  ;;  %6611 = vrot.lane.b32.xlu0 %v6429_v10, %s11529_s17 }
 0xb79   : > { %6321 = vmatprep.mubr.bf16.mxu1 %v11189_v60 }
 0xb7a   : > { %v6534_v50 = vpop.permute.xlu0 %6533 }
 0xb7b   : > { %6553 = vst.msk [vmem:[#allocation3 + $0xc8] sm:$0xff] %vm6547_vm8, %v6534_v50  ;;  %v6107_v32 = vpop.f32.mrb[56].mxu1 }
 0xb7c   : > { %v6109_v38 = vpop.f32.mrb[57].mxu1 }
 0xb7d   : > { %v6110_v11 = vpop.f32.mrb[58].mxu1  ;;  %v11211_v38 = vld [vmem:[%s14675_s11 + $0x470] ss:$8 sps:$4 sm:$0xff]  }
 0xb7e   : > { %v6430_v9 = vpack.c.bf16 %v6110_v11, %v6107_v32  ;;  %v6112_v12 = vpop.f32.mrb[59].mxu1 }
 0xb80   : > { %6322 = vmatmul.mubr.bf16.gmra.mrb[164].mxu1 %v11187_v20  ;;  %6613 = vrot.lane.b32.xlu1 %v6430_v9, %s11529_s17 }
 0xb81   : > { %6329 = vmatprep.mubr.bf16.mxu1 %v11192_v55 }
 0xb82   : > { %v6536_v49 = vpop.permute.xlu1 %6535 }
 0xb83   : > { %6554 = vst.msk [vmem:[#allocation3 + $0xf0] sm:$0xff] %vm6547_vm8, %v6536_v49  ;;  %v6115_v2 = vpop.f32.mrb[60].mxu1 }
 0xb84   : > { %v6117_v25 = vpop.f32.mrb[61].mxu1 }
 0xb85   : > { %v6118_v58 = vpop.f32.mrb[62].mxu1 }
 0xb86   : > { %v6431_v40 = vpack.c.bf16 %v6118_v58, %v6115_v2  ;;  %v6120_v57 = vpop.f32.mrb[63].mxu1 }
 0xb88   : > { %6330 = vmatmul.mubr.bf16.gmra.mrb[168].mxu1 %v11190_v18  ;;  %6615 = vrot.lane.b32.xlu0 %v6431_v40, %s11529_s17 }
 0xb89   : > { %6337 = vmatprep.mubr.bf16.mxu1 %v11195_v29 }
 0xb8a   : > { %v6538_v31 = vpop.permute.xlu0 %6537 }
 0xb8b   : > { %6555 = vst.msk [vmem:[#allocation3 + $0x118] sm:$0xff] %vm6547_vm8, %v6538_v31  ;;  %v6123_v56 = vpop.f32.mrb[64].mxu1  ;;  %vm7825_vm8 = vcmask 786048  }
 0xb8c   : > { %v6125_v28 = vpop.f32.mrb[65].mxu1 }
 0xb8d   : > { %v6126_v48 = vpop.f32.mrb[66].mxu1 }
 0xb8e   : > { %v6432_v14 = vpack.c.bf16 %v6126_v48, %v6123_v56  ;;  %v6128_v15 = vpop.f32.mrb[67].mxu1 }
 0xb90   : > { %6338 = vmatmul.mubr.bf16.gmra.mrb[172].mxu1 %v11193_v33  ;;  %6617 = vrot.lane.b32.xlu1 %v6432_v14, %s11529_s17 }
 0xb91   : > { %6345 = vmatprep.mubr.bf16.mxu1 %v11198_v47 }
 0xb92   : > { %v6565_v16 = vpop.permute.xlu1 %6564 }
 0xb93   : > { %6589 = vst.msk [vmem:[#allocation3] sm:$0xff] %vm6588_vm9, %v6565_v16  ;;  %v13999_v46 = vpop.f32.mrb[68].mxu1 }
 0xb94   : > { %v6133_v43 = vpop.f32.mrb[69].mxu1 }
 0xb95   : > { %v14007_v3 = vpop.f32.mrb[70].mxu1 }
 0xb96   : > { %v6433_v22 = vpack.c.bf16 %v14007_v3, %v13999_v46  ;;  %v6136_v41 = vpop.f32.mrb[71].mxu1 }
 0xb98   : > { %6346 = vmatmul.mubr.bf16.gmra.mrb[176].mxu1 %v11196_v4 }
 0xb99   : > { %6353 = vmatprep.mubr.bf16.mxu1 %v11201_v34 }
 0xb9a   : > { %v6567_v39 = vpop.permute.xlu0 %6566 }
 0xb9b   : > { %6590 = vst.msk [vmem:[#allocation3 + $0x28] sm:$0xff] %vm6588_vm9, %v6567_v39  ;;  %v6139_v30 = vpop.f32.mrb[72].mxu1 }
 0xb9c   : > { %v6141_v44 = vpop.f32.mrb[73].mxu1 }
 0xb9d   : > { %v6142_v24 = vpop.f32.mrb[74].mxu1 }
 0xb9e   : > { %v6434_v59 = vpack.c.bf16 %v6142_v24, %v6139_v30  ;;  %v6144_v54 = vpop.f32.mrb[75].mxu1 }
 0xba0   : > { %6354 = vmatmul.mubr.bf16.gmra.mrb[180].mxu1 %v11199_v53  ;;  %6646 = vrot.lane.b32.xlu1 %v6434_v59, %s11540_s25 }
 0xba1   : > { %6361 = vmatprep.mubr.bf16.mxu1 %v11204_v1 }
 0xba2   : > { %v6569_v63 = vpop.permute.xlu1 %6568 }
 0xba3   : > { %6591 = vst.msk [vmem:[#allocation3 + $0x50] sm:$0xff] %vm6588_vm9, %v6569_v63  ;;  %v6147_v62 = vpop.f32.mrb[76].mxu1 }
 0xba4   : > { %v6149_v42 = vpop.f32.mrb[77].mxu1 }
 0xba5   : > { %v6150_v27 = vpop.f32.mrb[78].mxu1 }
 0xba6   : > { %v6435_v21 = vpack.c.bf16 %v6150_v27, %v6147_v62  ;;  %v6152_v5 = vpop.f32.mrb[79].mxu1 }
 0xba8   : > { %6362 = vmatmul.mubr.bf16.gmra.mrb[184].mxu1 %v11202_v13  ;;  %6648 = vrot.lane.b32.xlu0 %v6435_v21, %s11540_s25 }
 0xba9   : > { %6369 = vmatprep.mubr.bf16.mxu1 %v11207_v7 }
 0xbaa   : > { %v6571_v6 = vpop.permute.xlu0 %6570 }
 0xbab   : > { %v6155_v61 = vpop.f32.mrb[80].mxu1  ;;  %6592 = vst.msk [vmem:[#allocation3 + $0x78] sm:$0xff] %vm6588_vm9, %v6571_v6 }
 0xbac   : > { %v6157_v26 = vpop.f32.mrb[81].mxu1 }
 0xbad   : > { %v6158_v37 = vpop.f32.mrb[82].mxu1 }
 0xbae   : > { %v6436_v23 = vpack.c.bf16 %v6158_v37, %v6155_v61  ;;  %v6160_v0 = vpop.f32.mrb[83].mxu1 }
 0xbb0   : > { %6370 = vmatmul.mubr.bf16.gmra.mrb[188].mxu1 %v11205_v52  ;;  %6650 = vrot.lane.b32.xlu1 %v6436_v23, %s11540_s25 }
 0xbb1   : > { %6377 = vmatprep.mubr.bf16.mxu1 %v11210_v45 }
 0xbb2   : > { %v6573_v17 = vpop.permute.xlu1 %6572 }
 0xbb3   : > { %v6163_v35 = vpop.f32.mrb[84].mxu1  ;;  %6593 = vst.msk [vmem:[#allocation3 + $0xa0] sm:$0xff] %vm6588_vm9, %v6573_v17 }
 0xbb4   : > { %v6165_v60 = vpop.f32.mrb[85].mxu1 }
 0xbb5   : > { %v6166_v10 = vpop.f32.mrb[86].mxu1 }
 0xbb6   : > { %v6437_v19 = vpack.c.bf16 %v6166_v10, %v6163_v35  ;;  %v6168_v50 = vpop.f32.mrb[87].mxu1 }
 0xbb8   : > { %6378 = vmatmul.mubr.bf16.gmra.mrb[192].mxu1 %v11208_v36  ;;  %6652 = vrot.lane.b32.xlu0 %v6437_v19, %s11540_s25 }
 0xbb9   : > { %6385 = vmatprep.mubr.bf16.mxu1 %v11213_v8 }
 0xbba   : > { %v6575_v32 = vpop.permute.xlu0 %6574 }
 0xbbb   : > { %v6171_v20 = vpop.f32.mrb[88].mxu1  ;;  %6594 = vst.msk [vmem:[#allocation3 + $0xc8] sm:$0xff] %vm6588_vm9, %v6575_v32 }
 0xbbc   : > { %v6173_v55 = vpop.f32.mrb[89].mxu1 }
 0xbbd   : > { %v6174_v11 = vpop.f32.mrb[90].mxu1 }
 0xbbe   : > { %v6438_v9 = vpack.c.bf16 %v6174_v11, %v6171_v20  ;;  %v6176_v12 = vpop.f32.mrb[91].mxu1 }
 0xbc0   : > { %6386 = vmatmul.mubr.bf16.gmra.mrb[196].mxu1 %v11211_v38  ;;  %6654 = vrot.lane.b32.xlu1 %v6438_v9, %s11540_s25 }
 0xbc2   : > { %v6577_v49 = vpop.permute.xlu1 %6576 }
 0xbc3   : > { %v6179_v2 = vpop.f32.mrb[92].mxu1  ;;  %6595 = vst.msk [vmem:[#allocation3 + $0xf0] sm:$0xff] %vm6588_vm9, %v6577_v49 }
 0xbc4   : > { %v6181_v18 = vpop.f32.mrb[93].mxu1 }
 0xbc5   : > { %v6182_v25 = vpop.f32.mrb[94].mxu1 }
 0xbc6   : > { %v6439_v29 = vpack.c.bf16 %v6182_v25, %v6179_v2  ;;  %v6184_v58 = vpop.f32.mrb[95].mxu1 }
 0xbc8   : > { %6656 = vrot.lane.b32.xlu0 %v6439_v29, %s11540_s25 }
 0xbca   : > { %v6579_v40 = vpop.permute.xlu0 %6578 }
 0xbcb   : > { %v14050_v57 = vpop.f32.mrb[96].mxu1  ;;  %6596 = vst.msk [vmem:[#allocation3 + $0x118] sm:$0xff] %vm6588_vm9, %v6579_v40  ;;  %vm7846_vm9 = vcmask 917248  }
 0xbcc   : > { %v6189_v31 = vpop.f32.mrb[97].mxu1 }
 0xbcd   : > { %v14053_v56 = vpop.f32.mrb[98].mxu1 }
 0xbce   : > { %v6440_v33 = vpack.c.bf16 %v14053_v56, %v14050_v57  ;;  %v6192_v28 = vpop.f32.mrb[99].mxu1 }
 0xbd2   : > { %v6606_v47 = vpop.permute.xlu1 %6605 }
 0xbd3   : > { %v14057_v48 = vpop.f32.mrb[100].mxu1  ;;  %6630 = vst.msk [vmem:[#allocation3] sm:$0xff] %vm6629_vm10, %v6606_v47 }
 0xbd4   : > { %v6197_v14 = vpop.f32.mrb[101].mxu1 }
 0xbd5   : > { %v14060_v15 = vpop.f32.mrb[102].mxu1 }
 0xbd6   : > { %v6441_v16 = vpack.c.bf16 %v14060_v15, %v14057_v48  ;;  %v6200_v4 = vpop.f32.mrb[103].mxu1 }
 0xbda   : > { %v6608_v43 = vpop.permute.xlu0 %6607 }
 0xbdb   : > { %v6203_v34 = vpop.f32.mrb[104].mxu1  ;;  %6631 = vst.msk [vmem:[#allocation3 + $0x28] sm:$0xff] %vm6629_vm10, %v6608_v43 }
 0xbdc   : > { %v6205_v41 = vpop.f32.mrb[105].mxu1 }
 0xbdd   : > { %v6206_v39 = vpop.f32.mrb[106].mxu1 }
 0xbde   : > { %v6442_v30 = vpack.c.bf16 %v6206_v39, %v6203_v34  ;;  %v6208_v53 = vpop.f32.mrb[107].mxu1 }
 0xbe0   : > { %6687 = vrot.lane.b32.xlu1 %v6442_v30, %s11541_s24 }
 0xbe2   : > { %v6610_v44 = vpop.permute.xlu1 %6609 }
 0xbe3   : > { %v6211_v1 = vpop.f32.mrb[108].mxu1  ;;  %6632 = vst.msk [vmem:[#allocation3 + $0x50] sm:$0xff] %vm6629_vm10, %v6610_v44 }
 0xbe4   : > { %v6213_v24 = vpop.f32.mrb[109].mxu1 }
 0xbe5   : > { %v6214_v59 = vpop.f32.mrb[110].mxu1 }
 0xbe6   : > { %v6443_v54 = vpack.c.bf16 %v6214_v59, %v6211_v1  ;;  %v6216_v63 = vpop.f32.mrb[111].mxu1 }
 0xbe8   : > { %6689 = vrot.lane.b32.xlu0 %v6443_v54, %s11541_s24 }
 0xbea   : > { %v6612_v62 = vpop.permute.xlu0 %6611 }
 0xbeb   : > { %v6219_v13 = vpop.f32.mrb[112].mxu1  ;;  %6633 = vst.msk [vmem:[#allocation3 + $0x78] sm:$0xff] %vm6629_vm10, %v6612_v62 }
 0xbec   : > { %v6221_v42 = vpop.f32.mrb[113].mxu1 }
 0xbed   : > { %v6222_v7 = vpop.f32.mrb[114].mxu1 }
 0xbee   : > { %v6444_v27 = vpack.c.bf16 %v6222_v7, %v6219_v13  ;;  %v6224_v21 = vpop.f32.mrb[115].mxu1 }
 0xbf0   : > { %6691 = vrot.lane.b32.xlu1 %v6444_v27, %s11541_s24 }
 0xbf2   : > { %v6614_v5 = vpop.permute.xlu1 %6613 }
 0xbf3   : > { %v6227_v6 = vpop.f32.mrb[116].mxu1  ;;  %6634 = vst.msk [vmem:[#allocation3 + $0xa0] sm:$0xff] %vm6629_vm10, %v6614_v5 }
 0xbf4   : > { %v6229_v61 = vpop.f32.mrb[117].mxu1 }
 0xbf5   : > { %v6230_v52 = vpop.f32.mrb[118].mxu1 }
 0xbf6   : > { %v6445_v26 = vpack.c.bf16 %v6230_v52, %v6227_v6  ;;  %v6232_v45 = vpop.f32.mrb[119].mxu1 }
 0xbf8   : > { %6693 = vrot.lane.b32.xlu0 %v6445_v26, %s11541_s24 }
 0xbfa   : > { %v6616_v37 = vpop.permute.xlu0 %6615 }
 0xbfb   : > { %v6235_v23 = vpop.f32.mrb[120].mxu1  ;;  %6635 = vst.msk [vmem:[#allocation3 + $0xc8] sm:$0xff] %vm6629_vm10, %v6616_v37 }
 0xbfc   : > { %v6237_v0 = vpop.f32.mrb[121].mxu1 }
 0xbfd   : > { %v6238_v17 = vpop.f32.mrb[122].mxu1  ;;  %v11214_v0 = vld [vmem:[%s14674_s10] sm:$0xff]  }
 0xbfe   : > { %v6446_v35 = vpack.c.bf16 %v6238_v17, %v6235_v23  ;;  %v6240_v36 = vpop.f32.mrb[123].mxu1  ;;  %10364 = vmatprep.subr.bf16.mxu0 %v11214_v0 }
 0xbff   : > { %10365 = vmatpush3.bf16.msra.mxu0 %v11214_v0  ;;  %v6823_v0 = vld [vmem:[%s14676_s12 + $0x40] sm:$0xff] }
 0xc00   : > { %6695 = vrot.lane.b32.xlu1 %v6446_v35, %s11541_s24 }
 0xc02   : > { %v6618_v60 = vpop.permute.xlu1 %6617 }
 0xc03   : > { %v6243_v8 = vpop.f32.mrb[124].mxu1  ;;  %6636 = vst.msk [vmem:[#allocation3 + $0xf0] sm:$0xff] %vm6629_vm10, %v6618_v60 }
 0xc04   : > { %v6245_v10 = vpop.f32.mrb[125].mxu1 }
 0xc05   : > { %v6246_v19 = vpop.f32.mrb[126].mxu1  ;;  %v11215_v10 = vld [vmem:[%s14674_s10 + $0x8] sm:$0xff]  }
 0xc06   : > { %v6447_v50 = vpack.c.bf16 %v6246_v19, %v6243_v8  ;;  %v6248_v32 = vpop.f32.mrb[127].mxu1  ;;  %10366 = vmatprep.subr.bf16.mxu0 %v11215_v10 }
 0xc07   : > { %10367 = vmatpush3.bf16.msra.mxu0 %v11215_v10  ;;  %v6827_v10 = vld [vmem:[%s14676_s12 + $0x60] sm:$0xff] }
 0xc08   : > { %6697 = vrot.lane.b32.xlu0 %v6447_v50, %s11541_s24  ;;  %v11216_v50 = vld [vmem:[%s14674_s10 + $0x10] ss:$0 sps:$4 sm:$0x33]  }
 0xc09   : > { %10529 = vmatprep.subr.msk.bf16.mxu0 %vm6951_vm13, %v11216_v50 }
 0xc0b   : > { %v6251_v20 = vpop.f32.mrb[128].mxu1 }
 0xc0c   : > { %v6253_v38 = vpop.f32.mrb[129].mxu1 }
 0xc0d   : > { %v6254_v55 = vpop.f32.mrb[130].mxu1 }
 0xc0e   : > { %v6448_v11 = vpack.c.bf16 %v6254_v55, %v6251_v20  ;;  %v6256_v9 = vpop.f32.mrb[131].mxu1 }
 0xc12   : > { %v6647_v12 = vpop.permute.xlu1 %6646 }
 0xc13   : > { %v6259_v49 = vpop.f32.mrb[132].mxu1  ;;  %6671 = vst.msk [vmem:[#allocation3] sm:$0xff] %vm6670_vm11, %v6647_v12 }
 0xc14   : > { %v6261_v2 = vpop.f32.mrb[133].mxu1 }
 0xc15   : > { %v6262_v18 = vpop.f32.mrb[134].mxu1 }
 0xc16   : > { %v6449_v25 = vpack.c.bf16 %v6262_v18, %v6259_v49  ;;  %v6264_v29 = vpop.f32.mrb[135].mxu1 }
 0xc1a   : > { %v6649_v58 = vpop.permute.xlu0 %6648 }
 0xc1b   : > { %v6267_v40 = vpop.f32.mrb[136].mxu1  ;;  %6672 = vst.msk [vmem:[#allocation3 + $0x28] sm:$0xff] %vm6670_vm11, %v6649_v58 }
 0xc1c   : > { %v6269_v31 = vpop.f32.mrb[137].mxu1 }
 0xc1d   : > { %v6270_v28 = vpop.f32.mrb[138].mxu1 }
 0xc1e   : > { %v6450_v47 = vpack.c.bf16 %v6270_v28, %v6267_v40  ;;  %v6272_v14 = vpop.f32.mrb[139].mxu1 }
 0xc20   : > { %6728 = vrot.lane.b32.xlu1 %v6450_v47, %s11542_s0 }
 0xc22   : > { %v6651_v4 = vpop.permute.xlu1 %6650 }
 0xc23   : > { %v6275_v43 = vpop.f32.mrb[140].mxu1  ;;  %6673 = vst.msk [vmem:[#allocation3 + $0x50] sm:$0xff] %vm6670_vm11, %v6651_v4 }
 0xc24   : > { %6658 = vrot.lane.b32.xlu1 %v6440_v33, %s11540_s25  ;;  %v6277_v34 = vpop.f32.mrb[141].mxu1 }
 0xc25   : > { %v6278_v41 = vpop.f32.mrb[142].mxu1 }
 0xc26   : > { %v6451_v39 = vpack.c.bf16 %v6278_v41, %v6275_v43  ;;  %v6280_v30 = vpop.f32.mrb[143].mxu1 }
 0xc28   : > { %6730 = vrot.lane.b32.xlu0 %v6451_v39, %s11542_s0 }
 0xc2a   : > { %v6653_v53 = vpop.permute.xlu0 %6652 }
 0xc2b   : > { %v6283_v44 = vpop.f32.mrb[144].mxu1  ;;  %6674 = vst.msk [vmem:[#allocation3 + $0x78] sm:$0xff] %vm6670_vm11, %v6653_v53 }
 0xc2c   : > { %6619 = vrot.lane.b32.xlu0 %v6433_v22, %s11529_s17  ;;  %v6285_v1 = vpop.f32.mrb[145].mxu1 }
 0xc2d   : > { %v6286_v24 = vpop.f32.mrb[146].mxu1 }
 0xc2e   : > { %v6452_v59 = vpack.c.bf16 %v6286_v24, %v6283_v44  ;;  %v6288_v57 = vpop.f32.mrb[147].mxu1 }
 0xc30   : > { %6732 = vrot.lane.b32.xlu1 %v6452_v59, %s11542_s0 }
 0xc32   : > { %v6655_v56 = vpop.permute.xlu1 %6654 }
 0xc33   : > { %v6291_v33 = vpop.f32.mrb[148].mxu1  ;;  %6675 = vst.msk [vmem:[#allocation3 + $0xa0] sm:$0xff] %vm6670_vm11, %v6655_v56 }
 0xc34   : > { %v6293_v54 = vpop.f32.mrb[149].mxu1  ;;  %6699 = vrot.lane.b32.xlu1 %v6448_v11, %s11541_s24  ;;  %v6953_v11 = vsel %vm6951_vm13, %v11216_v50, 0 }
 0xc35   : > { %v6294_v63 = vpop.f32.mrb[150].mxu1  ;;  %10369 = vmatpush3.bf16.msra.mxu0 %v6953_v11 }
 0xc36   : > { %v6453_v62 = vpack.c.bf16 %v6294_v63, %v6291_v33  ;;  %v6296_v13 = vpop.f32.mrb[151].mxu1 }
 0xc38   : > { %6734 = vrot.lane.b32.xlu0 %v6453_v62, %s11542_s0 }
 0xc3a   : > { %v6657_v46 = vpop.permute.xlu0 %6656 }
 0xc3b   : > { %v6299_v3 = vpop.f32.mrb[152].mxu1  ;;  %6676 = vst.msk [vmem:[#allocation3 + $0xc8] sm:$0xff] %vm6670_vm11, %v6657_v46 }
 0xc3c   : > { %6660 = vrot.lane.b32.xlu0 %v6441_v16, %s11540_s25  ;;  %v6301_v22 = vpop.f32.mrb[153].mxu1  ;;  %s14753_s25 = smov 80  }
 0xc3d   : > { %v6302_v42 = vpop.f32.mrb[154].mxu1 }
 0xc3e   : > { %v6454_v7 = vpack.c.bf16 %v6302_v42, %v6299_v3  ;;  %v6304_v27 = vpop.f32.mrb[155].mxu1  ;;  %v6815_v42 = vld [vmem:[%s14676_s12] sm:$0xff] }
 0xc40   : > { %6736 = vrot.lane.b32.xlu1 %v6454_v7, %s11542_s0 }
 0xc43   : > { %v6307_v21 = vpop.f32.mrb[156].mxu1 }
 0xc44   : > { %v6309_v5 = vpop.f32.mrb[157].mxu1 }
 0xc45   : > { %v6310_v6 = vpop.f32.mrb[158].mxu1 }
 0xc46   : > { %v6455_v61 = vpack.c.bf16 %v6310_v6, %v6307_v21  ;;  %v6312_v52 = vpop.f32.mrb[159].mxu1  ;;  %v6817_v6 = vld [vmem:[%s14676_s12 + $0x10] sm:$0xff] }
 0xc48   : > { %6738 = vrot.lane.b32.xlu0 %v6455_v61, %s11542_s0 }
 0xc4b   : > { %v14101_v26 = vpop.f32.mrb[160].mxu1 }
 0xc4c   : > { %6701 = vrot.lane.b32.xlu0 %v6449_v25, %s11541_s24  ;;  %v6317_v45 = vpop.f32.mrb[161].mxu1 }
 0xc4d   : > { %v14104_v48 = vpop.f32.mrb[162].mxu1  ;;  %v6819_v45 = vld [vmem:[%s14676_s12 + $0x20] sm:$0xff] }
 0xc4e   : > { %v6456_v15 = vpack.c.bf16 %v14104_v48, %v14101_v26  ;;  %v6320_v16 = vpop.f32.mrb[163].mxu1  ;;  %v6816_v48 = vld [vmem:[%s14676_s12 + $0x8] sm:$0xff] }
 0xc4f   : > { %v6821_v16 = vld [vmem:[%s14676_s12 + $0x30] sm:$0xff] }
 0xc52   : > { %v6688_v37 = vpop.permute.xlu1 %6687 }
 0xc53   : > { %v6323_v23 = vpop.f32.mrb[164].mxu1  ;;  %6712 = vst.msk [vmem:[#allocation3] sm:$0xff] %vm6711_vm12, %v6688_v37  ;;  %v6818_v37 = vld [vmem:[%s14676_s12 + $0x18] sm:$0xff] }
 0xc54   : > { %v6325_v17 = vpop.f32.mrb[165].mxu1 }
 0xc55   : > { %v6326_v35 = vpop.f32.mrb[166].mxu1  ;;  %v6820_v17 = vld [vmem:[%s14676_s12 + $0x28] sm:$0xff] }
 0xc56   : > { %v6457_v36 = vpack.c.bf16 %v6326_v35, %v6323_v23  ;;  %v6328_v60 = vpop.f32.mrb[167].mxu1 }
 0xc57   : > { %v6822_v60 = vld [vmem:[%s14676_s12 + $0x38] sm:$0xff] }
 0xc58   : > { %6742 = vrot.lane.b32.xlu0 %v6457_v36, %s11542_s0  ;;  %v6825_v36 = vld [vmem:[%s14676_s12 + $0x50] sm:$0xff] }
 0xc5a   : > { %v6690_v8 = vpop.permute.xlu0 %6689 }
 0xc5b   : > { %v6331_v19 = vpop.f32.mrb[168].mxu1  ;;  %6713 = vst.msk [vmem:[#allocation3 + $0x28] sm:$0xff] %vm6711_vm12, %v6690_v8 }
 0xc5c   : > { %v6333_v32 = vpop.f32.mrb[169].mxu1 }
 0xc5d   : > { %v6334_v20 = vpop.f32.mrb[170].mxu1  ;;  %v6829_v32 = vld [vmem:[%s14676_s12 + $0x70] sm:$0xff] }
 0xc5e   : > { %v6458_v38 = vpack.c.bf16 %v6334_v20, %v6331_v19  ;;  %v6336_v55 = vpop.f32.mrb[171].mxu1  ;;  %v6824_v19 = vld [vmem:[%s14676_s12 + $0x48] sm:$0xff]  ;;  %v6826_v20 = vld [vmem:[%s14676_s12 + $0x58] sm:$0xff] }
 0xc5f   : > { %v6828_v55 = vld [vmem:[%s14676_s12 + $0x68] sm:$0xff] }
 0xc60   : > { %6769 = vrot.lane.b32.xlu1 %v6458_v38, %s11528_s15 }
 0xc62   : > { %v6692_v9 = vpop.permute.xlu1 %6691 }
 0xc63   : > { %v6339_v12 = vpop.f32.mrb[172].mxu1  ;;  %6714 = vst.msk [vmem:[#allocation3 + $0x50] sm:$0xff] %vm6711_vm12, %v6692_v9  ;;  %v6830_v9 = vld [vmem:[%s14676_s12 + $0x78] sm:$0xff] }
 0xc64   : > { %v6341_v49 = vpop.f32.mrb[173].mxu1 }
 0xc65   : > { %v6342_v2 = vpop.f32.mrb[174].mxu1 }
 0xc66   : > { %v6459_v18 = vpack.c.bf16 %v6342_v2, %v6339_v12  ;;  %v6344_v25 = vpop.f32.mrb[175].mxu1 }
 0xc68   : > { %6771 = vrot.lane.b32.xlu1 %v6459_v18, %s11528_s15 }
 0xc6a   : > { %v6694_v29 = vpop.permute.xlu0 %6693 }
 0xc6b   : > { %v6347_v58 = vpop.f32.mrb[176].mxu1  ;;  %6715 = vst.msk [vmem:[#allocation3 + $0x78] sm:$0xff] %vm6711_vm12, %v6694_v29 }
 0xc6c   : > { %v6349_v40 = vpop.f32.mrb[177].mxu1 }
 0xc6d   : > { %v6350_v31 = vpop.f32.mrb[178].mxu1 }
 0xc6e   : > { %v6460_v28 = vpack.c.bf16 %v6350_v31, %v6347_v58  ;;  %v6352_v47 = vpop.f32.mrb[179].mxu1 }
 0xc70   : > { %6773 = vrot.lane.b32.xlu1 %v6460_v28, %s11528_s15 }
 0xc72   : > { %v6696_v14 = vpop.permute.xlu1 %6695 }
 0xc73   : > { %v6355_v4 = vpop.f32.mrb[180].mxu1  ;;  %6716 = vst.msk [vmem:[#allocation3 + $0xa0] sm:$0xff] %vm6711_vm12, %v6696_v14 }
 0xc74   : > { %v6357_v43 = vpop.f32.mrb[181].mxu1 }
 0xc75   : > { %v6358_v34 = vpop.f32.mrb[182].mxu1 }
 0xc76   : > { %v6461_v41 = vpack.c.bf16 %v6358_v34, %v6355_v4  ;;  %v6360_v39 = vpop.f32.mrb[183].mxu1 }
 0xc78   : > { %6775 = vrot.lane.b32.xlu1 %v6461_v41, %s11528_s15 }
 0xc7a   : > { %v6698_v30 = vpop.permute.xlu0 %6697 }
 0xc7b   : > { %v6363_v53 = vpop.f32.mrb[184].mxu1  ;;  %6717 = vst.msk [vmem:[#allocation3 + $0xc8] sm:$0xff] %vm6711_vm12, %v6698_v30 }
 0xc7c   : > { %v6365_v44 = vpop.f32.mrb[185].mxu1 }
 0xc7d   : > { %v6366_v1 = vpop.f32.mrb[186].mxu1 }
 0xc7e   : > { %v6462_v24 = vpack.c.bf16 %v6366_v1, %v6363_v53  ;;  %v6368_v59 = vpop.f32.mrb[187].mxu1  ;;  %v11217_v1 = vld [vmem:[#allocation9] sm:$0xff]  }
 0xc80   : > { %6777 = vrot.lane.b32.xlu1 %v6462_v24, %s11528_s15 }
 0xc83   : > { %v6371_v57 = vpop.f32.mrb[188].mxu1 }
 0xc84   : > { %v6373_v56 = vpop.f32.mrb[189].mxu1 }
 0xc85   : > { %v6374_v33 = vpop.f32.mrb[190].mxu1 }
 0xc86   : > { %v6463_v54 = vpack.c.bf16 %v6374_v33, %v6371_v57  ;;  %v6376_v63 = vpop.f32.mrb[191].mxu1 }
 0xc88   : > { %6779 = vrot.lane.b32.xlu1 %v6463_v54, %s11528_s15 }
 0xc8b   : > { %v6379_v62 = vpop.f32.mrb[192].mxu1 }
 0xc8c   : > { %6740 = vrot.lane.b32.xlu1 %v6456_v15, %s11542_s0  ;;  %v6381_v13 = vpop.f32.mrb[193].mxu1 }
 0xc8d   : > { %v6382_v46 = vpop.f32.mrb[194].mxu1 }
 0xc8e   : > { %v6464_v3 = vpack.c.bf16 %v6382_v46, %v6379_v62  ;;  %v6384_v22 = vpop.f32.mrb[195].mxu1 }
 0xc90   : > { %6781 = vrot.lane.b32.xlu1 %v6464_v3, %s11528_s15 }
 0xc92   : > { %v6729_v7 = vpop.permute.xlu1 %6728 }
 0xc93   : > { %6753 = vst.msk [vmem:[#allocation3] sm:$0xff] %vm6752_vm14, %v6729_v7  ;;  %v6387_v27 = vpop.f32.mrb[196].mxu1 }
 0xc94   : > { %6833 = vperm.xlu1 %10606, %v6815_v42   ;;  %v6389_v21 = vpop.f32.mrb[197].mxu1 }
 0xc95   : > { %v6390_v5 = vpop.f32.mrb[198].mxu1 }
 0xc96   : > { %v6465_v61 = vpack.c.bf16 %v6390_v5, %v6387_v27  ;;  %v6659_v52 = vpop.permute.xlu1 %6658  ;;  %v6392_v26 = vpop.f32.mrb[199].mxu1 }
 0xc97   : > { %6677 = vst.msk [vmem:[#allocation3 + $0xf0] sm:$0xff] %vm6670_vm11, %v6659_v52 }
 0xc98   : > { %6843 = vperm.xlu1 %10606, %v6817_v6   ;;  %6783 = vrot.lane.b32.xlu0 %v6465_v61, %s11528_s15 }
 0xc9a   : > { %v6731_v15 = vpop.permute.xlu0 %6730 }
 0xc9b   : > { %6754 = vst.msk [vmem:[#allocation3 + $0x28] sm:$0xff] %vm6752_vm14, %v6731_v15 }
 0xc9c   : > { %6853 = vperm.xlu1 %10606, %v6819_v45   ;;  %6838 = vperm.xlu0 %10605, %v6816_v48  }
 0xc9e   : > { %v6620_v23 = vpop.permute.xlu0 %6619 }
 0xc9f   : > { %6637 = vst.msk [vmem:[#allocation3 + $0x118] sm:$0xff] %vm6629_vm10, %v6620_v23  ;;  %vm7867_vm10 = vcmask 1048448  }
 0xca0   : > { %6863 = vperm.xlu1 %10606, %v6821_v16   ;;  %6848 = vperm.xlu0 %10605, %v6818_v37  }
 0xca2   : > { %v6733_v35 = vpop.permute.xlu1 %6732 }
 0xca3   : > { %6755 = vst.msk [vmem:[#allocation3 + $0x50] sm:$0xff] %vm6752_vm14, %v6733_v35 }
 0xca4   : > { %6873 = vperm.xlu1 %10606, %v6823_v0   ;;  %6858 = vperm.xlu0 %10605, %v6820_v17  }
 0xca6   : > { %v6700_v8 = vpop.permute.xlu1 %6699 }
 0xca7   : > { %6718 = vst.msk [vmem:[#allocation3 + $0xf0] sm:$0xff] %vm6711_vm12, %v6700_v8 }
 0xca8   : > { %6883 = vperm.xlu1 %10606, %v6825_v36   ;;  %6868 = vperm.xlu0 %10605, %v6822_v60  }
 0xcaa   : > { %v6735_v50 = vpop.permute.xlu0 %6734 }
 0xcab   : > { %6756 = vst.msk [vmem:[#allocation3 + $0x78] sm:$0xff] %vm6752_vm14, %v6735_v50 }
 0xcac   : > { %6893 = vperm.xlu1 %10606, %v6827_v10   ;;  %6878 = vperm.xlu0 %10605, %v6824_v19  }
 0xcae   : > { %v6661_v38 = vpop.permute.xlu0 %6660 }
 0xcaf   : > { %6678 = vst.msk [vmem:[#allocation3 + $0x118] sm:$0xff] %vm6670_vm11, %v6661_v38  ;;  %vm11544_vm11 = vmmov 0  }
 0xcb0   : > { %6903 = vperm.xlu1 %10606, %v6829_v32   ;;  %6888 = vperm.xlu0 %10605, %v6826_v20  }
 0xcb2   : > { %v6737_v11 = vpop.permute.xlu1 %6736 }
 0xcb3   : > { %6757 = vst.msk [vmem:[#allocation3 + $0xa0] sm:$0xff] %vm6752_vm14, %v6737_v11 }
 0xcb4   : > { %6898 = vperm.xlu0 %10605, %v6828_v55  }
 0xcb8   : > { %6908 = vperm.xlu0 %10605, %v6830_v9  }
 0xcba   : > { %v6739_v12 = vpop.permute.xlu0 %6738 }
 0xcbb   : > { %6758 = vst.msk [vmem:[#allocation3 + $0xc8] sm:$0xff] %vm6752_vm14, %v6739_v12 }
 0xcbe   : > { %v6702_v49 = vpop.permute.xlu0 %6701 }
 0xcbf   : > { %6719 = vst.msk [vmem:[#allocation3 + $0x118] sm:$0xff] %vm6711_vm12, %v6702_v49 }
 0xcca   : > { %v6743_v2 = vpop.permute.xlu0 %6742 }
 0xccb   : > { %6760 = vst.msk [vmem:[#allocation3 + $0x118] sm:$0xff] %vm6752_vm14, %v6743_v2 }
 0xcd2   : > { %v6770_v18 = vpop.permute.xlu1 %6769 }
 0xcd3   : > { %6794 = vst.msk [vmem:[#allocation3] sm:$0xff] %vm6793_vm15, %v6770_v18 }
 0xcda   : > { %v6772_v25 = vpop.permute.xlu1 %6771  ;;  %v6802_v29 = vld [vmem:[#allocation3] sm:$0xff] }
 0xcdb   : > { %6795 = vst.msk [vmem:[#allocation3 + $0x28] sm:$0xff] %vm6793_vm15, %v6772_v25  ;;  %10370 = vmatprep.mubr.msk.bf16.mxu0 %vm6926_vm1, %v6802_v29 }
 0xce2   : > { %v6803_v58 = vld [vmem:[#allocation3 + $0x28] sm:$0xff]  ;;  %v6774_v40 = vpop.permute.xlu1 %6773 }
 0xce3   : > { %10371 = vmatmul.mubr.msk.bf16.vlgmr.msra.gmra.mrb[252].mxu0 %vm6926_vm1, %v6803_v58  ;;  %6796 = vst.msk [vmem:[#allocation3 + $0x50] sm:$0xff] %vm6793_vm15, %v6774_v40 }
 0xcea   : > { %v6776_v31 = vpop.permute.xlu1 %6775  ;;  %v6804_v28 = vld [vmem:[#allocation3 + $0x50] sm:$0xff] }
 0xceb   : > { %6797 = vst.msk [vmem:[#allocation3 + $0x78] sm:$0xff] %vm6793_vm15, %v6776_v31  ;;  %10374 = vmatprep.mubr.msk.bf16.mxu0 %vm6926_vm1, %v6804_v28 }
 0xcf2   : > { %v6805_v47 = vld [vmem:[#allocation3 + $0x78] sm:$0xff]  ;;  %v6778_v14 = vpop.permute.xlu1 %6777 }
 0xcf3   : > { %10375 = vmatmul.mubr.msk.bf16.gmra.mrb[0].mxu0 %vm6926_vm1, %v6805_v47  ;;  %6798 = vst.msk [vmem:[#allocation3 + $0xa0] sm:$0xff] %vm6793_vm15, %v6778_v14 }
 0xcfa   : > { %v6780_v4 = vpop.permute.xlu1 %6779  ;;  %v6806_v43 = vld [vmem:[#allocation3 + $0xa0] sm:$0xff] }
 0xcfb   : > { %6799 = vst.msk [vmem:[#allocation3 + $0xc8] sm:$0xff] %vm6793_vm15, %v6780_v4  ;;  %10378 = vmatprep.mubr.msk.bf16.mxu0 %vm6926_vm1, %v6806_v43 }
 0xcfe   : > { %v6741_v34 = vpop.permute.xlu1 %6740 }
 0xcff   : > { %6759 = vst.msk [vmem:[#allocation3 + $0xf0] sm:$0xff] %vm6752_vm14, %v6741_v34 }
 0xd02   : > { %v6807_v41 = vld [vmem:[#allocation3 + $0xc8] sm:$0xff]  ;;  %v6782_v39 = vpop.permute.xlu1 %6781 }
 0xd03   : > { %10379 = vmatmul.mubr.msk.bf16.gmra.mrb[4].mxu0 %vm6926_vm1, %v6807_v41  ;;  %6800 = vst.msk [vmem:[#allocation3 + $0xf0] sm:$0xff] %vm6793_vm15, %v6782_v39 }
 0xd0a   : > { %v6784_v30 = vpop.permute.xlu0 %6783  ;;  %v6808_v53 = vld [vmem:[#allocation3 + $0xf0] sm:$0xff] }
 0xd0b   : > { %6801 = vst.msk [vmem:[#allocation3 + $0x118] sm:$0xff] %vm6793_vm15, %v6784_v30  ;;  %10382 = vmatprep.mubr.msk.bf16.mxu0 %vm6926_vm1, %v6808_v53 }
 0xd12   : > { %v6809_v44 = vld [vmem:[#allocation3 + $0x118] sm:$0xff] }
 0xd13   : > { %10383 = vmatmul.mubr.msk.bf16.gmra.mrb[8].mxu0 %vm6926_vm1, %v6809_v44  ;;  %v6834_v24 = vpop.permute.xlu1 %6833 }
 0xd14   : > { %10402 = vmatprep.mubr.bf16.mxu0 %v11217_v1 }
 0xd17   : > { %v6844_v57 = vpop.permute.xlu1 %6843 }
 0xd1b   : > { %v6839_v59 = vpop.permute.xlu0 %6838  ;;  %v6854_v61 = vpop.permute.xlu1 %6853 }
 0xd1f   : > { %v6849_v63 = vpop.permute.xlu0 %6848  ;;  %v6864_v26 = vpop.permute.xlu1 %6863 }
 0xd23   : > { %v6859_v52 = vpop.permute.xlu0 %6858  ;;  %v6874_v32 = vpop.permute.xlu1 %6873 }
 0xd27   : > { %v6869_v16 = vpop.permute.xlu0 %6868  ;;  %v6884_v38 = vpop.permute.xlu1 %6883 }
 0xd2b   : > { %v6879_v20 = vpop.permute.xlu0 %6878  ;;  %v6894_v4 = vpop.permute.xlu1 %6893 }
 0xd2f   : > { %v6889_v12 = vpop.permute.xlu0 %6888  ;;  %v6904_v34 = vpop.permute.xlu1 %6903 }
 0xd33   : > { %v6899_v43 = vpop.permute.xlu0 %6898 }
 0xd37   : > { %v6909_v53 = vpop.permute.xlu0 %6908 }
 0xdb6   : > { %v10372_v56 = vpop.f32.mrb[252].mxu0 }
 0xdb7   : > { %v6998_v33 = vadd.f32 %v10372_v56, %v6844_v57  ;;  %v6989_v54 = vpop.f32.mrb[253].mxu0 }
 0xdb8   : > { %v6990_v62 = vadd.f32 %v6989_v54, %v6834_v24  ;;  %v10373_v13 = vpop.f32.mrb[254].mxu0 }
 0xdb9   : > { %v7001_v46 = vadd.f32 %v10373_v13, %v6849_v63  ;;  %v6992_v3 = vpop.f32.mrb[255].mxu0  ;;  %v7054_v42 = vmax.f32 %v6998_v33, 0.0 }
 0xdba   : > { %v6993_v22 = vadd.f32 %v6992_v3, %v6839_v59  ;;  %v7052_v27 = vmax.f32 %v6990_v62, 0.0  ;;  %v11219_v3 = vld [vmem:[#allocation9 + $0x10] sm:$0xff]  }
 0xdbb   : > { %v7055_v7 = vmax.f32 %v7001_v46, 0.0  ;;  %v11218_v46 = vld [vmem:[#allocation9 + $0x8] sm:$0xff]  }
 0xdbc   : > { %v7053_v21 = vmax.f32 %v6993_v22, 0.0  ;;  %v11220_v22 = vld [vmem:[#allocation9 + $0x18] sm:$0xff]  }
 0xdbd   : > { %v7069_v5 = vpack.c.bf16 %v7055_v7, %v7054_v42  ;;  %v11221_v42 = vld [vmem:[#allocation9 + $0x20] sm:$0xff]   ;;  %v11222_v7 = vld [vmem:[#allocation9 + $0x28] sm:$0xff]  }
 0xdbe   : > { %v7068_v6 = vpack.c.bf16 %v7053_v21, %v7052_v27  ;;  %v11223_v27 = vld [vmem:[#allocation9 + $0x30] sm:$0xff]   ;;  %v11224_v21 = vld [vmem:[#allocation9 + $0x38] sm:$0xff]  }
 0xdc0   : > { %10386 = vmatprep.subr.bf16.mxu0 %v7068_v6 }
 0xdc1   : > { %10387 = vmatpush3.bf16.msra.mxu0 %v7068_v6  ;;  %v11226_v6 = vld [vmem:[#allocation9 + $0x48] sm:$0xff]  }
 0xdc2   : > { %10388 = vmatprep.subr.bf16.mxu0 %v7069_v5 }
 0xdc5   : > { %10389 = vmatpush3.bf16.msra.mxu0 %v7069_v5  ;;  %v11225_v5 = vld [vmem:[#allocation9 + $0x40] sm:$0xff]  }
 0xdc6   : > { %v10376_v45 = vpop.f32.mrb[0].mxu0 }
 0xdc7   : > { %v7014_v48 = vadd.f32 %v10376_v45, %v6864_v26  ;;  %v7005_v15 = vpop.f32.mrb[1].mxu0  ;;  %v11229_v26 = vld [vmem:[#allocation9 + $0x60] sm:$0xff]   ;;  %v11230_v45 = vld [vmem:[#allocation9 + $0x68] sm:$0xff]  }
 0xdc8   : > { %v7006_v37 = vadd.f32 %v7005_v15, %v6854_v61  ;;  %v10377_v23 = vpop.f32.mrb[2].mxu0  ;;  %v11227_v61 = vld [vmem:[#allocation9 + $0x50] sm:$0xff]   ;;  %v11232_v15 = vld [vmem:[#allocation9 + $0x78] sm:$0xff]  }
 0xdc9   : > { %v7017_v0 = vadd.f32 %v10377_v23, %v6869_v16  ;;  %v7008_v17 = vpop.f32.mrb[3].mxu0  ;;  %v7058_v36 = vmax.f32 %v7014_v48, 0.0  ;;  %v11231_v48 = vld [vmem:[#allocation9 + $0x70] sm:$0xff]   ;;  %v11233_v16 = vld [vmem:[#allocation9 + $0x80] sm:$0xff]  }
 0xdca   : > { %v7009_v35 = vadd.f32 %v7008_v17, %v6859_v52  ;;  %v7056_v8 = vmax.f32 %v7006_v37, 0.0  ;;  %v11228_v52 = vld [vmem:[#allocation9 + $0x58] sm:$0xff]   ;;  %v11234_v37 = vld [vmem:[#allocation9 + $0x88] sm:$0xff]   ;;  %v11235_v23 = vld [vmem:[#allocation9 + $0x90] sm:$0xff]  }
 0xdcb   : > { %v7059_v60 = vmax.f32 %v7017_v0, 0.0  ;;  %v11236_v0 = vld [vmem:[#allocation9 + $0x98] sm:$0xff]   ;;  %v11237_v17 = vld [vmem:[#allocation9 + $0xa0] sm:$0xff]  }
 0xdcc   : > { %v7057_v10 = vmax.f32 %v7009_v35, 0.0  ;;  %v11238_v35 = vld [vmem:[#allocation9 + $0xa8] sm:$0xff]  }
 0xdcd   : > { %v7071_v19 = vpack.c.bf16 %v7059_v60, %v7058_v36  ;;  %v11239_v36 = vld [vmem:[#allocation9 + $0xb0] sm:$0xff]   ;;  %v11240_v60 = vld [vmem:[#allocation9 + $0xb8] sm:$0xff]  }
 0xdce   : > { %v7070_v50 = vpack.c.bf16 %v7057_v10, %v7056_v8  ;;  %v11241_v8 = vld [vmem:[#allocation9 + $0xc0] sm:$0xff]   ;;  %v11242_v10 = vld [vmem:[#allocation9 + $0xc8] sm:$0xff]  }
 0xdd0   : > { %10390 = vmatprep.subr.bf16.mxu0 %v7070_v50 }
 0xdd1   : > { %10391 = vmatpush3.bf16.msra.mxu0 %v7070_v50  ;;  %v11244_v50 = vld [vmem:[#allocation9 + $0xd8] sm:$0xff]  }
 0xdd2   : > { %10392 = vmatprep.subr.bf16.mxu0 %v7071_v19 }
 0xdd5   : > { %10393 = vmatpush3.bf16.msra.mxu0 %v7071_v19  ;;  %v11243_v19 = vld [vmem:[#allocation9 + $0xd0] sm:$0xff]  }
 0xdd6   : > { %v10380_v55 = vpop.f32.mrb[4].mxu0 }
 0xdd7   : > { %v7030_v11 = vadd.f32 %v10380_v55, %v6884_v38  ;;  %v7021_v9 = vpop.f32.mrb[5].mxu0  ;;  %v11247_v38 = vld [vmem:[#allocation9 + $0xf0] sm:$0xff]   ;;  %v11248_v55 = vld [vmem:[#allocation9 + $0xf8] sm:$0xff]  }
 0xdd8   : > { %v7022_v49 = vadd.f32 %v7021_v9, %v6874_v32  ;;  %v10381_v2 = vpop.f32.mrb[6].mxu0  ;;  %v11245_v32 = vld [vmem:[#allocation9 + $0xe0] sm:$0xff]   ;;  %v11250_v9 = vld [vmem:[#allocation9 + $0x108] sm:$0xff]  }
 0xdd9   : > { %v7033_v18 = vadd.f32 %v10381_v2, %v6889_v12  ;;  %v7024_v25 = vpop.f32.mrb[7].mxu0  ;;  %v7062_v58 = vmax.f32 %v7030_v11, 0.0  ;;  %v11249_v11 = vld [vmem:[#allocation9 + $0x100] sm:$0xff]   ;;  %v11251_v12 = vld [vmem:[#allocation9 + $0x110] sm:$0xff]  }
 0xdda   : > { %v7025_v29 = vadd.f32 %v7024_v25, %v6879_v20  ;;  %v7060_v31 = vmax.f32 %v7022_v49, 0.0  ;;  %v11246_v20 = vld [vmem:[#allocation9 + $0xe8] sm:$0xff]   ;;  %v11252_v49 = vld [vmem:[#allocation9 + $0x118] sm:$0xff]  }
 0xddb   : > { %v7063_v40 = vmax.f32 %v7033_v18, 0.0 }
 0xddc   : > { %v7061_v28 = vmax.f32 %v7025_v29, 0.0 }
 0xddd   : > { %v7073_v47 = vpack.c.bf16 %v7063_v40, %v7062_v58 }
 0xdde   : > { %v7072_v14 = vpack.c.bf16 %v7061_v28, %v7060_v31 }
 0xde0   : > { %10394 = vmatprep.subr.bf16.mxu0 %v7072_v14 }
 0xde1   : > { %10395 = vmatpush3.bf16.msra.mxu0 %v7072_v14 }
 0xde2   : > { %10396 = vmatprep.subr.bf16.mxu0 %v7073_v47 }
 0xde5   : > { %10397 = vmatpush3.bf16.msra.mxu0 %v7073_v47 }
 0xde6   : > { %v10384_v41 = vpop.f32.mrb[8].mxu0 }
 0xde7   : > { %v7046_v39 = vadd.f32 %v10384_v41, %v6904_v34  ;;  %v7037_v30 = vpop.f32.mrb[9].mxu0 }
 0xde8   : > { %v7038_v44 = vadd.f32 %v7037_v30, %v6894_v4  ;;  %v10385_v1 = vpop.f32.mrb[10].mxu0 }
 0xde9   : > { %v7049_v24 = vadd.f32 %v10385_v1, %v6909_v53  ;;  %v7040_v59 = vpop.f32.mrb[11].mxu0  ;;  %v7066_v56 = vmax.f32 %v7046_v39, 0.0 }
 0xdea   : > { %v7041_v57 = vadd.f32 %v7040_v59, %v6899_v43  ;;  %v7064_v54 = vmax.f32 %v7038_v44, 0.0 }
 0xdeb   : > { %v7067_v33 = vmax.f32 %v7049_v24, 0.0 }
 0xdec   : > { %v7065_v63 = vmax.f32 %v7041_v57, 0.0 }
 0xded   : > { %v7075_v62 = vpack.c.bf16 %v7067_v33, %v7066_v56 }
 0xdee   : > { %v7074_v13 = vpack.c.bf16 %v7065_v63, %v7064_v54  ;;  %v11253_v54 = vld [vmem:[%s14677_s13] sm:$0xff]  }
 0xdf0   : > { %10398 = vmatprep.subr.bf16.mxu0 %v7074_v13 }
 0xdf1   : > { %10399 = vmatpush3.bf16.msra.mxu0 %v7074_v13 }
 0xdf2   : > { %10400 = vmatprep.subr.bf16.mxu0 %v7075_v62 }
 0xdf5   : > { %10401 = vmatpush3.bf16.msra.mxu0 %v7075_v62  ;;  %v11254_v62 = vld [vmem:[%s14677_s13 + $0x8] sm:$0xff]  }
 0xdf6   : > { %8016 = vmatprep.subr.bf16.mxu0 %v14752_v51 }
 0xdf8   : > { %10403 = vmatmul.mubr.bf16.vlgmr.msra.gmra.mrb[12].mxu0 %v11218_v46 }
 0xdf9   : > { %10406 = vmatprep.mubr.bf16.mxu0 %v11219_v3  ;;  %8017 = vmatpush1.bf16.msra.mxu0 %v11253_v54 }
 0xdfa   : > { %8018 = vmatprep.subr.bf16.mxu0 %v14752_v51 }
 0xdfd   : > { %8019 = vmatpush1.bf16.msra.mxu0 %v11254_v62 }
 0xdfe   : > { %8020 = vmatprep.subr.bf16.mxu0 %v14752_v51 }
 0xe00   : > { %10407 = vmatmul.mubr.bf16.gmra.mrb[16].mxu0 %v11220_v22 }
 0xe01   : > { %10410 = vmatprep.mubr.bf16.mxu0 %v11221_v42 }
 0xe08   : > { %10411 = vmatmul.mubr.bf16.gmra.mrb[20].mxu0 %v11222_v7  ;;  %v11255_v7 = vld [vmem:[%s14677_s13 + $0x10] sm:$0xff]  }
 0xe09   : > { %10414 = vmatprep.mubr.bf16.mxu0 %v11223_v27  ;;  %8021 = vmatpush1.bf16.msra.mxu0 %v11255_v7  ;;  %v11261_v7 = vld [vmem:[%s14677_s13 + $0x40] sm:$0xff]  }
 0xe0a   : > { %8022 = vmatprep.subr.bf16.mxu0 %v14752_v51 }
 0xe10   : > { %10415 = vmatmul.mubr.bf16.gmra.mrb[24].mxu0 %v11224_v21  ;;  %v11256_v21 = vld [vmem:[%s14677_s13 + $0x18] sm:$0xff]  }
 0xe11   : > { %10418 = vmatprep.mubr.bf16.mxu0 %v11225_v5  ;;  %8023 = vmatpush1.bf16.msra.mxu0 %v11256_v21 }
 0xe12   : > { %8024 = vmatprep.subr.bf16.mxu0 %v14752_v51 }
 0xe18   : > { %10419 = vmatmul.mubr.bf16.gmra.mrb[28].mxu0 %v11226_v6 }
 0xe19   : > { %10422 = vmatprep.mubr.bf16.mxu0 %v11227_v61 }
 0xe20   : > { %10423 = vmatmul.mubr.bf16.gmra.mrb[32].mxu0 %v11228_v52 }
 0xe21   : > { %10426 = vmatprep.mubr.bf16.mxu0 %v11229_v26 }
 0xe28   : > { %10427 = vmatmul.mubr.bf16.gmra.mrb[36].mxu0 %v11230_v45 }
 0xe29   : > { %10430 = vmatprep.mubr.bf16.mxu0 %v11231_v48 }
 0xe30   : > { %10431 = vmatmul.mubr.bf16.gmra.mrb[40].mxu0 %v11232_v15 }
 0xe31   : > { %10434 = vmatprep.mubr.bf16.mxu0 %v11233_v16 }
 0xe38   : > { %10435 = vmatmul.mubr.bf16.gmra.mrb[44].mxu0 %v11234_v37 }
 0xe39   : > { %10438 = vmatprep.mubr.bf16.mxu0 %v11235_v23 }
 0xe40   : > { %10439 = vmatmul.mubr.bf16.gmra.mrb[48].mxu0 %v11236_v0 }
 0xe41   : > { %10442 = vmatprep.mubr.bf16.mxu0 %v11237_v17 }
 0xe48   : > { %10443 = vmatmul.mubr.bf16.gmra.mrb[52].mxu0 %v11238_v35  ;;  %v11257_v35 = vld [vmem:[%s14677_s13 + $0x20] sm:$0xff]  }
 0xe49   : > { %10446 = vmatprep.mubr.bf16.mxu0 %v11239_v36  ;;  %8025 = vmatpush1.bf16.msra.mxu0 %v11257_v35 }
 0xe4a   : > { %8026 = vmatprep.subr.bf16.mxu0 %v14752_v51 }
 0xe50   : > { %10447 = vmatmul.mubr.bf16.gmra.mrb[56].mxu0 %v11240_v60 }
 0xe51   : > { %10450 = vmatprep.mubr.bf16.mxu0 %v11241_v8 }
 0xe58   : > { %10451 = vmatmul.mubr.bf16.gmra.mrb[60].mxu0 %v11242_v10 }
 0xe59   : > { %10454 = vmatprep.mubr.bf16.mxu0 %v11243_v19 }
 0xe60   : > { %10455 = vmatmul.mubr.bf16.gmra.mrb[64].mxu0 %v11244_v50 }
 0xe61   : > { %10458 = vmatprep.mubr.bf16.mxu0 %v11245_v32 }
 0xe68   : > { %10459 = vmatmul.mubr.bf16.gmra.mrb[68].mxu0 %v11246_v20 }
 0xe69   : > { %10462 = vmatprep.mubr.bf16.mxu0 %v11247_v38 }
 0xe70   : > { %10463 = vmatmul.mubr.bf16.gmra.mrb[72].mxu0 %v11248_v55 }
 0xe71   : > { %10466 = vmatprep.mubr.bf16.mxu0 %v11249_v11 }
 0xe78   : > { %10467 = vmatmul.mubr.bf16.gmra.mrb[76].mxu0 %v11250_v9 }
 0xe79   : > { %10470 = vmatprep.mubr.bf16.mxu0 %v11251_v12  ;;  %v11258_v12 = vld [vmem:[%s14677_s13 + $0x28] sm:$0xff]  }
 0xe7a   : > { %8027 = vmatpush1.bf16.msra.mxu0 %v11258_v12 }
 0xe7b   : > { %8028 = vmatprep.subr.bf16.mxu0 %v14752_v51 }
 0xe80   : > { %10471 = vmatmul.mubr.bf16.gmra.mrb[80].mxu0 %v11252_v49 }
 0xecb   : > { %v10404_v2 = vpop.f32.mrb[12].mxu0 }
 0xecc   : > { %v7398_v18 = vpop.f32.mrb[13].mxu0 }
 0xecd   : > { %v10405_v25 = vpop.f32.mrb[14].mxu0 }
 0xece   : > { %v7686_v29 = vpack.c.bf16 %v10405_v25, %v10404_v2  ;;  %v7401_v58 = vpop.f32.mrb[15].mxu0 }
 0xecf   : > { %v7685_v40 = vpack.c.bf16 %v7401_v58, %v7398_v18 }
 0xed0   : > { %7722 = vst.msk [vmem:[#allocation3 + $0x28] sm:$0xff] %vm1654_vm5, %v7686_v29 }
 0xed1   : > { %7721 = vst.msk [vmem:[#allocation3] sm:$0xff] %vm1654_vm5, %v7685_v40 }
 0xed3   : > { %v10408_v31 = vpop.f32.mrb[16].mxu0 }
 0xed4   : > { %v7414_v28 = vpop.f32.mrb[17].mxu0 }
 0xed5   : > { %v10409_v47 = vpop.f32.mrb[18].mxu0 }
 0xed6   : > { %v7688_v14 = vpack.c.bf16 %v10409_v47, %v10408_v31  ;;  %v7417_v4 = vpop.f32.mrb[19].mxu0 }
 0xed7   : > { %v7687_v43 = vpack.c.bf16 %v7417_v4, %v7414_v28 }
 0xed8   : > { %7724 = vst.msk [vmem:[#allocation3 + $0x78] sm:$0xff] %vm1654_vm5, %v7688_v14 }
 0xed9   : > { %7723 = vst.msk [vmem:[#allocation3 + $0x50] sm:$0xff] %vm1654_vm5, %v7687_v43  ;;  %v11259_v43 = vld [vmem:[%s14677_s13 + $0x30] sm:$0xff]  }
 0xeda   : > { %8029 = vmatpush1.bf16.msra.mxu0 %v11259_v43 }
 0xedb   : > { %v10412_v34 = vpop.f32.mrb[20].mxu0  ;;  %8030 = vmatprep.subr.bf16.mxu0 %v14752_v51 }
 0xedc   : > { %v7430_v41 = vpop.f32.mrb[21].mxu0 }
 0xedd   : > { %v10413_v39 = vpop.f32.mrb[22].mxu0 }
 0xede   : > { %v7690_v30 = vpack.c.bf16 %v10413_v39, %v10412_v34  ;;  %v7433_v53 = vpop.f32.mrb[23].mxu0 }
 0xedf   : > { %v7689_v44 = vpack.c.bf16 %v7433_v53, %v7430_v41 }
 0xee0   : > { %7731 = vrot.lane.b32.xlu0 %v7690_v30, %s11529_s17 }
 0xee1   : > { %7729 = vrot.lane.b32.xlu1 %v7689_v44, %s11529_s17 }
 0xee3   : > { %v14220_v1 = vpop.f32.mrb[24].mxu0 }
 0xee4   : > { %v7446_v24 = vpop.f32.mrb[25].mxu0 }
 0xee5   : > { %v14222_v59 = vpop.f32.mrb[26].mxu0 }
 0xee6   : > { %v7692_v57 = vpack.c.bf16 %v14222_v59, %v14220_v1  ;;  %v7449_v56 = vpop.f32.mrb[27].mxu0 }
 0xee7   : > { %v7691_v33 = vpack.c.bf16 %v7449_v56, %v7446_v24 }
 0xee9   : > { %7733 = vrot.lane.b32.xlu1 %v7691_v33, %s11529_s17 }
 0xeeb   : > { %v10420_v63 = vpop.f32.mrb[28].mxu0 }
 0xeec   : > { %v7462_v13 = vpop.f32.mrb[29].mxu0 }
 0xeed   : > { %v10421_v46 = vpop.f32.mrb[30].mxu0 }
 0xeee   : > { %v7694_v3 = vpack.c.bf16 %v10421_v46, %v10420_v63  ;;  %v7465_v22 = vpop.f32.mrb[31].mxu0 }
 0xeef   : > { %v7693_v42 = vpack.c.bf16 %v7465_v22, %v7462_v13  ;;  %v11260_v13 = vld [vmem:[%s14677_s13 + $0x38] sm:$0xff]  }
 0xef0   : > { %7752 = vrot.lane.b32.xlu1 %v7694_v3, %s11528_s15  ;;  %8031 = vmatpush1.bf16.msra.mxu0 %v11260_v13 }
 0xef1   : > { %7750 = vrot.lane.b32.xlu0 %v7693_v42, %s11528_s15  ;;  %8032 = vmatprep.subr.bf16.mxu0 %v14752_v51 }
 0xef3   : > { %v14240_v27 = vpop.f32.mrb[32].mxu0 }
 0xef4   : > { %v7478_v5 = vpop.f32.mrb[33].mxu0  ;;  %8033 = vmatpush1.bf16.msra.mxu0 %v11261_v7 }
 0xef5   : > { %v14246_v6 = vpop.f32.mrb[34].mxu0 }
 0xef6   : > { %v7696_v61 = vpack.c.bf16 %v14246_v6, %v14240_v27  ;;  %v7481_v52 = vpop.f32.mrb[35].mxu0 }
 0xef7   : > { %v7695_v26 = vpack.c.bf16 %v7481_v52, %v7478_v5 }
 0xef9   : > { %7754 = vrot.lane.b32.xlu0 %v7695_v26, %s11528_s15 }
 0xefb   : > { %v10428_v45 = vpop.f32.mrb[36].mxu0 }
 0xefc   : > { %v7494_v48 = vpop.f32.mrb[37].mxu0 }
 0xefd   : > { %v10429_v15 = vpop.f32.mrb[38].mxu0 }
 0xefe   : > { %v7698_v16 = vpack.c.bf16 %v10429_v15, %v10428_v45  ;;  %v7497_v37 = vpop.f32.mrb[39].mxu0 }
 0xeff   : > { %v7697_v23 = vpack.c.bf16 %v7497_v37, %v7494_v48 }
 0xf00   : > { %7773 = vrot.lane.b32.xlu0 %v7698_v16, %s11530_s18 }
 0xf01   : > { %7771 = vrot.lane.b32.xlu1 %v7697_v23, %s11530_s18 }
 0xf03   : > { %v14254_v0 = vpop.f32.mrb[40].mxu0 }
 0xf04   : > { %v14256_v17 = vpop.f32.mrb[41].mxu0 }
 0xf05   : > { %v14261_v36 = vpop.f32.mrb[42].mxu0 }
 0xf06   : > { %v7700_v60 = vpack.c.bf16 %v14261_v36, %v14254_v0  ;;  %v14265_v8 = vpop.f32.mrb[43].mxu0 }
 0xf07   : > { %v7699_v10 = vpack.c.bf16 %v14265_v8, %v14256_v17 }
 0xf0b   : > { %v10436_v19 = vpop.f32.mrb[44].mxu0 }
 0xf0c   : > { %v7526_v50 = vpop.f32.mrb[45].mxu0 }
 0xf0d   : > { %v10437_v32 = vpop.f32.mrb[46].mxu0 }
 0xf0e   : > { %v7702_v20 = vpack.c.bf16 %v10437_v32, %v10436_v19  ;;  %v7529_v38 = vpop.f32.mrb[47].mxu0 }
 0xf0f   : > { %v7701_v55 = vpack.c.bf16 %v7529_v38, %v7526_v50 }
 0xf10   : > { %7794 = vrot.lane.b32.xlu1 %v7702_v20, %s11523_s20 }
 0xf11   : > { %7792 = vrot.lane.b32.xlu0 %v7701_v55, %s11523_s20 }
 0xf13   : > { %v14272_v11 = vpop.f32.mrb[48].mxu0 }
 0xf14   : > { %v7542_v9 = vpop.f32.mrb[49].mxu0 }
 0xf15   : > { %v14277_v49 = vpop.f32.mrb[50].mxu0 }
 0xf16   : > { %v7704_v2 = vpack.c.bf16 %v14277_v49, %v14272_v11  ;;  %v7545_v18 = vpop.f32.mrb[51].mxu0 }
 0xf17   : > { %v7703_v25 = vpack.c.bf16 %v7545_v18, %v7542_v9 }
 0xf1b   : > { %v10444_v29 = vpop.f32.mrb[52].mxu0 }
 0xf1c   : > { %v7558_v58 = vpop.f32.mrb[53].mxu0 }
 0xf1d   : > { %v10445_v40 = vpop.f32.mrb[54].mxu0 }
 0xf1e   : > { %v7706_v31 = vpack.c.bf16 %v10445_v40, %v10444_v29  ;;  %v7561_v28 = vpop.f32.mrb[55].mxu0 }
 0xf1f   : > { %v7705_v47 = vpack.c.bf16 %v7561_v28, %v7558_v58 }
 0xf20   : > { %7815 = vrot.lane.b32.xlu0 %v7706_v31, %s14753_s25 }
 0xf21   : > { %7813 = vrot.lane.b32.xlu1 %v7705_v47, %s14753_s25 }
 0xf23   : > { %v14284_v14 = vpop.f32.mrb[56].mxu0 }
 0xf24   : > { %v7574_v4 = vpop.f32.mrb[57].mxu0 }
 0xf25   : > { %v10449_v34 = vpop.f32.mrb[58].mxu0 }
 0xf26   : > { %v7708_v41 = vpack.c.bf16 %v10449_v34, %v14284_v14  ;;  %v7577_v39 = vpop.f32.mrb[59].mxu0 }
 0xf27   : > { %v7707_v30 = vpack.c.bf16 %v7577_v39, %v7574_v4 }
 0xf2b   : > { %v10452_v53 = vpop.f32.mrb[60].mxu0 }
 0xf2c   : > { %v7590_v44 = vpop.f32.mrb[61].mxu0 }
 0xf2d   : > { %v10453_v24 = vpop.f32.mrb[62].mxu0 }
 0xf2e   : > { %v7710_v56 = vpack.c.bf16 %v10453_v24, %v10452_v53  ;;  %v7593_v33 = vpop.f32.mrb[63].mxu0 }
 0xf2f   : > { %v7709_v54 = vpack.c.bf16 %v7593_v33, %v7590_v44 }
 0xf30   : > { %7836 = vrot.lane.b32.xlu1 %v7710_v56, %s11525_s2 }
 0xf31   : > { %7834 = vrot.lane.b32.xlu0 %v7709_v54, %s11525_s2 }
 0xf33   : > { %v10456_v63 = vpop.f32.mrb[64].mxu0 }
 0xf34   : > { %v7606_v62 = vpop.f32.mrb[65].mxu0 }
 0xf35   : > { %v10457_v46 = vpop.f32.mrb[66].mxu0 }
 0xf36   : > { %v7712_v3 = vpack.c.bf16 %v10457_v46, %v10456_v63  ;;  %v7609_v22 = vpop.f32.mrb[67].mxu0 }
 0xf37   : > { %v7711_v42 = vpack.c.bf16 %v7609_v22, %v7606_v62 }
 0xf3b   : > { %v10460_v21 = vpop.f32.mrb[68].mxu0 }
 0xf3c   : > { %v7622_v5 = vpop.f32.mrb[69].mxu0 }
 0xf3d   : > { %v10461_v52 = vpop.f32.mrb[70].mxu0 }
 0xf3e   : > { %v7714_v26 = vpack.c.bf16 %v10461_v52, %v10460_v21  ;;  %v7625_v45 = vpop.f32.mrb[71].mxu0 }
 0xf3f   : > { %v7713_v48 = vpack.c.bf16 %v7625_v45, %v7622_v5 }
 0xf40   : > { %7857 = vrot.lane.b32.xlu0 %v7714_v26, %s11527_s16 }
 0xf41   : > { %7855 = vrot.lane.b32.xlu1 %v7713_v48, %s11527_s16  ;;  %v11543_v48 = vmov 0.0  }
 0xf42   : > { %10474 = vmatprep.subr.bf16.mxu0 %v11543_v48 }
 0xf43   : > { %v10464_v15 = vpop.f32.mrb[72].mxu0 }
 0xf44   : > { %7796 = vrot.lane.b32.xlu0 %v7703_v25, %s11523_s20  ;;  %v7638_v16 = vpop.f32.mrb[73].mxu0 }
 0xf45   : > { %7775 = vrot.lane.b32.xlu1 %v7699_v10, %s11530_s18  ;;  %v10465_v37 = vpop.f32.mrb[74].mxu0 }
 0xf46   : > { %v7716_v23 = vpack.c.bf16 %v10465_v37, %v10464_v15  ;;  %v7641_v35 = vpop.f32.mrb[75].mxu0 }
 0xf47   : > { %v7715_v19 = vpack.c.bf16 %v7641_v35, %v7638_v16 }
 0xf48   : > { %7838 = vrot.lane.b32.xlu0 %v7711_v42, %s11525_s2 }
 0xf49   : > { %7817 = vrot.lane.b32.xlu1 %v7707_v30, %s14753_s25 }
 0xf4b   : > { %v10468_v50 = vpop.f32.mrb[76].mxu0 }
 0xf4c   : > { %7735 = vrot.lane.b32.xlu0 %v7692_v57, %s11529_s17  ;;  %v7654_v32 = vpop.f32.mrb[77].mxu0  ;;  %s14756_s17 = sld [smem:[#allocation35_spill]] }
 0xf4d   : > { %7756 = vrot.lane.b32.xlu1 %v7696_v61, %s11528_s15  ;;  %v10469_v17 = vpop.f32.mrb[78].mxu0 }
 0xf4e   : > { %v7718_v8 = vpack.c.bf16 %v10469_v17, %v10468_v50  ;;  %v7657_v10 = vpop.f32.mrb[79].mxu0 }
 0xf4f   : > { %v7717_v20 = vpack.c.bf16 %v7657_v10, %v7654_v32 }
 0xf50   : > { %7777 = vrot.lane.b32.xlu0 %v7700_v60, %s11530_s18  ;;  %7873 = vst.msk [vmem:[#allocation3 + $0x30] sm:$0xff] %vm1654_vm5, %v7718_v8  ;;  %s14754_s18 = sld [smem:[#allocation34_spill]] }
 0xf51   : > { %7859 = vrot.lane.b32.xlu1 %v7715_v19, %s11527_s16  ;;  %7872 = vst.msk [vmem:[#allocation3 + $0x8] sm:$0xff] %vm1654_vm5, %v7717_v20 }
 0xf52   : > { %v7732_v1 = vpop.permute.xlu0 %7731 }
 0xf53   : > { %7743 = vst.msk [vmem:[#allocation3 + $0x28] sm:$0xff] %vm7741_vm2, %v7732_v1  ;;  %v7730_v59 = vpop.permute.xlu1 %7729  ;;  %v10472_v57 = vpop.f32.mrb[80].mxu0 }
 0xf54   : > { %7819 = vrot.lane.b32.xlu0 %v7708_v41, %s14753_s25  ;;  %7742 = vst.msk [vmem:[#allocation3] sm:$0xff] %vm7741_vm2, %v7730_v59  ;;  %v7670_v27 = vpop.f32.mrb[81].mxu0 }
 0xf55   : > { %7798 = vrot.lane.b32.xlu1 %v7704_v2, %s11523_s20  ;;  %v10473_v6 = vpop.f32.mrb[82].mxu0 }
 0xf56   : > { %v7720_v61 = vpack.c.bf16 %v10473_v6, %v10472_v57  ;;  %v7673_v0 = vpop.f32.mrb[83].mxu0  ;;  %v7903_v38 = vld [vmem:[%s14754_s18 + $0x8] sm:$0xff]  ;;  %v7902_v55 = vld [vmem:[%s14754_s18] sm:$0xff]  ;;  %v7905_v9 = vld [vmem:[%s14754_s18 + $0x18] sm:$0xff] }
 0xf57   : > { %v7719_v36 = vpack.c.bf16 %v7673_v0, %v7670_v27  ;;  %v7904_v12 = vld [vmem:[%s14754_s18 + $0x10] sm:$0xff]  ;;  %v7907_v49 = vld [vmem:[%s14754_s18 + $0x28] sm:$0xff]  ;;  %v7906_v2 = vld [vmem:[%s14754_s18 + $0x20] sm:$0xff] }
 0xf58   : > { %7861 = vrot.lane.b32.xlu0 %v7716_v23, %s11527_s16  ;;  %v7877_v60 = vld [vmem:[#allocation3 + $0x8] sm:$0xff]  ;;  %7875 = vst.msk [vmem:[#allocation3 + $0x80] sm:$0xff] %vm1654_vm5, %v7720_v61  ;;  %v7909_v29 = vld [vmem:[%s14754_s18 + $0x38] sm:$0xff]  ;;  %v7908_v58 = vld [vmem:[%s14754_s18 + $0x30] sm:$0xff]  ;;  %s14755_s16 = sld [smem:[#allocation36_spill]] }
 0xf59   : > { %7840 = vrot.lane.b32.xlu1 %v7712_v3, %s11525_s2  ;;  %9447 = vmatprep.mubr.msk.bf16.mxu0 %vm1654_vm5, %v7877_v60  ;;  %7874 = vst.msk [vmem:[#allocation3 + $0x58] sm:$0xff] %vm1654_vm5, %v7719_v36  ;;  %v7879_v54 = vld [vmem:[#allocation3 + $0x30] sm:$0xff] }
 0xf5b   : > { %v7734_v11 = vpop.permute.xlu1 %7733 }
 0xf5c   : > { %7917 = vperm.xlu0 %10605, %v7903_v38   ;;  %7744 = vst.msk [vmem:[#allocation3 + $0x50] sm:$0xff] %vm7741_vm2, %v7734_v11 }
 0xf5d   : > { %7912 = vperm.xlu1 %10606, %v7902_v55  }
 0xf5f   : > { %v7883_v26 = vld [vmem:[#allocation3 + $0x80] sm:$0xff] }
 0xf60   : > { %7927 = vperm.xlu0 %10605, %v7905_v9   ;;  %v7881_v46 = vld [vmem:[#allocation3 + $0x58] sm:$0xff] }
 0xf61   : > { %7922 = vperm.xlu1 %10606, %v7904_v12  }
 0xf62   : > { %v7753_v18 = vpop.permute.xlu1 %7752 }
 0xf63   : > { %v7751_v25 = vpop.permute.xlu0 %7750  ;;  %7764 = vst.msk [vmem:[#allocation3 + $0x28] sm:$0xff] %vm7762_vm3, %v7753_v18 }
 0xf64   : > { %7937 = vperm.xlu0 %10605, %v7907_v49   ;;  %7763 = vst.msk [vmem:[#allocation3] sm:$0xff] %vm7762_vm3, %v7751_v25 }
 0xf65   : > { %7932 = vperm.xlu1 %10606, %v7906_v2  }
 0xf68   : > { %7947 = vperm.xlu0 %10605, %v7909_v29  }
 0xf69   : > { %7942 = vperm.xlu1 %10606, %v7908_v58  }
 0xf6b   : > { %v7755_v40 = vpop.permute.xlu0 %7754 }
 0xf6c   : > { %7765 = vst.msk [vmem:[#allocation3 + $0x50] sm:$0xff] %vm7762_vm3, %v7755_v40 }
 0xf72   : > { %v7774_v31 = vpop.permute.xlu0 %7773 }
 0xf73   : > { %7785 = vst.msk [vmem:[#allocation3 + $0x28] sm:$0xff] %vm7783_vm6, %v7774_v31  ;;  %v7772_v28 = vpop.permute.xlu1 %7771 }
 0xf74   : > { %7784 = vst.msk [vmem:[#allocation3] sm:$0xff] %vm7783_vm6, %v7772_v28 }
 0xf82   : > { %v7795_v47 = vpop.permute.xlu1 %7794 }
 0xf83   : > { %v7793_v14 = vpop.permute.xlu0 %7792  ;;  %7806 = vst.msk [vmem:[#allocation3 + $0x28] sm:$0xff] %vm7804_vm7, %v7795_v47 }
 0xf84   : > { %7805 = vst.msk [vmem:[#allocation3] sm:$0xff] %vm7804_vm7, %v7793_v14 }
 0xf92   : > { %v7816_v4 = vpop.permute.xlu0 %7815 }
 0xf93   : > { %7827 = vst.msk [vmem:[#allocation3 + $0x28] sm:$0xff] %vm7825_vm8, %v7816_v4  ;;  %v7814_v43 = vpop.permute.xlu1 %7813 }
 0xf94   : > { %7826 = vst.msk [vmem:[#allocation3] sm:$0xff] %vm7825_vm8, %v7814_v43 }
 0xfa2   : > { %v7837_v34 = vpop.permute.xlu1 %7836 }
 0xfa3   : > { %v7835_v41 = vpop.permute.xlu0 %7834  ;;  %7848 = vst.msk [vmem:[#allocation3 + $0x28] sm:$0xff] %vm7846_vm9, %v7837_v34 }
 0xfa4   : > { %7847 = vst.msk [vmem:[#allocation3] sm:$0xff] %vm7846_vm9, %v7835_v41 }
 0xfb2   : > { %v7858_v39 = vpop.permute.xlu0 %7857 }
 0xfb3   : > { %7869 = vst.msk [vmem:[#allocation3 + $0x28] sm:$0xff] %vm7867_vm10, %v7858_v39  ;;  %v7856_v30 = vpop.permute.xlu1 %7855 }
 0xfb4   : > { %7868 = vst.msk [vmem:[#allocation3] sm:$0xff] %vm7867_vm10, %v7856_v30 }
 0xfb6   : > { %v7797_v53 = vpop.permute.xlu0 %7796 }
 0xfb7   : > { %v7776_v44 = vpop.permute.xlu1 %7775 }
 0xfb8   : > { %7786 = vst.msk [vmem:[#allocation3 + $0x50] sm:$0xff] %vm7783_vm6, %v7776_v44  ;;  %v11262_v44 = vld [vmem:[%s14755_s16] sm:$0xff]  }
 0xfb9   : > { %7807 = vst.msk [vmem:[#allocation3 + $0x50] sm:$0xff] %vm7804_vm7, %v7797_v53 }
 0xfba   : > { %v7839_v24 = vpop.permute.xlu0 %7838  ;;  %v7878_v22 = vld [vmem:[#allocation3 + $0x28] sm:$0xff] }
 0xfbb   : > { %v7818_v56 = vpop.permute.xlu1 %7817  ;;  %v7876_v33 = vld [vmem:[#allocation3] sm:$0xff] }
 0xfbc   : > { %7828 = vst.msk [vmem:[#allocation3 + $0x50] sm:$0xff] %vm7825_vm8, %v7818_v56  ;;  %8049 = vmatmul.mubr.bf16.vlgmr.msra.gmra.mrb[84].mxu0 %v7876_v33  ;;  %v11264_v56 = vld [vmem:[%s14755_s16 + $0x10] sm:$0xff]   ;;  %v11265_v33 = vld [vmem:[%s14755_s16 + $0x18] sm:$0xff]  }
 0xfbd   : > { %7849 = vst.msk [vmem:[#allocation3 + $0x50] sm:$0xff] %vm7846_vm9, %v7839_v24  ;;  %9448 = vmatprep.mubr.msk.bf16.mxu0 %vm1654_vm5, %v7879_v54  ;;  %v11263_v24 = vld [vmem:[%s14755_s16 + $0x8] sm:$0xff]   ;;  %v11266_v54 = vld [vmem:[%s14755_s16 + $0x20] ss:$0 sps:$4 sm:$0xff]  }
 0xfbe   : > { %v7736_v63 = vpop.permute.xlu0 %7735 }
 0xfbf   : > { %7745 = vst.msk [vmem:[#allocation3 + $0x78] sm:$0xff] %vm7741_vm2, %v7736_v63  ;;  %v7757_v62 = vpop.permute.xlu1 %7756  ;;  %v11267_v63 = vld [vmem:[%s14756_s17] ss:$8 sps:$4 sm:$0xff]  }
 0xfc0   : > { %7766 = vst.msk [vmem:[#allocation3 + $0x78] sm:$0xff] %vm7762_vm3, %v7757_v62  ;;  %v11269_v62 = vld [vmem:[%s14756_s17 + $0x4] ss:$8 sps:$4 sm:$0xff]  }
 0xfc2   : > { %v7778_v13 = vpop.permute.xlu0 %7777 }
 0xfc3   : > { %7787 = vst.msk [vmem:[#allocation3 + $0x78] sm:$0xff] %vm7783_vm6, %v7778_v13  ;;  %v7860_v3 = vpop.permute.xlu1 %7859  ;;  %v11272_v13 = vld [vmem:[%s14756_s17 + $0x14] ss:$8 sps:$4 sm:$0xff]  }
 0xfc4   : > { %7870 = vst.msk [vmem:[#allocation3 + $0x50] sm:$0xff] %vm7867_vm10, %v7860_v3  ;;  %8057 = vmatmul.mubr.bf16.gmra.mrb[88].mxu0 %v7878_v22  ;;  %v11275_v3 = vld [vmem:[%s14756_s17 + $0x24] ss:$8 sps:$4 sm:$0xff]   ;;  %v11273_v22 = vld [vmem:[%s14756_s17 + $0x20] ss:$8 sps:$4 sm:$0xff]  }
 0xfc5   : > { %9449 = vmatprep.mubr.msk.bf16.mxu0 %vm1654_vm5, %v7881_v46  ;;  %v11270_v46 = vld [vmem:[%s14756_s17 + $0x10] ss:$8 sps:$4 sm:$0xff]  }
 0xfc6   : > { %v7820_v42 = vpop.permute.xlu0 %7819 }
 0xfc7   : > { %v7799_v7 = vpop.permute.xlu1 %7798 }
 0xfc8   : > { %7808 = vst.msk [vmem:[#allocation3 + $0x78] sm:$0xff] %vm7804_vm7, %v7799_v7  ;;  %v11276_v7 = vld [vmem:[%s14756_s17 + $0x30] ss:$8 sps:$4 sm:$0xff]  }
 0xfc9   : > { %7829 = vst.msk [vmem:[#allocation3 + $0x78] sm:$0xff] %vm7825_vm8, %v7820_v42  ;;  %v11278_v42 = vld [vmem:[%s14756_s17 + $0x34] ss:$8 sps:$4 sm:$0xff]  }
 0xfca   : > { %v7862_v52 = vpop.permute.xlu0 %7861 }
 0xfcb   : > { %v7841_v21 = vpop.permute.xlu1 %7840  ;;  %v7880_v5 = vld [vmem:[#allocation3 + $0x50] sm:$0xff] }
 0xfcc   : > { %7850 = vst.msk [vmem:[#allocation3 + $0x78] sm:$0xff] %vm7846_vm9, %v7841_v21  ;;  %8065 = vmatmul.mubr.bf16.gmra.mrb[92].mxu0 %v7880_v5  ;;  %v11281_v21 = vld [vmem:[%s14756_s17 + $0x44] ss:$8 sps:$4 sm:$0xff]   ;;  %v11279_v5 = vld [vmem:[%s14756_s17 + $0x40] ss:$8 sps:$4 sm:$0xff]  }
 0xfcd   : > { %7871 = vst.msk [vmem:[#allocation3 + $0x78] sm:$0xff] %vm7867_vm10, %v7862_v52  ;;  %9450 = vmatprep.mubr.msk.bf16.mxu0 %vm1654_vm5, %v7883_v26  ;;  %v11284_v52 = vld [vmem:[%s14756_s17 + $0x54] ss:$8 sps:$4 sm:$0xff]   ;;  %v11282_v26 = vld [vmem:[%s14756_s17 + $0x50] ss:$8 sps:$4 sm:$0xff]   ;;  %vm8223_vm5 = vcmask 1043968  }
 0xfd4   : > { %v7882_v45 = vld [vmem:[#allocation3 + $0x78] sm:$0xff] }
 0xfd5   : > { %8073 = vmatmul.mubr.bf16.gmra.mrb[96].mxu0 %v7882_v45  ;;  %v11287_v45 = vld [vmem:[%s14756_s17 + $0x64] ss:$8 sps:$4 sm:$0xff]  }
 0xfd6   : > { %10482 = vmatprep.mubr.msk.bf16.mxu0 %vm11544_vm11, %v11543_v48 }
 0xfdb   : > { %v7918_v35 = vpop.permute.xlu0 %7917 }
 0xfdc   : > { %v7913_v15 = vpop.permute.xlu1 %7912 }
 0xfdf   : > { %v7928_v27 = vpop.permute.xlu0 %7927 }
 0xfe0   : > { %v7923_v20 = vpop.permute.xlu1 %7922 }
 0xfe3   : > { %v7938_v49 = vpop.permute.xlu0 %7937 }
 0xfe4   : > { %v7933_v55 = vpop.permute.xlu1 %7932 }
 0xfe7   : > { %v7948_v4 = vpop.permute.xlu0 %7947 }
 0xfe8   : > { %v7943_v31 = vpop.permute.xlu1 %7942 }
0x108f   : > { %v8050_v16 = vpop.f32.mrb[84].mxu0 }
0x1090   : > { %v8051_v37 = vadd.f32 %v8050_v16, %v7913_v15  ;;  %v8052_v23 = vpop.f32.mrb[85].mxu0  ;;  %v11290_v15 = vld [vmem:[%s14756_s17 + $0x74] ss:$8 sps:$4 sm:$0xff]   ;;  %v11288_v16 = vld [vmem:[%s14756_s17 + $0x70] ss:$8 sps:$4 sm:$0xff]  }
0x1091   : > { %v8053_v19 = vpop.f32.mrb[86].mxu0  ;;  %v11291_v23 = vld [vmem:[%s14756_s17 + $0x80] ss:$8 sps:$4 sm:$0xff]  }
0x1092   : > { %v8054_v50 = vadd.f32 %v8053_v19, %v7918_v35  ;;  %v8055_v32 = vpop.f32.mrb[87].mxu0  ;;  %v8081_v17 = vmax.f32 %v8051_v37, 0.0  ;;  %v11293_v37 = vld [vmem:[%s14756_s17 + $0x84] ss:$8 sps:$4 sm:$0xff]   ;;  %v11296_v35 = vld [vmem:[%s14756_s17 + $0x94] ss:$8 sps:$4 sm:$0xff]  }
0x1093   : > { %v11294_v19 = vld [vmem:[%s14756_s17 + $0x90] ss:$8 sps:$4 sm:$0xff]   ;;  %v11297_v32 = vld [vmem:[%s14756_s17 + $0xa0] ss:$8 sps:$4 sm:$0xff]  }
0x1094   : > { %v8082_v8 = vmax.f32 %v8054_v50, 0.0  ;;  %v11299_v50 = vld [vmem:[%s14756_s17 + $0xa4] ss:$8 sps:$4 sm:$0xff]  }
0x1096   : > { %v8089_v10 = vpack.c.bf16 %v8082_v8, %v8081_v17  ;;  %v11302_v17 = vld [vmem:[%s14756_s17 + $0xb4] ss:$8 sps:$4 sm:$0xff]   ;;  %v11300_v8 = vld [vmem:[%s14756_s17 + $0xb0] ss:$8 sps:$4 sm:$0xff]  }
0x1097   : > { %v8058_v1 = vpop.f32.mrb[88].mxu0 }
0x1098   : > { %v8059_v59 = vadd.f32 %v8058_v1, %v7923_v20  ;;  %v8060_v57 = vpop.f32.mrb[89].mxu0  ;;  %10475 = vmatpush3.bf16.msra.mxu0 %v8089_v10  ;;  %v11305_v10 = vld [vmem:[%s14756_s17 + $0xc4] ss:$8 sps:$4 sm:$0xff]   ;;  %v11303_v20 = vld [vmem:[%s14756_s17 + $0xc0] ss:$8 sps:$4 sm:$0xff]  }
0x1099   : > { %v8061_v6 = vpop.f32.mrb[90].mxu0  ;;  %10476 = vmatprep.subr.bf16.mxu0 %v11543_v48  ;;  %v11308_v1 = vld [vmem:[%s14756_s17 + $0xd4] ss:$8 sps:$4 sm:$0xff]  }
0x109a   : > { %v8062_v61 = vadd.f32 %v8061_v6, %v7928_v27  ;;  %v8063_v0 = vpop.f32.mrb[91].mxu0  ;;  %v8083_v36 = vmax.f32 %v8059_v59, 0.0  ;;  %v11306_v59 = vld [vmem:[%s14756_s17 + $0xd0] ss:$8 sps:$4 sm:$0xff]   ;;  %v11311_v6 = vld [vmem:[%s14756_s17 + $0xe4] ss:$8 sps:$4 sm:$0xff]  }
0x109b   : > { %v11309_v0 = vld [vmem:[%s14756_s17 + $0xe0] ss:$8 sps:$4 sm:$0xff]  }
0x109c   : > { %v8084_v60 = vmax.f32 %v8062_v61, 0.0 }
0x109e   : > { %v8090_v38 = vpack.c.bf16 %v8084_v60, %v8083_v36 }
0x109f   : > { %v8066_v11 = vpop.f32.mrb[92].mxu0 }
0x10a0   : > { %v8067_v9 = vadd.f32 %v8066_v11, %v7933_v55  ;;  %v8068_v12 = vpop.f32.mrb[93].mxu0  ;;  %10477 = vmatpush3.bf16.msra.mxu0 %v8090_v38  ;;  %v11314_v38 = vld [vmem:[%s14756_s17 + $0xf4] ss:$8 sps:$4 sm:$0xff]   ;;  %v11312_v55 = vld [vmem:[%s14756_s17 + $0xf0] ss:$8 sps:$4 sm:$0xff]  }
0x10a1   : > { %v8069_v2 = vpop.f32.mrb[94].mxu0  ;;  %10478 = vmatprep.subr.bf16.mxu0 %v11543_v48 }
0x10a2   : > { %v8070_v18 = vadd.f32 %v8069_v2, %v7938_v49  ;;  %v8071_v25 = vpop.f32.mrb[95].mxu0  ;;  %v8085_v29 = vmax.f32 %v8067_v9, 0.0  ;;  %v11317_v49 = vld [vmem:[%s14756_s17 + $0x104] ss:$8 sps:$4 sm:$0xff]  }
0x10a4   : > { %v8086_v58 = vmax.f32 %v8070_v18, 0.0 }
0x10a6   : > { %v8091_v40 = vpack.c.bf16 %v8086_v58, %v8085_v29 }
0x10a8   : > { %v8074_v28 = vpop.f32.mrb[96].mxu0  ;;  %10479 = vmatpush3.bf16.msra.mxu0 %v8091_v40 }
0x10a9   : > { %v8075_v47 = vadd.f32 %v8074_v28, %v7943_v31  ;;  %v8076_v14 = vpop.f32.mrb[97].mxu0  ;;  %10480 = vmatprep.subr.bf16.mxu0 %v11543_v48 }
0x10aa   : > { %v8077_v43 = vpop.f32.mrb[98].mxu0 }
0x10ab   : > { %v8078_v34 = vadd.f32 %v8077_v43, %v7948_v4  ;;  %v8079_v41 = vpop.f32.mrb[99].mxu0  ;;  %v8087_v39 = vmax.f32 %v8075_v47, 0.0 }
0x10ad   : > { %v8088_v30 = vmax.f32 %v8078_v34, 0.0 }
0x10af   : > { %v8092_v53 = vpack.c.bf16 %v8088_v30, %v8087_v39 }
0x10b1   : > { %10481 = vmatpush3.bf16.msra.mxu0 %v8092_v53  ;;  %v8324_v53 = vld [vmem:[%s14757_s3] sm:$0xff] }
0x10b2   : > { %8693 = vmatprep.subr.bf16.mxu0 %v11269_v62 }
0x10b4   : > { %10483 = vmatmul.mubr.msk.bf16.vlgmr.msra.gmra.mrb[100].mxu0 %vm1560_vm4, %v11262_v44 }
0x10b5   : > { %10486 = vmatprep.mubr.msk.bf16.mxu0 %vm11544_vm11, %v11543_v48  ;;  %8694 = vmatpush1.bf16.msra.mxu0 %v11267_v63 }
0x10b6   : > { %8695 = vmatprep.subr.bf16.mxu0 %v11272_v13  ;;  %v11315_v13 = vld [vmem:[%s14756_s17 + $0x100] ss:$8 sps:$4 sm:$0xff]  }
0x10b9   : > { %8696 = vmatpush1.bf16.msra.mxu0 %v11270_v46 }
0x10ba   : > { %8697 = vmatprep.subr.bf16.mxu0 %v11275_v3  ;;  %v11320_v3 = vld [vmem:[%s14756_s17 + $0x114] ss:$8 sps:$4 sm:$0xff]  }
0x10bc   : > { %10487 = vmatmul.mubr.msk.bf16.gmra.mrb[104].mxu0 %vm1560_vm4, %v11263_v24 }
0x10bd   : > { %10490 = vmatprep.mubr.msk.bf16.mxu0 %vm11544_vm11, %v11543_v48  ;;  %8698 = vmatpush1.bf16.msra.mxu0 %v11273_v22 }
0x10be   : > { %8699 = vmatprep.subr.bf16.mxu0 %v11278_v42 }
0x10c1   : > { %8700 = vmatpush1.bf16.msra.mxu0 %v11276_v7  ;;  %v11318_v7 = vld [vmem:[%s14756_s17 + $0x110] ss:$8 sps:$4 sm:$0xff]  }
0x10c2   : > { %8701 = vmatprep.subr.bf16.mxu0 %v11281_v21  ;;  %v11323_v21 = vld [vmem:[%s14756_s17 + $0x124] ss:$8 sps:$4 sm:$0xff]  }
0x10c4   : > { %10491 = vmatmul.mubr.msk.bf16.gmra.mrb[108].mxu0 %vm1560_vm4, %v11264_v56 }
0x10c5   : > { %10494 = vmatprep.mubr.msk.bf16.mxu0 %vm11544_vm11, %v11543_v48  ;;  %8702 = vmatpush1.bf16.msra.mxu0 %v11279_v5  ;;  %v11321_v5 = vld [vmem:[%s14756_s17 + $0x120] ss:$8 sps:$4 sm:$0xff]  }
0x10c6   : > { %8703 = vmatprep.subr.bf16.mxu0 %v11284_v52  ;;  %v11326_v52 = vld [vmem:[%s14756_s17 + $0x134] ss:$8 sps:$4 sm:$0xff]  }
0x10c9   : > { %8704 = vmatpush1.bf16.msra.mxu0 %v11282_v26 }
0x10ca   : > { %8705 = vmatprep.subr.bf16.mxu0 %v11287_v45  ;;  %v11324_v45 = vld [vmem:[%s14756_s17 + $0x130] ss:$8 sps:$4 sm:$0xff]  }
0x10cc   : > { %10495 = vmatmul.mubr.msk.bf16.gmra.mrb[112].mxu0 %vm1560_vm4, %v11265_v33 }
0x10cd   : > { %10498 = vmatprep.mubr.msk.bf16.mxu0 %vm11544_vm11, %v11543_v48  ;;  %v11285_v48 = vld [vmem:[%s14756_s17 + $0x60] ss:$8 sps:$4 sm:$0xff]  }
0x10ce   : > { %8706 = vmatpush1.bf16.msra.mxu0 %v11285_v48  ;;  %v11329_v48 = vld [vmem:[%s14756_s17 + $0x144] ss:$8 sps:$4 sm:$0xff]  }
0x10cf   : > { %8707 = vmatprep.subr.bf16.mxu0 %v11290_v15  ;;  %v11327_v15 = vld [vmem:[%s14756_s17 + $0x140] ss:$8 sps:$4 sm:$0xff]  }
0x10d2   : > { %8708 = vmatpush1.bf16.msra.mxu0 %v11288_v16  ;;  %v11332_v16 = vld [vmem:[%s14756_s17 + $0x154] ss:$8 sps:$4 sm:$0xff]  }
0x10d3   : > { %8709 = vmatprep.subr.bf16.mxu0 %v11293_v37 }
0x10d4   : > { %10499 = vmatmul.mubr.msk.bf16.gmra.mrb[116].mxu0 %vm1560_vm4, %v11266_v54 }
0x10d6   : > { %8710 = vmatpush1.bf16.msra.mxu0 %v11291_v23  ;;  %v11330_v23 = vld [vmem:[%s14756_s17 + $0x150] ss:$8 sps:$4 sm:$0xff]  }
0x10d7   : > { %8711 = vmatprep.subr.bf16.mxu0 %v11296_v35  ;;  %v11335_v35 = vld [vmem:[%s14756_s17 + $0x164] ss:$8 sps:$4 sm:$0xff]  }
0x10da   : > { %8712 = vmatpush1.bf16.msra.mxu0 %v11294_v19  ;;  %v11333_v19 = vld [vmem:[%s14756_s17 + $0x160] ss:$8 sps:$4 sm:$0xff]  }
0x10db   : > { %8713 = vmatprep.subr.bf16.mxu0 %v11299_v50  ;;  %v11338_v50 = vld [vmem:[%s14756_s17 + $0x174] ss:$8 sps:$4 sm:$0xff]  }
0x10de   : > { %8714 = vmatpush1.bf16.msra.mxu0 %v11297_v32  ;;  %v11336_v32 = vld [vmem:[%s14756_s17 + $0x170] ss:$8 sps:$4 sm:$0xff]  }
0x10df   : > { %8715 = vmatprep.subr.bf16.mxu0 %v11302_v17  ;;  %v11341_v17 = vld [vmem:[%s14756_s17 + $0x184] ss:$8 sps:$4 sm:$0xff]  }
0x10e2   : > { %8716 = vmatpush1.bf16.msra.mxu0 %v11300_v8  ;;  %v11339_v8 = vld [vmem:[%s14756_s17 + $0x180] ss:$8 sps:$4 sm:$0xff]  }
0x10e3   : > { %8717 = vmatprep.subr.bf16.mxu0 %v11305_v10  ;;  %v11344_v10 = vld [vmem:[%s14756_s17 + $0x194] ss:$8 sps:$4 sm:$0xff]  }
0x10e6   : > { %8718 = vmatpush1.bf16.msra.mxu0 %v11303_v20  ;;  %v11342_v20 = vld [vmem:[%s14756_s17 + $0x190] ss:$8 sps:$4 sm:$0xff]  }
0x10e7   : > { %8719 = vmatprep.subr.bf16.mxu0 %v11308_v1  ;;  %v11347_v1 = vld [vmem:[%s14756_s17 + $0x1a4] ss:$8 sps:$4 sm:$0xff]  }
0x10ea   : > { %8720 = vmatpush1.bf16.msra.mxu0 %v11306_v59  ;;  %v11345_v59 = vld [vmem:[%s14756_s17 + $0x1a0] ss:$8 sps:$4 sm:$0xff]  }
0x10eb   : > { %8721 = vmatprep.subr.bf16.mxu0 %v11311_v6  ;;  %v11353_v6 = vld [vmem:[%s14756_s17 + $0x1c4] ss:$8 sps:$4 sm:$0xff]  }
0x10ee   : > { %8722 = vmatpush1.bf16.msra.mxu0 %v11309_v0  ;;  %v11356_v0 = vld [vmem:[%s14756_s17 + $0x1d4] ss:$8 sps:$4 sm:$0xff]  }
0x10ef   : > { %8723 = vmatprep.subr.bf16.mxu0 %v11314_v38  ;;  %v11357_v38 = vld [vmem:[%s14756_s17 + $0x1e0] ss:$8 sps:$4 sm:$0xff]  }
0x10f2   : > { %8724 = vmatpush1.bf16.msra.mxu0 %v11312_v55  ;;  %v11362_v55 = vld [vmem:[%s14756_s17 + $0x1f4] ss:$8 sps:$4 sm:$0xff]  }
0x10f3   : > { %8734 = vmatprep.subr.bf16.mxu0 %v11317_v49  ;;  %v11368_v49 = vld [vmem:[%s14756_s17 + $0x214] ss:$8 sps:$4 sm:$0xff]  }
0x1187   : > { %v8174_v57 = vpop.f32.mrb[100].mxu0 }
0x1188   : > { %v10484_v27 = vpop.f32.mrb[101].mxu0 }
0x1189   : > { %v8177_v61 = vpop.f32.mrb[102].mxu0  ;;  %v11348_v27 = vld [vmem:[%s14756_s17 + $0x1b0] ss:$8 sps:$4 sm:$0xff]  }
0x118a   : > { %v8212_v36 = vpack.c.bf16 %v8177_v61, %v8174_v57  ;;  %v10485_v60 = vpop.f32.mrb[103].mxu0  ;;  %v11350_v57 = vld [vmem:[%s14756_s17 + $0x1b4] ss:$8 sps:$4 sm:$0xff]   ;;  %v11351_v61 = vld [vmem:[%s14756_s17 + $0x1c0] ss:$8 sps:$4 sm:$0xff]  }
0x118b   : > { %v11359_v60 = vld [vmem:[%s14756_s17 + $0x1e4] ss:$8 sps:$4 sm:$0xff]  }
0x118c   : > { %v8219_v11 = vrot.slane %v8212_v36, 4  ;;  %8217 = vst.msk [vmem:[#allocation3] sm:$0xf] %vm1306_vm0, %v8212_v36  ;;  %v11354_v36 = vld [vmem:[%s14756_s17 + $0x1d0] ss:$8 sps:$4 sm:$0xff]  }
0x118e   : > { %8220 = vrot.lane.b32.xlu0 %v8219_v11, %s11523_s20  ;;  %v11360_v11 = vld [vmem:[%s14756_s17 + $0x1f0] ss:$8 sps:$4 sm:$0xff]  }
0x118f   : > { %v8182_v9 = vpop.f32.mrb[104].mxu0 }
0x1190   : > { %v10488_v12 = vpop.f32.mrb[105].mxu0 }
0x1191   : > { %v8185_v2 = vpop.f32.mrb[106].mxu0  ;;  %v11363_v12 = vld [vmem:[%s14756_s17 + $0x200] ss:$8 sps:$4 sm:$0xff]  }
0x1192   : > { %v8213_v18 = vpack.c.bf16 %v8185_v2, %v8182_v9  ;;  %v10489_v25 = vpop.f32.mrb[107].mxu0  ;;  %v11365_v9 = vld [vmem:[%s14756_s17 + $0x204] ss:$8 sps:$4 sm:$0xff]  }
0x1193   : > { %v11371_v25 = vld [vmem:[%s14756_s17 + $0x224] ss:$8 sps:$4 sm:$0xff]  }
0x1194   : > { %v8227_v29 = vrot.slane %v8213_v18, 4  ;;  %8225 = vst.msk [vmem:[#allocation3 + $0x8] sm:$0xf] %vm1306_vm0, %v8213_v18  ;;  %v11366_v18 = vld [vmem:[%s14756_s17 + $0x210] ss:$8 sps:$4 sm:$0xff]  }
0x1196   : > { %8228 = vrot.lane.b32.xlu1 %v8227_v29, %s11523_s20  ;;  %v11369_v29 = vld [vmem:[%s14756_s17 + $0x220] ss:$8 sps:$4 sm:$0xff]  }
0x1197   : > { %v8190_v58 = vpop.f32.mrb[108].mxu0 }
0x1198   : > { %v10492_v40 = vpop.f32.mrb[109].mxu0 }
0x1199   : > { %v8193_v31 = vpop.f32.mrb[110].mxu0 }
0x119a   : > { %v8214_v28 = vpack.c.bf16 %v8193_v31, %v8190_v58  ;;  %v10493_v47 = vpop.f32.mrb[111].mxu0  ;;  %v11374_v58 = vld [vmem:[%s14756_s17 + $0x234] ss:$8 sps:$4 sm:$0xff]  }
0x119c   : > { %8232 = vst.msk [vmem:[#allocation3 + $0x10] sm:$0xf] %vm1306_vm0, %v8214_v28  ;;  %v8234_v14 = vrot.slane %v8214_v28, 4 }
0x119e   : > { %8235 = vrot.lane.b32.xlu0 %v8234_v14, %s11523_s20 }
0x119f   : > { %v8198_v4 = vpop.f32.mrb[112].mxu0 }
0x11a0   : > { %v10496_v43 = vpop.f32.mrb[113].mxu0 }
0x11a1   : > { %v8201_v34 = vpop.f32.mrb[114].mxu0 }
0x11a2   : > { %v8215_v41 = vpack.c.bf16 %v8201_v34, %v8198_v4  ;;  %v10497_v39 = vpop.f32.mrb[115].mxu0 }
0x11a4   : > { %8239 = vst.msk [vmem:[#allocation3 + $0x18] sm:$0xf] %vm1306_vm0, %v8215_v41  ;;  %v8241_v30 = vrot.slane %v8215_v41, 4 }
0x11a6   : > { %8242 = vrot.lane.b32.xlu1 %v8241_v30, %s11523_s20  ;;  %s9539_s20 = sshll.u32 %s14761_s21, 3 }
0x11a7   : > { %v8206_v44 = vpop.f32.mrb[116].mxu0  ;;  %s661_s29 = scalar_lea.vmem %s14758_s23, %s9539_s20 }
0x11a8   : > { %v8216_v24 = vpack.c.bf16 %v8206_v44, %v8206_v44  ;;  %v10500_v56 = vpop.f32.mrb[117].mxu0 }
0x11a9   : > { %v8209_v33 = vpop.f32.mrb[118].mxu0 }
0x11aa   : > { %8327 = vperm.xlu1 %10606, %v8324_v53   ;;  %8246 = vst.msk [vmem:[#allocation3 + $0x20] sm:$0xf] %vm1306_vm0, %v8216_v24  ;;  %v10501_v54 = vpop.f32.mrb[119].mxu0 }
0x11b1   : > { %v8251_v40 = vld [vmem:[#allocation3 + $0x20] sm:$0xf] }
0x1200   : > { %v8221_v63 = vpop.permute.xlu0 %8220 }
0x1201   : > { %8224 = vst.msk [vmem:[#allocation3] sm:$0xf] %vm8223_vm5, %v8221_v63 }
0x1208   : > { %v8229_v62 = vpop.permute.xlu1 %8228  ;;  %v8247_v42 = vld [vmem:[#allocation3] sm:$0xf] }
0x1209   : > { %8231 = vst.msk [vmem:[#allocation3 + $0x8] sm:$0xf] %vm8223_vm5, %v8229_v62 }
0x1210   : > { %v8248_v46 = vld [vmem:[#allocation3 + $0x8] sm:$0xf]  ;;  %v8236_v22 = vpop.permute.xlu0 %8235 }
0x1211   : > { %8725 = vmatprep.mubr.bf16.mxu0 %v8248_v46  ;;  %8238 = vst.msk [vmem:[#allocation3 + $0x10] sm:$0xf] %vm8223_vm5, %v8236_v22 }
0x1212   : > { %8726 = vmatmul.mubr.bf16.vlgmr.msra.gmra.mrb[120].mxu0 %v8247_v42 }
0x1213   : > { %8735 = vmatpush1.bf16.msra.mxu0 %v11315_v13 }
0x1214   : > { %8736 = vmatprep.subr.bf16.mxu0 %v11320_v3 }
0x1217   : > { %8737 = vmatpush1.bf16.msra.mxu0 %v11318_v7 }
0x1218   : > { %8738 = vmatprep.subr.bf16.mxu0 %v11323_v21  ;;  %v8243_v26 = vpop.permute.xlu1 %8242  ;;  %v8249_v2 = vld [vmem:[#allocation3 + $0x10] sm:$0xf] }
0x1219   : > { %8245 = vst.msk [vmem:[#allocation3 + $0x18] sm:$0xf] %vm8223_vm5, %v8243_v26 }
0x121b   : > { %8739 = vmatpush1.bf16.msra.mxu0 %v11321_v5 }
0x121c   : > { %8740 = vmatprep.subr.bf16.mxu0 %v11326_v52 }
0x121f   : > { %8741 = vmatpush1.bf16.msra.mxu0 %v11324_v45 }
0x1220   : > { %8742 = vmatprep.subr.bf16.mxu0 %v11329_v48  ;;  %v8250_v37 = vld [vmem:[#allocation3 + $0x18] sm:$0xf] }
0x1221   : > { %8766 = vmatprep.mubr.bf16.mxu0 %v8250_v37 }
0x1223   : > { %8743 = vmatpush1.bf16.msra.mxu0 %v11327_v15 }
0x1224   : > { %8744 = vmatprep.subr.bf16.mxu0 %v11332_v16 }
0x1227   : > { %8745 = vmatpush1.bf16.msra.mxu0 %v11330_v23 }
0x1228   : > { %8746 = vmatprep.subr.bf16.mxu0 %v11335_v35 }
0x1229   : > { %v8328_v31 = vpop.permute.xlu1 %8327 }
0x122b   : > { %8747 = vmatpush1.bf16.msra.mxu0 %v11333_v19 }
0x122c   : > { %8748 = vmatprep.subr.bf16.mxu0 %v11338_v50 }
0x122f   : > { %8749 = vmatpush1.bf16.msra.mxu0 %v11336_v32 }
0x1230   : > { %8750 = vmatprep.subr.bf16.mxu0 %v11341_v17 }
0x1233   : > { %8751 = vmatpush1.bf16.msra.mxu0 %v11339_v8 }
0x1234   : > { %8752 = vmatprep.subr.bf16.mxu0 %v11344_v10 }
0x1237   : > { %8753 = vmatpush1.bf16.msra.mxu0 %v11342_v20 }
0x1238   : > { %8754 = vmatprep.subr.bf16.mxu0 %v11347_v1 }
0x123b   : > { %8755 = vmatpush1.bf16.msra.mxu0 %v11345_v59 }
0x123c   : > { %8756 = vmatprep.subr.bf16.mxu0 %v11350_v57 }
0x123f   : > { %8757 = vmatpush1.bf16.msra.mxu0 %v11348_v27 }
0x1240   : > { %8758 = vmatprep.subr.bf16.mxu0 %v11353_v6 }
0x1243   : > { %8759 = vmatpush1.bf16.msra.mxu0 %v11351_v61 }
0x1244   : > { %8760 = vmatprep.subr.bf16.mxu0 %v11356_v0 }
0x1247   : > { %8761 = vmatpush1.bf16.msra.mxu0 %v11354_v36 }
0x1248   : > { %8762 = vmatprep.subr.bf16.mxu0 %v11359_v60 }
0x124b   : > { %8763 = vmatpush1.bf16.msra.mxu0 %v11357_v38 }
0x124c   : > { %8764 = vmatprep.subr.bf16.mxu0 %v11362_v55 }
0x124f   : > { %8765 = vmatpush1.bf16.msra.mxu0 %v11360_v11 }
0x1250   : > { %8775 = vmatprep.subr.bf16.mxu0 %v11365_v9 }
0x1252   : > { %8767 = vmatmul.mubr.bf16.vlgmr.msra.gmra.mrb[120].mxu0 %v8249_v2 }
0x1253   : > { %8776 = vmatpush1.bf16.msra.mxu0 %v11363_v12  ;;  %8807 = vmatprep.mubr.bf16.mxu0 %v14752_v51  ;;  %v11372_v51 = vld [vmem:[%s14756_s17 + $0x230] ss:$8 sps:$4 sm:$0xff]  }
0x1254   : > { %8777 = vmatprep.subr.bf16.mxu0 %v11368_v49 }
0x1257   : > { %8778 = vmatpush1.bf16.msra.mxu0 %v11366_v18 }
0x1258   : > { %8779 = vmatprep.subr.bf16.mxu0 %v11371_v25 }
0x125b   : > { %8780 = vmatpush1.bf16.msra.mxu0 %v11369_v29 }
0x125c   : > { %8781 = vmatprep.subr.bf16.mxu0 %v11374_v58 }
0x125f   : > { %8782 = vmatpush1.bf16.msra.mxu0 %v11372_v51 }
0x1262   : > { %9533 = vmatmul.mubr.msk.bf16.vlgmr.msra.gmra.mrb[120].mxu0 %vm1560_vm4, %v8251_v40 }
0x1335   : > { %v8809_v28 = vpop.f32.mrb[120].mxu0 }
0x1336   : > { %v10518_v47 = vadd.f32 %v8809_v28, %v8328_v31  ;;  %v8811_v14 = vpop.f32.mrb[121].mxu0 }
0x1337   : > { %v10519_v4 = vadd.f32 %v8811_v14, %v8328_v31  ;;  %v8813_v43 = vpop.f32.mrb[122].mxu0 }
0x1338   : > { %v9534_v34 = vmul.f32 -1.442695, %v10518_v47  ;;  %v8814_v41 = vpop.f32.mrb[123].mxu0 }
0x1339   : > { %v9535_v39 = vmul.f32 -1.442695, %v10519_v4 }
0x133a   : > { %11375 = vpow2.f32 %v9534_v34 }
0x133b   : > { %11377 = vpow2.f32 %v9535_v39 }
0x1344   : > { %v11376_v30 = vpop.eup %11375 }
0x1345   : > { %v11378_v53 = vpop.eup %11377  ;;  %v8822_v44 = vadd.f32 1.0, %v11376_v30 }
0x1346   : > { %v8823_v24 = vadd.f32 1.0, %v11378_v53 }
0x1347   : > { %11379 = vrcp.f32 %v8822_v44 }
0x1348   : > { %11381 = vrcp.f32 %v8823_v24 }
0x1351   : > { %v11380_v56 = vpop.eup %11379 }
0x1352   : > { %v11382_v33 = vpop.eup %11381 }
0x1353   : > { %v8830_v54 = vcombine.low %v11380_v56, %v11382_v33 }
0x1355   : > { %8832 = vst [vmem:[%s661_s29] sm:$0x77] %v8830_v54 }
0x1356 PF: > { %s14759_s15 = sld [smem:[#allocation14_spill]] }
0x135c   : > { %s32_s0 = sadd.s32 1, %s14759_s15  }
0x135d   : > { %p29_p1 = scmp.ge.s32.totalorder %s32_s0, 4  }
0x135f   :  { %31 = sbr.rel (!%p29_p1) target bundleno = 13 (0xd), region = 143 }
0x1366   :  { %8854 = vsyncpa [#allocation5], 1 }
0x1367   :  { %8856 = vsyncpa [#allocation5 + $0x1], 1 }
0x1368   :  { %8857 = vsyncpa [#allocation7], 1 }
0x1369   :  { %8858 = vsyncpa [#allocation10], 1 }

</bundles_post_ra>
